<compile_context>
chip_gen: v7x
topology: tpu7x:2x2x1
jax: 0.10.0
libtpu: 0.0.40
codegen_flags: <defaults>
</compile_context>

<pallas_src>
import functools

import jax
import jax.numpy as jnp
from jax.experimental import pallas as pl
from jax.experimental.pallas import tpu as pltpu

EPS = 1e-5
ACT_DTYPE = jnp.bfloat16   # activation / weight dtype fed to the MXU


# ----------------------------------------------------------------------------
# Pallas kernels
# ----------------------------------------------------------------------------
def _conv3x3_s1_body(x_ref, w_ref, b_ref):
    """3x3/stride-1 conv core: 3 row-tap matmuls over a width-unrolled padded input.

    x_ref : (1, H+2, W, 3*Cin) bf16, x_ref[0, r, wo, kw*Cin + ci] == x_pad[r, wo+kw, ci]
    w_ref : (3, 3*Cin, Cout)   bf16 (BN scale folded in), one slab per kh
    b_ref : (1, Cout)          f32 folded-BN bias
    returns f32 (H*W, Cout) accumulator (bias already added).
    """
    _, hpad, w, k3 = x_ref.shape
    h = hpad - 2
    cout = w_ref.shape[-1]
    x = x_ref[0]          # (H+2, W, 3*Cin), stays in VMEM
    wts = w_ref[...]      # (3, 3*Cin, Cout)
    acc = jnp.zeros((h * w, cout), jnp.float32)
    for kh in range(3):   # 3 row taps, each a (H*W, 3*Cin) @ (3*Cin, Cout) matmul
        xs = x[kh:kh + h, :, :].reshape(h * w, k3)
        acc = acc + jnp.dot(xs, wts[kh], preferred_element_type=jnp.float32)
    return acc + b_ref[...]


def _conv3x3_s1_kernel(x_ref, w_ref, b_ref, *rest, relu, has_residual):
    """Fused 3x3/s1 conv (+BN bias) (+residual) (+ReLU) for ONE image -> feature map."""
    if has_residual:
        r_ref, o_ref = rest
    else:
        (o_ref,) = rest
    acc = _conv3x3_s1_body(x_ref, w_ref, b_ref)
    if has_residual:
        acc = acc + r_ref[...].astype(jnp.float32)
    if relu:
        acc = jnp.maximum(acc, 0.0)
    o_ref[...] = acc.astype(o_ref.dtype)


def _conv3x3_s1_res_tail_kernel(x_ref, w_ref, b_ref, r_ref, s1_ref, b1_ref,
                                fw_ref, fb_ref, o_ref):
    """Last block's conv2: conv+BN bias + residual + ReLU, then the network tail
    (bn1 -> ReLU -> global 8x8 average pool -> fc) entirely in VMEM -> logits."""
    acc = _conv3x3_s1_body(x_ref, w_ref, b_ref)                     # (H*W, C) f32
    acc = jnp.maximum(acc + r_ref[...].astype(jnp.float32), 0.0)    # block output
    hact = jnp.maximum(acc * s1_ref[...] + b1_ref[...], 0.0)        # bn1 + ReLU
    pooled = jnp.mean(hact, axis=0, keepdims=True)                  # (1, C) global pool
    logits = jnp.dot(pooled, fw_ref[...],
                     preferred_element_type=jnp.float32) + fb_ref[...]
    o_ref[...] = logits.reshape(o_ref.shape)


def _ds_front_kernel(p_ref, xs_ref, w1_ref, b1_ref, ws_ref, bs_ref, o1_ref, os_ref):
    """Downsample-block front: stride-2 3x3 conv (+BN bias, ReLU) and 1x1 stride-2
    shortcut conv (+BN bias), fused as two matmuls over the same row tile."""
    a1 = jnp.dot(p_ref[...], w1_ref[...], preferred_element_type=jnp.float32)
    o1_ref[...] = jnp.maximum(a1 + b1_ref[...], 0.0).astype(o1_ref.dtype)
    a2 = jnp.dot(xs_ref[...], ws_ref[...], preferred_element_type=jnp.float32)
    os_ref[...] = (a2 + bs_ref[...]).astype(os_ref.dtype)


def _matmul_bias_kernel(x_ref, w_ref, b_ref, o_ref, *, relu):
    """out = (x @ w) + bias, optional ReLU (generic fallback path)."""
    acc = jnp.dot(x_ref[...], w_ref[...], preferred_element_type=jnp.float32)
    acc = acc + b_ref[...]
    if relu:
        acc = jnp.maximum(acc, 0.0)
    o_ref[...] = acc.astype(o_ref.dtype)


# ----------------------------------------------------------------------------
# Wrappers around pallas_call
# ----------------------------------------------------------------------------
def conv3x3_s1(x_nhwc, w_hwio, bias, *, relu, residual=None, tail=None):
    """Fused 3x3/stride-1 conv + folded-BN bias (+ residual) (+ ReLU) (+ network tail)."""
    n, h, w, cin = x_nhwc.shape
    cout = w_hwio.shape[-1]
    hw = h * w
    # Width-unrolled padded input (3x the input bytes -- tiny), built by XLA.
    xp = jnp.pad(x_nhwc, ((0, 0), (1, 1), (1, 1), (0, 0)))
    xw = jnp.concatenate([xp[:, :, kw:kw + w, :] for kw in range(3)], axis=-1)
    w3 = w_hwio.reshape(3, 3 * cin, cout)    # (kh, kw*cin, cout)

    in_specs = [
        pl.BlockSpec((1, h + 2, w, 3 * cin), lambda i: (i, 0, 0, 0)),
        pl.BlockSpec((3, 3 * cin, cout), lambda i: (0, 0, 0)),
        pl.BlockSpec((1, cout), lambda i: (0, 0)),
    ]
    args = [xw, w3, bias.reshape(1, -1)]
    if residual is not None:
        in_specs.append(pl.BlockSpec((hw, cout), lambda i: (i, 0)))
        args.append(residual.reshape(n * hw, cout))

    if tail is None:
        out = pl.pallas_call(
            functools.partial(_conv3x3_s1_kernel, relu=relu,
                              has_residual=residual is not None),
            out_shape=jax.ShapeDtypeStruct((n * hw, cout), ACT_DTYPE),
            grid=(n,),   # one image per step -> both TCs busy on v7x megacore
            in_specs=in_specs,
            out_specs=pl.BlockSpec((hw, cout), lambda i: (i, 0)),
            compiler_params=pltpu.CompilerParams(dimension_semantics=("parallel",)),
        )(*args)
        return out.reshape(n, h, w, cout)

    # Fused tail: bn1 -> ReLU -> 8x8 global average pool -> fc (logits out).
    assert residual is not None and relu
    assert h == 8 and w == 8, "avg_pool2d(., 8) maps an 8x8 map to 1x1 (32x32 input)"
    ncls = tail["fc_w"].shape[-1]
    in_specs += [
        pl.BlockSpec((1, cout), lambda i: (0, 0)),
        pl.BlockSpec((1, cout), lambda i: (0, 0)),
        pl.BlockSpec((cout, ncls), lambda i: (0, 0)),
        pl.BlockSpec((1, ncls), lambda i: (0, 0)),
    ]
    args += [tail["bn1_s"].reshape(1, -1), tail["bn1_b"].reshape(1, -1),
             tail["fc_w"], tail["fc_b"].reshape(1, -1)]
    out = pl.pallas_call(
        _conv3x3_s1_res_tail_kernel,
        out_shape=jax.ShapeDtypeStruct((n, 1, ncls), jnp.float32),
        grid=(n,),
        in_specs=in_specs,
        out_specs=pl.BlockSpec((1, 1, ncls), lambda i: (i, 0, 0)),
        compiler_params=pltpu.CompilerParams(dimension_semantics=("parallel",)),
    )(*args)
    return out.reshape(n, ncls)


def downsample_front(x_nhwc, w1_hwio, b1, ws_hwio, bs):
    """Fused front of a stride-2 BasicBlock: conv1 (3x3/s2 + BN + ReLU) and the 1x1/s2
    shortcut (+ BN) computed in a single dual-output kernel."""
    n, h, w, cin = x_nhwc.shape
    cout = w1_hwio.shape[-1]
    xp = jnp.pad(x_nhwc, ((0, 0), (1, 1), (1, 1), (0, 0)))
    ho = (h - 1) // 2 + 1
    wo = (w - 1) // 2 + 1
    cols = [xp[:, kh:kh + 2 * ho:2, kw:kw + 2 * wo:2, :]
            for kh in range(3) for kw in range(3)]
    patches = jnp.concatenate(cols, axis=-1).reshape(n * ho * wo, 9 * cin)
    xs = x_nhwc[:, ::2, ::2, :].reshape(n * ho * wo, cin)

    m = n * ho * wo
    tm = m // 2 if (m % 16 == 0 and m >= 16) else m   # >=2 parallel steps, exact tiling
    out1, short = pl.pallas_call(
        _ds_front_kernel,
        out_shape=(jax.ShapeDtypeStruct((m, cout), ACT_DTYPE),
                   jax.ShapeDtypeStruct((m, cout), ACT_DTYPE)),
        grid=(m // tm,),
        in_specs=[
            pl.BlockSpec((tm, 9 * cin), lambda i: (i, 0)),
            pl.BlockSpec((tm, cin), lambda i: (i, 0)),
            pl.BlockSpec((9 * cin, cout), lambda i: (0, 0)),
            pl.BlockSpec((1, cout), lambda i: (0, 0)),
            pl.BlockSpec((cin, cout), lambda i: (0, 0)),
            pl.BlockSpec((1, cout), lambda i: (0, 0)),
        ],
        out_specs=(pl.BlockSpec((tm, cout), lambda i: (i, 0)),
                   pl.BlockSpec((tm, cout), lambda i: (i, 0))),
        compiler_params=pltpu.CompilerParams(dimension_semantics=("parallel",)),
    )(patches, xs, w1_hwio.reshape(9 * cin, cout), b1.reshape(1, -1),
      ws_hwio.reshape(cin, cout), bs.reshape(1, -1))
    return out1.reshape(n, ho, wo, cout), short.reshape(n, ho, wo, cout)


def matmul_bias(x2d, w_mat, bias, *, relu):
    """Generic fused matmul+bias(+ReLU) (fallback, e.g. stride-1 1x1 shortcuts)."""
    m, k = x2d.shape
    cout = w_mat.shape[-1]
    tm = m // 2 if (m % 16 == 0 and m >= 16) else m
    return pl.pallas_call(
        functools.partial(_matmul_bias_kernel, relu=relu),
        out_shape=jax.ShapeDtypeStruct((m, cout), ACT_DTYPE),
        grid=(m // tm,),
        in_specs=[
            pl.BlockSpec((tm, k), lambda i: (i, 0)),
            pl.BlockSpec((k, cout), lambda i: (0, 0)),
            pl.BlockSpec((1, cout), lambda i: (0, 0)),
        ],
        out_specs=pl.BlockSpec((tm, cout), lambda i: (i, 0)),
        compiler_params=pltpu.CompilerParams(dimension_semantics=("parallel",)),
    )(x2d, w_mat, bias.reshape(1, -1))


def conv1x1(x_nhwc, w_hwio, bias, *, stride, relu):
    """1x1 conv shortcut (only hit for stride-1, channel-changing blocks)."""
    n = x_nhwc.shape[0]
    xs = x_nhwc[:, ::stride, ::stride, :]
    _, ho, wo, cin = xs.shape
    cout = w_hwio.shape[-1]
    out = matmul_bias(xs.reshape(n * ho * wo, cin), w_hwio.reshape(cin, cout),
                      bias, relu=relu)
    return out.reshape(n, ho, wo, cout)


# ----------------------------------------------------------------------------
# Parameter init (deterministic, mirrors the module's __init__; BN pre-folded)
# ----------------------------------------------------------------------------
def _kaiming_conv(key, kh, kw, cin, cout):
    # kaiming_normal_, mode='fan_out', relu: std = sqrt(2 / (cout*kh*kw)); HWIO layout.
    std = (2.0 / (cout * kh * kw)) ** 0.5
    return jax.random.normal(key, (kh, kw, cin, cout), jnp.float32) * std


def _bn_fold(c):
    # eval-mode BatchNorm with gamma=1, beta=0, running_mean=0, running_var=1.
    scale = jnp.full((c,), 1.0 / (1.0 + EPS) ** 0.5, jnp.float32)
    bias = jnp.zeros((c,), jnp.float32)
    return scale, bias


def _fold_into_weight(w_hwio, scale):
    # Fold the BN per-output-channel scale into the conv weight; keep bias separate.
    return (w_hwio * scale[None, None, None, :]).astype(ACT_DTYPE)


def make_block_params(key, cin, cout, stride):
    k1, k2, k3 = jax.random.split(key, 3)
    p = {"stride": stride}
    s1, p["b1"] = _bn_fold(cout)
    p["w1"] = _fold_into_weight(_kaiming_conv(k1, 3, 3, cin, cout), s1)
    s2, p["b2"] = _bn_fold(cout)
    p["w2"] = _fold_into_weight(_kaiming_conv(k2, 3, 3, cout, cout), s2)
    if stride != 1 or cin != cout:
        ss, p["bs"] = _bn_fold(cout)
        p["ws"] = _fold_into_weight(_kaiming_conv(k3, 1, 1, cin, cout), ss)
    return p


def init_params(key, depth=10, num_classes=10, widen_factor=1):
    nCh = [16, 16 * widen_factor, 32 * widen_factor, 64 * widen_factor]
    assert (depth - 4) % 6 == 0
    n = (depth - 4) // 6
    keys = jax.random.split(key, 3 * n + 2)
    ki = iter(keys)

    params = {
        # conv1 has no BatchNorm applied to it in the reference forward.
        "conv1_w": _kaiming_conv(next(ki), 3, 3, 3, nCh[0]).astype(ACT_DTYPE),
        "conv1_b": jnp.zeros((nCh[0],), jnp.float32),
    }
    blocks = []
    strides = [1, 2, 2]
    for bi in range(3):
        layer = []
        for li in range(n):
            cin = nCh[bi] if li == 0 else nCh[bi + 1]
            layer.append(make_block_params(next(ki), cin, nCh[bi + 1],
                                           strides[bi] if li == 0 else 1))
        blocks.append(layer)
    params["blocks"] = blocks
    params["bn1_s"], params["bn1_b"] = _bn_fold(nCh[3])

    # nn.Linear default weight init (U(+-1/sqrt(fan_in))); bias zeroed by the module.
    bound = 1.0 / (nCh[3] ** 0.5)
    params["fc_w"] = jax.random.uniform(next(ki), (nCh[3], num_classes), jnp.float32,
                                        minval=-bound, maxval=bound)
    params["fc_b"] = jnp.zeros((num_classes,), jnp.float32)
    return params


# ----------------------------------------------------------------------------
# Forward
# ----------------------------------------------------------------------------
def basic_block(x, p, tail=None):
    stride = p["stride"]
    if "ws" in p:
        if stride == 1:
            out = conv3x3_s1(x, p["w1"], p["b1"], relu=True)
            short = conv1x1(x, p["ws"], p["bs"], stride=1, relu=False)
        else:
            out, short = downsample_front(x, p["w1"], p["b1"], p["ws"], p["bs"])
    else:
        out = conv3x3_s1(x, p["w1"], p["b1"], relu=True)
        short = x
    # conv2 is always 3x3/stride-1: fuse bn2, residual add, final ReLU (+ network tail
    # on the very last block).
    return conv3x3_s1(out, p["w2"], p["b2"], relu=True, residual=short, tail=tail)


def wide_resnet_forward(x_nchw, params):
    x = jnp.transpose(x_nchw, (0, 2, 3, 1)).astype(ACT_DTYPE)   # NCHW -> NHWC, bf16
    out = conv3x3_s1(x, params["conv1_w"], params["conv1_b"], relu=False)  # plain conv1
    tail = {"bn1_s": params["bn1_s"], "bn1_b": params["bn1_b"],
            "fc_w": params["fc_w"], "fc_b": params["fc_b"]}
    n_blocks = sum(len(layer) for layer in params["blocks"])
    idx = 0
    for layer in params["blocks"]:
        for p in layer:
            idx += 1
            out = basic_block(out, p, tail=tail if idx == n_blocks else None)
    return out   # (N, num_classes) f32 logits


if __name__ == "__main__":
    key = jax.random.PRNGKey(0)
    kx, kp = jax.random.split(key)

    # CIFAR-like input (avg_pool2d(., 8) implies 32x32 spatial after two stride-2 stages)
    x = jax.random.normal(kx, (2, 3, 32, 32), jnp.float32)   # NCHW, like PyTorch
    params = init_params(kp, depth=10, num_classes=10, widen_factor=1)

    fwd = jax.jit(lambda inp: wide_resnet_forward(inp, params))
    logits = fwd(x)
    jax.block_until_ready(logits)
    assert logits.shape == (2, 10) and logits.dtype == jnp.float32
    print("KERNEL_OK")
</pallas_src>

<mosaic_0001>
module attributes {stable_mosaic.version = 11 : i64} {
  func.func @_conv3x3_s1_kernel(%arg0: i32, %arg1: memref<1x34x32x9xbf16, #tpu.memory_space<vmem>>, %arg2: memref<3x9x16xbf16, #tpu.memory_space<vmem>>, %arg3: memref<1x16xf32, #tpu.memory_space<vmem>>, %arg4: memref<1024x16xbf16, #tpu.memory_space<vmem>>) attributes {dimension_semantics = [#tpu.dimension_semantics<parallel>], iteration_bounds = array<i64: 2>, scalar_prefetch = 0 : i64, scratch_operands = 0 : i64, tpu.core_type = #tpu.core_type<tc>, window_params = [{transform_indices = @transform_0, window_bounds = array<i64: 1, 34, 32, 9>}, {pipeline_mode = #tpu.pipeline_mode<synchronous>, transform_indices = @transform_1, window_bounds = array<i64: 3, 9, 16>}, {pipeline_mode = #tpu.pipeline_mode<synchronous>, transform_indices = @transform_2, window_bounds = array<i64: 1, 16>}, {transform_indices = @transform_3, window_bounds = array<i64: 1024, 16>}]} {
    %c0 = arith.constant 0 : index
    %c0_0 = arith.constant 0 : index
    %c0_1 = arith.constant 0 : index
    %c0_2 = arith.constant 0 : index
    %0 = vector.load %arg1[%c0, %c0_0, %c0_1, %c0_2] : memref<1x34x32x9xbf16, #tpu.memory_space<vmem>>, vector<1x34x32x9xbf16>
    %1 = vector.shape_cast %0 : vector<1x34x32x9xbf16> to vector<34x32x9xbf16>
    %c0_3 = arith.constant 0 : index
    %c0_4 = arith.constant 0 : index
    %c0_5 = arith.constant 0 : index
    %2 = vector.load %arg2[%c0_3, %c0_4, %c0_5] : memref<3x9x16xbf16, #tpu.memory_space<vmem>>, vector<3x9x16xbf16>
    %cst = arith.constant 0.000000e+00 : f32
    %3 = vector.broadcast %cst : f32 to vector<1024x16xf32>
    %4 = vector.extract_strided_slice %1 {offsets = [0, 0, 0], sizes = [32, 32, 9], strides = [1, 1, 1]} : vector<34x32x9xbf16> to vector<32x32x9xbf16>
    %5 = vector.shape_cast %4 : vector<32x32x9xbf16> to vector<1024x9xbf16>
    %6 = vector.extract_strided_slice %2 {offsets = [0, 0, 0], sizes = [1, 9, 16], strides = [1, 1, 1]} : vector<3x9x16xbf16> to vector<1x9x16xbf16>
    %7 = vector.shape_cast %6 : vector<1x9x16xbf16> to vector<9x16xbf16>
    %cst_6 = arith.constant dense<0.000000e+00> : vector<1024x16xf32>
    %8 = tpu.matmul %5, %7, %cst_6 {dimension_numbers = #tpu.dot_dimension_numbers<[1], [0], [0], [1], [0, 0, 1, 1], [], []>} : vector<1024x9xbf16>, vector<9x16xbf16>, vector<1024x16xf32> -> vector<1024x16xf32>
    %9 = arith.addf %3, %8 : vector<1024x16xf32>
    %10 = vector.extract_strided_slice %1 {offsets = [1, 0, 0], sizes = [32, 32, 9], strides = [1, 1, 1]} : vector<34x32x9xbf16> to vector<32x32x9xbf16>
    %11 = vector.shape_cast %10 : vector<32x32x9xbf16> to vector<1024x9xbf16>
    %12 = vector.extract_strided_slice %2 {offsets = [1, 0, 0], sizes = [1, 9, 16], strides = [1, 1, 1]} : vector<3x9x16xbf16> to vector<1x9x16xbf16>
    %13 = vector.shape_cast %12 : vector<1x9x16xbf16> to vector<9x16xbf16>
    %cst_7 = arith.constant dense<0.000000e+00> : vector<1024x16xf32>
    %14 = tpu.matmul %11, %13, %cst_7 {dimension_numbers = #tpu.dot_dimension_numbers<[1], [0], [0], [1], [0, 0, 1, 1], [], []>} : vector<1024x9xbf16>, vector<9x16xbf16>, vector<1024x16xf32> -> vector<1024x16xf32>
    %15 = arith.addf %9, %14 : vector<1024x16xf32>
    %16 = vector.extract_strided_slice %1 {offsets = [2, 0, 0], sizes = [32, 32, 9], strides = [1, 1, 1]} : vector<34x32x9xbf16> to vector<32x32x9xbf16>
    %17 = vector.shape_cast %16 : vector<32x32x9xbf16> to vector<1024x9xbf16>
    %18 = vector.extract_strided_slice %2 {offsets = [2, 0, 0], sizes = [1, 9, 16], strides = [1, 1, 1]} : vector<3x9x16xbf16> to vector<1x9x16xbf16>
    %19 = vector.shape_cast %18 : vector<1x9x16xbf16> to vector<9x16xbf16>
    %cst_8 = arith.constant dense<0.000000e+00> : vector<1024x16xf32>
    %20 = tpu.matmul %17, %19, %cst_8 {dimension_numbers = #tpu.dot_dimension_numbers<[1], [0], [0], [1], [0, 0, 1, 1], [], []>} : vector<1024x9xbf16>, vector<9x16xbf16>, vector<1024x16xf32> -> vector<1024x16xf32>
    %21 = arith.addf %15, %20 : vector<1024x16xf32>
    %c0_9 = arith.constant 0 : index
    %c0_10 = arith.constant 0 : index
    %22 = vector.load %arg3[%c0_9, %c0_10] : memref<1x16xf32, #tpu.memory_space<vmem>>, vector<1x16xf32>
    %23 = vector.broadcast %22 : vector<1x16xf32> to vector<1024x16xf32>
    %24 = arith.addf %21, %23 : vector<1024x16xf32>
    %25 = arith.truncf %24 : vector<1024x16xf32> to vector<1024x16xbf16>
    %c0_11 = arith.constant 0 : index
    %c0_12 = arith.constant 0 : index
    %26 = vector.load %arg4[%c0_11, %c0_12] : memref<1024x16xbf16, #tpu.memory_space<vmem>>, vector<1024x16xbf16>
    tpu.vector_store %arg4[%c0_11, %c0_12], %25 {strides = array<i32>} : memref<1024x16xbf16, #tpu.memory_space<vmem>>, vector<1024x16xbf16>,
    return
  }
  func.func @transform_0(%arg0: i32) -> (i32, i32, i32, i32) {
    %c0_i32 = arith.constant 0 : i32
    %c0_i32_0 = arith.constant 0 : i32
    %c0_i32_1 = arith.constant 0 : i32
    %c0_i32_2 = arith.constant 0 : i32
    return %arg0, %c0_i32, %c0_i32_0, %c0_i32_1 : i32, i32, i32, i32
  }
  func.func @transform_1(%arg0: i32) -> (i32, i32, i32) {
    %c0_i32 = arith.constant 0 : i32
    %c0_i32_0 = arith.constant 0 : i32
    %c0_i32_1 = arith.constant 0 : i32
    %c0_i32_2 = arith.constant 0 : i32
    return %c0_i32, %c0_i32_0, %c0_i32_1 : i32, i32, i32
  }
  func.func @transform_2(%arg0: i32) -> (i32, i32) {
    %c0_i32 = arith.constant 0 : i32
    %c0_i32_0 = arith.constant 0 : i32
    %c0_i32_1 = arith.constant 0 : i32
    return %c0_i32, %c0_i32_0 : i32, i32
  }
  func.func @transform_3(%arg0: i32) -> (i32, i32) {
    %c0_i32 = arith.constant 0 : i32
    %c0_i32_0 = arith.constant 0 : i32
    return %arg0, %c0_i32 : i32, i32
  }
}

module attributes {stable_mosaic.version = 11 : i64} {
  func.func @_conv3x3_s1_kernel(%arg0: i32, %arg1: memref<1x34x32x48xbf16, #tpu.memory_space<vmem>>, %arg2: memref<3x48x16xbf16, #tpu.memory_space<vmem>>, %arg3: memref<1x16xf32, #tpu.memory_space<vmem>>, %arg4: memref<1024x16xbf16, #tpu.memory_space<vmem>>) attributes {dimension_semantics = [#tpu.dimension_semantics<parallel>], iteration_bounds = array<i64: 2>, scalar_prefetch = 0 : i64, scratch_operands = 0 : i64, tpu.core_type = #tpu.core_type<tc>, window_params = [{transform_indices = @transform_0, window_bounds = array<i64: 1, 34, 32, 48>}, {pipeline_mode = #tpu.pipeline_mode<synchronous>, transform_indices = @transform_1, window_bounds = array<i64: 3, 48, 16>}, {pipeline_mode = #tpu.pipeline_mode<synchronous>, transform_indices = @transform_2, window_bounds = array<i64: 1, 16>}, {transform_indices = @transform_3, window_bounds = array<i64: 1024, 16>}]} {
    %c0 = arith.constant 0 : index
    %c0_0 = arith.constant 0 : index
    %c0_1 = arith.constant 0 : index
    %c0_2 = arith.constant 0 : index
    %0 = vector.load %arg1[%c0, %c0_0, %c0_1, %c0_2] : memref<1x34x32x48xbf16, #tpu.memory_space<vmem>>, vector<1x34x32x48xbf16>
    %1 = vector.shape_cast %0 : vector<1x34x32x48xbf16> to vector<34x32x48xbf16>
    %c0_3 = arith.constant 0 : index
    %c0_4 = arith.constant 0 : index
    %c0_5 = arith.constant 0 : index
    %2 = vector.load %arg2[%c0_3, %c0_4, %c0_5] : memref<3x48x16xbf16, #tpu.memory_space<vmem>>, vector<3x48x16xbf16>
    %cst = arith.constant 0.000000e+00 : f32
    %3 = vector.broadcast %cst : f32 to vector<1024x16xf32>
    %4 = vector.extract_strided_slice %1 {offsets = [0, 0, 0], sizes = [32, 32, 48], strides = [1, 1, 1]} : vector<34x32x48xbf16> to vector<32x32x48xbf16>
    %5 = vector.shape_cast %4 : vector<32x32x48xbf16> to vector<1024x48xbf16>
    %6 = vector.extract_strided_slice %2 {offsets = [0, 0, 0], sizes = [1, 48, 16], strides = [1, 1, 1]} : vector<3x48x16xbf16> to vector<1x48x16xbf16>
    %7 = vector.shape_cast %6 : vector<1x48x16xbf16> to vector<48x16xbf16>
    %cst_6 = arith.constant dense<0.000000e+00> : vector<1024x16xf32>
    %8 = tpu.matmul %5, %7, %cst_6 {dimension_numbers = #tpu.dot_dimension_numbers<[1], [0], [0], [1], [0, 0, 1, 1], [], []>} : vector<1024x48xbf16>, vector<48x16xbf16>, vector<1024x16xf32> -> vector<1024x16xf32>
    %9 = arith.addf %3, %8 : vector<1024x16xf32>
    %10 = vector.extract_strided_slice %1 {offsets = [1, 0, 0], sizes = [32, 32, 48], strides = [1, 1, 1]} : vector<34x32x48xbf16> to vector<32x32x48xbf16>
    %11 = vector.shape_cast %10 : vector<32x32x48xbf16> to vector<1024x48xbf16>
    %12 = vector.extract_strided_slice %2 {offsets = [1, 0, 0], sizes = [1, 48, 16], strides = [1, 1, 1]} : vector<3x48x16xbf16> to vector<1x48x16xbf16>
    %13 = vector.shape_cast %12 : vector<1x48x16xbf16> to vector<48x16xbf16>
    %cst_7 = arith.constant dense<0.000000e+00> : vector<1024x16xf32>
    %14 = tpu.matmul %11, %13, %cst_7 {dimension_numbers = #tpu.dot_dimension_numbers<[1], [0], [0], [1], [0, 0, 1, 1], [], []>} : vector<1024x48xbf16>, vector<48x16xbf16>, vector<1024x16xf32> -> vector<1024x16xf32>
    %15 = arith.addf %9, %14 : vector<1024x16xf32>
    %16 = vector.extract_strided_slice %1 {offsets = [2, 0, 0], sizes = [32, 32, 48], strides = [1, 1, 1]} : vector<34x32x48xbf16> to vector<32x32x48xbf16>
    %17 = vector.shape_cast %16 : vector<32x32x48xbf16> to vector<1024x48xbf16>
    %18 = vector.extract_strided_slice %2 {offsets = [2, 0, 0], sizes = [1, 48, 16], strides = [1, 1, 1]} : vector<3x48x16xbf16> to vector<1x48x16xbf16>
    %19 = vector.shape_cast %18 : vector<1x48x16xbf16> to vector<48x16xbf16>
    %cst_8 = arith.constant dense<0.000000e+00> : vector<1024x16xf32>
    %20 = tpu.matmul %17, %19, %cst_8 {dimension_numbers = #tpu.dot_dimension_numbers<[1], [0], [0], [1], [0, 0, 1, 1], [], []>} : vector<1024x48xbf16>, vector<48x16xbf16>, vector<1024x16xf32> -> vector<1024x16xf32>
    %21 = arith.addf %15, %20 : vector<1024x16xf32>
    %c0_9 = arith.constant 0 : index
    %c0_10 = arith.constant 0 : index
    %22 = vector.load %arg3[%c0_9, %c0_10] : memref<1x16xf32, #tpu.memory_space<vmem>>, vector<1x16xf32>
    %23 = vector.broadcast %22 : vector<1x16xf32> to vector<1024x16xf32>
    %24 = arith.addf %21, %23 : vector<1024x16xf32>
    %cst_11 = arith.constant 0.000000e+00 : f32
    %25 = vector.broadcast %cst_11 : f32 to vector<1024x16xf32>
    %26 = arith.maximumf %24, %25 : vector<1024x16xf32>
    %27 = arith.truncf %26 : vector<1024x16xf32> to vector<1024x16xbf16>
    %c0_12 = arith.constant 0 : index
    %c0_13 = arith.constant 0 : index
    %28 = vector.load %arg4[%c0_12, %c0_13] : memref<1024x16xbf16, #tpu.memory_space<vmem>>, vector<1024x16xbf16>
    tpu.vector_store %arg4[%c0_12, %c0_13], %27 {strides = array<i32>} : memref<1024x16xbf16, #tpu.memory_space<vmem>>, vector<1024x16xbf16>,
    return
  }
  func.func @transform_0(%arg0: i32) -> (i32, i32, i32, i32) {
    %c0_i32 = arith.constant 0 : i32
    %c0_i32_0 = arith.constant 0 : i32
    %c0_i32_1 = arith.constant 0 : i32
    %c0_i32_2 = arith.constant 0 : i32
    return %arg0, %c0_i32, %c0_i32_0, %c0_i32_1 : i32, i32, i32, i32
  }
  func.func @transform_1(%arg0: i32) -> (i32, i32, i32) {
    %c0_i32 = arith.constant 0 : i32
    %c0_i32_0 = arith.constant 0 : i32
    %c0_i32_1 = arith.constant 0 : i32
    %c0_i32_2 = arith.constant 0 : i32
    return %c0_i32, %c0_i32_0, %c0_i32_1 : i32, i32, i32
  }
  func.func @transform_2(%arg0: i32) -> (i32, i32) {
    %c0_i32 = arith.constant 0 : i32
    %c0_i32_0 = arith.constant 0 : i32
    %c0_i32_1 = arith.constant 0 : i32
    return %c0_i32, %c0_i32_0 : i32, i32
  }
  func.func @transform_3(%arg0: i32) -> (i32, i32) {
    %c0_i32 = arith.constant 0 : i32
    %c0_i32_0 = arith.constant 0 : i32
    return %arg0, %c0_i32 : i32, i32
  }
}

module attributes {stable_mosaic.version = 11 : i64} {
  func.func @_conv3x3_s1_kernel(%arg0: i32, %arg1: memref<1x34x32x48xbf16, #tpu.memory_space<vmem>>, %arg2: memref<3x48x16xbf16, #tpu.memory_space<vmem>>, %arg3: memref<1x16xf32, #tpu.memory_space<vmem>>, %arg4: memref<1024x16xbf16, #tpu.memory_space<vmem>>, %arg5: memref<1024x16xbf16, #tpu.memory_space<vmem>>) attributes {dimension_semantics = [#tpu.dimension_semantics<parallel>], iteration_bounds = array<i64: 2>, scalar_prefetch = 0 : i64, scratch_operands = 0 : i64, tpu.core_type = #tpu.core_type<tc>, window_params = [{transform_indices = @transform_0, window_bounds = array<i64: 1, 34, 32, 48>}, {pipeline_mode = #tpu.pipeline_mode<synchronous>, transform_indices = @transform_1, window_bounds = array<i64: 3, 48, 16>}, {pipeline_mode = #tpu.pipeline_mode<synchronous>, transform_indices = @transform_2, window_bounds = array<i64: 1, 16>}, {transform_indices = @transform_3, window_bounds = array<i64: 1024, 16>}, {transform_indices = @transform_4, window_bounds = array<i64: 1024, 16>}]} {
    %c0 = arith.constant 0 : index
    %c0_0 = arith.constant 0 : index
    %c0_1 = arith.constant 0 : index
    %c0_2 = arith.constant 0 : index
    %0 = vector.load %arg1[%c0, %c0_0, %c0_1, %c0_2] : memref<1x34x32x48xbf16, #tpu.memory_space<vmem>>, vector<1x34x32x48xbf16>
    %1 = vector.shape_cast %0 : vector<1x34x32x48xbf16> to vector<34x32x48xbf16>
    %c0_3 = arith.constant 0 : index
    %c0_4 = arith.constant 0 : index
    %c0_5 = arith.constant 0 : index
    %2 = vector.load %arg2[%c0_3, %c0_4, %c0_5] : memref<3x48x16xbf16, #tpu.memory_space<vmem>>, vector<3x48x16xbf16>
    %cst = arith.constant 0.000000e+00 : f32
    %3 = vector.broadcast %cst : f32 to vector<1024x16xf32>
    %4 = vector.extract_strided_slice %1 {offsets = [0, 0, 0], sizes = [32, 32, 48], strides = [1, 1, 1]} : vector<34x32x48xbf16> to vector<32x32x48xbf16>
    %5 = vector.shape_cast %4 : vector<32x32x48xbf16> to vector<1024x48xbf16>
    %6 = vector.extract_strided_slice %2 {offsets = [0, 0, 0], sizes = [1, 48, 16], strides = [1, 1, 1]} : vector<3x48x16xbf16> to vector<1x48x16xbf16>
    %7 = vector.shape_cast %6 : vector<1x48x16xbf16> to vector<48x16xbf16>
    %cst_6 = arith.constant dense<0.000000e+00> : vector<1024x16xf32>
    %8 = tpu.matmul %5, %7, %cst_6 {dimension_numbers = #tpu.dot_dimension_numbers<[1], [0], [0], [1], [0, 0, 1, 1], [], []>} : vector<1024x48xbf16>, vector<48x16xbf16>, vector<1024x16xf32> -> vector<1024x16xf32>
    %9 = arith.addf %3, %8 : vector<1024x16xf32>
    %10 = vector.extract_strided_slice %1 {offsets = [1, 0, 0], sizes = [32, 32, 48], strides = [1, 1, 1]} : vector<34x32x48xbf16> to vector<32x32x48xbf16>
    %11 = vector.shape_cast %10 : vector<32x32x48xbf16> to vector<1024x48xbf16>
    %12 = vector.extract_strided_slice %2 {offsets = [1, 0, 0], sizes = [1, 48, 16], strides = [1, 1, 1]} : vector<3x48x16xbf16> to vector<1x48x16xbf16>
    %13 = vector.shape_cast %12 : vector<1x48x16xbf16> to vector<48x16xbf16>
    %cst_7 = arith.constant dense<0.000000e+00> : vector<1024x16xf32>
    %14 = tpu.matmul %11, %13, %cst_7 {dimension_numbers = #tpu.dot_dimension_numbers<[1], [0], [0], [1], [0, 0, 1, 1], [], []>} : vector<1024x48xbf16>, vector<48x16xbf16>, vector<1024x16xf32> -> vector<1024x16xf32>
    %15 = arith.addf %9, %14 : vector<1024x16xf32>
    %16 = vector.extract_strided_slice %1 {offsets = [2, 0, 0], sizes = [32, 32, 48], strides = [1, 1, 1]} : vector<34x32x48xbf16> to vector<32x32x48xbf16>
    %17 = vector.shape_cast %16 : vector<32x32x48xbf16> to vector<1024x48xbf16>
    %18 = vector.extract_strided_slice %2 {offsets = [2, 0, 0], sizes = [1, 48, 16], strides = [1, 1, 1]} : vector<3x48x16xbf16> to vector<1x48x16xbf16>
    %19 = vector.shape_cast %18 : vector<1x48x16xbf16> to vector<48x16xbf16>
    %cst_8 = arith.constant dense<0.000000e+00> : vector<1024x16xf32>
    %20 = tpu.matmul %17, %19, %cst_8 {dimension_numbers = #tpu.dot_dimension_numbers<[1], [0], [0], [1], [0, 0, 1, 1], [], []>} : vector<1024x48xbf16>, vector<48x16xbf16>, vector<1024x16xf32> -> vector<1024x16xf32>
    %21 = arith.addf %15, %20 : vector<1024x16xf32>
    %c0_9 = arith.constant 0 : index
    %c0_10 = arith.constant 0 : index
    %22 = vector.load %arg3[%c0_9, %c0_10] : memref<1x16xf32, #tpu.memory_space<vmem>>, vector<1x16xf32>
    %23 = vector.broadcast %22 : vector<1x16xf32> to vector<1024x16xf32>
    %24 = arith.addf %21, %23 : vector<1024x16xf32>
    %c0_11 = arith.constant 0 : index
    %c0_12 = arith.constant 0 : index
    %25 = vector.load %arg4[%c0_11, %c0_12] : memref<1024x16xbf16, #tpu.memory_space<vmem>>, vector<1024x16xbf16>
    %26 = arith.extf %25 : vector<1024x16xbf16> to vector<1024x16xf32>
    %27 = arith.addf %24, %26 : vector<1024x16xf32>
    %cst_13 = arith.constant 0.000000e+00 : f32
    %28 = vector.broadcast %cst_13 : f32 to vector<1024x16xf32>
    %29 = arith.maximumf %27, %28 : vector<1024x16xf32>
    %30 = arith.truncf %29 : vector<1024x16xf32> to vector<1024x16xbf16>
    %c0_14 = arith.constant 0 : index
    %c0_15 = arith.constant 0 : index
    %31 = vector.load %arg5[%c0_14, %c0_15] : memref<1024x16xbf16, #tpu.memory_space<vmem>>, vector<1024x16xbf16>
    tpu.vector_store %arg5[%c0_14, %c0_15], %30 {strides = array<i32>} : memref<1024x16xbf16, #tpu.memory_space<vmem>>, vector<1024x16xbf16>,
    return
  }
  func.func @transform_0(%arg0: i32) -> (i32, i32, i32, i32) {
    %c0_i32 = arith.constant 0 : i32
    %c0_i32_0 = arith.constant 0 : i32
    %c0_i32_1 = arith.constant 0 : i32
    %c0_i32_2 = arith.constant 0 : i32
    return %arg0, %c0_i32, %c0_i32_0, %c0_i32_1 : i32, i32, i32, i32
  }
  func.func @transform_1(%arg0: i32) -> (i32, i32, i32) {
    %c0_i32 = arith.constant 0 : i32
    %c0_i32_0 = arith.constant 0 : i32
    %c0_i32_1 = arith.constant 0 : i32
    %c0_i32_2 = arith.constant 0 : i32
    return %c0_i32, %c0_i32_0, %c0_i32_1 : i32, i32, i32
  }
  func.func @transform_2(%arg0: i32) -> (i32, i32) {
    %c0_i32 = arith.constant 0 : i32
    %c0_i32_0 = arith.constant 0 : i32
    %c0_i32_1 = arith.constant 0 : i32
    return %c0_i32, %c0_i32_0 : i32, i32
  }
  func.func @transform_3(%arg0: i32) -> (i32, i32) {
    %c0_i32 = arith.constant 0 : i32
    %c0_i32_0 = arith.constant 0 : i32
    return %arg0, %c0_i32 : i32, i32
  }
  func.func @transform_4(%arg0: i32) -> (i32, i32) {
    %c0_i32 = arith.constant 0 : i32
    %c0_i32_0 = arith.constant 0 : i32
    return %arg0, %c0_i32 : i32, i32
  }
}

module attributes {stable_mosaic.version = 11 : i64} {
  func.func @_ds_front_kernel(%arg0: i32, %arg1: memref<256x144xbf16, #tpu.memory_space<vmem>>, %arg2: memref<256x16xbf16, #tpu.memory_space<vmem>>, %arg3: memref<144x32xbf16, #tpu.memory_space<vmem>>, %arg4: memref<1x32xf32, #tpu.memory_space<vmem>>, %arg5: memref<16x32xbf16, #tpu.memory_space<vmem>>, %arg6: memref<1x32xf32, #tpu.memory_space<vmem>>, %arg7: memref<256x32xbf16, #tpu.memory_space<vmem>>, %arg8: memref<256x32xbf16, #tpu.memory_space<vmem>>) attributes {dimension_semantics = [#tpu.dimension_semantics<parallel>], iteration_bounds = array<i64: 2>, scalar_prefetch = 0 : i64, scratch_operands = 0 : i64, tpu.core_type = #tpu.core_type<tc>, window_params = [{transform_indices = @transform_0, window_bounds = array<i64: 256, 144>}, {transform_indices = @transform_1, window_bounds = array<i64: 256, 16>}, {pipeline_mode = #tpu.pipeline_mode<synchronous>, transform_indices = @transform_2, window_bounds = array<i64: 144, 32>}, {pipeline_mode = #tpu.pipeline_mode<synchronous>, transform_indices = @transform_3, window_bounds = array<i64: 1, 32>}, {pipeline_mode = #tpu.pipeline_mode<synchronous>, transform_indices = @transform_4, window_bounds = array<i64: 16, 32>}, {pipeline_mode = #tpu.pipeline_mode<synchronous>, transform_indices = @transform_5, window_bounds = array<i64: 1, 32>}, {transform_indices = @transform_6, window_bounds = array<i64: 256, 32>}, {transform_indices = @transform_7, window_bounds = array<i64: 256, 32>}]} {
    %c0 = arith.constant 0 : index
    %c0_0 = arith.constant 0 : index
    %0 = vector.load %arg1[%c0, %c0_0] : memref<256x144xbf16, #tpu.memory_space<vmem>>, vector<256x144xbf16>
    %c0_1 = arith.constant 0 : index
    %c0_2 = arith.constant 0 : index
    %1 = vector.load %arg3[%c0_1, %c0_2] : memref<144x32xbf16, #tpu.memory_space<vmem>>, vector<144x32xbf16>
    %cst = arith.constant dense<0.000000e+00> : vector<256x32xf32>
    %2 = tpu.matmul %0, %1, %cst {dimension_numbers = #tpu.dot_dimension_numbers<[1], [0], [0], [1], [0, 0, 1, 1], [], []>} : vector<256x144xbf16>, vector<144x32xbf16>, vector<256x32xf32> -> vector<256x32xf32>
    %c0_3 = arith.constant 0 : index
    %c0_4 = arith.constant 0 : index
    %3 = vector.load %arg4[%c0_3, %c0_4] : memref<1x32xf32, #tpu.memory_space<vmem>>, vector<1x32xf32>
    %4 = vector.broadcast %3 : vector<1x32xf32> to vector<256x32xf32>
    %5 = arith.addf %2, %4 : vector<256x32xf32>
    %cst_5 = arith.constant 0.000000e+00 : f32
    %6 = vector.broadcast %cst_5 : f32 to vector<256x32xf32>
    %7 = arith.maximumf %5, %6 : vector<256x32xf32>
    %8 = arith.truncf %7 : vector<256x32xf32> to vector<256x32xbf16>
    %c0_6 = arith.constant 0 : index
    %c0_7 = arith.constant 0 : index
    %9 = vector.load %arg7[%c0_6, %c0_7] : memref<256x32xbf16, #tpu.memory_space<vmem>>, vector<256x32xbf16>
    tpu.vector_store %arg7[%c0_6, %c0_7], %8 {strides = array<i32>} : memref<256x32xbf16, #tpu.memory_space<vmem>>, vector<256x32xbf16>,
    %c0_8 = arith.constant 0 : index
    %c0_9 = arith.constant 0 : index
    %10 = vector.load %arg2[%c0_8, %c0_9] : memref<256x16xbf16, #tpu.memory_space<vmem>>, vector<256x16xbf16>
    %c0_10 = arith.constant 0 : index
    %c0_11 = arith.constant 0 : index
    %11 = vector.load %arg5[%c0_10, %c0_11] : memref<16x32xbf16, #tpu.memory_space<vmem>>, vector<16x32xbf16>
    %cst_12 = arith.constant dense<0.000000e+00> : vector<256x32xf32>
    %12 = tpu.matmul %10, %11, %cst_12 {dimension_numbers = #tpu.dot_dimension_numbers<[1], [0], [0], [1], [0, 0, 1, 1], [], []>} : vector<256x16xbf16>, vector<16x32xbf16>, vector<256x32xf32> -> vector<256x32xf32>
    %c0_13 = arith.constant 0 : index
    %c0_14 = arith.constant 0 : index
    %13 = vector.load %arg6[%c0_13, %c0_14] : memref<1x32xf32, #tpu.memory_space<vmem>>, vector<1x32xf32>
    %14 = vector.broadcast %13 : vector<1x32xf32> to vector<256x32xf32>
    %15 = arith.addf %12, %14 : vector<256x32xf32>
    %16 = arith.truncf %15 : vector<256x32xf32> to vector<256x32xbf16>
    %c0_15 = arith.constant 0 : index
    %c0_16 = arith.constant 0 : index
    %17 = vector.load %arg8[%c0_15, %c0_16] : memref<256x32xbf16, #tpu.memory_space<vmem>>, vector<256x32xbf16>
    tpu.vector_store %arg8[%c0_15, %c0_16], %16 {strides = array<i32>} : memref<256x32xbf16, #tpu.memory_space<vmem>>, vector<256x32xbf16>,
    return
  }
  func.func @transform_0(%arg0: i32) -> (i32, i32) {
    %c0_i32 = arith.constant 0 : i32
    %c0_i32_0 = arith.constant 0 : i32
    return %arg0, %c0_i32 : i32, i32
  }
  func.func @transform_1(%arg0: i32) -> (i32, i32) {
    %c0_i32 = arith.constant 0 : i32
    %c0_i32_0 = arith.constant 0 : i32
    return %arg0, %c0_i32 : i32, i32
  }
  func.func @transform_2(%arg0: i32) -> (i32, i32) {
    %c0_i32 = arith.constant 0 : i32
    %c0_i32_0 = arith.constant 0 : i32
    %c0_i32_1 = arith.constant 0 : i32
    return %c0_i32, %c0_i32_0 : i32, i32
  }
  func.func @transform_3(%arg0: i32) -> (i32, i32) {
    %c0_i32 = arith.constant 0 : i32
    %c0_i32_0 = arith.constant 0 : i32
    %c0_i32_1 = arith.constant 0 : i32
    return %c0_i32, %c0_i32_0 : i32, i32
  }
  func.func @transform_4(%arg0: i32) -> (i32, i32) {
    %c0_i32 = arith.constant 0 : i32
    %c0_i32_0 = arith.constant 0 : i32
    %c0_i32_1 = arith.constant 0 : i32
    return %c0_i32, %c0_i32_0 : i32, i32
  }
  func.func @transform_5(%arg0: i32) -> (i32, i32) {
    %c0_i32 = arith.constant 0 : i32
    %c0_i32_0 = arith.constant 0 : i32
    %c0_i32_1 = arith.constant 0 : i32
    return %c0_i32, %c0_i32_0 : i32, i32
  }
  func.func @transform_6(%arg0: i32) -> (i32, i32) {
    %c0_i32 = arith.constant 0 : i32
    %c0_i32_0 = arith.constant 0 : i32
    return %arg0, %c0_i32 : i32, i32
  }
  func.func @transform_7(%arg0: i32) -> (i32, i32) {
    %c0_i32 = arith.constant 0 : i32
    %c0_i32_0 = arith.constant 0 : i32
    return %arg0, %c0_i32 : i32, i32
  }
}

module attributes {stable_mosaic.version = 11 : i64} {
  func.func @_conv3x3_s1_kernel(%arg0: i32, %arg1: memref<1x18x16x96xbf16, #tpu.memory_space<vmem>>, %arg2: memref<3x96x32xbf16, #tpu.memory_space<vmem>>, %arg3: memref<1x32xf32, #tpu.memory_space<vmem>>, %arg4: memref<256x32xbf16, #tpu.memory_space<vmem>>, %arg5: memref<256x32xbf16, #tpu.memory_space<vmem>>) attributes {dimension_semantics = [#tpu.dimension_semantics<parallel>], iteration_bounds = array<i64: 2>, scalar_prefetch = 0 : i64, scratch_operands = 0 : i64, tpu.core_type = #tpu.core_type<tc>, window_params = [{transform_indices = @transform_0, window_bounds = array<i64: 1, 18, 16, 96>}, {pipeline_mode = #tpu.pipeline_mode<synchronous>, transform_indices = @transform_1, window_bounds = array<i64: 3, 96, 32>}, {pipeline_mode = #tpu.pipeline_mode<synchronous>, transform_indices = @transform_2, window_bounds = array<i64: 1, 32>}, {transform_indices = @transform_3, window_bounds = array<i64: 256, 32>}, {transform_indices = @transform_4, window_bounds = array<i64: 256, 32>}]} {
    %c0 = arith.constant 0 : index
    %c0_0 = arith.constant 0 : index
    %c0_1 = arith.constant 0 : index
    %c0_2 = arith.constant 0 : index
    %0 = vector.load %arg1[%c0, %c0_0, %c0_1, %c0_2] : memref<1x18x16x96xbf16, #tpu.memory_space<vmem>>, vector<1x18x16x96xbf16>
    %1 = vector.shape_cast %0 : vector<1x18x16x96xbf16> to vector<18x16x96xbf16>
    %c0_3 = arith.constant 0 : index
    %c0_4 = arith.constant 0 : index
    %c0_5 = arith.constant 0 : index
    %2 = vector.load %arg2[%c0_3, %c0_4, %c0_5] : memref<3x96x32xbf16, #tpu.memory_space<vmem>>, vector<3x96x32xbf16>
    %cst = arith.constant 0.000000e+00 : f32
    %3 = vector.broadcast %cst : f32 to vector<256x32xf32>
    %4 = vector.extract_strided_slice %1 {offsets = [0, 0, 0], sizes = [16, 16, 96], strides = [1, 1, 1]} : vector<18x16x96xbf16> to vector<16x16x96xbf16>
    %5 = vector.shape_cast %4 : vector<16x16x96xbf16> to vector<256x96xbf16>
    %6 = vector.extract_strided_slice %2 {offsets = [0, 0, 0], sizes = [1, 96, 32], strides = [1, 1, 1]} : vector<3x96x32xbf16> to vector<1x96x32xbf16>
    %7 = vector.shape_cast %6 : vector<1x96x32xbf16> to vector<96x32xbf16>
    %cst_6 = arith.constant dense<0.000000e+00> : vector<256x32xf32>
    %8 = tpu.matmul %5, %7, %cst_6 {dimension_numbers = #tpu.dot_dimension_numbers<[1], [0], [0], [1], [0, 0, 1, 1], [], []>} : vector<256x96xbf16>, vector<96x32xbf16>, vector<256x32xf32> -> vector<256x32xf32>
    %9 = arith.addf %3, %8 : vector<256x32xf32>
    %10 = vector.extract_strided_slice %1 {offsets = [1, 0, 0], sizes = [16, 16, 96], strides = [1, 1, 1]} : vector<18x16x96xbf16> to vector<16x16x96xbf16>
    %11 = vector.shape_cast %10 : vector<16x16x96xbf16> to vector<256x96xbf16>
    %12 = vector.extract_strided_slice %2 {offsets = [1, 0, 0], sizes = [1, 96, 32], strides = [1, 1, 1]} : vector<3x96x32xbf16> to vector<1x96x32xbf16>
    %13 = vector.shape_cast %12 : vector<1x96x32xbf16> to vector<96x32xbf16>
    %cst_7 = arith.constant dense<0.000000e+00> : vector<256x32xf32>
    %14 = tpu.matmul %11, %13, %cst_7 {dimension_numbers = #tpu.dot_dimension_numbers<[1], [0], [0], [1], [0, 0, 1, 1], [], []>} : vector<256x96xbf16>, vector<96x32xbf16>, vector<256x32xf32> -> vector<256x32xf32>
    %15 = arith.addf %9, %14 : vector<256x32xf32>
    %16 = vector.extract_strided_slice %1 {offsets = [2, 0, 0], sizes = [16, 16, 96], strides = [1, 1, 1]} : vector<18x16x96xbf16> to vector<16x16x96xbf16>
    %17 = vector.shape_cast %16 : vector<16x16x96xbf16> to vector<256x96xbf16>
    %18 = vector.extract_strided_slice %2 {offsets = [2, 0, 0], sizes = [1, 96, 32], strides = [1, 1, 1]} : vector<3x96x32xbf16> to vector<1x96x32xbf16>
    %19 = vector.shape_cast %18 : vector<1x96x32xbf16> to vector<96x32xbf16>
    %cst_8 = arith.constant dense<0.000000e+00> : vector<256x32xf32>
    %20 = tpu.matmul %17, %19, %cst_8 {dimension_numbers = #tpu.dot_dimension_numbers<[1], [0], [0], [1], [0, 0, 1, 1], [], []>} : vector<256x96xbf16>, vector<96x32xbf16>, vector<256x32xf32> -> vector<256x32xf32>
    %21 = arith.addf %15, %20 : vector<256x32xf32>
    %c0_9 = arith.constant 0 : index
    %c0_10 = arith.constant 0 : index
    %22 = vector.load %arg3[%c0_9, %c0_10] : memref<1x32xf32, #tpu.memory_space<vmem>>, vector<1x32xf32>
    %23 = vector.broadcast %22 : vector<1x32xf32> to vector<256x32xf32>
    %24 = arith.addf %21, %23 : vector<256x32xf32>
    %c0_11 = arith.constant 0 : index
    %c0_12 = arith.constant 0 : index
    %25 = vector.load %arg4[%c0_11, %c0_12] : memref<256x32xbf16, #tpu.memory_space<vmem>>, vector<256x32xbf16>
    %26 = arith.extf %25 : vector<256x32xbf16> to vector<256x32xf32>
    %27 = arith.addf %24, %26 : vector<256x32xf32>
    %cst_13 = arith.constant 0.000000e+00 : f32
    %28 = vector.broadcast %cst_13 : f32 to vector<256x32xf32>
    %29 = arith.maximumf %27, %28 : vector<256x32xf32>
    %30 = arith.truncf %29 : vector<256x32xf32> to vector<256x32xbf16>
    %c0_14 = arith.constant 0 : index
    %c0_15 = arith.constant 0 : index
    %31 = vector.load %arg5[%c0_14, %c0_15] : memref<256x32xbf16, #tpu.memory_space<vmem>>, vector<256x32xbf16>
    tpu.vector_store %arg5[%c0_14, %c0_15], %30 {strides = array<i32>} : memref<256x32xbf16, #tpu.memory_space<vmem>>, vector<256x32xbf16>,
    return
  }
  func.func @transform_0(%arg0: i32) -> (i32, i32, i32, i32) {
    %c0_i32 = arith.constant 0 : i32
    %c0_i32_0 = arith.constant 0 : i32
    %c0_i32_1 = arith.constant 0 : i32
    %c0_i32_2 = arith.constant 0 : i32
    return %arg0, %c0_i32, %c0_i32_0, %c0_i32_1 : i32, i32, i32, i32
  }
  func.func @transform_1(%arg0: i32) -> (i32, i32, i32) {
    %c0_i32 = arith.constant 0 : i32
    %c0_i32_0 = arith.constant 0 : i32
    %c0_i32_1 = arith.constant 0 : i32
    %c0_i32_2 = arith.constant 0 : i32
    return %c0_i32, %c0_i32_0, %c0_i32_1 : i32, i32, i32
  }
  func.func @transform_2(%arg0: i32) -> (i32, i32) {
    %c0_i32 = arith.constant 0 : i32
    %c0_i32_0 = arith.constant 0 : i32
    %c0_i32_1 = arith.constant 0 : i32
    return %c0_i32, %c0_i32_0 : i32, i32
  }
  func.func @transform_3(%arg0: i32) -> (i32, i32) {
    %c0_i32 = arith.constant 0 : i32
    %c0_i32_0 = arith.constant 0 : i32
    return %arg0, %c0_i32 : i32, i32
  }
  func.func @transform_4(%arg0: i32) -> (i32, i32) {
    %c0_i32 = arith.constant 0 : i32
    %c0_i32_0 = arith.constant 0 : i32
    return %arg0, %c0_i32 : i32, i32
  }
}

module attributes {stable_mosaic.version = 11 : i64} {
  func.func @_ds_front_kernel(%arg0: i32, %arg1: memref<64x288xbf16, #tpu.memory_space<vmem>>, %arg2: memref<64x32xbf16, #tpu.memory_space<vmem>>, %arg3: memref<288x64xbf16, #tpu.memory_space<vmem>>, %arg4: memref<1x64xf32, #tpu.memory_space<vmem>>, %arg5: memref<32x64xbf16, #tpu.memory_space<vmem>>, %arg6: memref<1x64xf32, #tpu.memory_space<vmem>>, %arg7: memref<64x64xbf16, #tpu.memory_space<vmem>>, %arg8: memref<64x64xbf16, #tpu.memory_space<vmem>>) attributes {dimension_semantics = [#tpu.dimension_semantics<parallel>], iteration_bounds = array<i64: 2>, scalar_prefetch = 0 : i64, scratch_operands = 0 : i64, tpu.core_type = #tpu.core_type<tc>, window_params = [{transform_indices = @transform_0, window_bounds = array<i64: 64, 288>}, {transform_indices = @transform_1, window_bounds = array<i64: 64, 32>}, {pipeline_mode = #tpu.pipeline_mode<synchronous>, transform_indices = @transform_2, window_bounds = array<i64: 288, 64>}, {pipeline_mode = #tpu.pipeline_mode<synchronous>, transform_indices = @transform_3, window_bounds = array<i64: 1, 64>}, {pipeline_mode = #tpu.pipeline_mode<synchronous>, transform_indices = @transform_4, window_bounds = array<i64: 32, 64>}, {pipeline_mode = #tpu.pipeline_mode<synchronous>, transform_indices = @transform_5, window_bounds = array<i64: 1, 64>}, {transform_indices = @transform_6, window_bounds = array<i64: 64, 64>}, {transform_indices = @transform_7, window_bounds = array<i64: 64, 64>}]} {
    %c0 = arith.constant 0 : index
    %c0_0 = arith.constant 0 : index
    %0 = vector.load %arg1[%c0, %c0_0] : memref<64x288xbf16, #tpu.memory_space<vmem>>, vector<64x288xbf16>
    %c0_1 = arith.constant 0 : index
    %c0_2 = arith.constant 0 : index
    %1 = vector.load %arg3[%c0_1, %c0_2] : memref<288x64xbf16, #tpu.memory_space<vmem>>, vector<288x64xbf16>
    %cst = arith.constant dense<0.000000e+00> : vector<64x64xf32>
    %2 = tpu.matmul %0, %1, %cst {dimension_numbers = #tpu.dot_dimension_numbers<[1], [0], [0], [1], [0, 0, 1, 1], [], []>} : vector<64x288xbf16>, vector<288x64xbf16>, vector<64x64xf32> -> vector<64x64xf32>
    %c0_3 = arith.constant 0 : index
    %c0_4 = arith.constant 0 : index
    %3 = vector.load %arg4[%c0_3, %c0_4] : memref<1x64xf32, #tpu.memory_space<vmem>>, vector<1x64xf32>
    %4 = vector.broadcast %3 : vector<1x64xf32> to vector<64x64xf32>
    %5 = arith.addf %2, %4 : vector<64x64xf32>
    %cst_5 = arith.constant 0.000000e+00 : f32
    %6 = vector.broadcast %cst_5 : f32 to vector<64x64xf32>
    %7 = arith.maximumf %5, %6 : vector<64x64xf32>
    %8 = arith.truncf %7 : vector<64x64xf32> to vector<64x64xbf16>
    %c0_6 = arith.constant 0 : index
    %c0_7 = arith.constant 0 : index
    %9 = vector.load %arg7[%c0_6, %c0_7] : memref<64x64xbf16, #tpu.memory_space<vmem>>, vector<64x64xbf16>
    tpu.vector_store %arg7[%c0_6, %c0_7], %8 {strides = array<i32>} : memref<64x64xbf16, #tpu.memory_space<vmem>>, vector<64x64xbf16>,
    %c0_8 = arith.constant 0 : index
    %c0_9 = arith.constant 0 : index
    %10 = vector.load %arg2[%c0_8, %c0_9] : memref<64x32xbf16, #tpu.memory_space<vmem>>, vector<64x32xbf16>
    %c0_10 = arith.constant 0 : index
    %c0_11 = arith.constant 0 : index
    %11 = vector.load %arg5[%c0_10, %c0_11] : memref<32x64xbf16, #tpu.memory_space<vmem>>, vector<32x64xbf16>
    %cst_12 = arith.constant dense<0.000000e+00> : vector<64x64xf32>
    %12 = tpu.matmul %10, %11, %cst_12 {dimension_numbers = #tpu.dot_dimension_numbers<[1], [0], [0], [1], [0, 0, 1, 1], [], []>} : vector<64x32xbf16>, vector<32x64xbf16>, vector<64x64xf32> -> vector<64x64xf32>
    %c0_13 = arith.constant 0 : index
    %c0_14 = arith.constant 0 : index
    %13 = vector.load %arg6[%c0_13, %c0_14] : memref<1x64xf32, #tpu.memory_space<vmem>>, vector<1x64xf32>
    %14 = vector.broadcast %13 : vector<1x64xf32> to vector<64x64xf32>
    %15 = arith.addf %12, %14 : vector<64x64xf32>
    %16 = arith.truncf %15 : vector<64x64xf32> to vector<64x64xbf16>
    %c0_15 = arith.constant 0 : index
    %c0_16 = arith.constant 0 : index
    %17 = vector.load %arg8[%c0_15, %c0_16] : memref<64x64xbf16, #tpu.memory_space<vmem>>, vector<64x64xbf16>
    tpu.vector_store %arg8[%c0_15, %c0_16], %16 {strides = array<i32>} : memref<64x64xbf16, #tpu.memory_space<vmem>>, vector<64x64xbf16>,
    return
  }
  func.func @transform_0(%arg0: i32) -> (i32, i32) {
    %c0_i32 = arith.constant 0 : i32
    %c0_i32_0 = arith.constant 0 : i32
    return %arg0, %c0_i32 : i32, i32
  }
  func.func @transform_1(%arg0: i32) -> (i32, i32) {
    %c0_i32 = arith.constant 0 : i32
    %c0_i32_0 = arith.constant 0 : i32
    return %arg0, %c0_i32 : i32, i32
  }
  func.func @transform_2(%arg0: i32) -> (i32, i32) {
    %c0_i32 = arith.constant 0 : i32
    %c0_i32_0 = arith.constant 0 : i32
    %c0_i32_1 = arith.constant 0 : i32
    return %c0_i32, %c0_i32_0 : i32, i32
  }
  func.func @transform_3(%arg0: i32) -> (i32, i32) {
    %c0_i32 = arith.constant 0 : i32
    %c0_i32_0 = arith.constant 0 : i32
    %c0_i32_1 = arith.constant 0 : i32
    return %c0_i32, %c0_i32_0 : i32, i32
  }
  func.func @transform_4(%arg0: i32) -> (i32, i32) {
    %c0_i32 = arith.constant 0 : i32
    %c0_i32_0 = arith.constant 0 : i32
    %c0_i32_1 = arith.constant 0 : i32
    return %c0_i32, %c0_i32_0 : i32, i32
  }
  func.func @transform_5(%arg0: i32) -> (i32, i32) {
    %c0_i32 = arith.constant 0 : i32
    %c0_i32_0 = arith.constant 0 : i32
    %c0_i32_1 = arith.constant 0 : i32
    return %c0_i32, %c0_i32_0 : i32, i32
  }
  func.func @transform_6(%arg0: i32) -> (i32, i32) {
    %c0_i32 = arith.constant 0 : i32
    %c0_i32_0 = arith.constant 0 : i32
    return %arg0, %c0_i32 : i32, i32
  }
  func.func @transform_7(%arg0: i32) -> (i32, i32) {
    %c0_i32 = arith.constant 0 : i32
    %c0_i32_0 = arith.constant 0 : i32
    return %arg0, %c0_i32 : i32, i32
  }
}

module attributes {stable_mosaic.version = 11 : i64} {
  func.func @_conv3x3_s1_res_tail_kernel(%arg0: i32, %arg1: memref<1x10x8x192xbf16, #tpu.memory_space<vmem>>, %arg2: memref<3x192x64xbf16, #tpu.memory_space<vmem>>, %arg3: memref<1x64xf32, #tpu.memory_space<vmem>>, %arg4: memref<64x64xbf16, #tpu.memory_space<vmem>>, %arg5: memref<1x64xf32, #tpu.memory_space<vmem>>, %arg6: memref<1x64xf32, #tpu.memory_space<vmem>>, %arg7: memref<64x10xf32, #tpu.memory_space<vmem>>, %arg8: memref<1x10xf32, #tpu.memory_space<vmem>>, %arg9: memref<1x1x10xf32, #tpu.memory_space<vmem>>) attributes {dimension_semantics = [#tpu.dimension_semantics<parallel>], iteration_bounds = array<i64: 2>, scalar_prefetch = 0 : i64, scratch_operands = 0 : i64, tpu.core_type = #tpu.core_type<tc>, window_params = [{transform_indices = @transform_0, window_bounds = array<i64: 1, 10, 8, 192>}, {pipeline_mode = #tpu.pipeline_mode<synchronous>, transform_indices = @transform_1, window_bounds = array<i64: 3, 192, 64>}, {pipeline_mode = #tpu.pipeline_mode<synchronous>, transform_indices = @transform_2, window_bounds = array<i64: 1, 64>}, {transform_indices = @transform_3, window_bounds = array<i64: 64, 64>}, {pipeline_mode = #tpu.pipeline_mode<synchronous>, transform_indices = @transform_4, window_bounds = array<i64: 1, 64>}, {pipeline_mode = #tpu.pipeline_mode<synchronous>, transform_indices = @transform_5, window_bounds = array<i64: 1, 64>}, {pipeline_mode = #tpu.pipeline_mode<synchronous>, transform_indices = @transform_6, window_bounds = array<i64: 64, 10>}, {pipeline_mode = #tpu.pipeline_mode<synchronous>, transform_indices = @transform_7, window_bounds = array<i64: 1, 10>}, {transform_indices = @transform_8, window_bounds = array<i64: 1, 1, 10>}]} {
    %c0 = arith.constant 0 : index
    %c0_0 = arith.constant 0 : index
    %c0_1 = arith.constant 0 : index
    %c0_2 = arith.constant 0 : index
    %0 = vector.load %arg1[%c0, %c0_0, %c0_1, %c0_2] : memref<1x10x8x192xbf16, #tpu.memory_space<vmem>>, vector<1x10x8x192xbf16>
    %1 = vector.shape_cast %0 : vector<1x10x8x192xbf16> to vector<10x8x192xbf16>
    %c0_3 = arith.constant 0 : index
    %c0_4 = arith.constant 0 : index
    %c0_5 = arith.constant 0 : index
    %2 = vector.load %arg2[%c0_3, %c0_4, %c0_5] : memref<3x192x64xbf16, #tpu.memory_space<vmem>>, vector<3x192x64xbf16>
    %cst = arith.constant 0.000000e+00 : f32
    %3 = vector.broadcast %cst : f32 to vector<64x64xf32>
    %4 = vector.extract_strided_slice %1 {offsets = [0, 0, 0], sizes = [8, 8, 192], strides = [1, 1, 1]} : vector<10x8x192xbf16> to vector<8x8x192xbf16>
    %5 = vector.shape_cast %4 : vector<8x8x192xbf16> to vector<64x192xbf16>
    %6 = vector.extract_strided_slice %2 {offsets = [0, 0, 0], sizes = [1, 192, 64], strides = [1, 1, 1]} : vector<3x192x64xbf16> to vector<1x192x64xbf16>
    %7 = vector.shape_cast %6 : vector<1x192x64xbf16> to vector<192x64xbf16>
    %cst_6 = arith.constant dense<0.000000e+00> : vector<64x64xf32>
    %8 = tpu.matmul %5, %7, %cst_6 {dimension_numbers = #tpu.dot_dimension_numbers<[1], [0], [0], [1], [0, 0, 1, 1], [], []>} : vector<64x192xbf16>, vector<192x64xbf16>, vector<64x64xf32> -> vector<64x64xf32>
    %9 = arith.addf %3, %8 : vector<64x64xf32>
    %10 = vector.extract_strided_slice %1 {offsets = [1, 0, 0], sizes = [8, 8, 192], strides = [1, 1, 1]} : vector<10x8x192xbf16> to vector<8x8x192xbf16>
    %11 = vector.shape_cast %10 : vector<8x8x192xbf16> to vector<64x192xbf16>
    %12 = vector.extract_strided_slice %2 {offsets = [1, 0, 0], sizes = [1, 192, 64], strides = [1, 1, 1]} : vector<3x192x64xbf16> to vector<1x192x64xbf16>
    %13 = vector.shape_cast %12 : vector<1x192x64xbf16> to vector<192x64xbf16>
    %cst_7 = arith.constant dense<0.000000e+00> : vector<64x64xf32>
    %14 = tpu.matmul %11, %13, %cst_7 {dimension_numbers = #tpu.dot_dimension_numbers<[1], [0], [0], [1], [0, 0, 1, 1], [], []>} : vector<64x192xbf16>, vector<192x64xbf16>, vector<64x64xf32> -> vector<64x64xf32>
    %15 = arith.addf %9, %14 : vector<64x64xf32>
    %16 = vector.extract_strided_slice %1 {offsets = [2, 0, 0], sizes = [8, 8, 192], strides = [1, 1, 1]} : vector<10x8x192xbf16> to vector<8x8x192xbf16>
    %17 = vector.shape_cast %16 : vector<8x8x192xbf16> to vector<64x192xbf16>
    %18 = vector.extract_strided_slice %2 {offsets = [2, 0, 0], sizes = [1, 192, 64], strides = [1, 1, 1]} : vector<3x192x64xbf16> to vector<1x192x64xbf16>
    %19 = vector.shape_cast %18 : vector<1x192x64xbf16> to vector<192x64xbf16>
    %cst_8 = arith.constant dense<0.000000e+00> : vector<64x64xf32>
    %20 = tpu.matmul %17, %19, %cst_8 {dimension_numbers = #tpu.dot_dimension_numbers<[1], [0], [0], [1], [0, 0, 1, 1], [], []>} : vector<64x192xbf16>, vector<192x64xbf16>, vector<64x64xf32> -> vector<64x64xf32>
    %21 = arith.addf %15, %20 : vector<64x64xf32>
    %c0_9 = arith.constant 0 : index
    %c0_10 = arith.constant 0 : index
    %22 = vector.load %arg3[%c0_9, %c0_10] : memref<1x64xf32, #tpu.memory_space<vmem>>, vector<1x64xf32>
    %23 = vector.broadcast %22 : vector<1x64xf32> to vector<64x64xf32>
    %24 = arith.addf %21, %23 : vector<64x64xf32>
    %c0_11 = arith.constant 0 : index
    %c0_12 = arith.constant 0 : index
    %25 = vector.load %arg4[%c0_11, %c0_12] : memref<64x64xbf16, #tpu.memory_space<vmem>>, vector<64x64xbf16>
    %26 = arith.extf %25 : vector<64x64xbf16> to vector<64x64xf32>
    %27 = arith.addf %24, %26 : vector<64x64xf32>
    %cst_13 = arith.constant 0.000000e+00 : f32
    %28 = vector.broadcast %cst_13 : f32 to vector<64x64xf32>
    %29 = arith.maximumf %27, %28 : vector<64x64xf32>
    %c0_14 = arith.constant 0 : index
    %c0_15 = arith.constant 0 : index
    %30 = vector.load %arg5[%c0_14, %c0_15] : memref<1x64xf32, #tpu.memory_space<vmem>>, vector<1x64xf32>
    %31 = vector.broadcast %30 : vector<1x64xf32> to vector<64x64xf32>
    %32 = arith.mulf %29, %31 : vector<64x64xf32>
    %c0_16 = arith.constant 0 : index
    %c0_17 = arith.constant 0 : index
    %33 = vector.load %arg6[%c0_16, %c0_17] : memref<1x64xf32, #tpu.memory_space<vmem>>, vector<1x64xf32>
    %34 = vector.broadcast %33 : vector<1x64xf32> to vector<64x64xf32>
    %35 = arith.addf %32, %34 : vector<64x64xf32>
    %cst_18 = arith.constant 0.000000e+00 : f32
    %36 = vector.broadcast %cst_18 : f32 to vector<64x64xf32>
    %37 = arith.maximumf %35, %36 : vector<64x64xf32>
    %cst_19 = arith.constant dense<0.000000e+00> : vector<64xf32>
    %38 = vector.multi_reduction <add>, %37, %cst_19 [0] : vector<64x64xf32> to vector<64xf32>
    %39 = vector.shape_cast %38 : vector<64xf32> to vector<1x64xf32>
    %cst_20 = arith.constant 6.400000e+01 : f32
    %40 = vector.broadcast %cst_20 : f32 to vector<1x64xf32>
    %41 = arith.divf %39, %40 : vector<1x64xf32>
    %c0_21 = arith.constant 0 : index
    %c0_22 = arith.constant 0 : index
    %42 = vector.load %arg7[%c0_21, %c0_22] : memref<64x10xf32, #tpu.memory_space<vmem>>, vector<64x10xf32>
    %cst_23 = arith.constant dense<0.000000e+00> : vector<1x10xf32>
    %43 = tpu.matmul %41, %42, %cst_23 {dimension_numbers = #tpu.dot_dimension_numbers<[1], [0], [0], [1], [0, 0, 1, 1], [], []>} : vector<1x64xf32>, vector<64x10xf32>, vector<1x10xf32> -> vector<1x10xf32>
    %c0_24 = arith.constant 0 : index
    %c0_25 = arith.constant 0 : index
    %44 = vector.load %arg8[%c0_24, %c0_25] : memref<1x10xf32, #tpu.memory_space<vmem>>, vector<1x10xf32>
    %45 = arith.addf %43, %44 : vector<1x10xf32>
    %46 = vector.shape_cast %45 : vector<1x10xf32> to vector<1x1x10xf32>
    %c0_26 = arith.constant 0 : index
    %c0_27 = arith.constant 0 : index
    %c0_28 = arith.constant 0 : index
    %47 = vector.load %arg9[%c0_26, %c0_27, %c0_28] : memref<1x1x10xf32, #tpu.memory_space<vmem>>, vector<1x1x10xf32>
    tpu.vector_store %arg9[%c0_26, %c0_27, %c0_28], %46 {strides = array<i32>} : memref<1x1x10xf32, #tpu.memory_space<vmem>>, vector<1x1x10xf32>,
    return
  }
  func.func @transform_0(%arg0: i32) -> (i32, i32, i32, i32) {
    %c0_i32 = arith.constant 0 : i32
    %c0_i32_0 = arith.constant 0 : i32
    %c0_i32_1 = arith.constant 0 : i32
    %c0_i32_2 = arith.constant 0 : i32
    return %arg0, %c0_i32, %c0_i32_0, %c0_i32_1 : i32, i32, i32, i32
  }
  func.func @transform_1(%arg0: i32) -> (i32, i32, i32) {
    %c0_i32 = arith.constant 0 : i32
    %c0_i32_0 = arith.constant 0 : i32
    %c0_i32_1 = arith.constant 0 : i32
    %c0_i32_2 = arith.constant 0 : i32
    return %c0_i32, %c0_i32_0, %c0_i32_1 : i32, i32, i32
  }
  func.func @transform_2(%arg0: i32) -> (i32, i32) {
    %c0_i32 = arith.constant 0 : i32
    %c0_i32_0 = arith.constant 0 : i32
    %c0_i32_1 = arith.constant 0 : i32
    return %c0_i32, %c0_i32_0 : i32, i32
  }
  func.func @transform_3(%arg0: i32) -> (i32, i32) {
    %c0_i32 = arith.constant 0 : i32
    %c0_i32_0 = arith.constant 0 : i32
    return %arg0, %c0_i32 : i32, i32
  }
  func.func @transform_4(%arg0: i32) -> (i32, i32) {
    %c0_i32 = arith.constant 0 : i32
    %c0_i32_0 = arith.constant 0 : i32
    %c0_i32_1 = arith.constant 0 : i32
    return %c0_i32, %c0_i32_0 : i32, i32
  }
  func.func @transform_5(%arg0: i32) -> (i32, i32) {
    %c0_i32 = arith.constant 0 : i32
    %c0_i32_0 = arith.constant 0 : i32
    %c0_i32_1 = arith.constant 0 : i32
    return %c0_i32, %c0_i32_0 : i32, i32
  }
  func.func @transform_6(%arg0: i32) -> (i32, i32) {
    %c0_i32 = arith.constant 0 : i32
    %c0_i32_0 = arith.constant 0 : i32
    %c0_i32_1 = arith.constant 0 : i32
    return %c0_i32, %c0_i32_0 : i32, i32
  }
  func.func @transform_7(%arg0: i32) -> (i32, i32) {
    %c0_i32 = arith.constant 0 : i32
    %c0_i32_0 = arith.constant 0 : i32
    %c0_i32_1 = arith.constant 0 : i32
    return %c0_i32, %c0_i32_0 : i32, i32
  }
  func.func @transform_8(%arg0: i32) -> (i32, i32, i32) {
    %c0_i32 = arith.constant 0 : i32
    %c0_i32_0 = arith.constant 0 : i32
    %c0_i32_1 = arith.constant 0 : i32
    return %arg0, %c0_i32, %c0_i32_0 : i32, i32, i32
  }
}

</mosaic_0001>

<bundles_post_ra>
// kernel: _lambda_.7
= control target key start
LH: loop header
LB: loop body
LE: loop exit
PB: predicated region body
PF: predicated region fallthrough
CT: control target
= control target key end

     0   :  { %s4967_s12 = smov 0   ;;  %s6156_s0 = inlined_call_operand.vmem [shape: bf16[2,34,32,9], index: 0, kind: input, shape index: {}]   ;;  %s6157_s1 = inlined_call_operand.vmem [shape: bf16[3,9,16], index: 1, kind: input, shape index: {}]   ;;  %s6158_s2 = inlined_call_operand.vmem [shape: f32[1,16], index: 2, kind: input, shape index: {}]   ;;  %s6159_s3 = inlined_call_operand.vmem [shape: bf16[2048,16], index: 3, kind: output, shape index: {}]  }
   0x1 LB: > { %s4973_s13 = sadd.s32 4294967295, %s4944_s12   ;;  %p3487_p0 = scmp.ge.s32.totalorder %s4944_s12, 1  ;;  %s4944_s12 = sphi %s4967_s12, %s13_s12  }
   0x2   : > { %p137_p1 = scmp.lt.s32.totalorder %s4944_s12, 3 }
   0x4   : > { %p138_p2 = pnand %p3487_p0, %p137_p1 }
   0x6   : > { %141 = sbr.rel (%p138_p2) target bundleno = 621 (0x26d), region = 32 }
   0xd   : > { %v4866_v0 = vld [vmem:[%s6157_s1 + $0x8] sm:$0x1f]   ;;  %vm833_vm0 = vcmask 1043456   ;;  %vm834_vm1 = vcmask 1044480   ;;  %v4867_v1 = vld [vmem:[%s6157_s1] sm:$0x1f]  }
   0xe   : > { %p161_p3 = scmp.lt.s32.totalorder %s4973_s13, 1  ;;  %v4946_v2 = vmov 65535   ;;  %v4870_v5 = vld [vmem:[%s6157_s1 + $0x10] sm:$0x1f]   ;;  %vm640_vm2 = vcmask 72704   ;;  %s3489_s25 = sshll.u32 %s4973_s13, 7 }
   0xf   : > { %v835_v3 = vsel %vm833_vm0, 4294967295, %v4946_v2  ;;  %p167_p4 = scmp.lt.s32.totalorder %s3489_s25, 255  ;;  %vm3298_vm3 = vcmask 125952  }
  0x10   : > { %v836_v4 = vsel %vm834_vm1, %v835_v3, 0  ;;  %s162_s18 = scalar_select %p161_p3, %s4973_s13, 1 }
  0x11   : > { %v838_v6 = vand.u32 %v4866_v0, %v836_v4  ;;  %v1407_v7 = vand.u32 %v4867_v1, %v836_v4  ;;  %v1976_v8 = vand.u32 %v4870_v5, %v836_v4  ;;  %s6201_s25 = smov (!%p167_p4, %s3489_s25), 255 }
  0x12   : > { %s4856_s21 = smul.u32 544, %s162_s18  ;;  %s3490_s28 = sshll.u32 %s6201_s25, 2 }
  0x13   : > { %4208 = vmatprep.subr.bf16.mxu1 %v838_v6  ;;  %4338 = vmatprep.subr.bf16.mxu0 %v1407_v7  ;;  %s5666_s4 = scalar_lea.vmem %s6159_s3, %s3490_s28 }
  0x14   : > { %4209 = vmatpush3.bf16.msra.mxu1 %v838_v6  ;;  %4339 = vmatpush3.bf16.msra.mxu0 %v1407_v7  ;;  %s4991_s24 = scalar_lea.vmem %s6156_s0, %s4856_s21 }
  0x15   : > { %v4868_v9 = vld [vmem:[%s4991_s24 + $0x10] sm:$0xff]   ;;  %4598 = vmatprep.subr.bf16.mxu1 %v1407_v7  ;;  %4468 = vmatprep.subr.bf16.mxu0 %v1976_v8  ;;  %v4869_v10 = vld [vmem:[%s4991_s24] sm:$0xff]   ;;  %v4871_v11 = vld [vmem:[%s4991_s24 + $0x18] sm:$0xff]  }
  0x16   : > { %4210 = vmatprep.mubr.msk.bf16.mxu1 %vm640_vm2, %v4868_v9  ;;  %4340 = vmatprep.mubr.msk.bf16.mxu0 %vm640_vm2, %v4869_v10  ;;  %v4872_v12 = vld [vmem:[%s4991_s24 + $0x8] sm:$0xff]   ;;  %v5001_v13 = vld [vmem:[%s4991_s24 + $0x20] sm:$0xff]   ;;  %v5011_v15 = vld [vmem:[%s4991_s24 + $0x30] sm:$0xff]  }
  0x17   : > { %4211 = vmatmul.mubr.msk.bf16.vlgmr.msra.gmra.mrb[0].mxu1 %vm640_vm2, %v4871_v11  ;;  %4341 = vmatmul.mubr.msk.bf16.vlgmr.msra.gmra.mrb[0].mxu0 %vm640_vm2, %v4872_v12  ;;  %v5008_v14 = vld [vmem:[%s4991_s24 + $0x28] sm:$0xff]   ;;  %v5021_v16 = vld [vmem:[%s4991_s24 + $0x38] sm:$0xff]   ;;  %v5024_v17 = vld [vmem:[%s4991_s24 + $0x40] sm:$0xff]  }
  0x18   : > { %4599 = vmatpush3.bf16.msra.mxu1 %v1407_v7  ;;  %4469 = vmatpush3.bf16.msra.mxu0 %v1976_v8  ;;  %v5035_v18 = vld [vmem:[%s4991_s24 + $0x48] sm:$0xff]   ;;  %v5038_v19 = vld [vmem:[%s4991_s24 + $0x50] sm:$0xff]   ;;  %v5049_v20 = vld [vmem:[%s4991_s24 + $0x58] sm:$0xff]  }
  0x19   : > { %4214 = vmatprep.mubr.msk.bf16.mxu1 %vm640_vm2, %v5001_v13  ;;  %4344 = vmatprep.mubr.msk.bf16.mxu0 %vm640_vm2, %v4868_v9  ;;  %v5052_v21 = vld [vmem:[%s4991_s24 + $0x60] sm:$0xff]   ;;  %v5063_v22 = vld [vmem:[%s4991_s24 + $0x68] sm:$0xff]   ;;  %v5066_v23 = vld [vmem:[%s4991_s24 + $0x70] sm:$0xff]  }
  0x1a   : > { %v5077_v24 = vld [vmem:[%s4991_s24 + $0x78] sm:$0xff]   ;;  %v5080_v25 = vld [vmem:[%s4991_s24 + $0x80] sm:$0xff]   ;;  %v5091_v26 = vld [vmem:[%s4991_s24 + $0x88] sm:$0xff]  }
  0x1b   : > { %v5094_v27 = vld [vmem:[%s4991_s24 + $0x90] sm:$0xff]   ;;  %v5105_v28 = vld [vmem:[%s4991_s24 + $0x98] sm:$0xff]   ;;  %v5108_v29 = vld [vmem:[%s4991_s24 + $0xa0] sm:$0xff]  }
  0x1c   : > { %v5119_v30 = vld [vmem:[%s4991_s24 + $0xa8] sm:$0xff]   ;;  %v5122_v31 = vld [vmem:[%s4991_s24 + $0xb0] sm:$0xff]   ;;  %v5133_v32 = vld [vmem:[%s4991_s24 + $0xb8] sm:$0xff]  }
  0x1d   : > { %v5136_v33 = vld [vmem:[%s4991_s24 + $0xc0] sm:$0xff]   ;;  %v5147_v34 = vld [vmem:[%s4991_s24 + $0xc8] sm:$0xff]   ;;  %v5150_v35 = vld [vmem:[%s4991_s24 + $0xd0] sm:$0xff]  }
  0x1e   : > { %v5161_v36 = vld [vmem:[%s4991_s24 + $0xd8] sm:$0xff]   ;;  %v5164_v37 = vld [vmem:[%s4991_s24 + $0xe0] sm:$0xff]   ;;  %v5175_v38 = vld [vmem:[%s4991_s24 + $0xe8] sm:$0xff]  }
  0x1f   : > { %4215 = vmatmul.mubr.msk.bf16.gmra.mrb[4].mxu1 %vm640_vm2, %v5008_v14  ;;  %4345 = vmatmul.mubr.msk.bf16.gmra.mrb[4].mxu0 %vm640_vm2, %v4871_v11  ;;  %v5178_v39 = vld [vmem:[%s4991_s24 + $0xf0] sm:$0xff]   ;;  %v5189_v40 = vld [vmem:[%s4991_s24 + $0xf8] sm:$0xff]   ;;  %v5192_v41 = vld [vmem:[%s4991_s24 + $0x100] sm:$0xff]  }
  0x20   : > { %4218 = vmatprep.mubr.msk.bf16.mxu1 %vm640_vm2, %v5011_v15  ;;  %4348 = vmatprep.mubr.msk.bf16.mxu0 %vm640_vm2, %v5001_v13  ;;  %v5203_v42 = vld [vmem:[%s4991_s24 + $0x108] sm:$0xff]   ;;  %v5206_v43 = vld [vmem:[%s4991_s24 + $0x110] sm:$0xff]   ;;  %v5217_v44 = vld [vmem:[%s4991_s24 + $0x118] sm:$0xff]  }
  0x21   : > { %v5220_v45 = vld [vmem:[%s4991_s24 + $0x120] sm:$0xff]   ;;  %v5231_v46 = vld [vmem:[%s4991_s24 + $0x128] sm:$0xff]   ;;  %v5234_v47 = vld [vmem:[%s4991_s24 + $0x130] sm:$0xff]  }
  0x22   : > { %v5245_v48 = vld [vmem:[%s4991_s24 + $0x138] sm:$0xff]   ;;  %v5248_v49 = vld [vmem:[%s4991_s24 + $0x140] sm:$0xff]   ;;  %v5259_v50 = vld [vmem:[%s4991_s24 + $0x148] sm:$0xff]  }
  0x23   : > { %v5262_v51 = vld [vmem:[%s4991_s24 + $0x150] sm:$0xff]   ;;  %v5273_v52 = vld [vmem:[%s4991_s24 + $0x158] sm:$0xff]   ;;  %v5276_v53 = vld [vmem:[%s4991_s24 + $0x160] sm:$0xff]  }
  0x24   : > { %v5287_v54 = vld [vmem:[%s4991_s24 + $0x168] sm:$0xff]   ;;  %v5290_v55 = vld [vmem:[%s4991_s24 + $0x170] sm:$0xff]   ;;  %v5301_v56 = vld [vmem:[%s4991_s24 + $0x178] sm:$0xff]  }
  0x25   : > { %v5304_v57 = vld [vmem:[%s4991_s24 + $0x180] sm:$0xff]   ;;  %v5315_v58 = vld [vmem:[%s4991_s24 + $0x188] sm:$0xff]   ;;  %v5318_v59 = vld [vmem:[%s4991_s24 + $0x190] sm:$0xff]  }
  0x26   : > { %v5329_v60 = vld [vmem:[%s4991_s24 + $0x198] sm:$0xff]   ;;  %v5332_v61 = vld [vmem:[%s4991_s24 + $0x1a0] sm:$0xff]   ;;  %v5343_v62 = vld [vmem:[%s4991_s24 + $0x1a8] sm:$0xff]  }
  0x27   : > { %4219 = vmatmul.mubr.msk.bf16.gmra.mrb[8].mxu1 %vm640_vm2, %v5021_v16  ;;  %4349 = vmatmul.mubr.msk.bf16.gmra.mrb[8].mxu0 %vm640_vm2, %v5008_v14  ;;  %v5346_v63 = vld [vmem:[%s4991_s24 + $0x1b0] sm:$0xff]   ;;  %v5357_v0 = vld [vmem:[%s4991_s24 + $0x1b8] sm:$0xff]   ;;  %v5360_v1 = vld [vmem:[%s4991_s24 + $0x1c0] sm:$0xff]  }
  0x28   : > { %4222 = vmatprep.mubr.msk.bf16.mxu1 %vm640_vm2, %v5024_v17  ;;  %4352 = vmatprep.mubr.msk.bf16.mxu0 %vm640_vm2, %v5011_v15  ;;  %v5375_v4 = vld [vmem:[%s4991_s24 + $0x1c8] sm:$0xff]   ;;  %v5380_v6 = vld [vmem:[%s4991_s24 + $0x1d0] sm:$0xff]   ;;  %v5397_v10 = vld [vmem:[%s4991_s24 + $0x1d8] sm:$0xff]  }
  0x29   : > { %v5402_v12 = vld [vmem:[%s4991_s24 + $0x1e0] sm:$0xff]  }
  0x2f   : > { %4223 = vmatmul.mubr.msk.bf16.gmra.mrb[12].mxu1 %vm640_vm2, %v5035_v18  ;;  %4353 = vmatmul.mubr.msk.bf16.gmra.mrb[12].mxu0 %vm640_vm2, %v5021_v16 }
  0x30   : > { %4226 = vmatprep.mubr.msk.bf16.mxu1 %vm640_vm2, %v5038_v19  ;;  %4356 = vmatprep.mubr.msk.bf16.mxu0 %vm640_vm2, %v5024_v17 }
  0x37   : > { %4227 = vmatmul.mubr.msk.bf16.gmra.mrb[16].mxu1 %vm640_vm2, %v5049_v20  ;;  %4357 = vmatmul.mubr.msk.bf16.gmra.mrb[16].mxu0 %vm640_vm2, %v5035_v18 }
  0x38   : > { %4230 = vmatprep.mubr.msk.bf16.mxu1 %vm640_vm2, %v5052_v21  ;;  %4360 = vmatprep.mubr.msk.bf16.mxu0 %vm640_vm2, %v5038_v19 }
  0x3f   : > { %4231 = vmatmul.mubr.msk.bf16.gmra.mrb[20].mxu1 %vm640_vm2, %v5063_v22  ;;  %4361 = vmatmul.mubr.msk.bf16.gmra.mrb[20].mxu0 %vm640_vm2, %v5049_v20 }
  0x40   : > { %4234 = vmatprep.mubr.msk.bf16.mxu1 %vm640_vm2, %v5066_v23  ;;  %4364 = vmatprep.mubr.msk.bf16.mxu0 %vm640_vm2, %v5052_v21 }
  0x47   : > { %4235 = vmatmul.mubr.msk.bf16.gmra.mrb[24].mxu1 %vm640_vm2, %v5077_v24  ;;  %4365 = vmatmul.mubr.msk.bf16.gmra.mrb[24].mxu0 %vm640_vm2, %v5063_v22 }
  0x48   : > { %4238 = vmatprep.mubr.msk.bf16.mxu1 %vm640_vm2, %v5080_v25  ;;  %4368 = vmatprep.mubr.msk.bf16.mxu0 %vm640_vm2, %v5066_v23 }
  0x4f   : > { %4239 = vmatmul.mubr.msk.bf16.gmra.mrb[28].mxu1 %vm640_vm2, %v5091_v26  ;;  %4369 = vmatmul.mubr.msk.bf16.gmra.mrb[28].mxu0 %vm640_vm2, %v5077_v24 }
  0x50   : > { %4242 = vmatprep.mubr.msk.bf16.mxu1 %vm640_vm2, %v5094_v27  ;;  %4372 = vmatprep.mubr.msk.bf16.mxu0 %vm640_vm2, %v5080_v25 }
  0x57   : > { %4243 = vmatmul.mubr.msk.bf16.gmra.mrb[32].mxu1 %vm640_vm2, %v5105_v28  ;;  %4373 = vmatmul.mubr.msk.bf16.gmra.mrb[32].mxu0 %vm640_vm2, %v5091_v26 }
  0x58   : > { %4246 = vmatprep.mubr.msk.bf16.mxu1 %vm640_vm2, %v5108_v29  ;;  %4376 = vmatprep.mubr.msk.bf16.mxu0 %vm640_vm2, %v5094_v27 }
  0x5f   : > { %4247 = vmatmul.mubr.msk.bf16.gmra.mrb[36].mxu1 %vm640_vm2, %v5119_v30  ;;  %4377 = vmatmul.mubr.msk.bf16.gmra.mrb[36].mxu0 %vm640_vm2, %v5105_v28 }
  0x60   : > { %4250 = vmatprep.mubr.msk.bf16.mxu1 %vm640_vm2, %v5122_v31  ;;  %4380 = vmatprep.mubr.msk.bf16.mxu0 %vm640_vm2, %v5108_v29 }
  0x67   : > { %4251 = vmatmul.mubr.msk.bf16.gmra.mrb[40].mxu1 %vm640_vm2, %v5133_v32  ;;  %4381 = vmatmul.mubr.msk.bf16.gmra.mrb[40].mxu0 %vm640_vm2, %v5119_v30 }
  0x68   : > { %4254 = vmatprep.mubr.msk.bf16.mxu1 %vm640_vm2, %v5136_v33  ;;  %4384 = vmatprep.mubr.msk.bf16.mxu0 %vm640_vm2, %v5122_v31 }
  0x6f   : > { %4255 = vmatmul.mubr.msk.bf16.gmra.mrb[44].mxu1 %vm640_vm2, %v5147_v34  ;;  %4385 = vmatmul.mubr.msk.bf16.gmra.mrb[44].mxu0 %vm640_vm2, %v5133_v32 }
  0x70   : > { %4258 = vmatprep.mubr.msk.bf16.mxu1 %vm640_vm2, %v5150_v35  ;;  %4388 = vmatprep.mubr.msk.bf16.mxu0 %vm640_vm2, %v5136_v33 }
  0x77   : > { %4259 = vmatmul.mubr.msk.bf16.gmra.mrb[48].mxu1 %vm640_vm2, %v5161_v36  ;;  %4389 = vmatmul.mubr.msk.bf16.gmra.mrb[48].mxu0 %vm640_vm2, %v5147_v34 }
  0x78   : > { %4262 = vmatprep.mubr.msk.bf16.mxu1 %vm640_vm2, %v5164_v37  ;;  %4392 = vmatprep.mubr.msk.bf16.mxu0 %vm640_vm2, %v5150_v35 }
  0x7f   : > { %4263 = vmatmul.mubr.msk.bf16.gmra.mrb[52].mxu1 %vm640_vm2, %v5175_v38  ;;  %4393 = vmatmul.mubr.msk.bf16.gmra.mrb[52].mxu0 %vm640_vm2, %v5161_v36 }
  0x80   : > { %4266 = vmatprep.mubr.msk.bf16.mxu1 %vm640_vm2, %v5178_v39  ;;  %4396 = vmatprep.mubr.msk.bf16.mxu0 %vm640_vm2, %v5164_v37 }
  0x87   : > { %4267 = vmatmul.mubr.msk.bf16.gmra.mrb[56].mxu1 %vm640_vm2, %v5189_v40  ;;  %4397 = vmatmul.mubr.msk.bf16.gmra.mrb[56].mxu0 %vm640_vm2, %v5175_v38 }
  0x88   : > { %4270 = vmatprep.mubr.msk.bf16.mxu1 %vm640_vm2, %v5192_v41  ;;  %4400 = vmatprep.mubr.msk.bf16.mxu0 %vm640_vm2, %v5178_v39 }
  0x8f   : > { %4271 = vmatmul.mubr.msk.bf16.gmra.mrb[60].mxu1 %vm640_vm2, %v5203_v42  ;;  %4401 = vmatmul.mubr.msk.bf16.gmra.mrb[60].mxu0 %vm640_vm2, %v5189_v40 }
  0x90   : > { %4274 = vmatprep.mubr.msk.bf16.mxu1 %vm640_vm2, %v5206_v43  ;;  %4470 = vmatprep.mubr.msk.bf16.mxu0 %vm640_vm2, %v5001_v13 }
  0x97   : > { %4275 = vmatmul.mubr.msk.bf16.gmra.mrb[64].mxu1 %vm640_vm2, %v5217_v44  ;;  %4471 = vmatmul.mubr.msk.bf16.vlgmr.msra.gmra.mrb[0].mxu0 %vm640_vm2, %v5008_v14 }
  0x98   : > { %4278 = vmatprep.mubr.msk.bf16.mxu1 %vm640_vm2, %v5220_v45  ;;  %4474 = vmatprep.mubr.msk.bf16.mxu0 %vm640_vm2, %v5011_v15 }
  0x9f   : > { %4279 = vmatmul.mubr.msk.bf16.gmra.mrb[68].mxu1 %vm640_vm2, %v5231_v46  ;;  %4475 = vmatmul.mubr.msk.bf16.gmra.mrb[4].mxu0 %vm640_vm2, %v5021_v16  ;;  %v5419_v16 = vld [vmem:[%s4991_s24 + $0x1e8] sm:$0xff]  }
  0xa0   : > { %4282 = vmatprep.mubr.msk.bf16.mxu1 %vm640_vm2, %v5234_v47  ;;  %4478 = vmatprep.mubr.msk.bf16.mxu0 %vm640_vm2, %v5024_v17 }
  0xa7   : > { %4283 = vmatmul.mubr.msk.bf16.gmra.mrb[72].mxu1 %vm640_vm2, %v5245_v48  ;;  %4479 = vmatmul.mubr.msk.bf16.gmra.mrb[8].mxu0 %vm640_vm2, %v5035_v18  ;;  %v5424_v18 = vld [vmem:[%s4991_s24 + $0x1f0] sm:$0xff]  }
  0xa8   : > { %4286 = vmatprep.mubr.msk.bf16.mxu1 %vm640_vm2, %v5248_v49  ;;  %4482 = vmatprep.mubr.msk.bf16.mxu0 %vm640_vm2, %v5038_v19 }
  0xaf   : > { %4287 = vmatmul.mubr.msk.bf16.gmra.mrb[76].mxu1 %vm640_vm2, %v5259_v50  ;;  %4483 = vmatmul.mubr.msk.bf16.gmra.mrb[12].mxu0 %vm640_vm2, %v5049_v20 }
  0xb0   : > { %4290 = vmatprep.mubr.msk.bf16.mxu1 %vm640_vm2, %v5262_v51  ;;  %4486 = vmatprep.mubr.msk.bf16.mxu0 %vm640_vm2, %v5052_v21 }
  0xb7   : > { %4291 = vmatmul.mubr.msk.bf16.gmra.mrb[80].mxu1 %vm640_vm2, %v5273_v52  ;;  %4487 = vmatmul.mubr.msk.bf16.gmra.mrb[16].mxu0 %vm640_vm2, %v5063_v22  ;;  %v5441_v22 = vld [vmem:[%s4991_s24 + $0x1f8] sm:$0xff]  }
  0xb8   : > { %4294 = vmatprep.mubr.msk.bf16.mxu1 %vm640_vm2, %v5276_v53  ;;  %4490 = vmatprep.mubr.msk.bf16.mxu0 %vm640_vm2, %v5066_v23 }
  0xbf   : > { %4295 = vmatmul.mubr.msk.bf16.gmra.mrb[84].mxu1 %vm640_vm2, %v5287_v54  ;;  %4491 = vmatmul.mubr.msk.bf16.gmra.mrb[20].mxu0 %vm640_vm2, %v5077_v24  ;;  %v5446_v24 = vld [vmem:[%s4991_s24 + $0x200] sm:$0xff]  }
  0xc0   : > { %4298 = vmatprep.mubr.msk.bf16.mxu1 %vm640_vm2, %v5290_v55  ;;  %4494 = vmatprep.mubr.msk.bf16.mxu0 %vm640_vm2, %v5080_v25 }
  0xc7   : > { %4299 = vmatmul.mubr.msk.bf16.gmra.mrb[88].mxu1 %vm640_vm2, %v5301_v56  ;;  %4495 = vmatmul.mubr.msk.bf16.gmra.mrb[24].mxu0 %vm640_vm2, %v5091_v26 }
  0xc8   : > { %4302 = vmatprep.mubr.msk.bf16.mxu1 %vm640_vm2, %v5304_v57  ;;  %4498 = vmatprep.mubr.msk.bf16.mxu0 %vm640_vm2, %v5094_v27 }
  0xcf   : > { %4303 = vmatmul.mubr.msk.bf16.gmra.mrb[92].mxu1 %vm640_vm2, %v5315_v58  ;;  %4499 = vmatmul.mubr.msk.bf16.gmra.mrb[28].mxu0 %vm640_vm2, %v5105_v28  ;;  %v5463_v28 = vld [vmem:[%s4991_s24 + $0x208] sm:$0xff]  }
  0xd0   : > { %4306 = vmatprep.mubr.msk.bf16.mxu1 %vm640_vm2, %v5318_v59  ;;  %4502 = vmatprep.mubr.msk.bf16.mxu0 %vm640_vm2, %v5108_v29 }
  0xd7   : > { %4307 = vmatmul.mubr.msk.bf16.gmra.mrb[96].mxu1 %vm640_vm2, %v5329_v60  ;;  %4503 = vmatmul.mubr.msk.bf16.gmra.mrb[32].mxu0 %vm640_vm2, %v5119_v30 }
  0xd8   : > { %4310 = vmatprep.mubr.msk.bf16.mxu1 %vm640_vm2, %v5332_v61  ;;  %4506 = vmatprep.mubr.msk.bf16.mxu0 %vm640_vm2, %v5122_v31 }
  0xdf   : > { %4311 = vmatmul.mubr.msk.bf16.gmra.mrb[100].mxu1 %vm640_vm2, %v5343_v62  ;;  %4507 = vmatmul.mubr.msk.bf16.gmra.mrb[36].mxu0 %vm640_vm2, %v5133_v32 }
  0xe0   : > { %4314 = vmatprep.mubr.msk.bf16.mxu1 %vm640_vm2, %v5346_v63  ;;  %4510 = vmatprep.mubr.msk.bf16.mxu0 %vm640_vm2, %v5136_v33 }
  0xe7   : > { %4315 = vmatmul.mubr.msk.bf16.gmra.mrb[104].mxu1 %vm640_vm2, %v5357_v0  ;;  %4511 = vmatmul.mubr.msk.bf16.gmra.mrb[40].mxu0 %vm640_vm2, %v5147_v34 }
  0xe8   : > { %4318 = vmatprep.mubr.msk.bf16.mxu1 %vm640_vm2, %v5360_v1  ;;  %4514 = vmatprep.mubr.msk.bf16.mxu0 %vm640_vm2, %v5150_v35 }
  0xea   : > { %v5370_v2 = vpop.f32.mrb[0].mxu1 }
  0xeb   : > { %v5372_v3 = vpop.f32.mrb[1].mxu1 }
  0xec   : > { %v5377_v5 = vpop.f32.mrb[2].mxu1 }
  0xed   : > { %v5382_v7 = vpop.f32.mrb[3].mxu1 }
  0xef   : > { %4319 = vmatmul.mubr.msk.bf16.gmra.mrb[108].mxu1 %vm640_vm2, %v5375_v4  ;;  %4515 = vmatmul.mubr.msk.bf16.gmra.mrb[44].mxu0 %vm640_vm2, %v5161_v36 }
  0xf0   : > { %4322 = vmatprep.mubr.msk.bf16.mxu1 %vm640_vm2, %v5380_v6  ;;  %4518 = vmatprep.mubr.msk.bf16.mxu0 %vm640_vm2, %v5164_v37 }
  0xf2   : > { %v5392_v8 = vpop.f32.mrb[4].mxu1 }
  0xf3   : > { %v5394_v9 = vpop.f32.mrb[5].mxu1 }
  0xf4   : > { %v5399_v11 = vpop.f32.mrb[6].mxu1 }
  0xf5   : > { %v5404_v13 = vpop.f32.mrb[7].mxu1 }
  0xf7   : > { %4323 = vmatmul.mubr.msk.bf16.gmra.mrb[112].mxu1 %vm640_vm2, %v5397_v10  ;;  %4519 = vmatmul.mubr.msk.bf16.gmra.mrb[48].mxu0 %vm640_vm2, %v5175_v38 }
  0xf8   : > { %4326 = vmatprep.mubr.msk.bf16.mxu1 %vm640_vm2, %v5402_v12  ;;  %4522 = vmatprep.mubr.msk.bf16.mxu0 %vm640_vm2, %v5178_v39 }
  0xfa   : > { %v5414_v14 = vpop.f32.mrb[8].mxu1 }
  0xfb   : > { %v5416_v15 = vpop.f32.mrb[9].mxu1 }
  0xfc   : > { %v5421_v17 = vpop.f32.mrb[10].mxu1 }
  0xfd   : > { %v5426_v19 = vpop.f32.mrb[11].mxu1 }
  0xff   : > { %4327 = vmatmul.mubr.msk.bf16.gmra.mrb[116].mxu1 %vm640_vm2, %v5419_v16  ;;  %4523 = vmatmul.mubr.msk.bf16.gmra.mrb[52].mxu0 %vm640_vm2, %v5189_v40 }
 0x100   : > { %4330 = vmatprep.mubr.msk.bf16.mxu1 %vm640_vm2, %v5424_v18  ;;  %4526 = vmatprep.mubr.msk.bf16.mxu0 %vm640_vm2, %v5192_v41 }
 0x102   : > { %v5436_v20 = vpop.f32.mrb[12].mxu1 }
 0x103   : > { %v5438_v21 = vpop.f32.mrb[13].mxu1 }
 0x104   : > { %v5443_v23 = vpop.f32.mrb[14].mxu1 }
 0x105   : > { %v5448_v25 = vpop.f32.mrb[15].mxu1 }
 0x107   : > { %4331 = vmatmul.mubr.msk.bf16.gmra.mrb[120].mxu1 %vm640_vm2, %v5441_v22  ;;  %4527 = vmatmul.mubr.msk.bf16.gmra.mrb[56].mxu0 %vm640_vm2, %v5203_v42 }
 0x108   : > { %4334 = vmatprep.mubr.msk.bf16.mxu1 %vm640_vm2, %v5446_v24  ;;  %4530 = vmatprep.mubr.msk.bf16.mxu0 %vm640_vm2, %v5206_v43 }
 0x10a   : > { %v5458_v26 = vpop.f32.mrb[16].mxu1 }
 0x10b   : > { %v5460_v27 = vpop.f32.mrb[17].mxu1 }
 0x10c   : > { %v5465_v29 = vpop.f32.mrb[18].mxu1 }
 0x10d   : > { %v5467_v30 = vpop.f32.mrb[19].mxu1 }
 0x10f   : > { %4335 = vmatmul.mubr.msk.bf16.gmra.mrb[124].mxu1 %vm640_vm2, %v5463_v28  ;;  %4531 = vmatmul.mubr.msk.bf16.gmra.mrb[60].mxu0 %vm640_vm2, %v5217_v44 }
 0x110   : > { %4404 = vmatprep.mubr.msk.bf16.mxu1 %vm640_vm2, %v5192_v41  ;;  %4534 = vmatprep.mubr.msk.bf16.mxu0 %vm640_vm2, %v5220_v45 }
 0x112   : > { %v5477_v31 = vpop.f32.mrb[20].mxu1 }
 0x113   : > { %v5479_v32 = vpop.f32.mrb[21].mxu1 }
 0x114   : > { %v5481_v33 = vpop.f32.mrb[22].mxu1 }
 0x115   : > { %v5483_v34 = vpop.f32.mrb[23].mxu1 }
 0x117   : > { %4405 = vmatmul.mubr.msk.bf16.vlgmr.msra.gmra.mrb[64].mxu1 %vm640_vm2, %v5203_v42  ;;  %4535 = vmatmul.mubr.msk.bf16.gmra.mrb[64].mxu0 %vm640_vm2, %v5231_v46 }
 0x118   : > { %4408 = vmatprep.mubr.msk.bf16.mxu1 %vm640_vm2, %v5206_v43  ;;  %4538 = vmatprep.mubr.msk.bf16.mxu0 %vm640_vm2, %v5234_v47 }
 0x11a   : > { %v5493_v35 = vpop.f32.mrb[24].mxu1 }
 0x11b   : > { %v5495_v36 = vpop.f32.mrb[25].mxu1 }
 0x11c   : > { %v5497_v37 = vpop.f32.mrb[26].mxu1 }
 0x11d   : > { %v5499_v38 = vpop.f32.mrb[27].mxu1 }
 0x11f   : > { %4409 = vmatmul.mubr.msk.bf16.gmra.mrb[68].mxu1 %vm640_vm2, %v5217_v44  ;;  %4539 = vmatmul.mubr.msk.bf16.gmra.mrb[68].mxu0 %vm640_vm2, %v5245_v48 }
 0x120   : > { %4412 = vmatprep.mubr.msk.bf16.mxu1 %vm640_vm2, %v5220_v45  ;;  %4542 = vmatprep.mubr.msk.bf16.mxu0 %vm640_vm2, %v5248_v49 }
 0x122   : > { %v5509_v39 = vpop.f32.mrb[28].mxu1 }
 0x123   : > { %v5511_v40 = vpop.f32.mrb[29].mxu1 }
 0x124   : > { %v5513_v41 = vpop.f32.mrb[30].mxu1 }
 0x125   : > { %6160 = vst [vmem:[#allocation2_spill] sm:$0xff] %v5513_v41  ;;  %v5515_v42 = vpop.f32.mrb[31].mxu1 }
 0x127   : > { %4413 = vmatmul.mubr.msk.bf16.gmra.mrb[72].mxu1 %vm640_vm2, %v5231_v46  ;;  %4543 = vmatmul.mubr.msk.bf16.gmra.mrb[72].mxu0 %vm640_vm2, %v5259_v50 }
 0x128   : > { %4416 = vmatprep.mubr.msk.bf16.mxu1 %vm640_vm2, %v5234_v47  ;;  %4546 = vmatprep.mubr.msk.bf16.mxu0 %vm640_vm2, %v5262_v51 }
 0x12a   : > { %v5525_v43 = vpop.f32.mrb[32].mxu1 }
 0x12b   : > { %v5527_v44 = vpop.f32.mrb[33].mxu1 }
 0x12c   : > { %6161 = vst [vmem:[#allocation3_spill] sm:$0xff] %v5527_v44  ;;  %v5529_v45 = vpop.f32.mrb[34].mxu1 }
 0x12d   : > { %6162 = vst [vmem:[#allocation4_spill] sm:$0xff] %v5529_v45  ;;  %v5531_v41 = vpop.f32.mrb[35].mxu1 }
 0x12f   : > { %4417 = vmatmul.mubr.msk.bf16.gmra.mrb[76].mxu1 %vm640_vm2, %v5245_v48  ;;  %4547 = vmatmul.mubr.msk.bf16.gmra.mrb[76].mxu0 %vm640_vm2, %v5273_v52 }
 0x130   : > { %4420 = vmatprep.mubr.msk.bf16.mxu1 %vm640_vm2, %v5248_v49  ;;  %4550 = vmatprep.mubr.msk.bf16.mxu0 %vm640_vm2, %v5276_v53 }
 0x132   : > { %v5541_v46 = vpop.f32.mrb[36].mxu1 }
 0x133   : > { %v5543_v47 = vpop.f32.mrb[37].mxu1 }
 0x134   : > { %6163 = vst [vmem:[#allocation5_spill] sm:$0xff] %v5543_v47  ;;  %v5545_v44 = vpop.f32.mrb[38].mxu1 }
 0x135   : > { %6164 = vst [vmem:[#allocation6_spill] sm:$0xff] %v5545_v44  ;;  %v5547_v45 = vpop.f32.mrb[39].mxu1 }
 0x137   : > { %4421 = vmatmul.mubr.msk.bf16.gmra.mrb[80].mxu1 %vm640_vm2, %v5259_v50  ;;  %4551 = vmatmul.mubr.msk.bf16.gmra.mrb[80].mxu0 %vm640_vm2, %v5287_v54 }
 0x138   : > { %4424 = vmatprep.mubr.msk.bf16.mxu1 %vm640_vm2, %v5262_v51  ;;  %4554 = vmatprep.mubr.msk.bf16.mxu0 %vm640_vm2, %v5290_v55 }
 0x13a   : > { %v5557_v48 = vpop.f32.mrb[40].mxu1 }
 0x13b   : > { %v5559_v49 = vpop.f32.mrb[41].mxu1 }
 0x13c   : > { %6165 = vst [vmem:[#allocation7_spill] sm:$0xff] %v5559_v49  ;;  %v5561_v47 = vpop.f32.mrb[42].mxu1 }
 0x13d   : > { %6166 = vst [vmem:[#allocation8_spill] sm:$0xff] %v5561_v47  ;;  %v5563_v44 = vpop.f32.mrb[43].mxu1 }
 0x13f   : > { %4425 = vmatmul.mubr.msk.bf16.gmra.mrb[84].mxu1 %vm640_vm2, %v5273_v52  ;;  %4555 = vmatmul.mubr.msk.bf16.gmra.mrb[84].mxu0 %vm640_vm2, %v5301_v56 }
 0x140   : > { %4428 = vmatprep.mubr.msk.bf16.mxu1 %vm640_vm2, %v5276_v53  ;;  %4558 = vmatprep.mubr.msk.bf16.mxu0 %vm640_vm2, %v5304_v57 }
 0x142   : > { %v5573_v50 = vpop.f32.mrb[44].mxu1 }
 0x143   : > { %v5575_v51 = vpop.f32.mrb[45].mxu1 }
 0x144   : > { %6167 = vst [vmem:[#allocation9_spill] sm:$0xff] %v5575_v51  ;;  %v5577_v49 = vpop.f32.mrb[46].mxu1 }
 0x145   : > { %6168 = vst [vmem:[#allocation10_spill] sm:$0xff] %v5577_v49  ;;  %v5579_v47 = vpop.f32.mrb[47].mxu1 }
 0x147   : > { %4429 = vmatmul.mubr.msk.bf16.gmra.mrb[88].mxu1 %vm640_vm2, %v5287_v54  ;;  %4559 = vmatmul.mubr.msk.bf16.gmra.mrb[88].mxu0 %vm640_vm2, %v5315_v58 }
 0x148   : > { %4432 = vmatprep.mubr.msk.bf16.mxu1 %vm640_vm2, %v5290_v55  ;;  %4562 = vmatprep.mubr.msk.bf16.mxu0 %vm640_vm2, %v5318_v59 }
 0x14a   : > { %v5589_v52 = vpop.f32.mrb[48].mxu1 }
 0x14b   : > { %v5591_v53 = vpop.f32.mrb[49].mxu1 }
 0x14c   : > { %v5593_v51 = vpop.f32.mrb[50].mxu1 }
 0x14d   : > { %6169 = vst [vmem:[#allocation11_spill] sm:$0xff] %v5593_v51  ;;  %v5595_v49 = vpop.f32.mrb[51].mxu1 }
 0x14e   : > { %6170 = vst [vmem:[#allocation12_spill] sm:$0xff] %v5595_v49 }
 0x14f   : > { %4433 = vmatmul.mubr.msk.bf16.gmra.mrb[92].mxu1 %vm640_vm2, %v5301_v56  ;;  %4563 = vmatmul.mubr.msk.bf16.gmra.mrb[92].mxu0 %vm640_vm2, %v5329_v60 }
 0x150   : > { %4436 = vmatprep.mubr.msk.bf16.mxu1 %vm640_vm2, %v5304_v57  ;;  %4566 = vmatprep.mubr.msk.bf16.mxu0 %vm640_vm2, %v5332_v61 }
 0x152   : > { %v5605_v54 = vpop.f32.mrb[52].mxu1 }
 0x153   : > { %v5607_v55 = vpop.f32.mrb[53].mxu1 }
 0x154   : > { %6171 = vst [vmem:[#allocation13_spill] sm:$0xff] %v5607_v55  ;;  %v5609_v51 = vpop.f32.mrb[54].mxu1 }
 0x155   : > { %6172 = vst [vmem:[#allocation14_spill] sm:$0xff] %v5609_v51  ;;  %v5611_v49 = vpop.f32.mrb[55].mxu1 }
 0x157   : > { %4437 = vmatmul.mubr.msk.bf16.gmra.mrb[96].mxu1 %vm640_vm2, %v5315_v58  ;;  %4567 = vmatmul.mubr.msk.bf16.gmra.mrb[96].mxu0 %vm640_vm2, %v5343_v62 }
 0x158   : > { %4440 = vmatprep.mubr.msk.bf16.mxu1 %vm640_vm2, %v5318_v59  ;;  %4570 = vmatprep.mubr.msk.bf16.mxu0 %vm640_vm2, %v5346_v63 }
 0x15a   : > { %v5621_v56 = vpop.f32.mrb[56].mxu1 }
 0x15b   : > { %v5623_v57 = vpop.f32.mrb[57].mxu1 }
 0x15c   : > { %6173 = vst [vmem:[#allocation15_spill] sm:$0xff] %v5623_v57  ;;  %v5625_v55 = vpop.f32.mrb[58].mxu1 }
 0x15d   : > { %6174 = vst [vmem:[#allocation16_spill] sm:$0xff] %v5625_v55  ;;  %v5627_v51 = vpop.f32.mrb[59].mxu1 }
 0x15e   : > { %6175 = vst [vmem:[#allocation17_spill] sm:$0xff] %v5627_v51 }
 0x15f   : > { %4441 = vmatmul.mubr.msk.bf16.gmra.mrb[100].mxu1 %vm640_vm2, %v5329_v60  ;;  %4571 = vmatmul.mubr.msk.bf16.gmra.mrb[100].mxu0 %vm640_vm2, %v5357_v0 }
 0x160   : > { %4444 = vmatprep.mubr.msk.bf16.mxu1 %vm640_vm2, %v5332_v61  ;;  %4574 = vmatprep.mubr.msk.bf16.mxu0 %vm640_vm2, %v5360_v1  ;;  %v5657_v61 = vld [vmem:[%s6158_s2] ss:$0 sm:$0xff] }
 0x162   : > { %v5638_v58 = vpop.f32.mrb[60].mxu1 }
 0x163   : > { %6176 = vst [vmem:[#allocation18_spill] sm:$0xff] %v5638_v58  ;;  %v5640_v59 = vpop.f32.mrb[61].mxu1 }
 0x164   : > { %6177 = vst [vmem:[#allocation19_spill] sm:$0xff] %v5640_v59  ;;  %v5642_v55 = vpop.f32.mrb[62].mxu1 }
 0x165   : > { %6178 = vst [vmem:[#allocation20_spill] sm:$0xff] %v5642_v55  ;;  %v5644_v51 = vpop.f32.mrb[63].mxu1 }
 0x166   : > { %6179 = vst [vmem:[#allocation21_spill] sm:$0xff] %v5644_v51 }
 0x167   : > { %4445 = vmatmul.mubr.msk.bf16.gmra.mrb[104].mxu1 %vm640_vm2, %v5343_v62  ;;  %4575 = vmatmul.mubr.msk.bf16.gmra.mrb[104].mxu0 %vm640_vm2, %v5375_v4 }
 0x168   : > { %4448 = vmatprep.mubr.msk.bf16.mxu1 %vm640_vm2, %v5346_v63  ;;  %4578 = vmatprep.mubr.msk.bf16.mxu0 %vm640_vm2, %v5380_v6 }
 0x16a   : > { %v4472_v60 = vpop.f32.mrb[0].mxu0 }
 0x16b   : > { %v4600_v51 = vadd.f32 %v4472_v60, %v5370_v2  ;;  %v2012_v62 = vpop.f32.mrb[1].mxu0 }
 0x16c   : > { %v4601_v55 = vadd.f32 %v2012_v62, %v5372_v3  ;;  %v4473_v59 = vpop.f32.mrb[2].mxu0 }
 0x16d   : > { %v2660_v58 = vadd.f32 %v4600_v51, %v5657_v61  ;;  %v4602_v63 = vadd.f32 %v4473_v59, %v5377_v5  ;;  %v2015_v57 = vpop.f32.mrb[3].mxu0 }
 0x16e   : > { %v2658_v2 = vadd.f32 %v4601_v55, %v5657_v61  ;;  %v4603_v60 = vadd.f32 %v2015_v57, %v5382_v7 }
 0x16f   : > { %4449 = vmatmul.mubr.msk.bf16.gmra.mrb[108].mxu1 %vm640_vm2, %v5357_v0  ;;  %v3887_v3 = vpack.c.bf16 %v2660_v58, %v2660_v58  ;;  %v2661_v5 = vadd.f32 %v4602_v63, %v5657_v61  ;;  %4579 = vmatmul.mubr.msk.bf16.gmra.mrb[108].mxu0 %vm640_vm2, %v5397_v10 }
 0x170   : > { %4452 = vmatprep.mubr.msk.bf16.mxu1 %vm640_vm2, %v5360_v1  ;;  %v3885_v51 = vpack.c.bf16 %v2658_v2, %v2658_v2  ;;  %v2659_v59 = vadd.f32 %v4603_v60, %v5657_v61  ;;  %4582 = vmatprep.mubr.msk.bf16.mxu0 %vm640_vm2, %v5402_v12 }
 0x171   : > { %3301 = vst.msk [vmem:[%s5666_s4 + $0x8] sm:$0xf] %vm3298_vm3, %v3887_v3  ;;  %v3888_v7 = vpack.c.bf16 %v2661_v5, %v2661_v5 }
 0x172   : > { %3299 = vst.msk [vmem:[%s5666_s4] sm:$0xf] %vm3298_vm3, %v3885_v51  ;;  %v3886_v0 = vpack.c.bf16 %v2659_v59, %v2659_v59  ;;  %v4476_v55 = vpop.f32.mrb[4].mxu0 }
 0x173   : > { %3302 = vst.msk [vmem:[%s5666_s4 + $0xc] sm:$0xf] %vm3298_vm3, %v3888_v7  ;;  %v4604_v57 = vadd.f32 %v4476_v55, %v5392_v8  ;;  %v2028_v58 = vpop.f32.mrb[5].mxu0 }
 0x174   : > { %3300 = vst.msk [vmem:[%s5666_s4 + $0x4] sm:$0xf] %vm3298_vm3, %v3886_v0  ;;  %v4605_v1 = vadd.f32 %v2028_v58, %v5394_v9  ;;  %v4477_v62 = vpop.f32.mrb[6].mxu0 }
 0x175   : > { %v2664_v63 = vadd.f32 %v4604_v57, %v5657_v61  ;;  %v4606_v2 = vadd.f32 %v4477_v62, %v5399_v11  ;;  %v2031_v60 = vpop.f32.mrb[7].mxu0 }
 0x176   : > { %v2662_v3 = vadd.f32 %v4605_v1, %v5657_v61  ;;  %v4607_v5 = vadd.f32 %v2031_v60, %v5404_v13 }
 0x177   : > { %4453 = vmatmul.mubr.msk.bf16.gmra.mrb[112].mxu1 %vm640_vm2, %v5375_v4  ;;  %v3891_v8 = vpack.c.bf16 %v2664_v63, %v2664_v63  ;;  %v2665_v51 = vadd.f32 %v4606_v2, %v5657_v61  ;;  %4583 = vmatmul.mubr.msk.bf16.gmra.mrb[112].mxu0 %vm640_vm2, %v5419_v16 }
 0x178   : > { %4456 = vmatprep.mubr.msk.bf16.mxu1 %vm640_vm2, %v5380_v6  ;;  %v3889_v9 = vpack.c.bf16 %v2662_v3, %v2662_v3  ;;  %v2663_v11 = vadd.f32 %v4607_v5, %v5657_v61  ;;  %4586 = vmatprep.mubr.msk.bf16.mxu0 %vm640_vm2, %v5424_v18 }
 0x179   : > { %3305 = vst.msk [vmem:[%s5666_s4 + $0x18] sm:$0xf] %vm3298_vm3, %v3891_v8  ;;  %v3892_v13 = vpack.c.bf16 %v2665_v51, %v2665_v51  ;;  %v4935_v51 = vld [vmem:[%s4991_s24 + $0x210] sm:$0xff]  }
 0x17a   : > { %3303 = vst.msk [vmem:[%s5666_s4 + $0x10] sm:$0xf] %vm3298_vm3, %v3889_v9  ;;  %v3890_v4 = vpack.c.bf16 %v2663_v11, %v2663_v11  ;;  %v4480_v59 = vpop.f32.mrb[8].mxu0 }
 0x17b   : > { %3306 = vst.msk [vmem:[%s5666_s4 + $0x1c] sm:$0xf] %vm3298_vm3, %v3892_v13  ;;  %v4608_v7 = vadd.f32 %v4480_v59, %v5414_v14  ;;  %v2044_v0 = vpop.f32.mrb[9].mxu0 }
 0x17c   : > { %3304 = vst.msk [vmem:[%s5666_s4 + $0x14] sm:$0xf] %vm3298_vm3, %v3890_v4  ;;  %v4609_v6 = vadd.f32 %v2044_v0, %v5416_v15  ;;  %v4481_v55 = vpop.f32.mrb[10].mxu0 }
 0x17d   : > { %v2668_v57 = vadd.f32 %v4608_v7, %v5657_v61  ;;  %v4610_v58 = vadd.f32 %v4481_v55, %v5421_v17  ;;  %v2047_v1 = vpop.f32.mrb[11].mxu0 }
 0x17e   : > { %v2666_v62 = vadd.f32 %v4609_v6, %v5657_v61  ;;  %v4611_v63 = vadd.f32 %v2047_v1, %v5426_v19  ;;  %v4936_v6 = vld [vmem:[%s4991_s24 + $0x218] sm:$0xff]  }
 0x17f   : > { %4457 = vmatmul.mubr.msk.bf16.gmra.mrb[116].mxu1 %vm640_vm2, %v5397_v10  ;;  %v3895_v14 = vpack.c.bf16 %v2668_v57, %v2668_v57  ;;  %v2669_v2 = vadd.f32 %v4610_v58, %v5657_v61  ;;  %4587 = vmatmul.mubr.msk.bf16.gmra.mrb[116].mxu0 %vm640_vm2, %v5441_v22 }
 0x180   : > { %4460 = vmatprep.mubr.msk.bf16.mxu1 %vm640_vm2, %v5402_v12  ;;  %v3893_v15 = vpack.c.bf16 %v2666_v62, %v2666_v62  ;;  %v2667_v17 = vadd.f32 %v4611_v63, %v5657_v61  ;;  %4590 = vmatprep.mubr.msk.bf16.mxu0 %vm640_vm2, %v5446_v24 }
 0x181   : > { %3309 = vst.msk [vmem:[%s5666_s4 + $0x28] sm:$0xf] %vm3298_vm3, %v3895_v14  ;;  %v3896_v10 = vpack.c.bf16 %v2669_v2, %v2669_v2 }
 0x182   : > { %3307 = vst.msk [vmem:[%s5666_s4 + $0x20] sm:$0xf] %vm3298_vm3, %v3893_v15  ;;  %v3894_v19 = vpack.c.bf16 %v2667_v17, %v2667_v17  ;;  %v4484_v60 = vpop.f32.mrb[12].mxu0 }
 0x183   : > { %3310 = vst.msk [vmem:[%s5666_s4 + $0x2c] sm:$0xf] %vm3298_vm3, %v3896_v10  ;;  %v4612_v3 = vadd.f32 %v4484_v60, %v5436_v20  ;;  %v2060_v5 = vpop.f32.mrb[13].mxu0 }
 0x184   : > { %3308 = vst.msk [vmem:[%s5666_s4 + $0x24] sm:$0xf] %vm3298_vm3, %v3894_v19  ;;  %v4613_v12 = vadd.f32 %v2060_v5, %v5438_v21  ;;  %v4485_v8 = vpop.f32.mrb[14].mxu0 }
 0x185   : > { %v2672_v24 = vadd.f32 %v4612_v3, %v5657_v61  ;;  %v4614_v9 = vadd.f32 %v4485_v8, %v5443_v23  ;;  %v2063_v11 = vpop.f32.mrb[15].mxu0 }
 0x186   : > { %v2670_v13 = vadd.f32 %v4613_v12, %v5657_v61  ;;  %v4615_v4 = vadd.f32 %v2063_v11, %v5448_v25 }
 0x187   : > { %4461 = vmatmul.mubr.msk.bf16.gmra.mrb[120].mxu1 %vm640_vm2, %v5419_v16  ;;  %v3899_v20 = vpack.c.bf16 %v2672_v24, %v2672_v24  ;;  %v2673_v21 = vadd.f32 %v4614_v9, %v5657_v61  ;;  %4591 = vmatmul.mubr.msk.bf16.gmra.mrb[120].mxu0 %vm640_vm2, %v5463_v28 }
 0x188   : > { %4464 = vmatprep.mubr.msk.bf16.mxu1 %vm640_vm2, %v5424_v18  ;;  %v3897_v23 = vpack.c.bf16 %v2670_v13, %v2670_v13  ;;  %v2671_v59 = vadd.f32 %v4615_v4, %v5657_v61  ;;  %4594 = vmatprep.mubr.msk.bf16.mxu0 %vm640_vm2, %v4935_v51 }
 0x189   : > { %3313 = vst.msk [vmem:[%s5666_s4 + $0x38] sm:$0xf] %vm3298_vm3, %v3899_v20  ;;  %v3900_v25 = vpack.c.bf16 %v2673_v21, %v2673_v21 }
 0x18a   : > { %3311 = vst.msk [vmem:[%s5666_s4 + $0x30] sm:$0xf] %vm3298_vm3, %v3897_v23  ;;  %v3898_v16 = vpack.c.bf16 %v2671_v59, %v2671_v59  ;;  %v4488_v7 = vpop.f32.mrb[16].mxu0 }
 0x18b   : > { %3314 = vst.msk [vmem:[%s5666_s4 + $0x3c] sm:$0xf] %vm3298_vm3, %v3900_v25  ;;  %v4616_v0 = vadd.f32 %v4488_v7, %v5458_v26  ;;  %v2076_v28 = vpop.f32.mrb[17].mxu0 }
 0x18c   : > { %3312 = vst.msk [vmem:[%s5666_s4 + $0x34] sm:$0xf] %vm3298_vm3, %v3898_v16  ;;  %v4617_v18 = vadd.f32 %v2076_v28, %v5460_v27  ;;  %v4489_v55 = vpop.f32.mrb[18].mxu0 }
 0x18d   : > { %v2676_v57 = vadd.f32 %v4616_v0, %v5657_v61  ;;  %v4618_v58 = vadd.f32 %v4489_v55, %v5465_v29  ;;  %v2079_v1 = vpop.f32.mrb[19].mxu0 }
 0x18e   : > { %v2674_v62 = vadd.f32 %v4617_v18, %v5657_v61  ;;  %v4619_v26 = vadd.f32 %v2079_v1, %v5467_v30  ;;  %v6180_v1 = vld [vmem:[#allocation2_spill] sm:$0xff] }
 0x18f   : > { %4465 = vmatmul.mubr.msk.bf16.gmra.mrb[124].mxu1 %vm640_vm2, %v5441_v22  ;;  %v3903_v63 = vpack.c.bf16 %v2676_v57, %v2676_v57  ;;  %v2677_v14 = vadd.f32 %v4618_v58, %v5657_v61  ;;  %4595 = vmatmul.mubr.msk.bf16.gmra.mrb[124].mxu0 %vm640_vm2, %v4936_v6 }
 0x190   : > { %v3901_v27 = vpack.c.bf16 %v2674_v62, %v2674_v62  ;;  %v2675_v2 = vadd.f32 %v4619_v26, %v5657_v61 }
 0x191   : > { %3317 = vst.msk [vmem:[%s5666_s4 + $0x48] sm:$0xf] %vm3298_vm3, %v3903_v63  ;;  %v3904_v29 = vpack.c.bf16 %v2677_v14, %v2677_v14 }
 0x192   : > { %3315 = vst.msk [vmem:[%s5666_s4 + $0x40] sm:$0xf] %vm3298_vm3, %v3901_v27  ;;  %v3902_v15 = vpack.c.bf16 %v2675_v2, %v2675_v2  ;;  %v4492_v17 = vpop.f32.mrb[20].mxu0 }
 0x193   : > { %3318 = vst.msk [vmem:[%s5666_s4 + $0x4c] sm:$0xf] %vm3298_vm3, %v3904_v29  ;;  %v4620_v22 = vadd.f32 %v4492_v17, %v5477_v31  ;;  %v2092_v30 = vpop.f32.mrb[21].mxu0 }
 0x194   : > { %3316 = vst.msk [vmem:[%s5666_s4 + $0x44] sm:$0xf] %vm3298_vm3, %v3902_v15  ;;  %v4621_v10 = vadd.f32 %v2092_v30, %v5479_v32  ;;  %v4493_v19 = vpop.f32.mrb[22].mxu0  ;;  %v6181_v30 = vld [vmem:[#allocation3_spill] sm:$0xff] }
 0x195   : > { %v2680_v60 = vadd.f32 %v4620_v22, %v5657_v61  ;;  %v4622_v3 = vadd.f32 %v4493_v19, %v5481_v33  ;;  %v2095_v5 = vpop.f32.mrb[23].mxu0 }
 0x196   : > { %v2678_v12 = vadd.f32 %v4621_v10, %v5657_v61  ;;  %v4623_v8 = vadd.f32 %v2095_v5, %v5483_v34 }
 0x197   : > { %v3907_v51 = vpack.c.bf16 %v2680_v60, %v2680_v60  ;;  %v2681_v31 = vadd.f32 %v4622_v3, %v5657_v61  ;;  %v6182_v3 = vld [vmem:[#allocation4_spill] sm:$0xff] }
 0x198   : > { %v3905_v24 = vpack.c.bf16 %v2678_v12, %v2678_v12  ;;  %v2679_v9 = vadd.f32 %v4623_v8, %v5657_v61 }
 0x199   : > { %3321 = vst.msk [vmem:[%s5666_s4 + $0x58] sm:$0xf] %vm3298_vm3, %v3907_v51  ;;  %v3908_v32 = vpack.c.bf16 %v2681_v31, %v2681_v31 }
 0x19a   : > { %3319 = vst.msk [vmem:[%s5666_s4 + $0x50] sm:$0xf] %vm3298_vm3, %v3905_v24  ;;  %v3906_v11 = vpack.c.bf16 %v2679_v9, %v2679_v9  ;;  %v4496_v13 = vpop.f32.mrb[24].mxu0 }
 0x19b   : > { %3322 = vst.msk [vmem:[%s5666_s4 + $0x5c] sm:$0xf] %vm3298_vm3, %v3908_v32  ;;  %v4624_v33 = vadd.f32 %v4496_v13, %v5493_v35  ;;  %v2108_v34 = vpop.f32.mrb[25].mxu0 }
 0x19c   : > { %3320 = vst.msk [vmem:[%s5666_s4 + $0x54] sm:$0xf] %vm3298_vm3, %v3906_v11  ;;  %v4625_v4 = vadd.f32 %v2108_v34, %v5495_v36  ;;  %v4497_v20 = vpop.f32.mrb[26].mxu0  ;;  %v6183_v34 = vld [vmem:[#allocation5_spill] sm:$0xff] }
 0x19d   : > { %v2684_v21 = vadd.f32 %v4624_v33, %v5657_v61  ;;  %v4626_v23 = vadd.f32 %v4497_v20, %v5497_v37  ;;  %v2111_v59 = vpop.f32.mrb[27].mxu0 }
 0x19e   : > { %v2682_v25 = vadd.f32 %v4625_v4, %v5657_v61  ;;  %v4627_v16 = vadd.f32 %v2111_v59, %v5499_v38 }
 0x19f   : > { %v3911_v7 = vpack.c.bf16 %v2684_v21, %v2684_v21  ;;  %v2685_v35 = vadd.f32 %v4626_v23, %v5657_v61  ;;  %v6184_v23 = vld [vmem:[#allocation6_spill] sm:$0xff] }
 0x1a0   : > { %v3909_v0 = vpack.c.bf16 %v2682_v25, %v2682_v25  ;;  %v2683_v28 = vadd.f32 %v4627_v16, %v5657_v61 }
 0x1a1   : > { %3325 = vst.msk [vmem:[%s5666_s4 + $0x68] sm:$0xf] %vm3298_vm3, %v3911_v7  ;;  %v3912_v36 = vpack.c.bf16 %v2685_v35, %v2685_v35 }
 0x1a2   : > { %3323 = vst.msk [vmem:[%s5666_s4 + $0x60] sm:$0xf] %vm3298_vm3, %v3909_v0  ;;  %v3910_v6 = vpack.c.bf16 %v2683_v28, %v2683_v28  ;;  %v4500_v18 = vpop.f32.mrb[28].mxu0 }
 0x1a3   : > { %3326 = vst.msk [vmem:[%s5666_s4 + $0x6c] sm:$0xf] %vm3298_vm3, %v3912_v36  ;;  %v4628_v37 = vadd.f32 %v4500_v18, %v5509_v39  ;;  %v2124_v38 = vpop.f32.mrb[29].mxu0 }
 0x1a4   : > { %3324 = vst.msk [vmem:[%s5666_s4 + $0x64] sm:$0xf] %vm3298_vm3, %v3910_v6  ;;  %v4629_v55 = vadd.f32 %v2124_v38, %v5511_v40  ;;  %v4501_v57 = vpop.f32.mrb[30].mxu0  ;;  %v6185_v38 = vld [vmem:[#allocation7_spill] sm:$0xff] }
 0x1a5   : > { %v2688_v58 = vadd.f32 %v4628_v37, %v5657_v61  ;;  %v4630_v62 = vadd.f32 %v4501_v57, %v6180_v1  ;;  %v2127_v26 = vpop.f32.mrb[31].mxu0  ;;  %v6186_v1 = vld [vmem:[#allocation8_spill] sm:$0xff] }
 0x1a6   : > { %v2686_v63 = vadd.f32 %v4629_v55, %v5657_v61  ;;  %v4631_v14 = vadd.f32 %v2127_v26, %v5515_v42 }
 0x1a7   : > { %v3915_v27 = vpack.c.bf16 %v2688_v58, %v2688_v58  ;;  %v2689_v39 = vadd.f32 %v4630_v62, %v5657_v61 }
 0x1a8   : > { %v3913_v2 = vpack.c.bf16 %v2686_v63, %v2686_v63  ;;  %v2687_v29 = vadd.f32 %v4631_v14, %v5657_v61 }
 0x1a9   : > { %3329 = vst.msk [vmem:[%s5666_s4 + $0x78] sm:$0xf] %vm3298_vm3, %v3915_v27  ;;  %v3916_v40 = vpack.c.bf16 %v2689_v39, %v2689_v39 }
 0x1aa   : > { %3327 = vst.msk [vmem:[%s5666_s4 + $0x70] sm:$0xf] %vm3298_vm3, %v3913_v2  ;;  %v3914_v15 = vpack.c.bf16 %v2687_v29, %v2687_v29  ;;  %v4504_v17 = vpop.f32.mrb[32].mxu0 }
 0x1ab   : > { %3330 = vst.msk [vmem:[%s5666_s4 + $0x7c] sm:$0xf] %vm3298_vm3, %v3916_v40  ;;  %v4632_v22 = vadd.f32 %v4504_v17, %v5525_v43  ;;  %v2140_v42 = vpop.f32.mrb[33].mxu0 }
 0x1ac   : > { %3328 = vst.msk [vmem:[%s5666_s4 + $0x74] sm:$0xf] %vm3298_vm3, %v3914_v15  ;;  %v4633_v10 = vadd.f32 %v2140_v42, %v6181_v30  ;;  %v4505_v19 = vpop.f32.mrb[34].mxu0 }
 0x1ad   : > { %v2692_v60 = vadd.f32 %v4632_v22, %v5657_v61  ;;  %v4634_v5 = vadd.f32 %v4505_v19, %v6182_v3  ;;  %v2143_v12 = vpop.f32.mrb[35].mxu0  ;;  %v6187_v22 = vld [vmem:[#allocation9_spill] sm:$0xff]  ;;  %v6188_v19 = vld [vmem:[#allocation10_spill] sm:$0xff] }
 0x1ae   : > { %v2690_v8 = vadd.f32 %v4633_v10, %v5657_v61  ;;  %v4635_v51 = vadd.f32 %v2143_v12, %v5531_v41 }
 0x1af   : > { %v3919_v31 = vpack.c.bf16 %v2692_v60, %v2692_v60  ;;  %v2693_v43 = vadd.f32 %v4634_v5, %v5657_v61 }
 0x1b0   : > { %v3917_v24 = vpack.c.bf16 %v2690_v8, %v2690_v8  ;;  %v2691_v9 = vadd.f32 %v4635_v51, %v5657_v61 }
 0x1b1   : > { %3333 = vst.msk [vmem:[%s5666_s4 + $0x88] sm:$0xf] %vm3298_vm3, %v3919_v31  ;;  %v3920_v32 = vpack.c.bf16 %v2693_v43, %v2693_v43 }
 0x1b2   : > { %3331 = vst.msk [vmem:[%s5666_s4 + $0x80] sm:$0xf] %vm3298_vm3, %v3917_v24  ;;  %v3918_v11 = vpack.c.bf16 %v2691_v9, %v2691_v9  ;;  %v4508_v13 = vpop.f32.mrb[36].mxu0 }
 0x1b3   : > { %3334 = vst.msk [vmem:[%s5666_s4 + $0x8c] sm:$0xf] %vm3298_vm3, %v3920_v32  ;;  %v4636_v33 = vadd.f32 %v4508_v13, %v5541_v46  ;;  %v2156_v41 = vpop.f32.mrb[37].mxu0 }
 0x1b4   : > { %3332 = vst.msk [vmem:[%s5666_s4 + $0x84] sm:$0xf] %vm3298_vm3, %v3918_v11  ;;  %v4637_v4 = vadd.f32 %v2156_v41, %v6183_v34  ;;  %v4509_v20 = vpop.f32.mrb[38].mxu0  ;;  %v6189_v41 = vld [vmem:[#allocation11_spill] sm:$0xff] }
 0x1b5   : > { %v2696_v21 = vadd.f32 %v4636_v33, %v5657_v61  ;;  %v4638_v59 = vadd.f32 %v4509_v20, %v6184_v23  ;;  %v2159_v25 = vpop.f32.mrb[39].mxu0 }
 0x1b6   : > { %v2694_v16 = vadd.f32 %v4637_v4, %v5657_v61  ;;  %v4639_v7 = vadd.f32 %v2159_v25, %v5547_v45 }
 0x1b7   : > { %v3923_v35 = vpack.c.bf16 %v2696_v21, %v2696_v21  ;;  %v2697_v46 = vadd.f32 %v4638_v59, %v5657_v61  ;;  %v6190_v21 = vld [vmem:[#allocation12_spill] sm:$0xff] }
 0x1b8   : > { %v3921_v0 = vpack.c.bf16 %v2694_v16, %v2694_v16  ;;  %v2695_v28 = vadd.f32 %v4639_v7, %v5657_v61 }
 0x1b9   : > { %3337 = vst.msk [vmem:[%s5666_s4 + $0x98] sm:$0xf] %vm3298_vm3, %v3923_v35  ;;  %v3924_v36 = vpack.c.bf16 %v2697_v46, %v2697_v46 }
 0x1ba   : > { %3335 = vst.msk [vmem:[%s5666_s4 + $0x90] sm:$0xf] %vm3298_vm3, %v3921_v0  ;;  %v3922_v6 = vpack.c.bf16 %v2695_v28, %v2695_v28  ;;  %v4512_v18 = vpop.f32.mrb[40].mxu0  ;;  %v6191_v28 = vld [vmem:[#allocation13_spill] sm:$0xff] }
 0x1bb   : > { %3338 = vst.msk [vmem:[%s5666_s4 + $0x9c] sm:$0xf] %vm3298_vm3, %v3924_v36  ;;  %v4640_v37 = vadd.f32 %v4512_v18, %v5557_v48  ;;  %v2172_v45 = vpop.f32.mrb[41].mxu0 }
 0x1bc   : > { %3336 = vst.msk [vmem:[%s5666_s4 + $0x94] sm:$0xf] %vm3298_vm3, %v3922_v6  ;;  %v4641_v55 = vadd.f32 %v2172_v45, %v6185_v38  ;;  %v4513_v57 = vpop.f32.mrb[42].mxu0 }
 0x1bd   : > { %v2700_v58 = vadd.f32 %v4640_v37, %v5657_v61  ;;  %v4642_v62 = vadd.f32 %v4513_v57, %v6186_v1  ;;  %v2175_v26 = vpop.f32.mrb[43].mxu0  ;;  %v6192_v37 = vld [vmem:[#allocation14_spill] sm:$0xff] }
 0x1be   : > { %v2698_v63 = vadd.f32 %v4641_v55, %v5657_v61  ;;  %v4643_v14 = vadd.f32 %v2175_v26, %v5563_v44 }
 0x1bf   : > { %v3927_v27 = vpack.c.bf16 %v2700_v58, %v2700_v58  ;;  %v2701_v48 = vadd.f32 %v4642_v62, %v5657_v61 }
 0x1c0   : > { %v3925_v39 = vpack.c.bf16 %v2698_v63, %v2698_v63  ;;  %v2699_v2 = vadd.f32 %v4643_v14, %v5657_v61 }
 0x1c1   : > { %3341 = vst.msk [vmem:[%s5666_s4 + $0xa8] sm:$0xf] %vm3298_vm3, %v3927_v27  ;;  %v3928_v29 = vpack.c.bf16 %v2701_v48, %v2701_v48  ;;  %v6193_v48 = vld [vmem:[#allocation15_spill] sm:$0xff] }
 0x1c2   : > { %3339 = vst.msk [vmem:[%s5666_s4 + $0xa0] sm:$0xf] %vm3298_vm3, %v3925_v39  ;;  %v3926_v40 = vpack.c.bf16 %v2699_v2, %v2699_v2  ;;  %v4516_v15 = vpop.f32.mrb[44].mxu0 }
 0x1c3   : > { %3342 = vst.msk [vmem:[%s5666_s4 + $0xac] sm:$0xf] %vm3298_vm3, %v3928_v29  ;;  %v4644_v17 = vadd.f32 %v4516_v15, %v5573_v50  ;;  %v2188_v44 = vpop.f32.mrb[45].mxu0 }
 0x1c4   : > { %3340 = vst.msk [vmem:[%s5666_s4 + $0xa4] sm:$0xf] %vm3298_vm3, %v3926_v40  ;;  %v4645_v42 = vadd.f32 %v2188_v44, %v6187_v22  ;;  %v4517_v30 = vpop.f32.mrb[46].mxu0  ;;  %v6194_v40 = vld [vmem:[#allocation16_spill] sm:$0xff]  ;;  %v6195_v22 = vld [vmem:[#allocation17_spill] sm:$0xff] }
 0x1c5   : > { %v2704_v10 = vadd.f32 %v4644_v17, %v5657_v61  ;;  %v4646_v60 = vadd.f32 %v4517_v30, %v6188_v19  ;;  %v2191_v3 = vpop.f32.mrb[47].mxu0 }
 0x1c6   : > { %v2702_v5 = vadd.f32 %v4645_v42, %v5657_v61  ;;  %v4647_v12 = vadd.f32 %v2191_v3, %v5579_v47 }
 0x1c7   : > { %v3931_v8 = vpack.c.bf16 %v2704_v10, %v2704_v10  ;;  %v2705_v50 = vadd.f32 %v4646_v60, %v5657_v61 }
 0x1c8   : > { %v3929_v51 = vpack.c.bf16 %v2702_v5, %v2702_v5  ;;  %v2703_v31 = vadd.f32 %v4647_v12, %v5657_v61  ;;  %v6196_v12 = vld [vmem:[#allocation18_spill] sm:$0xff] }
 0x1c9   : > { %3345 = vst.msk [vmem:[%s5666_s4 + $0xb8] sm:$0xf] %vm3298_vm3, %v3931_v8  ;;  %v3932_v43 = vpack.c.bf16 %v2705_v50, %v2705_v50 }
 0x1ca   : > { %3343 = vst.msk [vmem:[%s5666_s4 + $0xb0] sm:$0xf] %vm3298_vm3, %v3929_v51  ;;  %v3930_v24 = vpack.c.bf16 %v2703_v31, %v2703_v31  ;;  %v4520_v9 = vpop.f32.mrb[48].mxu0  ;;  %v6197_v51 = vld [vmem:[#allocation19_spill] sm:$0xff] }
 0x1cb   : > { %3346 = vst.msk [vmem:[%s5666_s4 + $0xbc] sm:$0xf] %vm3298_vm3, %v3932_v43  ;;  %v4648_v32 = vadd.f32 %v4520_v9, %v5589_v52  ;;  %v2204_v47 = vpop.f32.mrb[49].mxu0  ;;  %v6198_v9 = vld [vmem:[#allocation20_spill] sm:$0xff] }
 0x1cc   : > { %3344 = vst.msk [vmem:[%s5666_s4 + $0xb4] sm:$0xf] %vm3298_vm3, %v3930_v24  ;;  %v4649_v11 = vadd.f32 %v2204_v47, %v5591_v53  ;;  %v4521_v13 = vpop.f32.mrb[50].mxu0 }
 0x1cd   : > { %v2708_v33 = vadd.f32 %v4648_v32, %v5657_v61  ;;  %v4650_v34 = vadd.f32 %v4521_v13, %v6189_v41  ;;  %v2207_v4 = vpop.f32.mrb[51].mxu0  ;;  %v6199_v13 = vld [vmem:[#allocation21_spill] sm:$0xff] }
 0x1ce   : > { %v2706_v20 = vadd.f32 %v4649_v11, %v5657_v61  ;;  %v4651_v23 = vadd.f32 %v2207_v4, %v6190_v21 }
 0x1cf   : > { %v3935_v59 = vpack.c.bf16 %v2708_v33, %v2708_v33  ;;  %v2709_v52 = vadd.f32 %v4650_v34, %v5657_v61 }
 0x1d0   : > { %v3933_v25 = vpack.c.bf16 %v2706_v20, %v2706_v20  ;;  %v2707_v16 = vadd.f32 %v4651_v23, %v5657_v61 }
 0x1d1   : > { %3349 = vst.msk [vmem:[%s5666_s4 + $0xc8] sm:$0xf] %vm3298_vm3, %v3935_v59  ;;  %v3936_v53 = vpack.c.bf16 %v2709_v52, %v2709_v52 }
 0x1d2   : > { %3347 = vst.msk [vmem:[%s5666_s4 + $0xc0] sm:$0xf] %vm3298_vm3, %v3933_v25  ;;  %v3934_v7 = vpack.c.bf16 %v2707_v16, %v2707_v16  ;;  %v4524_v35 = vpop.f32.mrb[52].mxu0 }
 0x1d3   : > { %3350 = vst.msk [vmem:[%s5666_s4 + $0xcc] sm:$0xf] %vm3298_vm3, %v3936_v53  ;;  %v4652_v46 = vadd.f32 %v4524_v35, %v5605_v54  ;;  %v2220_v0 = vpop.f32.mrb[53].mxu0 }
 0x1d4   : > { %3348 = vst.msk [vmem:[%s5666_s4 + $0xc4] sm:$0xf] %vm3298_vm3, %v3934_v7  ;;  %v4653_v36 = vadd.f32 %v2220_v0, %v6191_v28  ;;  %v4525_v6 = vpop.f32.mrb[54].mxu0 }
 0x1d5   : > { %v2712_v18 = vadd.f32 %v4652_v46, %v5657_v61  ;;  %v4654_v45 = vadd.f32 %v4525_v6, %v6192_v37  ;;  %v2223_v38 = vpop.f32.mrb[55].mxu0 }
 0x1d6   : > { %v2710_v55 = vadd.f32 %v4653_v36, %v5657_v61  ;;  %v4655_v57 = vadd.f32 %v2223_v38, %v5611_v49 }
 0x1d7   : > { %v3939_v58 = vpack.c.bf16 %v2712_v18, %v2712_v18  ;;  %v2713_v54 = vadd.f32 %v4654_v45, %v5657_v61 }
 0x1d8   : > { %v3937_v1 = vpack.c.bf16 %v2710_v55, %v2710_v55  ;;  %v2711_v62 = vadd.f32 %v4655_v57, %v5657_v61 }
 0x1d9   : > { %3353 = vst.msk [vmem:[%s5666_s4 + $0xd8] sm:$0xf] %vm3298_vm3, %v3939_v58  ;;  %v3940_v26 = vpack.c.bf16 %v2713_v54, %v2713_v54 }
 0x1da   : > { %3351 = vst.msk [vmem:[%s5666_s4 + $0xd0] sm:$0xf] %vm3298_vm3, %v3937_v1  ;;  %v3938_v63 = vpack.c.bf16 %v2711_v62, %v2711_v62  ;;  %v4528_v14 = vpop.f32.mrb[56].mxu0 }
 0x1db   : > { %3354 = vst.msk [vmem:[%s5666_s4 + $0xdc] sm:$0xf] %vm3298_vm3, %v3940_v26  ;;  %v4656_v27 = vadd.f32 %v4528_v14, %v5621_v56  ;;  %v2236_v49 = vpop.f32.mrb[57].mxu0 }
 0x1dc   : > { %3352 = vst.msk [vmem:[%s5666_s4 + $0xd4] sm:$0xf] %vm3298_vm3, %v3938_v63  ;;  %v4657_v39 = vadd.f32 %v2236_v49, %v6193_v48  ;;  %v4529_v2 = vpop.f32.mrb[58].mxu0 }
 0x1dd   : > { %v2716_v29 = vadd.f32 %v4656_v27, %v5657_v61  ;;  %v4658_v15 = vadd.f32 %v4529_v2, %v6194_v40  ;;  %v2239_v17 = vpop.f32.mrb[59].mxu0 }
 0x1de   : > { %v2714_v44 = vadd.f32 %v4657_v39, %v5657_v61  ;;  %v4659_v42 = vadd.f32 %v2239_v17, %v6195_v22 }
 0x1df   : > { %v3943_v30 = vpack.c.bf16 %v2716_v29, %v2716_v29  ;;  %v2717_v56 = vadd.f32 %v4658_v15, %v5657_v61 }
 0x1e0   : > { %v3941_v10 = vpack.c.bf16 %v2714_v44, %v2714_v44  ;;  %v2715_v19 = vadd.f32 %v4659_v42, %v5657_v61 }
 0x1e1   : > { %3357 = vst.msk [vmem:[%s5666_s4 + $0xe8] sm:$0xf] %vm3298_vm3, %v3943_v30  ;;  %v3944_v60 = vpack.c.bf16 %v2717_v56, %v2717_v56 }
 0x1e2   : > { %3355 = vst.msk [vmem:[%s5666_s4 + $0xe0] sm:$0xf] %vm3298_vm3, %v3941_v10  ;;  %v3942_v3 = vpack.c.bf16 %v2715_v19, %v2715_v19  ;;  %v4532_v5 = vpop.f32.mrb[60].mxu0 }
 0x1e3   : > { %3358 = vst.msk [vmem:[%s5666_s4 + $0xec] sm:$0xf] %vm3298_vm3, %v3944_v60  ;;  %v4660_v8 = vadd.f32 %v4532_v5, %v6196_v12  ;;  %v2252_v50 = vpop.f32.mrb[61].mxu0 }
 0x1e4   : > { %3356 = vst.msk [vmem:[%s5666_s4 + $0xe4] sm:$0xf] %vm3298_vm3, %v3942_v3  ;;  %v4661_v31 = vadd.f32 %v2252_v50, %v6197_v51  ;;  %v4533_v43 = vpop.f32.mrb[62].mxu0 }
 0x1e5   : > { %v2720_v24 = vadd.f32 %v4660_v8, %v5657_v61  ;;  %v4662_v32 = vadd.f32 %v4533_v43, %v6198_v9  ;;  %v2255_v47 = vpop.f32.mrb[63].mxu0 }
 0x1e6   : > { %v2718_v11 = vadd.f32 %v4661_v31, %v5657_v61  ;;  %v4663_v33 = vadd.f32 %v2255_v47, %v6199_v13 }
 0x1e7   : > { %v3947_v41 = vpack.c.bf16 %v2720_v24, %v2720_v24  ;;  %v2721_v34 = vadd.f32 %v4662_v32, %v5657_v61 }
 0x1e8   : > { %v3945_v4 = vpack.c.bf16 %v2718_v11, %v2718_v11  ;;  %v2719_v20 = vadd.f32 %v4663_v33, %v5657_v61 }
 0x1e9   : > { %3361 = vst.msk [vmem:[%s5666_s4 + $0xf8] sm:$0xf] %vm3298_vm3, %v3947_v41  ;;  %v3948_v21 = vpack.c.bf16 %v2721_v34, %v2721_v34 }
 0x1ea   : > { %v4406_v23 = vpop.f32.mrb[64].mxu1  ;;  %3359 = vst.msk [vmem:[%s5666_s4 + $0xf0] sm:$0xf] %vm3298_vm3, %v3945_v4  ;;  %v3946_v59 = vpack.c.bf16 %v2719_v20, %v2719_v20  ;;  %v4536_v52 = vpop.f32.mrb[64].mxu0 }
 0x1eb   : > { %v1699_v25 = vpop.f32.mrb[65].mxu1  ;;  %3362 = vst.msk [vmem:[%s5666_s4 + $0xfc] sm:$0xf] %vm3298_vm3, %v3948_v21  ;;  %v4664_v16 = vadd.f32 %v4536_v52, %v4406_v23  ;;  %v2268_v53 = vpop.f32.mrb[65].mxu0 }
 0x1ec   : > { %v4407_v7 = vpop.f32.mrb[66].mxu1  ;;  %3360 = vst.msk [vmem:[%s5666_s4 + $0xf4] sm:$0xf] %vm3298_vm3, %v3946_v59  ;;  %v4665_v35 = vadd.f32 %v2268_v53, %v1699_v25  ;;  %v4537_v46 = vpop.f32.mrb[66].mxu0 }
 0x1ed   : > { %v1702_v0 = vpop.f32.mrb[67].mxu1  ;;  %v2724_v28 = vadd.f32 %v4664_v16, %v5657_v61  ;;  %v4666_v36 = vadd.f32 %v4537_v46, %v4407_v7  ;;  %v2271_v6 = vpop.f32.mrb[67].mxu0 }
 0x1ee   : > { %v2722_v18 = vadd.f32 %v4665_v35, %v5657_v61  ;;  %v4667_v37 = vadd.f32 %v2271_v6, %v1702_v0 }
 0x1ef   : > { %v3951_v45 = vpack.c.bf16 %v2724_v28, %v2724_v28  ;;  %v2725_v38 = vadd.f32 %v4666_v36, %v5657_v61 }
 0x1f0   : > { %v3949_v55 = vpack.c.bf16 %v2722_v18, %v2722_v18  ;;  %v2723_v57 = vadd.f32 %v4667_v37, %v5657_v61 }
 0x1f1   : > { %3365 = vst.msk [vmem:[%s5666_s4 + $0x108] sm:$0xf] %vm3298_vm3, %v3951_v45  ;;  %v3952_v58 = vpack.c.bf16 %v2725_v38, %v2725_v38 }
 0x1f2   : > { %v4410_v54 = vpop.f32.mrb[68].mxu1  ;;  %3363 = vst.msk [vmem:[%s5666_s4 + $0x100] sm:$0xf] %vm3298_vm3, %v3949_v55  ;;  %v3950_v1 = vpack.c.bf16 %v2723_v57, %v2723_v57  ;;  %v4540_v62 = vpop.f32.mrb[68].mxu0 }
 0x1f3   : > { %v1715_v26 = vpop.f32.mrb[69].mxu1  ;;  %3366 = vst.msk [vmem:[%s5666_s4 + $0x10c] sm:$0xf] %vm3298_vm3, %v3952_v58  ;;  %v4668_v63 = vadd.f32 %v4540_v62, %v4410_v54  ;;  %v2284_v14 = vpop.f32.mrb[69].mxu0 }
 0x1f4   : > { %v4411_v27 = vpop.f32.mrb[70].mxu1  ;;  %3364 = vst.msk [vmem:[%s5666_s4 + $0x104] sm:$0xf] %vm3298_vm3, %v3950_v1  ;;  %v4669_v49 = vadd.f32 %v2284_v14, %v1715_v26  ;;  %v4541_v48 = vpop.f32.mrb[70].mxu0 }
 0x1f5   : > { %v1718_v39 = vpop.f32.mrb[71].mxu1  ;;  %v2728_v2 = vadd.f32 %v4668_v63, %v5657_v61  ;;  %v4670_v29 = vadd.f32 %v4541_v48, %v4411_v27  ;;  %v2287_v40 = vpop.f32.mrb[71].mxu0 }
 0x1f6   : > { %v2726_v15 = vadd.f32 %v4669_v49, %v5657_v61  ;;  %v4671_v17 = vadd.f32 %v2287_v40, %v1718_v39 }
 0x1f7   : > { %v3955_v44 = vpack.c.bf16 %v2728_v2, %v2728_v2  ;;  %v2729_v22 = vadd.f32 %v4670_v29, %v5657_v61 }
 0x1f8   : > { %v3953_v42 = vpack.c.bf16 %v2726_v15, %v2726_v15  ;;  %v2727_v30 = vadd.f32 %v4671_v17, %v5657_v61 }
 0x1f9   : > { %3369 = vst.msk [vmem:[%s5666_s4 + $0x118] sm:$0xf] %vm3298_vm3, %v3955_v44  ;;  %v3956_v56 = vpack.c.bf16 %v2729_v22, %v2729_v22 }
 0x1fa   : > { %v4414_v10 = vpop.f32.mrb[72].mxu1  ;;  %3367 = vst.msk [vmem:[%s5666_s4 + $0x110] sm:$0xf] %vm3298_vm3, %v3953_v42  ;;  %v3954_v19 = vpack.c.bf16 %v2727_v30, %v2727_v30  ;;  %v4544_v60 = vpop.f32.mrb[72].mxu0 }
 0x1fb   : > { %v1731_v3 = vpop.f32.mrb[73].mxu1  ;;  %3370 = vst.msk [vmem:[%s5666_s4 + $0x11c] sm:$0xf] %vm3298_vm3, %v3956_v56  ;;  %v4672_v5 = vadd.f32 %v4544_v60, %v4414_v10  ;;  %v2300_v12 = vpop.f32.mrb[73].mxu0 }
 0x1fc   : > { %v4415_v8 = vpop.f32.mrb[74].mxu1  ;;  %3368 = vst.msk [vmem:[%s5666_s4 + $0x114] sm:$0xf] %vm3298_vm3, %v3954_v19  ;;  %v4673_v50 = vadd.f32 %v2300_v12, %v1731_v3  ;;  %v4545_v51 = vpop.f32.mrb[74].mxu0 }
 0x1fd   : > { %v1734_v31 = vpop.f32.mrb[75].mxu1  ;;  %v2732_v43 = vadd.f32 %v4672_v5, %v5657_v61  ;;  %v4674_v24 = vadd.f32 %v4545_v51, %v4415_v8  ;;  %v2303_v9 = vpop.f32.mrb[75].mxu0 }
 0x1fe   : > { %v2730_v32 = vadd.f32 %v4673_v50, %v5657_v61  ;;  %v4675_v47 = vadd.f32 %v2303_v9, %v1734_v31 }
 0x1ff   : > { %v3959_v11 = vpack.c.bf16 %v2732_v43, %v2732_v43  ;;  %v2733_v13 = vadd.f32 %v4674_v24, %v5657_v61 }
 0x200   : > { %v3957_v33 = vpack.c.bf16 %v2730_v32, %v2730_v32  ;;  %v2731_v41 = vadd.f32 %v4675_v47, %v5657_v61 }
 0x201   : > { %3373 = vst.msk [vmem:[%s5666_s4 + $0x128] sm:$0xf] %vm3298_vm3, %v3959_v11  ;;  %v3960_v34 = vpack.c.bf16 %v2733_v13, %v2733_v13 }
 0x202   : > { %v4418_v4 = vpop.f32.mrb[76].mxu1  ;;  %3371 = vst.msk [vmem:[%s5666_s4 + $0x120] sm:$0xf] %vm3298_vm3, %v3957_v33  ;;  %v3958_v20 = vpack.c.bf16 %v2731_v41, %v2731_v41  ;;  %v4548_v21 = vpop.f32.mrb[76].mxu0 }
 0x203   : > { %v1747_v23 = vpop.f32.mrb[77].mxu1  ;;  %3374 = vst.msk [vmem:[%s5666_s4 + $0x12c] sm:$0xf] %vm3298_vm3, %v3960_v34  ;;  %v4676_v59 = vadd.f32 %v4548_v21, %v4418_v4  ;;  %v2316_v52 = vpop.f32.mrb[77].mxu0 }
 0x204   : > { %v4419_v25 = vpop.f32.mrb[78].mxu1  ;;  %3372 = vst.msk [vmem:[%s5666_s4 + $0x124] sm:$0xf] %vm3298_vm3, %v3958_v20  ;;  %v4677_v16 = vadd.f32 %v2316_v52, %v1747_v23  ;;  %v4549_v53 = vpop.f32.mrb[78].mxu0 }
 0x205   : > { %v1750_v7 = vpop.f32.mrb[79].mxu1  ;;  %v2736_v35 = vadd.f32 %v4676_v59, %v5657_v61  ;;  %v4678_v46 = vadd.f32 %v4549_v53, %v4419_v25  ;;  %v2319_v0 = vpop.f32.mrb[79].mxu0 }
 0x206   : > { %v2734_v28 = vadd.f32 %v4677_v16, %v5657_v61  ;;  %v4679_v36 = vadd.f32 %v2319_v0, %v1750_v7 }
 0x207   : > { %v3963_v6 = vpack.c.bf16 %v2736_v35, %v2736_v35  ;;  %v2737_v18 = vadd.f32 %v4678_v46, %v5657_v61 }
 0x208   : > { %v3961_v37 = vpack.c.bf16 %v2734_v28, %v2734_v28  ;;  %v2735_v45 = vadd.f32 %v4679_v36, %v5657_v61 }
 0x209   : > { %3377 = vst.msk [vmem:[%s5666_s4 + $0x138] sm:$0xf] %vm3298_vm3, %v3963_v6  ;;  %v3964_v38 = vpack.c.bf16 %v2737_v18, %v2737_v18 }
 0x20a   : > { %v4422_v55 = vpop.f32.mrb[80].mxu1  ;;  %3375 = vst.msk [vmem:[%s5666_s4 + $0x130] sm:$0xf] %vm3298_vm3, %v3961_v37  ;;  %v3962_v57 = vpack.c.bf16 %v2735_v45, %v2735_v45  ;;  %v4552_v58 = vpop.f32.mrb[80].mxu0 }
 0x20b   : > { %v1763_v54 = vpop.f32.mrb[81].mxu1  ;;  %3378 = vst.msk [vmem:[%s5666_s4 + $0x13c] sm:$0xf] %vm3298_vm3, %v3964_v38  ;;  %v4680_v1 = vadd.f32 %v4552_v58, %v4422_v55  ;;  %v2332_v62 = vpop.f32.mrb[81].mxu0 }
 0x20c   : > { %v4423_v26 = vpop.f32.mrb[82].mxu1  ;;  %3376 = vst.msk [vmem:[%s5666_s4 + $0x134] sm:$0xf] %vm3298_vm3, %v3962_v57  ;;  %v4681_v63 = vadd.f32 %v2332_v62, %v1763_v54  ;;  %v4553_v14 = vpop.f32.mrb[82].mxu0 }
 0x20d   : > { %v1766_v27 = vpop.f32.mrb[83].mxu1  ;;  %v2740_v49 = vadd.f32 %v4680_v1, %v5657_v61  ;;  %v4682_v48 = vadd.f32 %v4553_v14, %v4423_v26  ;;  %v2335_v39 = vpop.f32.mrb[83].mxu0  ;;  %v6043_v26 = vld [vmem:[%s6158_s2] ss:$0 sm:$0xff] }
 0x20e   : > { %v2738_v2 = vadd.f32 %v4681_v63, %v5657_v61  ;;  %v4683_v29 = vadd.f32 %v2335_v39, %v1766_v27 }
 0x20f   : > { %v3967_v40 = vpack.c.bf16 %v2740_v49, %v2740_v49  ;;  %v2741_v15 = vadd.f32 %v4682_v48, %v5657_v61 }
 0x210   : > { %v3965_v17 = vpack.c.bf16 %v2738_v2, %v2738_v2  ;;  %v2739_v44 = vadd.f32 %v4683_v29, %v5657_v61 }
 0x211   : > { %3381 = vst.msk [vmem:[%s5666_s4 + $0x148] sm:$0xf] %vm3298_vm3, %v3967_v40  ;;  %v3968_v22 = vpack.c.bf16 %v2741_v15, %v2741_v15 }
 0x212   : > { %v4426_v42 = vpop.f32.mrb[84].mxu1  ;;  %3379 = vst.msk [vmem:[%s5666_s4 + $0x140] sm:$0xf] %vm3298_vm3, %v3965_v17  ;;  %v3966_v30 = vpack.c.bf16 %v2739_v44, %v2739_v44  ;;  %v4556_v56 = vpop.f32.mrb[84].mxu0 }
 0x213   : > { %v1779_v10 = vpop.f32.mrb[85].mxu1  ;;  %3382 = vst.msk [vmem:[%s5666_s4 + $0x14c] sm:$0xf] %vm3298_vm3, %v3968_v22  ;;  %v4684_v19 = vadd.f32 %v4556_v56, %v4426_v42  ;;  %v2348_v60 = vpop.f32.mrb[85].mxu0 }
 0x214   : > { %v4427_v3 = vpop.f32.mrb[86].mxu1  ;;  %3380 = vst.msk [vmem:[%s5666_s4 + $0x144] sm:$0xf] %vm3298_vm3, %v3966_v30  ;;  %v4685_v5 = vadd.f32 %v2348_v60, %v1779_v10  ;;  %v4557_v12 = vpop.f32.mrb[86].mxu0 }
 0x215   : > { %v1782_v8 = vpop.f32.mrb[87].mxu1  ;;  %v2744_v50 = vadd.f32 %v4684_v19, %v5657_v61  ;;  %v4686_v51 = vadd.f32 %v4557_v12, %v4427_v3  ;;  %v2351_v31 = vpop.f32.mrb[87].mxu0 }
 0x216   : > { %v2742_v43 = vadd.f32 %v4685_v5, %v5657_v61  ;;  %v4687_v24 = vadd.f32 %v2351_v31, %v1782_v8 }
 0x217   : > { %v3971_v9 = vpack.c.bf16 %v2744_v50, %v2744_v50  ;;  %v2745_v32 = vadd.f32 %v4686_v51, %v5657_v61 }
 0x218   : > { %v3969_v47 = vpack.c.bf16 %v2742_v43, %v2742_v43  ;;  %v2743_v11 = vadd.f32 %v4687_v24, %v5657_v61 }
 0x219   : > { %3385 = vst.msk [vmem:[%s5666_s4 + $0x158] sm:$0xf] %vm3298_vm3, %v3971_v9  ;;  %v3972_v13 = vpack.c.bf16 %v2745_v32, %v2745_v32 }
 0x21a   : > { %v4430_v33 = vpop.f32.mrb[88].mxu1  ;;  %3383 = vst.msk [vmem:[%s5666_s4 + $0x150] sm:$0xf] %vm3298_vm3, %v3969_v47  ;;  %v3970_v41 = vpack.c.bf16 %v2743_v11, %v2743_v11  ;;  %v4560_v34 = vpop.f32.mrb[88].mxu0 }
 0x21b   : > { %v1795_v4 = vpop.f32.mrb[89].mxu1  ;;  %3386 = vst.msk [vmem:[%s5666_s4 + $0x15c] sm:$0xf] %vm3298_vm3, %v3972_v13  ;;  %v4688_v20 = vadd.f32 %v4560_v34, %v4430_v33  ;;  %v2364_v21 = vpop.f32.mrb[89].mxu0 }
 0x21c   : > { %v4431_v23 = vpop.f32.mrb[90].mxu1  ;;  %3384 = vst.msk [vmem:[%s5666_s4 + $0x154] sm:$0xf] %vm3298_vm3, %v3970_v41  ;;  %v4689_v59 = vadd.f32 %v2364_v21, %v1795_v4  ;;  %v4561_v52 = vpop.f32.mrb[90].mxu0 }
 0x21d   : > { %v1798_v25 = vpop.f32.mrb[91].mxu1  ;;  %v2748_v16 = vadd.f32 %v4688_v20, %v5657_v61  ;;  %v4690_v53 = vadd.f32 %v4561_v52, %v4431_v23  ;;  %v2367_v7 = vpop.f32.mrb[91].mxu0 }
 0x21e   : > { %v2746_v35 = vadd.f32 %v4689_v59, %v5657_v61  ;;  %v4691_v46 = vadd.f32 %v2367_v7, %v1798_v25 }
 0x21f   : > { %v3975_v0 = vpack.c.bf16 %v2748_v16, %v2748_v16  ;;  %v2749_v28 = vadd.f32 %v4690_v53, %v5657_v61 }
 0x220   : > { %v3973_v36 = vpack.c.bf16 %v2746_v35, %v2746_v35  ;;  %v2747_v6 = vadd.f32 %v4691_v46, %v5657_v61 }
 0x221   : > { %3389 = vst.msk [vmem:[%s5666_s4 + $0x168] sm:$0xf] %vm3298_vm3, %v3975_v0  ;;  %v3976_v18 = vpack.c.bf16 %v2749_v28, %v2749_v28 }
 0x222   : > { %v4434_v37 = vpop.f32.mrb[92].mxu1  ;;  %3387 = vst.msk [vmem:[%s5666_s4 + $0x160] sm:$0xf] %vm3298_vm3, %v3973_v36  ;;  %v3974_v45 = vpack.c.bf16 %v2747_v6, %v2747_v6  ;;  %v4564_v38 = vpop.f32.mrb[92].mxu0 }
 0x223   : > { %v1811_v55 = vpop.f32.mrb[93].mxu1  ;;  %3390 = vst.msk [vmem:[%s5666_s4 + $0x16c] sm:$0xf] %vm3298_vm3, %v3976_v18  ;;  %v4692_v57 = vadd.f32 %v4564_v38, %v4434_v37  ;;  %v2380_v58 = vpop.f32.mrb[93].mxu0 }
 0x224   : > { %v4435_v54 = vpop.f32.mrb[94].mxu1  ;;  %3388 = vst.msk [vmem:[%s5666_s4 + $0x164] sm:$0xf] %vm3298_vm3, %v3974_v45  ;;  %v4693_v1 = vadd.f32 %v2380_v58, %v1811_v55  ;;  %v4565_v61 = vpop.f32.mrb[94].mxu0 }
 0x225   : > { %v1814_v62 = vpop.f32.mrb[95].mxu1  ;;  %v2752_v63 = vadd.f32 %v6043_v26, %v4692_v57  ;;  %v4694_v14 = vadd.f32 %v4565_v61, %v4435_v54  ;;  %v2383_v27 = vpop.f32.mrb[95].mxu0 }
 0x226   : > { %v2750_v49 = vadd.f32 %v6043_v26, %v4693_v1  ;;  %v4695_v48 = vadd.f32 %v2383_v27, %v1814_v62 }
 0x227   : > { %v3979_v39 = vpack.c.bf16 %v2752_v63, %v2752_v63  ;;  %v2753_v2 = vadd.f32 %v6043_v26, %v4694_v14 }
 0x228   : > { %v3977_v29 = vpack.c.bf16 %v2750_v49, %v2750_v49  ;;  %v2751_v40 = vadd.f32 %v6043_v26, %v4695_v48 }
 0x229   : > { %3393 = vst.msk [vmem:[%s5666_s4 + $0x178] sm:$0xf] %vm3298_vm3, %v3979_v39  ;;  %v3980_v15 = vpack.c.bf16 %v2753_v2, %v2753_v2 }
 0x22a   : > { %v4438_v17 = vpop.f32.mrb[96].mxu1  ;;  %3391 = vst.msk [vmem:[%s5666_s4 + $0x170] sm:$0xf] %vm3298_vm3, %v3977_v29  ;;  %v3978_v44 = vpack.c.bf16 %v2751_v40, %v2751_v40  ;;  %v4568_v22 = vpop.f32.mrb[96].mxu0 }
 0x22b   : > { %v1827_v42 = vpop.f32.mrb[97].mxu1  ;;  %3394 = vst.msk [vmem:[%s5666_s4 + $0x17c] sm:$0xf] %vm3298_vm3, %v3980_v15  ;;  %v4696_v30 = vadd.f32 %v4568_v22, %v4438_v17  ;;  %v2396_v56 = vpop.f32.mrb[97].mxu0 }
 0x22c   : > { %v4439_v10 = vpop.f32.mrb[98].mxu1  ;;  %3392 = vst.msk [vmem:[%s5666_s4 + $0x174] sm:$0xf] %vm3298_vm3, %v3978_v44  ;;  %v4697_v19 = vadd.f32 %v2396_v56, %v1827_v42  ;;  %v4569_v60 = vpop.f32.mrb[98].mxu0 }
 0x22d   : > { %v1830_v3 = vpop.f32.mrb[99].mxu1  ;;  %v2756_v5 = vadd.f32 %v6043_v26, %v4696_v30  ;;  %v4698_v12 = vadd.f32 %v4569_v60, %v4439_v10  ;;  %v2399_v8 = vpop.f32.mrb[99].mxu0 }
 0x22e   : > { %v2754_v50 = vadd.f32 %v6043_v26, %v4697_v19  ;;  %v4699_v51 = vadd.f32 %v2399_v8, %v1830_v3 }
 0x22f   : > { %v3983_v31 = vpack.c.bf16 %v2756_v5, %v2756_v5  ;;  %v2757_v43 = vadd.f32 %v6043_v26, %v4698_v12 }
 0x230   : > { %v3981_v24 = vpack.c.bf16 %v2754_v50, %v2754_v50  ;;  %v2755_v9 = vadd.f32 %v6043_v26, %v4699_v51 }
 0x231   : > { %3397 = vst.msk [vmem:[%s5666_s4 + $0x188] sm:$0xf] %vm3298_vm3, %v3983_v31  ;;  %v3984_v32 = vpack.c.bf16 %v2757_v43, %v2757_v43 }
 0x232   : > { %v4442_v47 = vpop.f32.mrb[100].mxu1  ;;  %3395 = vst.msk [vmem:[%s5666_s4 + $0x180] sm:$0xf] %vm3298_vm3, %v3981_v24  ;;  %v3982_v11 = vpack.c.bf16 %v2755_v9, %v2755_v9  ;;  %v4572_v13 = vpop.f32.mrb[100].mxu0 }
 0x233   : > { %v1843_v33 = vpop.f32.mrb[101].mxu1  ;;  %3398 = vst.msk [vmem:[%s5666_s4 + $0x18c] sm:$0xf] %vm3298_vm3, %v3984_v32  ;;  %v4700_v41 = vadd.f32 %v4572_v13, %v4442_v47  ;;  %v2412_v34 = vpop.f32.mrb[101].mxu0 }
 0x234   : > { %v4443_v4 = vpop.f32.mrb[102].mxu1  ;;  %3396 = vst.msk [vmem:[%s5666_s4 + $0x184] sm:$0xf] %vm3298_vm3, %v3982_v11  ;;  %v4701_v20 = vadd.f32 %v2412_v34, %v1843_v33  ;;  %v4573_v21 = vpop.f32.mrb[102].mxu0 }
 0x235   : > { %v1846_v23 = vpop.f32.mrb[103].mxu1  ;;  %v2760_v59 = vadd.f32 %v6043_v26, %v4700_v41  ;;  %v4702_v52 = vadd.f32 %v4573_v21, %v4443_v4  ;;  %v2415_v25 = vpop.f32.mrb[103].mxu0 }
 0x236   : > { %v2758_v16 = vadd.f32 %v6043_v26, %v4701_v20  ;;  %v4703_v53 = vadd.f32 %v2415_v25, %v1846_v23 }
 0x237   : > { %v3987_v7 = vpack.c.bf16 %v2760_v59, %v2760_v59  ;;  %v2761_v35 = vadd.f32 %v6043_v26, %v4702_v52 }
 0x238   : > { %v3985_v46 = vpack.c.bf16 %v2758_v16, %v2758_v16  ;;  %v2759_v0 = vadd.f32 %v6043_v26, %v4703_v53 }
 0x239   : > { %3401 = vst.msk [vmem:[%s5666_s4 + $0x198] sm:$0xf] %vm3298_vm3, %v3987_v7  ;;  %v3988_v28 = vpack.c.bf16 %v2761_v35, %v2761_v35 }
 0x23a   : > { %v4446_v36 = vpop.f32.mrb[104].mxu1  ;;  %3399 = vst.msk [vmem:[%s5666_s4 + $0x190] sm:$0xf] %vm3298_vm3, %v3985_v46  ;;  %v3986_v6 = vpack.c.bf16 %v2759_v0, %v2759_v0  ;;  %v4576_v18 = vpop.f32.mrb[104].mxu0 }
 0x23b   : > { %v1859_v37 = vpop.f32.mrb[105].mxu1  ;;  %3402 = vst.msk [vmem:[%s5666_s4 + $0x19c] sm:$0xf] %vm3298_vm3, %v3988_v28  ;;  %v4704_v45 = vadd.f32 %v4576_v18, %v4446_v36  ;;  %v2428_v38 = vpop.f32.mrb[105].mxu0 }
 0x23c   : > { %v4447_v55 = vpop.f32.mrb[106].mxu1  ;;  %3400 = vst.msk [vmem:[%s5666_s4 + $0x194] sm:$0xf] %vm3298_vm3, %v3986_v6  ;;  %v4705_v57 = vadd.f32 %v2428_v38, %v1859_v37  ;;  %v4577_v58 = vpop.f32.mrb[106].mxu0 }
 0x23d   : > { %v1862_v54 = vpop.f32.mrb[107].mxu1  ;;  %v2764_v1 = vadd.f32 %v6043_v26, %v4704_v45  ;;  %v4706_v61 = vadd.f32 %v4577_v58, %v4447_v55  ;;  %v2431_v62 = vpop.f32.mrb[107].mxu0 }
 0x23e   : > { %v2762_v63 = vadd.f32 %v6043_v26, %v4705_v57  ;;  %v4707_v14 = vadd.f32 %v2431_v62, %v1862_v54 }
 0x23f   : > { %v3991_v27 = vpack.c.bf16 %v2764_v1, %v2764_v1  ;;  %v2765_v49 = vadd.f32 %v6043_v26, %v4706_v61 }
 0x240   : > { %v3989_v48 = vpack.c.bf16 %v2762_v63, %v2762_v63  ;;  %v2763_v39 = vadd.f32 %v6043_v26, %v4707_v14 }
 0x241   : > { %3405 = vst.msk [vmem:[%s5666_s4 + $0x1a8] sm:$0xf] %vm3298_vm3, %v3991_v27  ;;  %v3992_v2 = vpack.c.bf16 %v2765_v49, %v2765_v49 }
 0x242   : > { %v4450_v29 = vpop.f32.mrb[108].mxu1  ;;  %3403 = vst.msk [vmem:[%s5666_s4 + $0x1a0] sm:$0xf] %vm3298_vm3, %v3989_v48  ;;  %v3990_v40 = vpack.c.bf16 %v2763_v39, %v2763_v39  ;;  %v4580_v15 = vpop.f32.mrb[108].mxu0 }
 0x243   : > { %v1875_v17 = vpop.f32.mrb[109].mxu1  ;;  %3406 = vst.msk [vmem:[%s5666_s4 + $0x1ac] sm:$0xf] %vm3298_vm3, %v3992_v2  ;;  %v4708_v44 = vadd.f32 %v4580_v15, %v4450_v29  ;;  %v2444_v22 = vpop.f32.mrb[109].mxu0 }
 0x244   : > { %v4451_v42 = vpop.f32.mrb[110].mxu1  ;;  %3404 = vst.msk [vmem:[%s5666_s4 + $0x1a4] sm:$0xf] %vm3298_vm3, %v3990_v40  ;;  %v4709_v30 = vadd.f32 %v2444_v22, %v1875_v17  ;;  %v4581_v56 = vpop.f32.mrb[110].mxu0 }
 0x245   : > { %v1878_v10 = vpop.f32.mrb[111].mxu1  ;;  %v2768_v19 = vadd.f32 %v6043_v26, %v4708_v44  ;;  %v4710_v60 = vadd.f32 %v4581_v56, %v4451_v42  ;;  %v2447_v3 = vpop.f32.mrb[111].mxu0 }
 0x246   : > { %v2766_v5 = vadd.f32 %v6043_v26, %v4709_v30  ;;  %v4711_v12 = vadd.f32 %v2447_v3, %v1878_v10 }
 0x247   : > { %v3995_v8 = vpack.c.bf16 %v2768_v19, %v2768_v19  ;;  %v2769_v50 = vadd.f32 %v6043_v26, %v4710_v60 }
 0x248   : > { %v3993_v51 = vpack.c.bf16 %v2766_v5, %v2766_v5  ;;  %v2767_v31 = vadd.f32 %v6043_v26, %v4711_v12 }
 0x249   : > { %3409 = vst.msk [vmem:[%s5666_s4 + $0x1b8] sm:$0xf] %vm3298_vm3, %v3995_v8  ;;  %v3996_v43 = vpack.c.bf16 %v2769_v50, %v2769_v50 }
 0x24a   : > { %v4454_v24 = vpop.f32.mrb[112].mxu1  ;;  %3407 = vst.msk [vmem:[%s5666_s4 + $0x1b0] sm:$0xf] %vm3298_vm3, %v3993_v51  ;;  %v3994_v9 = vpack.c.bf16 %v2767_v31, %v2767_v31  ;;  %v4584_v32 = vpop.f32.mrb[112].mxu0 }
 0x24b   : > { %v1891_v47 = vpop.f32.mrb[113].mxu1  ;;  %3410 = vst.msk [vmem:[%s5666_s4 + $0x1bc] sm:$0xf] %vm3298_vm3, %v3996_v43  ;;  %v4712_v11 = vadd.f32 %v4584_v32, %v4454_v24  ;;  %v2460_v13 = vpop.f32.mrb[113].mxu0 }
 0x24c   : > { %v4455_v33 = vpop.f32.mrb[114].mxu1  ;;  %3408 = vst.msk [vmem:[%s5666_s4 + $0x1b4] sm:$0xf] %vm3298_vm3, %v3994_v9  ;;  %v4713_v41 = vadd.f32 %v2460_v13, %v1891_v47  ;;  %v4585_v34 = vpop.f32.mrb[114].mxu0 }
 0x24d   : > { %v1894_v4 = vpop.f32.mrb[115].mxu1  ;;  %v2772_v20 = vadd.f32 %v6043_v26, %v4712_v11  ;;  %v4714_v21 = vadd.f32 %v4585_v34, %v4455_v33  ;;  %v2463_v23 = vpop.f32.mrb[115].mxu0 }
 0x24e   : > { %v2770_v59 = vadd.f32 %v6043_v26, %v4713_v41  ;;  %v4715_v52 = vadd.f32 %v2463_v23, %v1894_v4 }
 0x24f   : > { %v3999_v25 = vpack.c.bf16 %v2772_v20, %v2772_v20  ;;  %v2773_v16 = vadd.f32 %v6043_v26, %v4714_v21 }
 0x250   : > { %v3997_v53 = vpack.c.bf16 %v2770_v59, %v2770_v59  ;;  %v2771_v7 = vadd.f32 %v6043_v26, %v4715_v52 }
 0x251   : > { %3413 = vst.msk [vmem:[%s5666_s4 + $0x1c8] sm:$0xf] %vm3298_vm3, %v3999_v25  ;;  %v4000_v35 = vpack.c.bf16 %v2773_v16, %v2773_v16 }
 0x252   : > { %v4458_v46 = vpop.f32.mrb[116].mxu1  ;;  %3411 = vst.msk [vmem:[%s5666_s4 + $0x1c0] sm:$0xf] %vm3298_vm3, %v3997_v53  ;;  %v3998_v0 = vpack.c.bf16 %v2771_v7, %v2771_v7  ;;  %v4588_v28 = vpop.f32.mrb[116].mxu0 }
 0x253   : > { %v1907_v36 = vpop.f32.mrb[117].mxu1  ;;  %3414 = vst.msk [vmem:[%s5666_s4 + $0x1cc] sm:$0xf] %vm3298_vm3, %v4000_v35  ;;  %v4716_v6 = vadd.f32 %v4588_v28, %v4458_v46  ;;  %v2476_v18 = vpop.f32.mrb[117].mxu0 }
 0x254   : > { %v4459_v37 = vpop.f32.mrb[118].mxu1  ;;  %3412 = vst.msk [vmem:[%s5666_s4 + $0x1c4] sm:$0xf] %vm3298_vm3, %v3998_v0  ;;  %v4717_v45 = vadd.f32 %v2476_v18, %v1907_v36  ;;  %v4589_v38 = vpop.f32.mrb[118].mxu0 }
 0x255   : > { %v1910_v55 = vpop.f32.mrb[119].mxu1  ;;  %v2776_v57 = vadd.f32 %v6043_v26, %v4716_v6  ;;  %v4718_v58 = vadd.f32 %v4589_v38, %v4459_v37  ;;  %v2479_v54 = vpop.f32.mrb[119].mxu0 }
 0x256   : > { %v2774_v1 = vadd.f32 %v6043_v26, %v4717_v45  ;;  %v4719_v61 = vadd.f32 %v2479_v54, %v1910_v55 }
 0x257   : > { %v4003_v62 = vpack.c.bf16 %v2776_v57, %v2776_v57  ;;  %v2777_v63 = vadd.f32 %v6043_v26, %v4718_v58 }
 0x258   : > { %v4001_v14 = vpack.c.bf16 %v2774_v1, %v2774_v1  ;;  %v2775_v27 = vadd.f32 %v6043_v26, %v4719_v61 }
 0x259   : > { %3417 = vst.msk [vmem:[%s5666_s4 + $0x1d8] sm:$0xf] %vm3298_vm3, %v4003_v62  ;;  %v4004_v49 = vpack.c.bf16 %v2777_v63, %v2777_v63 }
 0x25a   : > { %v4462_v48 = vpop.f32.mrb[120].mxu1  ;;  %3415 = vst.msk [vmem:[%s5666_s4 + $0x1d0] sm:$0xf] %vm3298_vm3, %v4001_v14  ;;  %v4002_v39 = vpack.c.bf16 %v2775_v27, %v2775_v27  ;;  %v4592_v2 = vpop.f32.mrb[120].mxu0 }
 0x25b   : > { %v1923_v29 = vpop.f32.mrb[121].mxu1  ;;  %3418 = vst.msk [vmem:[%s5666_s4 + $0x1dc] sm:$0xf] %vm3298_vm3, %v4004_v49  ;;  %v4720_v40 = vadd.f32 %v4592_v2, %v4462_v48  ;;  %v2492_v15 = vpop.f32.mrb[121].mxu0 }
 0x25c   : > { %v4463_v17 = vpop.f32.mrb[122].mxu1  ;;  %3416 = vst.msk [vmem:[%s5666_s4 + $0x1d4] sm:$0xf] %vm3298_vm3, %v4002_v39  ;;  %v4721_v44 = vadd.f32 %v2492_v15, %v1923_v29  ;;  %v4593_v22 = vpop.f32.mrb[122].mxu0 }
 0x25d   : > { %v1926_v42 = vpop.f32.mrb[123].mxu1  ;;  %v2780_v30 = vadd.f32 %v6043_v26, %v4720_v40  ;;  %v4722_v56 = vadd.f32 %v4593_v22, %v4463_v17  ;;  %v2495_v10 = vpop.f32.mrb[123].mxu0 }
 0x25e   : > { %v2778_v19 = vadd.f32 %v6043_v26, %v4721_v44  ;;  %v4723_v60 = vadd.f32 %v2495_v10, %v1926_v42 }
 0x25f   : > { %v4007_v3 = vpack.c.bf16 %v2780_v30, %v2780_v30  ;;  %v2781_v5 = vadd.f32 %v6043_v26, %v4722_v56 }
 0x260   : > { %v4005_v12 = vpack.c.bf16 %v2778_v19, %v2778_v19  ;;  %v2779_v8 = vadd.f32 %v6043_v26, %v4723_v60 }
 0x261   : > { %3421 = vst.msk [vmem:[%s5666_s4 + $0x1e8] sm:$0xf] %vm3298_vm3, %v4007_v3  ;;  %v4008_v50 = vpack.c.bf16 %v2781_v5, %v2781_v5 }
 0x262   : > { %v4466_v51 = vpop.f32.mrb[124].mxu1  ;;  %3419 = vst.msk [vmem:[%s5666_s4 + $0x1e0] sm:$0xf] %vm3298_vm3, %v4005_v12  ;;  %v4006_v31 = vpack.c.bf16 %v2779_v8, %v2779_v8  ;;  %v4596_v43 = vpop.f32.mrb[124].mxu0 }
 0x263   : > { %v1939_v24 = vpop.f32.mrb[125].mxu1  ;;  %3422 = vst.msk [vmem:[%s5666_s4 + $0x1ec] sm:$0xf] %vm3298_vm3, %v4008_v50  ;;  %v4724_v9 = vadd.f32 %v4596_v43, %v4466_v51  ;;  %v2508_v32 = vpop.f32.mrb[125].mxu0 }
 0x264   : > { %v4467_v47 = vpop.f32.mrb[126].mxu1  ;;  %3420 = vst.msk [vmem:[%s5666_s4 + $0x1e4] sm:$0xf] %vm3298_vm3, %v4006_v31  ;;  %v4725_v11 = vadd.f32 %v2508_v32, %v1939_v24  ;;  %v4597_v13 = vpop.f32.mrb[126].mxu0 }
 0x265   : > { %v1942_v33 = vpop.f32.mrb[127].mxu1  ;;  %v2784_v41 = vadd.f32 %v6043_v26, %v4724_v9  ;;  %v4726_v34 = vadd.f32 %v4597_v13, %v4467_v47  ;;  %v2511_v4 = vpop.f32.mrb[127].mxu0 }
 0x266   : > { %v2782_v20 = vadd.f32 %v6043_v26, %v4725_v11  ;;  %v4727_v21 = vadd.f32 %v2511_v4, %v1942_v33 }
 0x267   : > { %v4011_v23 = vpack.c.bf16 %v2784_v41, %v2784_v41  ;;  %v2785_v59 = vadd.f32 %v6043_v26, %v4726_v34 }
 0x268   : > { %v4009_v52 = vpack.c.bf16 %v2782_v20, %v2782_v20  ;;  %v2783_v25 = vadd.f32 %v6043_v26, %v4727_v21 }
 0x269   : > { %3425 = vst.msk [vmem:[%s5666_s4 + $0x1f8] sm:$0xf] %vm3298_vm3, %v4011_v23  ;;  %v4012_v16 = vpack.c.bf16 %v2785_v59, %v2785_v59 }
 0x26a   : > { %3423 = vst.msk [vmem:[%s5666_s4 + $0x1f0] sm:$0xf] %vm3298_vm3, %v4009_v52  ;;  %v4010_v53 = vpack.c.bf16 %v2783_v25, %v2783_v25 }
 0x26b   : > { %3426 = vst.msk [vmem:[%s5666_s4 + $0x1fc] sm:$0xf] %vm3298_vm3, %v4012_v16 }
 0x26c   : > { %3424 = vst.msk [vmem:[%s5666_s4 + $0x1f4] sm:$0xf] %vm3298_vm3, %v4010_v53 }
 0x26d PF: > { %s13_s12 = sadd.s32 1, %s4944_s12  }
 0x26e   : > { %p10_p5 = scmp.ge.s32.totalorder %s13_s12, 4  }
 0x270   :  { %12 = sbr.rel (!%p10_p5) target bundleno = 1 (0x1), region = 62 }

// kernel: _lambda_.8
= control target key start
LH: loop header
LB: loop body
LE: loop exit
PB: predicated region body
PF: predicated region fallthrough
CT: control target
= control target key end

     0   :  { %s5165_s12 = smov 0   ;;  %s6372_s0 = inlined_call_operand.vmem [shape: bf16[2,34,32,48], index: 0, kind: input, shape index: {}]   ;;  %s6373_s1 = inlined_call_operand.vmem [shape: bf16[3,48,16], index: 1, kind: input, shape index: {}]   ;;  %s6374_s2 = inlined_call_operand.vmem [shape: f32[1,16], index: 2, kind: input, shape index: {}]   ;;  %s6375_s3 = inlined_call_operand.vmem [shape: bf16[2048,16], index: 3, kind: output, shape index: {}]  }
   0x1 LB: > { %s5171_s13 = sadd.s32 4294967295, %s5143_s12   ;;  %p3653_p0 = scmp.ge.s32.totalorder %s5143_s12, 1  ;;  %s5143_s12 = sphi %s5165_s12, %s13_s12  }
   0x2   : > { %p137_p1 = scmp.lt.s32.totalorder %s5143_s12, 3 }
   0x4   : > { %p138_p2 = pnand %p3653_p0, %p137_p1 }
   0x6   : > { %141 = sbr.rel (%p138_p2) target bundleno = 626 (0x272), region = 32 }
   0xd   : > { %v5059_v0 = vld [vmem:[%s6373_s1 + $0x18] sm:$0xff]   ;;  %p161_p3 = scmp.lt.s32.totalorder %s5171_s13, 1  ;;  %v5060_v1 = vld [vmem:[%s6373_s1] sm:$0xff]   ;;  %v5062_v3 = vld [vmem:[%s6373_s1 + $0x8] sm:$0xff]   ;;  %vm665_vm0 = vcmask 392192   ;;  %s3655_s10 = sshll.u32 %s5171_s13, 7 }
   0xe   : > { %4386 = vmatprep.subr.bf16.mxu1 %v5059_v0  ;;  %v5061_v2 = vld [vmem:[%s6373_s1 + $0x20] sm:$0xff]   ;;  %4520 = vmatprep.subr.bf16.mxu0 %v5060_v1  ;;  %v5063_v4 = vld [vmem:[%s6373_s1 + $0x28] sm:$0xff]   ;;  %v5064_v5 = vld [vmem:[%s6373_s1 + $0x10] sm:$0xff]   ;;  %p167_p4 = scmp.lt.s32.totalorder %s3655_s10, 255  ;;  %vm3464_vm1 = vcmask 125952  }
   0xf   : > { %s162_s20 = scalar_select %p161_p3, %s5171_s13, 1  ;;  %4387 = vmatpush3.bf16.msra.mxu1 %v5059_v0  ;;  %4521 = vmatpush3.bf16.msra.mxu0 %v5060_v1  ;;  %v5069_v8 = vld [vmem:[%s6373_s1 + $0x30] sm:$0xff]   ;;  %v5080_v14 = vld [vmem:[%s6373_s1 + $0x38] sm:$0xff]   ;;  %v5091_v17 = vld [vmem:[%s6373_s1 + $0x40] sm:$0xff]  }
  0x10   : > { %4388 = vmatprep.subr.bf16.mxu1 %v5061_v2  ;;  %4522 = vmatprep.subr.bf16.mxu0 %v5062_v3  ;;  %s6423_s10 = smov (!%p167_p4, %s3655_s10), 255 }
  0x11   : > { %s5050_s25 = smul.u32 544, %s162_s20  ;;  %s3656_s14 = sshll.u32 %s6423_s10, 2 }
  0x12   : > { %s5891_s17 = scalar_lea.vmem %s6375_s3, %s3656_s14 }
  0x13   : > { %s5198_s30 = scalar_lea.vmem %s6372_s0, %s5050_s25  ;;  %4389 = vmatpush3.bf16.msra.mxu1 %v5061_v2  ;;  %4523 = vmatpush3.bf16.msra.mxu0 %v5062_v3 }
  0x14   : > { %v5065_v6 = vld [vmem:[%s5198_s30 + $0x10] sm:$0xff]   ;;  %4390 = vmatprep.subr.bf16.mxu1 %v5063_v4  ;;  %v5066_v7 = vld [vmem:[%s5198_s30] sm:$0xff]   ;;  %4524 = vmatprep.subr.bf16.mxu0 %v5064_v5  ;;  %v5067_v9 = vld [vmem:[%s5198_s30 + $0x18] sm:$0xff]  }
  0x15   : > { %4392 = vmatprep.mubr.msk.bf16.mxu1 %vm665_vm0, %v5065_v6  ;;  %4526 = vmatprep.mubr.msk.bf16.mxu0 %vm665_vm0, %v5066_v7  ;;  %v5068_v10 = vld [vmem:[%s5198_s30 + $0x8] sm:$0xff]   ;;  %v5210_v11 = vld [vmem:[%s5198_s30 + $0x20] sm:$0xff]   ;;  %v5221_v13 = vld [vmem:[%s5198_s30 + $0x30] sm:$0xff]  }
  0x16   : > { %v5218_v12 = vld [vmem:[%s5198_s30 + $0x28] sm:$0xff]   ;;  %v5234_v15 = vld [vmem:[%s5198_s30 + $0x38] sm:$0xff]   ;;  %v5237_v16 = vld [vmem:[%s5198_s30 + $0x40] sm:$0xff]  }
  0x17   : > { %4391 = vmatpush3.bf16.msra.mxu1 %v5063_v4  ;;  %4525 = vmatpush3.bf16.msra.mxu0 %v5064_v5  ;;  %v5251_v18 = vld [vmem:[%s5198_s30 + $0x48] sm:$0xff]   ;;  %v5254_v19 = vld [vmem:[%s5198_s30 + $0x50] sm:$0xff]   ;;  %v5265_v20 = vld [vmem:[%s5198_s30 + $0x58] sm:$0xff]  }
  0x18   : > { %4788 = vmatprep.subr.bf16.mxu1 %v5060_v1  ;;  %4654 = vmatprep.subr.bf16.mxu0 %v5069_v8  ;;  %v5268_v21 = vld [vmem:[%s5198_s30 + $0x60] sm:$0xff]   ;;  %v5279_v22 = vld [vmem:[%s5198_s30 + $0x68] sm:$0xff]   ;;  %v5282_v23 = vld [vmem:[%s5198_s30 + $0x70] sm:$0xff]  }
  0x19   : > { %v5293_v24 = vld [vmem:[%s5198_s30 + $0x78] sm:$0xff]   ;;  %v5296_v25 = vld [vmem:[%s5198_s30 + $0x80] sm:$0xff]   ;;  %v5307_v26 = vld [vmem:[%s5198_s30 + $0x88] sm:$0xff]  }
  0x1a   : > { %4393 = vmatmul.mubr.msk.bf16.vlgmr.msra.gmra.mrb[0].mxu1 %vm665_vm0, %v5067_v9  ;;  %4527 = vmatmul.mubr.msk.bf16.vlgmr.msra.gmra.mrb[0].mxu0 %vm665_vm0, %v5068_v10  ;;  %v5310_v27 = vld [vmem:[%s5198_s30 + $0x90] sm:$0xff]   ;;  %v5321_v28 = vld [vmem:[%s5198_s30 + $0x98] sm:$0xff]   ;;  %v5324_v29 = vld [vmem:[%s5198_s30 + $0xa0] sm:$0xff]  }
  0x1b   : > { %4791 = vmatpush3.bf16.msra.mxu1 %v5060_v1  ;;  %4655 = vmatpush3.bf16.msra.mxu0 %v5069_v8  ;;  %v5335_v30 = vld [vmem:[%s5198_s30 + $0xa8] sm:$0xff]   ;;  %v5338_v31 = vld [vmem:[%s5198_s30 + $0xb0] sm:$0xff]   ;;  %v5349_v32 = vld [vmem:[%s5198_s30 + $0xb8] sm:$0xff]  }
  0x1c   : > { %4396 = vmatprep.mubr.msk.bf16.mxu1 %vm665_vm0, %v5210_v11  ;;  %4530 = vmatprep.mubr.msk.bf16.mxu0 %vm665_vm0, %v5065_v6  ;;  %v5352_v33 = vld [vmem:[%s5198_s30 + $0xc0] sm:$0xff]   ;;  %v5363_v34 = vld [vmem:[%s5198_s30 + $0xc8] sm:$0xff]   ;;  %v5366_v35 = vld [vmem:[%s5198_s30 + $0xd0] sm:$0xff]  }
  0x1d   : > { %4789 = vmatprep.subr.bf16.mxu1 %v5062_v3  ;;  %4656 = vmatprep.subr.bf16.mxu0 %v5080_v14  ;;  %v5377_v36 = vld [vmem:[%s5198_s30 + $0xd8] sm:$0xff]   ;;  %v5380_v37 = vld [vmem:[%s5198_s30 + $0xe0] sm:$0xff]   ;;  %v5391_v38 = vld [vmem:[%s5198_s30 + $0xe8] sm:$0xff]  }
  0x1e   : > { %v5394_v39 = vld [vmem:[%s5198_s30 + $0xf0] sm:$0xff]   ;;  %v5405_v40 = vld [vmem:[%s5198_s30 + $0xf8] sm:$0xff]   ;;  %v5408_v41 = vld [vmem:[%s5198_s30 + $0x100] sm:$0xff]  }
  0x1f   : > { %4792 = vmatpush3.bf16.msra.mxu1 %v5062_v3  ;;  %4657 = vmatpush3.bf16.msra.mxu0 %v5080_v14  ;;  %v5419_v42 = vld [vmem:[%s5198_s30 + $0x108] sm:$0xff]   ;;  %v5422_v43 = vld [vmem:[%s5198_s30 + $0x110] sm:$0xff]   ;;  %v5433_v44 = vld [vmem:[%s5198_s30 + $0x118] sm:$0xff]  }
  0x20   : > { %4790 = vmatprep.subr.bf16.mxu1 %v5064_v5  ;;  %4658 = vmatprep.subr.bf16.mxu0 %v5091_v17  ;;  %v5436_v45 = vld [vmem:[%s5198_s30 + $0x120] sm:$0xff]   ;;  %v5447_v46 = vld [vmem:[%s5198_s30 + $0x128] sm:$0xff]   ;;  %v5450_v47 = vld [vmem:[%s5198_s30 + $0x130] sm:$0xff]  }
  0x21   : > { %v5461_v48 = vld [vmem:[%s5198_s30 + $0x138] sm:$0xff]   ;;  %v5464_v49 = vld [vmem:[%s5198_s30 + $0x140] sm:$0xff]   ;;  %v5475_v50 = vld [vmem:[%s5198_s30 + $0x148] sm:$0xff]  }
  0x22   : > { %4397 = vmatmul.mubr.msk.bf16.gmra.mrb[4].mxu1 %vm665_vm0, %v5218_v12  ;;  %4531 = vmatmul.mubr.msk.bf16.gmra.mrb[4].mxu0 %vm665_vm0, %v5067_v9  ;;  %v5478_v51 = vld [vmem:[%s5198_s30 + $0x150] sm:$0xff]   ;;  %v5489_v52 = vld [vmem:[%s5198_s30 + $0x158] sm:$0xff]   ;;  %v5492_v53 = vld [vmem:[%s5198_s30 + $0x160] sm:$0xff]  }
  0x23   : > { %4400 = vmatprep.mubr.msk.bf16.mxu1 %vm665_vm0, %v5221_v13  ;;  %4534 = vmatprep.mubr.msk.bf16.mxu0 %vm665_vm0, %v5210_v11  ;;  %v5503_v54 = vld [vmem:[%s5198_s30 + $0x168] sm:$0xff]   ;;  %v5506_v55 = vld [vmem:[%s5198_s30 + $0x170] sm:$0xff]   ;;  %v5517_v56 = vld [vmem:[%s5198_s30 + $0x178] sm:$0xff]  }
  0x24   : > { %4793 = vmatpush3.bf16.msra.mxu1 %v5064_v5  ;;  %4659 = vmatpush3.bf16.msra.mxu0 %v5091_v17  ;;  %v5520_v57 = vld [vmem:[%s5198_s30 + $0x180] sm:$0xff]   ;;  %v5531_v58 = vld [vmem:[%s5198_s30 + $0x188] sm:$0xff]   ;;  %v5534_v59 = vld [vmem:[%s5198_s30 + $0x190] sm:$0xff]  }
  0x25   : > { %v5545_v60 = vld [vmem:[%s5198_s30 + $0x198] sm:$0xff]   ;;  %v5548_v61 = vld [vmem:[%s5198_s30 + $0x1a0] sm:$0xff]   ;;  %v5559_v62 = vld [vmem:[%s5198_s30 + $0x1a8] sm:$0xff]  }
  0x26   : > { %v5562_v63 = vld [vmem:[%s5198_s30 + $0x1b0] sm:$0xff]   ;;  %v5573_v0 = vld [vmem:[%s5198_s30 + $0x1b8] sm:$0xff]   ;;  %v5576_v1 = vld [vmem:[%s5198_s30 + $0x1c0] sm:$0xff]  }
  0x27   : > { %v5591_v4 = vld [vmem:[%s5198_s30 + $0x1c8] sm:$0xff]   ;;  %v5596_v6 = vld [vmem:[%s5198_s30 + $0x1d0] sm:$0xff]   ;;  %v5613_v10 = vld [vmem:[%s5198_s30 + $0x1d8] sm:$0xff]  }
  0x2a   : > { %4401 = vmatmul.mubr.msk.bf16.gmra.mrb[8].mxu1 %vm665_vm0, %v5234_v15  ;;  %4535 = vmatmul.mubr.msk.bf16.gmra.mrb[8].mxu0 %vm665_vm0, %v5218_v12 }
  0x2b   : > { %4404 = vmatprep.mubr.msk.bf16.mxu1 %vm665_vm0, %v5237_v16  ;;  %4538 = vmatprep.mubr.msk.bf16.mxu0 %vm665_vm0, %v5221_v13 }
  0x32   : > { %4405 = vmatmul.mubr.msk.bf16.gmra.mrb[12].mxu1 %vm665_vm0, %v5251_v18  ;;  %4539 = vmatmul.mubr.msk.bf16.gmra.mrb[12].mxu0 %vm665_vm0, %v5234_v15 }
  0x33   : > { %4408 = vmatprep.mubr.msk.bf16.mxu1 %vm665_vm0, %v5254_v19  ;;  %4542 = vmatprep.mubr.msk.bf16.mxu0 %vm665_vm0, %v5237_v16 }
  0x3a   : > { %4409 = vmatmul.mubr.msk.bf16.gmra.mrb[16].mxu1 %vm665_vm0, %v5265_v20  ;;  %4543 = vmatmul.mubr.msk.bf16.gmra.mrb[16].mxu0 %vm665_vm0, %v5251_v18 }
  0x3b   : > { %4412 = vmatprep.mubr.msk.bf16.mxu1 %vm665_vm0, %v5268_v21  ;;  %4546 = vmatprep.mubr.msk.bf16.mxu0 %vm665_vm0, %v5254_v19 }
  0x42   : > { %4413 = vmatmul.mubr.msk.bf16.gmra.mrb[20].mxu1 %vm665_vm0, %v5279_v22  ;;  %4547 = vmatmul.mubr.msk.bf16.gmra.mrb[20].mxu0 %vm665_vm0, %v5265_v20 }
  0x43   : > { %4416 = vmatprep.mubr.msk.bf16.mxu1 %vm665_vm0, %v5282_v23  ;;  %4550 = vmatprep.mubr.msk.bf16.mxu0 %vm665_vm0, %v5268_v21 }
  0x4a   : > { %4417 = vmatmul.mubr.msk.bf16.gmra.mrb[24].mxu1 %vm665_vm0, %v5293_v24  ;;  %4551 = vmatmul.mubr.msk.bf16.gmra.mrb[24].mxu0 %vm665_vm0, %v5279_v22 }
  0x4b   : > { %4420 = vmatprep.mubr.msk.bf16.mxu1 %vm665_vm0, %v5296_v25  ;;  %4554 = vmatprep.mubr.msk.bf16.mxu0 %vm665_vm0, %v5282_v23 }
  0x52   : > { %4421 = vmatmul.mubr.msk.bf16.gmra.mrb[28].mxu1 %vm665_vm0, %v5307_v26  ;;  %4555 = vmatmul.mubr.msk.bf16.gmra.mrb[28].mxu0 %vm665_vm0, %v5293_v24 }
  0x53   : > { %4424 = vmatprep.mubr.msk.bf16.mxu1 %vm665_vm0, %v5310_v27  ;;  %4558 = vmatprep.mubr.msk.bf16.mxu0 %vm665_vm0, %v5296_v25 }
  0x5a   : > { %4425 = vmatmul.mubr.msk.bf16.gmra.mrb[32].mxu1 %vm665_vm0, %v5321_v28  ;;  %4559 = vmatmul.mubr.msk.bf16.gmra.mrb[32].mxu0 %vm665_vm0, %v5307_v26 }
  0x5b   : > { %4428 = vmatprep.mubr.msk.bf16.mxu1 %vm665_vm0, %v5324_v29  ;;  %4562 = vmatprep.mubr.msk.bf16.mxu0 %vm665_vm0, %v5310_v27 }
  0x62   : > { %4429 = vmatmul.mubr.msk.bf16.gmra.mrb[36].mxu1 %vm665_vm0, %v5335_v30  ;;  %4563 = vmatmul.mubr.msk.bf16.gmra.mrb[36].mxu0 %vm665_vm0, %v5321_v28 }
  0x63   : > { %4432 = vmatprep.mubr.msk.bf16.mxu1 %vm665_vm0, %v5338_v31  ;;  %4566 = vmatprep.mubr.msk.bf16.mxu0 %vm665_vm0, %v5324_v29 }
  0x6a   : > { %4433 = vmatmul.mubr.msk.bf16.gmra.mrb[40].mxu1 %vm665_vm0, %v5349_v32  ;;  %4567 = vmatmul.mubr.msk.bf16.gmra.mrb[40].mxu0 %vm665_vm0, %v5335_v30 }
  0x6b   : > { %4436 = vmatprep.mubr.msk.bf16.mxu1 %vm665_vm0, %v5352_v33  ;;  %4570 = vmatprep.mubr.msk.bf16.mxu0 %vm665_vm0, %v5338_v31 }
  0x72   : > { %4437 = vmatmul.mubr.msk.bf16.gmra.mrb[44].mxu1 %vm665_vm0, %v5363_v34  ;;  %4571 = vmatmul.mubr.msk.bf16.gmra.mrb[44].mxu0 %vm665_vm0, %v5349_v32 }
  0x73   : > { %4440 = vmatprep.mubr.msk.bf16.mxu1 %vm665_vm0, %v5366_v35  ;;  %4574 = vmatprep.mubr.msk.bf16.mxu0 %vm665_vm0, %v5352_v33 }
  0x7a   : > { %4441 = vmatmul.mubr.msk.bf16.gmra.mrb[48].mxu1 %vm665_vm0, %v5377_v36  ;;  %4575 = vmatmul.mubr.msk.bf16.gmra.mrb[48].mxu0 %vm665_vm0, %v5363_v34 }
  0x7b   : > { %4444 = vmatprep.mubr.msk.bf16.mxu1 %vm665_vm0, %v5380_v37  ;;  %4578 = vmatprep.mubr.msk.bf16.mxu0 %vm665_vm0, %v5366_v35 }
  0x82   : > { %4445 = vmatmul.mubr.msk.bf16.gmra.mrb[52].mxu1 %vm665_vm0, %v5391_v38  ;;  %4579 = vmatmul.mubr.msk.bf16.gmra.mrb[52].mxu0 %vm665_vm0, %v5377_v36 }
  0x83   : > { %4448 = vmatprep.mubr.msk.bf16.mxu1 %vm665_vm0, %v5394_v39  ;;  %4582 = vmatprep.mubr.msk.bf16.mxu0 %vm665_vm0, %v5380_v37 }
  0x8a   : > { %4449 = vmatmul.mubr.msk.bf16.gmra.mrb[56].mxu1 %vm665_vm0, %v5405_v40  ;;  %4583 = vmatmul.mubr.msk.bf16.gmra.mrb[56].mxu0 %vm665_vm0, %v5391_v38 }
  0x8b   : > { %4452 = vmatprep.mubr.msk.bf16.mxu1 %vm665_vm0, %v5408_v41  ;;  %4586 = vmatprep.mubr.msk.bf16.mxu0 %vm665_vm0, %v5394_v39 }
  0x92   : > { %4453 = vmatmul.mubr.msk.bf16.gmra.mrb[60].mxu1 %vm665_vm0, %v5419_v42  ;;  %4587 = vmatmul.mubr.msk.bf16.gmra.mrb[60].mxu0 %vm665_vm0, %v5405_v40 }
  0x93   : > { %4456 = vmatprep.mubr.msk.bf16.mxu1 %vm665_vm0, %v5422_v43  ;;  %4660 = vmatprep.mubr.msk.bf16.mxu0 %vm665_vm0, %v5210_v11 }
  0x9a   : > { %4457 = vmatmul.mubr.msk.bf16.gmra.mrb[64].mxu1 %vm665_vm0, %v5433_v44  ;;  %4661 = vmatmul.mubr.msk.bf16.vlgmr.msra.gmra.mrb[0].mxu0 %vm665_vm0, %v5218_v12  ;;  %v5618_v12 = vld [vmem:[%s5198_s30 + $0x1e0] sm:$0xff]  }
  0x9b   : > { %4460 = vmatprep.mubr.msk.bf16.mxu1 %vm665_vm0, %v5436_v45  ;;  %4664 = vmatprep.mubr.msk.bf16.mxu0 %vm665_vm0, %v5221_v13 }
  0xa2   : > { %4461 = vmatmul.mubr.msk.bf16.gmra.mrb[68].mxu1 %vm665_vm0, %v5447_v46  ;;  %4665 = vmatmul.mubr.msk.bf16.gmra.mrb[4].mxu0 %vm665_vm0, %v5234_v15 }
  0xa3   : > { %4464 = vmatprep.mubr.msk.bf16.mxu1 %vm665_vm0, %v5450_v47  ;;  %4668 = vmatprep.mubr.msk.bf16.mxu0 %vm665_vm0, %v5237_v16  ;;  %v5635_v16 = vld [vmem:[%s5198_s30 + $0x1e8] sm:$0xff]  }
  0xaa   : > { %4465 = vmatmul.mubr.msk.bf16.gmra.mrb[72].mxu1 %vm665_vm0, %v5461_v48  ;;  %4669 = vmatmul.mubr.msk.bf16.gmra.mrb[8].mxu0 %vm665_vm0, %v5251_v18  ;;  %v5640_v18 = vld [vmem:[%s5198_s30 + $0x1f0] sm:$0xff]  }
  0xab   : > { %4468 = vmatprep.mubr.msk.bf16.mxu1 %vm665_vm0, %v5464_v49  ;;  %4672 = vmatprep.mubr.msk.bf16.mxu0 %vm665_vm0, %v5254_v19 }
  0xb2   : > { %4469 = vmatmul.mubr.msk.bf16.gmra.mrb[76].mxu1 %vm665_vm0, %v5475_v50  ;;  %4673 = vmatmul.mubr.msk.bf16.gmra.mrb[12].mxu0 %vm665_vm0, %v5265_v20 }
  0xb3   : > { %4472 = vmatprep.mubr.msk.bf16.mxu1 %vm665_vm0, %v5478_v51  ;;  %4676 = vmatprep.mubr.msk.bf16.mxu0 %vm665_vm0, %v5268_v21 }
  0xba   : > { %4473 = vmatmul.mubr.msk.bf16.gmra.mrb[80].mxu1 %vm665_vm0, %v5489_v52  ;;  %4677 = vmatmul.mubr.msk.bf16.gmra.mrb[16].mxu0 %vm665_vm0, %v5279_v22  ;;  %v5657_v22 = vld [vmem:[%s5198_s30 + $0x1f8] sm:$0xff]  }
  0xbb   : > { %4476 = vmatprep.mubr.msk.bf16.mxu1 %vm665_vm0, %v5492_v53  ;;  %4680 = vmatprep.mubr.msk.bf16.mxu0 %vm665_vm0, %v5282_v23 }
  0xc2   : > { %4477 = vmatmul.mubr.msk.bf16.gmra.mrb[84].mxu1 %vm665_vm0, %v5503_v54  ;;  %4681 = vmatmul.mubr.msk.bf16.gmra.mrb[20].mxu0 %vm665_vm0, %v5293_v24  ;;  %v5662_v24 = vld [vmem:[%s5198_s30 + $0x200] sm:$0xff]  }
  0xc3   : > { %4480 = vmatprep.mubr.msk.bf16.mxu1 %vm665_vm0, %v5506_v55  ;;  %4684 = vmatprep.mubr.msk.bf16.mxu0 %vm665_vm0, %v5296_v25 }
  0xca   : > { %4481 = vmatmul.mubr.msk.bf16.gmra.mrb[88].mxu1 %vm665_vm0, %v5517_v56  ;;  %4685 = vmatmul.mubr.msk.bf16.gmra.mrb[24].mxu0 %vm665_vm0, %v5307_v26 }
  0xcb   : > { %4484 = vmatprep.mubr.msk.bf16.mxu1 %vm665_vm0, %v5520_v57  ;;  %4688 = vmatprep.mubr.msk.bf16.mxu0 %vm665_vm0, %v5310_v27 }
  0xd2   : > { %4485 = vmatmul.mubr.msk.bf16.gmra.mrb[92].mxu1 %vm665_vm0, %v5531_v58  ;;  %4689 = vmatmul.mubr.msk.bf16.gmra.mrb[28].mxu0 %vm665_vm0, %v5321_v28  ;;  %v5679_v28 = vld [vmem:[%s5198_s30 + $0x208] sm:$0xff]  }
  0xd3   : > { %4488 = vmatprep.mubr.msk.bf16.mxu1 %vm665_vm0, %v5534_v59  ;;  %4692 = vmatprep.mubr.msk.bf16.mxu0 %vm665_vm0, %v5324_v29 }
  0xda   : > { %4489 = vmatmul.mubr.msk.bf16.gmra.mrb[96].mxu1 %vm665_vm0, %v5545_v60  ;;  %4693 = vmatmul.mubr.msk.bf16.gmra.mrb[32].mxu0 %vm665_vm0, %v5335_v30 }
  0xdb   : > { %4492 = vmatprep.mubr.msk.bf16.mxu1 %vm665_vm0, %v5548_v61  ;;  %4696 = vmatprep.mubr.msk.bf16.mxu0 %vm665_vm0, %v5338_v31 }
  0xe2   : > { %4493 = vmatmul.mubr.msk.bf16.gmra.mrb[100].mxu1 %vm665_vm0, %v5559_v62  ;;  %4697 = vmatmul.mubr.msk.bf16.gmra.mrb[36].mxu0 %vm665_vm0, %v5349_v32 }
  0xe3   : > { %4496 = vmatprep.mubr.msk.bf16.mxu1 %vm665_vm0, %v5562_v63  ;;  %4700 = vmatprep.mubr.msk.bf16.mxu0 %vm665_vm0, %v5352_v33 }
  0xea   : > { %4497 = vmatmul.mubr.msk.bf16.gmra.mrb[104].mxu1 %vm665_vm0, %v5573_v0  ;;  %4701 = vmatmul.mubr.msk.bf16.gmra.mrb[40].mxu0 %vm665_vm0, %v5363_v34 }
  0xeb   : > { %4500 = vmatprep.mubr.msk.bf16.mxu1 %vm665_vm0, %v5576_v1  ;;  %4704 = vmatprep.mubr.msk.bf16.mxu0 %vm665_vm0, %v5366_v35 }
  0xed   : > { %v5586_v2 = vpop.f32.mrb[0].mxu1 }
  0xee   : > { %v5588_v3 = vpop.f32.mrb[1].mxu1 }
  0xef   : > { %v5593_v5 = vpop.f32.mrb[2].mxu1 }
  0xf0   : > { %v5598_v7 = vpop.f32.mrb[3].mxu1 }
  0xf2   : > { %4501 = vmatmul.mubr.msk.bf16.gmra.mrb[108].mxu1 %vm665_vm0, %v5591_v4  ;;  %4705 = vmatmul.mubr.msk.bf16.gmra.mrb[44].mxu0 %vm665_vm0, %v5377_v36 }
  0xf3   : > { %4504 = vmatprep.mubr.msk.bf16.mxu1 %vm665_vm0, %v5596_v6  ;;  %4708 = vmatprep.mubr.msk.bf16.mxu0 %vm665_vm0, %v5380_v37 }
  0xf5   : > { %v5608_v8 = vpop.f32.mrb[4].mxu1 }
  0xf6   : > { %v5610_v9 = vpop.f32.mrb[5].mxu1 }
  0xf7   : > { %v5615_v11 = vpop.f32.mrb[6].mxu1 }
  0xf8   : > { %v5620_v13 = vpop.f32.mrb[7].mxu1 }
  0xfa   : > { %4505 = vmatmul.mubr.msk.bf16.gmra.mrb[112].mxu1 %vm665_vm0, %v5613_v10  ;;  %4709 = vmatmul.mubr.msk.bf16.gmra.mrb[48].mxu0 %vm665_vm0, %v5391_v38 }
  0xfb   : > { %4508 = vmatprep.mubr.msk.bf16.mxu1 %vm665_vm0, %v5618_v12  ;;  %4712 = vmatprep.mubr.msk.bf16.mxu0 %vm665_vm0, %v5394_v39 }
  0xfd   : > { %v5630_v14 = vpop.f32.mrb[8].mxu1 }
  0xfe   : > { %v5632_v15 = vpop.f32.mrb[9].mxu1 }
  0xff   : > { %v5637_v17 = vpop.f32.mrb[10].mxu1 }
 0x100   : > { %v5642_v19 = vpop.f32.mrb[11].mxu1 }
 0x102   : > { %4509 = vmatmul.mubr.msk.bf16.gmra.mrb[116].mxu1 %vm665_vm0, %v5635_v16  ;;  %4713 = vmatmul.mubr.msk.bf16.gmra.mrb[52].mxu0 %vm665_vm0, %v5405_v40 }
 0x103   : > { %4512 = vmatprep.mubr.msk.bf16.mxu1 %vm665_vm0, %v5640_v18  ;;  %4716 = vmatprep.mubr.msk.bf16.mxu0 %vm665_vm0, %v5408_v41 }
 0x105   : > { %v5652_v20 = vpop.f32.mrb[12].mxu1 }
 0x106   : > { %v5654_v21 = vpop.f32.mrb[13].mxu1 }
 0x107   : > { %v5659_v23 = vpop.f32.mrb[14].mxu1 }
 0x108   : > { %v5664_v25 = vpop.f32.mrb[15].mxu1 }
 0x10a   : > { %4513 = vmatmul.mubr.msk.bf16.gmra.mrb[120].mxu1 %vm665_vm0, %v5657_v22  ;;  %4717 = vmatmul.mubr.msk.bf16.gmra.mrb[56].mxu0 %vm665_vm0, %v5419_v42 }
 0x10b   : > { %4516 = vmatprep.mubr.msk.bf16.mxu1 %vm665_vm0, %v5662_v24  ;;  %4720 = vmatprep.mubr.msk.bf16.mxu0 %vm665_vm0, %v5422_v43 }
 0x10d   : > { %v5674_v26 = vpop.f32.mrb[16].mxu1 }
 0x10e   : > { %v5676_v27 = vpop.f32.mrb[17].mxu1 }
 0x10f   : > { %v5681_v29 = vpop.f32.mrb[18].mxu1 }
 0x110   : > { %v5683_v30 = vpop.f32.mrb[19].mxu1 }
 0x112   : > { %4517 = vmatmul.mubr.msk.bf16.gmra.mrb[124].mxu1 %vm665_vm0, %v5679_v28  ;;  %4721 = vmatmul.mubr.msk.bf16.gmra.mrb[60].mxu0 %vm665_vm0, %v5433_v44 }
 0x113   : > { %4590 = vmatprep.mubr.msk.bf16.mxu1 %vm665_vm0, %v5408_v41  ;;  %4724 = vmatprep.mubr.msk.bf16.mxu0 %vm665_vm0, %v5436_v45 }
 0x115   : > { %v5693_v31 = vpop.f32.mrb[20].mxu1 }
 0x116   : > { %v5695_v32 = vpop.f32.mrb[21].mxu1 }
 0x117   : > { %v5697_v33 = vpop.f32.mrb[22].mxu1 }
 0x118   : > { %v5699_v34 = vpop.f32.mrb[23].mxu1 }
 0x11a   : > { %4591 = vmatmul.mubr.msk.bf16.vlgmr.msra.gmra.mrb[64].mxu1 %vm665_vm0, %v5419_v42  ;;  %4725 = vmatmul.mubr.msk.bf16.gmra.mrb[64].mxu0 %vm665_vm0, %v5447_v46 }
 0x11b   : > { %4594 = vmatprep.mubr.msk.bf16.mxu1 %vm665_vm0, %v5422_v43  ;;  %4728 = vmatprep.mubr.msk.bf16.mxu0 %vm665_vm0, %v5450_v47 }
 0x11d   : > { %v5709_v35 = vpop.f32.mrb[24].mxu1 }
 0x11e   : > { %v5711_v36 = vpop.f32.mrb[25].mxu1 }
 0x11f   : > { %v5713_v37 = vpop.f32.mrb[26].mxu1 }
 0x120   : > { %v5715_v38 = vpop.f32.mrb[27].mxu1 }
 0x122   : > { %4595 = vmatmul.mubr.msk.bf16.gmra.mrb[68].mxu1 %vm665_vm0, %v5433_v44  ;;  %4729 = vmatmul.mubr.msk.bf16.gmra.mrb[68].mxu0 %vm665_vm0, %v5461_v48 }
 0x123   : > { %4598 = vmatprep.mubr.msk.bf16.mxu1 %vm665_vm0, %v5436_v45  ;;  %4732 = vmatprep.mubr.msk.bf16.mxu0 %vm665_vm0, %v5464_v49 }
 0x125   : > { %v5725_v39 = vpop.f32.mrb[28].mxu1 }
 0x126   : > { %v5727_v40 = vpop.f32.mrb[29].mxu1 }
 0x127   : > { %v5729_v41 = vpop.f32.mrb[30].mxu1 }
 0x128   : > { %6376 = vst [vmem:[#allocation2_spill] sm:$0xff] %v5729_v41  ;;  %v5731_v42 = vpop.f32.mrb[31].mxu1 }
 0x12a   : > { %4599 = vmatmul.mubr.msk.bf16.gmra.mrb[72].mxu1 %vm665_vm0, %v5447_v46  ;;  %4733 = vmatmul.mubr.msk.bf16.gmra.mrb[72].mxu0 %vm665_vm0, %v5475_v50 }
 0x12b   : > { %4602 = vmatprep.mubr.msk.bf16.mxu1 %vm665_vm0, %v5450_v47  ;;  %4736 = vmatprep.mubr.msk.bf16.mxu0 %vm665_vm0, %v5478_v51 }
 0x12d   : > { %v5741_v43 = vpop.f32.mrb[32].mxu1 }
 0x12e   : > { %v5743_v44 = vpop.f32.mrb[33].mxu1 }
 0x12f   : > { %6377 = vst [vmem:[#allocation3_spill] sm:$0xff] %v5743_v44  ;;  %v5745_v45 = vpop.f32.mrb[34].mxu1 }
 0x130   : > { %6378 = vst [vmem:[#allocation4_spill] sm:$0xff] %v5745_v45  ;;  %v5747_v41 = vpop.f32.mrb[35].mxu1 }
 0x132   : > { %4603 = vmatmul.mubr.msk.bf16.gmra.mrb[76].mxu1 %vm665_vm0, %v5461_v48  ;;  %4737 = vmatmul.mubr.msk.bf16.gmra.mrb[76].mxu0 %vm665_vm0, %v5489_v52 }
 0x133   : > { %4606 = vmatprep.mubr.msk.bf16.mxu1 %vm665_vm0, %v5464_v49  ;;  %4740 = vmatprep.mubr.msk.bf16.mxu0 %vm665_vm0, %v5492_v53 }
 0x135   : > { %v5757_v46 = vpop.f32.mrb[36].mxu1 }
 0x136   : > { %v5759_v47 = vpop.f32.mrb[37].mxu1 }
 0x137   : > { %6379 = vst [vmem:[#allocation5_spill] sm:$0xff] %v5759_v47  ;;  %v5761_v44 = vpop.f32.mrb[38].mxu1 }
 0x138   : > { %6380 = vst [vmem:[#allocation6_spill] sm:$0xff] %v5761_v44  ;;  %v5763_v45 = vpop.f32.mrb[39].mxu1 }
 0x13a   : > { %4607 = vmatmul.mubr.msk.bf16.gmra.mrb[80].mxu1 %vm665_vm0, %v5475_v50  ;;  %4741 = vmatmul.mubr.msk.bf16.gmra.mrb[80].mxu0 %vm665_vm0, %v5503_v54 }
 0x13b   : > { %4610 = vmatprep.mubr.msk.bf16.mxu1 %vm665_vm0, %v5478_v51  ;;  %4744 = vmatprep.mubr.msk.bf16.mxu0 %vm665_vm0, %v5506_v55 }
 0x13d   : > { %v5773_v48 = vpop.f32.mrb[40].mxu1 }
 0x13e   : > { %v5775_v49 = vpop.f32.mrb[41].mxu1 }
 0x13f   : > { %6381 = vst [vmem:[#allocation7_spill] sm:$0xff] %v5775_v49  ;;  %v5777_v47 = vpop.f32.mrb[42].mxu1 }
 0x140   : > { %6382 = vst [vmem:[#allocation8_spill] sm:$0xff] %v5777_v47  ;;  %v5779_v44 = vpop.f32.mrb[43].mxu1 }
 0x142   : > { %4611 = vmatmul.mubr.msk.bf16.gmra.mrb[84].mxu1 %vm665_vm0, %v5489_v52  ;;  %4745 = vmatmul.mubr.msk.bf16.gmra.mrb[84].mxu0 %vm665_vm0, %v5517_v56 }
 0x143   : > { %4614 = vmatprep.mubr.msk.bf16.mxu1 %vm665_vm0, %v5492_v53  ;;  %4748 = vmatprep.mubr.msk.bf16.mxu0 %vm665_vm0, %v5520_v57 }
 0x145   : > { %v5789_v50 = vpop.f32.mrb[44].mxu1 }
 0x146   : > { %v5791_v51 = vpop.f32.mrb[45].mxu1 }
 0x147   : > { %6383 = vst [vmem:[#allocation9_spill] sm:$0xff] %v5791_v51  ;;  %v5793_v49 = vpop.f32.mrb[46].mxu1 }
 0x148   : > { %6384 = vst [vmem:[#allocation10_spill] sm:$0xff] %v5793_v49  ;;  %v5795_v47 = vpop.f32.mrb[47].mxu1 }
 0x14a   : > { %4615 = vmatmul.mubr.msk.bf16.gmra.mrb[88].mxu1 %vm665_vm0, %v5503_v54  ;;  %4749 = vmatmul.mubr.msk.bf16.gmra.mrb[88].mxu0 %vm665_vm0, %v5531_v58 }
 0x14b   : > { %4618 = vmatprep.mubr.msk.bf16.mxu1 %vm665_vm0, %v5506_v55  ;;  %4752 = vmatprep.mubr.msk.bf16.mxu0 %vm665_vm0, %v5534_v59 }
 0x14d   : > { %v5805_v52 = vpop.f32.mrb[48].mxu1 }
 0x14e   : > { %v5807_v53 = vpop.f32.mrb[49].mxu1 }
 0x14f   : > { %6385 = vst [vmem:[#allocation11_spill] sm:$0xff] %v5807_v53  ;;  %v5809_v51 = vpop.f32.mrb[50].mxu1 }
 0x150   : > { %v5811_v49 = vpop.f32.mrb[51].mxu1 }
 0x151   : > { %6386 = vst [vmem:[#allocation12_spill] sm:$0xff] %v5811_v49 }
 0x152   : > { %4619 = vmatmul.mubr.msk.bf16.gmra.mrb[92].mxu1 %vm665_vm0, %v5517_v56  ;;  %4753 = vmatmul.mubr.msk.bf16.gmra.mrb[92].mxu0 %vm665_vm0, %v5545_v60 }
 0x153   : > { %4622 = vmatprep.mubr.msk.bf16.mxu1 %vm665_vm0, %v5520_v57  ;;  %4756 = vmatprep.mubr.msk.bf16.mxu0 %vm665_vm0, %v5548_v61 }
 0x155   : > { %v5821_v54 = vpop.f32.mrb[52].mxu1 }
 0x156   : > { %6387 = vst [vmem:[#allocation13_spill] sm:$0xff] %v5821_v54  ;;  %v5823_v55 = vpop.f32.mrb[53].mxu1 }
 0x157   : > { %6388 = vst [vmem:[#allocation14_spill] sm:$0xff] %v5823_v55  ;;  %v5825_v53 = vpop.f32.mrb[54].mxu1 }
 0x158   : > { %6389 = vst [vmem:[#allocation15_spill] sm:$0xff] %v5825_v53  ;;  %v5827_v49 = vpop.f32.mrb[55].mxu1 }
 0x159   : > { %6390 = vst [vmem:[#allocation16_spill] sm:$0xff] %v5827_v49 }
 0x15a   : > { %4623 = vmatmul.mubr.msk.bf16.gmra.mrb[96].mxu1 %vm665_vm0, %v5531_v58  ;;  %4757 = vmatmul.mubr.msk.bf16.gmra.mrb[96].mxu0 %vm665_vm0, %v5559_v62 }
 0x15b   : > { %4626 = vmatprep.mubr.msk.bf16.mxu1 %vm665_vm0, %v5534_v59  ;;  %4760 = vmatprep.mubr.msk.bf16.mxu0 %vm665_vm0, %v5562_v63 }
 0x15d   : > { %v5837_v56 = vpop.f32.mrb[56].mxu1 }
 0x15e   : > { %6391 = vst [vmem:[#allocation17_spill] sm:$0xff] %v5837_v56  ;;  %v5839_v57 = vpop.f32.mrb[57].mxu1 }
 0x15f   : > { %6392 = vst [vmem:[#allocation18_spill] sm:$0xff] %v5839_v57  ;;  %v5841_v53 = vpop.f32.mrb[58].mxu1 }
 0x160   : > { %6393 = vst [vmem:[#allocation19_spill] sm:$0xff] %v5841_v53  ;;  %v5843_v55 = vpop.f32.mrb[59].mxu1 }
 0x161   : > { %6394 = vst [vmem:[#allocation20_spill] sm:$0xff] %v5843_v55 }
 0x162   : > { %4627 = vmatmul.mubr.msk.bf16.gmra.mrb[100].mxu1 %vm665_vm0, %v5545_v60  ;;  %4761 = vmatmul.mubr.msk.bf16.gmra.mrb[100].mxu0 %vm665_vm0, %v5573_v0 }
 0x163   : > { %4630 = vmatprep.mubr.msk.bf16.mxu1 %vm665_vm0, %v5548_v61  ;;  %4764 = vmatprep.mubr.msk.bf16.mxu0 %vm665_vm0, %v5576_v1  ;;  %v5873_v61 = vld [vmem:[%s6374_s2] ss:$0 sm:$0xff] }
 0x165   : > { %v5853_v58 = vpop.f32.mrb[60].mxu1 }
 0x166   : > { %6395 = vst [vmem:[#allocation21_spill] sm:$0xff] %v5853_v58  ;;  %v5855_v59 = vpop.f32.mrb[61].mxu1 }
 0x167   : > { %6396 = vst [vmem:[#allocation22_spill] sm:$0xff] %v5855_v59  ;;  %v5858_v53 = vpop.f32.mrb[62].mxu1 }
 0x168   : > { %6397 = vst [vmem:[#allocation23_spill] sm:$0xff] %v5858_v53  ;;  %v5860_v55 = vpop.f32.mrb[63].mxu1 }
 0x169   : > { %6398 = vst [vmem:[#allocation24_spill] sm:$0xff] %v5860_v55 }
 0x16a   : > { %4631 = vmatmul.mubr.msk.bf16.gmra.mrb[104].mxu1 %vm665_vm0, %v5559_v62  ;;  %4765 = vmatmul.mubr.msk.bf16.gmra.mrb[104].mxu0 %vm665_vm0, %v5591_v4 }
 0x16b   : > { %4634 = vmatprep.mubr.msk.bf16.mxu1 %vm665_vm0, %v5562_v63  ;;  %4768 = vmatprep.mubr.msk.bf16.mxu0 %vm665_vm0, %v5596_v6 }
 0x16d   : > { %v4662_v60 = vpop.f32.mrb[0].mxu0 }
 0x16e   : > { %v4794_v55 = vadd.f32 %v4662_v60, %v5586_v2  ;;  %v2050_v53 = vpop.f32.mrb[1].mxu0 }
 0x16f   : > { %v4795_v62 = vadd.f32 %v2050_v53, %v5588_v3  ;;  %v4663_v59 = vpop.f32.mrb[2].mxu0 }
 0x170   : > { %v2698_v58 = vadd.f32 %v4794_v55, %v5873_v61  ;;  %v4796_v63 = vadd.f32 %v4663_v59, %v5593_v5  ;;  %v2053_v57 = vpop.f32.mrb[3].mxu0 }
 0x171   : > { %v2696_v56 = vadd.f32 %v4795_v62, %v5873_v61  ;;  %v4797_v49 = vadd.f32 %v2053_v57, %v5598_v7 }
 0x172   : > { %4635 = vmatmul.mubr.msk.bf16.gmra.mrb[108].mxu1 %vm665_vm0, %v5573_v0  ;;  %v2826_v54 = vmax.f32 %v2698_v58, 0.0  ;;  %v2699_v2 = vadd.f32 %v4796_v63, %v5873_v61  ;;  %4769 = vmatmul.mubr.msk.bf16.gmra.mrb[108].mxu0 %vm665_vm0, %v5613_v10 }
 0x173   : > { %4638 = vmatprep.mubr.msk.bf16.mxu1 %vm665_vm0, %v5576_v1  ;;  %v2824_v3 = vmax.f32 %v2696_v56, 0.0  ;;  %v2697_v0 = vadd.f32 %v4797_v49, %v5873_v61  ;;  %4772 = vmatprep.mubr.msk.bf16.mxu0 %vm665_vm0, %v5618_v12 }
 0x174   : > { %v4059_v5 = vpack.c.bf16 %v2826_v54, %v2826_v54  ;;  %v2827_v7 = vmax.f32 %v2699_v2, 0.0 }
 0x175   : > { %v4057_v53 = vpack.c.bf16 %v2824_v3, %v2824_v3  ;;  %v2825_v1 = vmax.f32 %v2697_v0, 0.0  ;;  %v4666_v55 = vpop.f32.mrb[4].mxu0 }
 0x176   : > { %3467 = vst.msk [vmem:[%s5891_s17 + $0x8] sm:$0xf] %vm3464_vm1, %v4059_v5  ;;  %v4060_v57 = vpack.c.bf16 %v2827_v7, %v2827_v7  ;;  %v4798_v58 = vadd.f32 %v4666_v55, %v5608_v8  ;;  %v2066_v59 = vpop.f32.mrb[5].mxu0 }
 0x177   : > { %3465 = vst.msk [vmem:[%s5891_s17] sm:$0xf] %vm3464_vm1, %v4057_v53  ;;  %v4058_v56 = vpack.c.bf16 %v2825_v1, %v2825_v1  ;;  %v4799_v49 = vadd.f32 %v2066_v59, %v5610_v9  ;;  %v4667_v60 = vpop.f32.mrb[6].mxu0 }
 0x178   : > { %3468 = vst.msk [vmem:[%s5891_s17 + $0xc] sm:$0xf] %vm3464_vm1, %v4060_v57  ;;  %v2702_v54 = vadd.f32 %v4798_v58, %v5873_v61  ;;  %v4800_v62 = vadd.f32 %v4667_v60, %v5615_v11  ;;  %v2069_v63 = vpop.f32.mrb[7].mxu0 }
 0x179   : > { %3466 = vst.msk [vmem:[%s5891_s17 + $0x4] sm:$0xf] %vm3464_vm1, %v4058_v56  ;;  %v2700_v2 = vadd.f32 %v4799_v49, %v5873_v61  ;;  %v4801_v8 = vadd.f32 %v2069_v63, %v5620_v13 }
 0x17a   : > { %4639 = vmatmul.mubr.msk.bf16.gmra.mrb[112].mxu1 %vm665_vm0, %v5591_v4  ;;  %v2830_v3 = vmax.f32 %v2702_v54, 0.0  ;;  %v2703_v9 = vadd.f32 %v4800_v62, %v5873_v61  ;;  %4773 = vmatmul.mubr.msk.bf16.gmra.mrb[112].mxu0 %vm665_vm0, %v5635_v16 }
 0x17b   : > { %4642 = vmatprep.mubr.msk.bf16.mxu1 %vm665_vm0, %v5596_v6  ;;  %v2828_v11 = vmax.f32 %v2700_v2, 0.0  ;;  %v2701_v0 = vadd.f32 %v4801_v8, %v5873_v61  ;;  %4776 = vmatprep.mubr.msk.bf16.mxu0 %vm665_vm0, %v5640_v18 }
 0x17c   : > { %v4063_v13 = vpack.c.bf16 %v2830_v3, %v2830_v3  ;;  %v2831_v5 = vmax.f32 %v2703_v9, 0.0 }
 0x17d   : > { %v4061_v4 = vpack.c.bf16 %v2828_v11, %v2828_v11  ;;  %v2829_v7 = vmax.f32 %v2701_v0, 0.0  ;;  %v4670_v53 = vpop.f32.mrb[8].mxu0 }
 0x17e   : > { %3471 = vst.msk [vmem:[%s5891_s17 + $0x18] sm:$0xf] %vm3464_vm1, %v4063_v13  ;;  %v4064_v1 = vpack.c.bf16 %v2831_v5, %v2831_v5  ;;  %v4802_v55 = vadd.f32 %v4670_v53, %v5630_v14  ;;  %v2082_v57 = vpop.f32.mrb[9].mxu0 }
 0x17f   : > { %3469 = vst.msk [vmem:[%s5891_s17 + $0x10] sm:$0xf] %vm3464_vm1, %v4061_v4  ;;  %v4062_v6 = vpack.c.bf16 %v2829_v7, %v2829_v7  ;;  %v4803_v58 = vadd.f32 %v2082_v57, %v5632_v15  ;;  %v4671_v59 = vpop.f32.mrb[10].mxu0  ;;  %v5134_v4 = vld [vmem:[%s5198_s30 + $0x210] sm:$0xff]  }
 0x180   : > { %3472 = vst.msk [vmem:[%s5891_s17 + $0x1c] sm:$0xf] %vm3464_vm1, %v4064_v1  ;;  %v2706_v56 = vadd.f32 %v4802_v55, %v5873_v61  ;;  %v4804_v49 = vadd.f32 %v4671_v59, %v5637_v17  ;;  %v2085_v60 = vpop.f32.mrb[11].mxu0 }
 0x181   : > { %3470 = vst.msk [vmem:[%s5891_s17 + $0x14] sm:$0xf] %vm3464_vm1, %v4062_v6  ;;  %v2704_v54 = vadd.f32 %v4803_v58, %v5873_v61  ;;  %v4805_v14 = vadd.f32 %v2085_v60, %v5642_v19  ;;  %v5135_v60 = vld [vmem:[%s5198_s30 + $0x218] sm:$0xff]  }
 0x182   : > { %4643 = vmatmul.mubr.msk.bf16.gmra.mrb[116].mxu1 %vm665_vm0, %v5613_v10  ;;  %v2834_v62 = vmax.f32 %v2706_v56, 0.0  ;;  %v2707_v15 = vadd.f32 %v4804_v49, %v5873_v61  ;;  %4777 = vmatmul.mubr.msk.bf16.gmra.mrb[116].mxu0 %vm665_vm0, %v5657_v22 }
 0x183   : > { %4646 = vmatprep.mubr.msk.bf16.mxu1 %vm665_vm0, %v5618_v12  ;;  %v2832_v17 = vmax.f32 %v2704_v54, 0.0  ;;  %v2705_v63 = vadd.f32 %v4805_v14, %v5873_v61  ;;  %4780 = vmatprep.mubr.msk.bf16.mxu0 %vm665_vm0, %v5662_v24 }
 0x184   : > { %v4067_v19 = vpack.c.bf16 %v2834_v62, %v2834_v62  ;;  %v2835_v10 = vmax.f32 %v2707_v15, 0.0 }
 0x185   : > { %v4065_v2 = vpack.c.bf16 %v2832_v17, %v2832_v17  ;;  %v2833_v8 = vmax.f32 %v2705_v63, 0.0  ;;  %v4674_v3 = vpop.f32.mrb[12].mxu0 }
 0x186   : > { %3475 = vst.msk [vmem:[%s5891_s17 + $0x28] sm:$0xf] %vm3464_vm1, %v4067_v19  ;;  %v4068_v9 = vpack.c.bf16 %v2835_v10, %v2835_v10  ;;  %v4806_v11 = vadd.f32 %v4674_v3, %v5652_v20  ;;  %v2098_v12 = vpop.f32.mrb[13].mxu0 }
 0x187   : > { %3473 = vst.msk [vmem:[%s5891_s17 + $0x20] sm:$0xf] %vm3464_vm1, %v4065_v2  ;;  %v4066_v0 = vpack.c.bf16 %v2833_v8, %v2833_v8  ;;  %v4807_v13 = vadd.f32 %v2098_v12, %v5654_v21  ;;  %v4675_v5 = vpop.f32.mrb[14].mxu0 }
 0x188   : > { %3476 = vst.msk [vmem:[%s5891_s17 + $0x2c] sm:$0xf] %vm3464_vm1, %v4068_v9  ;;  %v2710_v24 = vadd.f32 %v4806_v11, %v5873_v61  ;;  %v4808_v7 = vadd.f32 %v4675_v5, %v5659_v23  ;;  %v2101_v53 = vpop.f32.mrb[15].mxu0 }
 0x189   : > { %3474 = vst.msk [vmem:[%s5891_s17 + $0x24] sm:$0xf] %vm3464_vm1, %v4066_v0  ;;  %v2708_v20 = vadd.f32 %v4807_v13, %v5873_v61  ;;  %v4809_v1 = vadd.f32 %v2101_v53, %v5664_v25 }
 0x18a   : > { %4647 = vmatmul.mubr.msk.bf16.gmra.mrb[120].mxu1 %vm665_vm0, %v5635_v16  ;;  %v2838_v21 = vmax.f32 %v2710_v24, 0.0  ;;  %v2711_v55 = vadd.f32 %v4808_v7, %v5873_v61  ;;  %4781 = vmatmul.mubr.msk.bf16.gmra.mrb[120].mxu0 %vm665_vm0, %v5679_v28 }
 0x18b   : > { %4650 = vmatprep.mubr.msk.bf16.mxu1 %vm665_vm0, %v5640_v18  ;;  %v2836_v23 = vmax.f32 %v2708_v20, 0.0  ;;  %v2709_v57 = vadd.f32 %v4809_v1, %v5873_v61  ;;  %4784 = vmatprep.mubr.msk.bf16.mxu0 %vm665_vm0, %v5134_v4 }
 0x18c   : > { %v4071_v25 = vpack.c.bf16 %v2838_v21, %v2838_v21  ;;  %v2839_v6 = vmax.f32 %v2711_v55, 0.0 }
 0x18d   : > { %v4069_v16 = vpack.c.bf16 %v2836_v23, %v2836_v23  ;;  %v2837_v58 = vmax.f32 %v2709_v57, 0.0  ;;  %v4678_v59 = vpop.f32.mrb[16].mxu0 }
 0x18e   : > { %3479 = vst.msk [vmem:[%s5891_s17 + $0x38] sm:$0xf] %vm3464_vm1, %v4071_v25  ;;  %v4072_v56 = vpack.c.bf16 %v2839_v6, %v2839_v6  ;;  %v4810_v28 = vadd.f32 %v4678_v59, %v5674_v26  ;;  %v2114_v49 = vpop.f32.mrb[17].mxu0 }
 0x18f   : > { %3477 = vst.msk [vmem:[%s5891_s17 + $0x30] sm:$0xf] %vm3464_vm1, %v4069_v16  ;;  %v4070_v18 = vpack.c.bf16 %v2837_v58, %v2837_v58  ;;  %v4811_v54 = vadd.f32 %v2114_v49, %v5676_v27  ;;  %v4679_v14 = vpop.f32.mrb[18].mxu0 }
 0x190   : > { %3480 = vst.msk [vmem:[%s5891_s17 + $0x3c] sm:$0xf] %vm3464_vm1, %v4072_v56  ;;  %v2714_v62 = vadd.f32 %v4810_v28, %v5873_v61  ;;  %v4812_v15 = vadd.f32 %v4679_v14, %v5681_v29  ;;  %v2117_v17 = vpop.f32.mrb[19].mxu0 }
 0x191   : > { %3478 = vst.msk [vmem:[%s5891_s17 + $0x34] sm:$0xf] %vm3464_vm1, %v4070_v18  ;;  %v2712_v26 = vadd.f32 %v4811_v54, %v5873_v61  ;;  %v4813_v63 = vadd.f32 %v2117_v17, %v5683_v30 }
 0x192   : > { %4651 = vmatmul.mubr.msk.bf16.gmra.mrb[124].mxu1 %vm665_vm0, %v5657_v22  ;;  %v2842_v27 = vmax.f32 %v2714_v62, 0.0  ;;  %v2715_v19 = vadd.f32 %v4812_v15, %v5873_v61  ;;  %4785 = vmatmul.mubr.msk.bf16.gmra.mrb[124].mxu0 %vm665_vm0, %v5135_v60 }
 0x193   : > { %v2840_v10 = vmax.f32 %v2712_v26, 0.0  ;;  %v2713_v29 = vadd.f32 %v4813_v63, %v5873_v61 }
 0x194   : > { %v4075_v2 = vpack.c.bf16 %v2842_v27, %v2842_v27  ;;  %v2843_v8 = vmax.f32 %v2715_v19, 0.0 }
 0x195   : > { %v4073_v3 = vpack.c.bf16 %v2840_v10, %v2840_v10  ;;  %v2841_v9 = vmax.f32 %v2713_v29, 0.0  ;;  %v4682_v11 = vpop.f32.mrb[20].mxu0 }
 0x196   : > { %3483 = vst.msk [vmem:[%s5891_s17 + $0x48] sm:$0xf] %vm3464_vm1, %v4075_v2  ;;  %v4076_v30 = vpack.c.bf16 %v2843_v8, %v2843_v8  ;;  %v4814_v22 = vadd.f32 %v4682_v11, %v5693_v31  ;;  %v2130_v12 = vpop.f32.mrb[21].mxu0 }
 0x197   : > { %3481 = vst.msk [vmem:[%s5891_s17 + $0x40] sm:$0xf] %vm3464_vm1, %v4073_v3  ;;  %v4074_v0 = vpack.c.bf16 %v2841_v9, %v2841_v9  ;;  %v4815_v13 = vadd.f32 %v2130_v12, %v5695_v32  ;;  %v4683_v5 = vpop.f32.mrb[22].mxu0  ;;  %v6399_v3 = vld [vmem:[#allocation2_spill] sm:$0xff] }
 0x198   : > { %3484 = vst.msk [vmem:[%s5891_s17 + $0x4c] sm:$0xf] %vm3464_vm1, %v4076_v30  ;;  %v2718_v4 = vadd.f32 %v4814_v22, %v5873_v61  ;;  %v4816_v24 = vadd.f32 %v4683_v5, %v5697_v33  ;;  %v2133_v7 = vpop.f32.mrb[23].mxu0 }
 0x199   : > { %3482 = vst.msk [vmem:[%s5891_s17 + $0x44] sm:$0xf] %vm3464_vm1, %v4074_v0  ;;  %v2716_v31 = vadd.f32 %v4815_v13, %v5873_v61  ;;  %v4817_v53 = vadd.f32 %v2133_v7, %v5699_v34 }
 0x19a   : > { %v2846_v20 = vmax.f32 %v2718_v4, 0.0  ;;  %v2719_v1 = vadd.f32 %v4816_v24, %v5873_v61 }
 0x19b   : > { %v2844_v32 = vmax.f32 %v2716_v31, 0.0  ;;  %v2717_v21 = vadd.f32 %v4817_v53, %v5873_v61 }
 0x19c   : > { %v4079_v55 = vpack.c.bf16 %v2846_v20, %v2846_v20  ;;  %v2847_v23 = vmax.f32 %v2719_v1, 0.0  ;;  %v6400_v1 = vld [vmem:[#allocation3_spill] sm:$0xff] }
 0x19d   : > { %v4077_v57 = vpack.c.bf16 %v2844_v32, %v2844_v32  ;;  %v2845_v33 = vmax.f32 %v2717_v21, 0.0  ;;  %v4686_v25 = vpop.f32.mrb[24].mxu0 }
 0x19e   : > { %3487 = vst.msk [vmem:[%s5891_s17 + $0x58] sm:$0xf] %vm3464_vm1, %v4079_v55  ;;  %v4080_v6 = vpack.c.bf16 %v2847_v23, %v2847_v23  ;;  %v4818_v16 = vadd.f32 %v4686_v25, %v5709_v35  ;;  %v2146_v58 = vpop.f32.mrb[25].mxu0  ;;  %v6401_v23 = vld [vmem:[#allocation4_spill] sm:$0xff] }
 0x19f   : > { %3485 = vst.msk [vmem:[%s5891_s17 + $0x50] sm:$0xf] %vm3464_vm1, %v4077_v57  ;;  %v4078_v34 = vpack.c.bf16 %v2845_v33, %v2845_v33  ;;  %v4819_v59 = vadd.f32 %v2146_v58, %v5711_v36  ;;  %v4687_v56 = vpop.f32.mrb[26].mxu0 }
 0x1a0   : > { %3488 = vst.msk [vmem:[%s5891_s17 + $0x5c] sm:$0xf] %vm3464_vm1, %v4080_v6  ;;  %v2722_v28 = vadd.f32 %v4818_v16, %v5873_v61  ;;  %v4820_v49 = vadd.f32 %v4687_v56, %v5713_v37  ;;  %v2149_v60 = vpop.f32.mrb[27].mxu0 }
 0x1a1   : > { %3486 = vst.msk [vmem:[%s5891_s17 + $0x54] sm:$0xf] %vm3464_vm1, %v4078_v34  ;;  %v2720_v35 = vadd.f32 %v4819_v59, %v5873_v61  ;;  %v4821_v18 = vadd.f32 %v2149_v60, %v5715_v38 }
 0x1a2   : > { %v2850_v54 = vmax.f32 %v2722_v28, 0.0  ;;  %v2723_v14 = vadd.f32 %v4820_v49, %v5873_v61 }
 0x1a3   : > { %v2848_v36 = vmax.f32 %v2720_v35, 0.0  ;;  %v2721_v62 = vadd.f32 %v4821_v18, %v5873_v61 }
 0x1a4   : > { %v4083_v15 = vpack.c.bf16 %v2850_v54, %v2850_v54  ;;  %v2851_v17 = vmax.f32 %v2723_v14, 0.0  ;;  %v6402_v14 = vld [vmem:[#allocation5_spill] sm:$0xff] }
 0x1a5   : > { %v4081_v26 = vpack.c.bf16 %v2848_v36, %v2848_v36  ;;  %v2849_v37 = vmax.f32 %v2721_v62, 0.0  ;;  %v4690_v63 = vpop.f32.mrb[28].mxu0 }
 0x1a6   : > { %3491 = vst.msk [vmem:[%s5891_s17 + $0x68] sm:$0xf] %vm3464_vm1, %v4083_v15  ;;  %v4084_v27 = vpack.c.bf16 %v2851_v17, %v2851_v17  ;;  %v4822_v19 = vadd.f32 %v4690_v63, %v5725_v39  ;;  %v2162_v10 = vpop.f32.mrb[29].mxu0  ;;  %v6403_v17 = vld [vmem:[#allocation6_spill] sm:$0xff] }
 0x1a7   : > { %3489 = vst.msk [vmem:[%s5891_s17 + $0x60] sm:$0xf] %vm3464_vm1, %v4081_v26  ;;  %v4082_v38 = vpack.c.bf16 %v2849_v37, %v2849_v37  ;;  %v4823_v29 = vadd.f32 %v2162_v10, %v5727_v40  ;;  %v4691_v2 = vpop.f32.mrb[30].mxu0 }
 0x1a8   : > { %3492 = vst.msk [vmem:[%s5891_s17 + $0x6c] sm:$0xf] %vm3464_vm1, %v4084_v27  ;;  %v2726_v8 = vadd.f32 %v4822_v19, %v5873_v61  ;;  %v4824_v9 = vadd.f32 %v4691_v2, %v6399_v3  ;;  %v2165_v11 = vpop.f32.mrb[31].mxu0 }
 0x1a9   : > { %3490 = vst.msk [vmem:[%s5891_s17 + $0x64] sm:$0xf] %vm3464_vm1, %v4082_v38  ;;  %v2724_v39 = vadd.f32 %v4823_v29, %v5873_v61  ;;  %v4825_v30 = vadd.f32 %v2165_v11, %v5731_v42 }
 0x1aa   : > { %v2854_v22 = vmax.f32 %v2726_v8, 0.0  ;;  %v2727_v12 = vadd.f32 %v4824_v9, %v5873_v61 }
 0x1ab   : > { %v2852_v40 = vmax.f32 %v2724_v39, 0.0  ;;  %v2725_v0 = vadd.f32 %v4825_v30, %v5873_v61 }
 0x1ac   : > { %v4087_v13 = vpack.c.bf16 %v2854_v22, %v2854_v22  ;;  %v2855_v5 = vmax.f32 %v2727_v12, 0.0  ;;  %v6404_v22 = vld [vmem:[#allocation7_spill] sm:$0xff] }
 0x1ad   : > { %v4085_v4 = vpack.c.bf16 %v2852_v40, %v2852_v40  ;;  %v2853_v24 = vmax.f32 %v2725_v0, 0.0  ;;  %v4694_v7 = vpop.f32.mrb[32].mxu0 }
 0x1ae   : > { %3495 = vst.msk [vmem:[%s5891_s17 + $0x78] sm:$0xf] %vm3464_vm1, %v4087_v13  ;;  %v4088_v31 = vpack.c.bf16 %v2855_v5, %v2855_v5  ;;  %v4826_v53 = vadd.f32 %v4694_v7, %v5741_v43  ;;  %v2178_v20 = vpop.f32.mrb[33].mxu0  ;;  %v6405_v13 = vld [vmem:[#allocation8_spill] sm:$0xff] }
 0x1af   : > { %3493 = vst.msk [vmem:[%s5891_s17 + $0x70] sm:$0xf] %vm3464_vm1, %v4085_v4  ;;  %v4086_v42 = vpack.c.bf16 %v2853_v24, %v2853_v24  ;;  %v4827_v32 = vadd.f32 %v2178_v20, %v6400_v1  ;;  %v4695_v21 = vpop.f32.mrb[34].mxu0 }
 0x1b0   : > { %3496 = vst.msk [vmem:[%s5891_s17 + $0x7c] sm:$0xf] %vm3464_vm1, %v4088_v31  ;;  %v2730_v55 = vadd.f32 %v4826_v53, %v5873_v61  ;;  %v4828_v57 = vadd.f32 %v4695_v21, %v6401_v23  ;;  %v2181_v33 = vpop.f32.mrb[35].mxu0 }
 0x1b1   : > { %3494 = vst.msk [vmem:[%s5891_s17 + $0x74] sm:$0xf] %vm3464_vm1, %v4086_v42  ;;  %v2728_v43 = vadd.f32 %v4827_v32, %v5873_v61  ;;  %v4829_v25 = vadd.f32 %v2181_v33, %v5747_v41 }
 0x1b2   : > { %v2858_v6 = vmax.f32 %v2730_v55, 0.0  ;;  %v2731_v16 = vadd.f32 %v4828_v57, %v5873_v61 }
 0x1b3   : > { %v2856_v58 = vmax.f32 %v2728_v43, 0.0  ;;  %v2729_v34 = vadd.f32 %v4829_v25, %v5873_v61  ;;  %v6406_v43 = vld [vmem:[#allocation9_spill] sm:$0xff] }
 0x1b4   : > { %v4091_v59 = vpack.c.bf16 %v2858_v6, %v2858_v6  ;;  %v2859_v56 = vmax.f32 %v2731_v16, 0.0 }
 0x1b5   : > { %v4089_v28 = vpack.c.bf16 %v2856_v58, %v2856_v58  ;;  %v2857_v49 = vmax.f32 %v2729_v34, 0.0  ;;  %v4698_v60 = vpop.f32.mrb[36].mxu0  ;;  %v6407_v58 = vld [vmem:[#allocation10_spill] sm:$0xff] }
 0x1b6   : > { %3499 = vst.msk [vmem:[%s5891_s17 + $0x88] sm:$0xf] %vm3464_vm1, %v4091_v59  ;;  %v4092_v35 = vpack.c.bf16 %v2859_v56, %v2859_v56  ;;  %v4830_v18 = vadd.f32 %v4698_v60, %v5757_v46  ;;  %v2194_v54 = vpop.f32.mrb[37].mxu0 }
 0x1b7   : > { %3497 = vst.msk [vmem:[%s5891_s17 + $0x80] sm:$0xf] %vm3464_vm1, %v4089_v28  ;;  %v4090_v41 = vpack.c.bf16 %v2857_v49, %v2857_v49  ;;  %v4831_v36 = vadd.f32 %v2194_v54, %v6402_v14  ;;  %v4699_v62 = vpop.f32.mrb[38].mxu0 }
 0x1b8   : > { %3500 = vst.msk [vmem:[%s5891_s17 + $0x8c] sm:$0xf] %vm3464_vm1, %v4092_v35  ;;  %v2734_v15 = vadd.f32 %v4830_v18, %v5873_v61  ;;  %v4832_v26 = vadd.f32 %v4699_v62, %v6403_v17  ;;  %v2197_v37 = vpop.f32.mrb[39].mxu0 }
 0x1b9   : > { %3498 = vst.msk [vmem:[%s5891_s17 + $0x84] sm:$0xf] %vm3464_vm1, %v4090_v41  ;;  %v2732_v46 = vadd.f32 %v4831_v36, %v5873_v61  ;;  %v4833_v63 = vadd.f32 %v2197_v37, %v5763_v45 }
 0x1ba   : > { %v2862_v27 = vmax.f32 %v2734_v15, 0.0  ;;  %v2735_v19 = vadd.f32 %v4832_v26, %v5873_v61  ;;  %v6408_v26 = vld [vmem:[#allocation11_spill] sm:$0xff] }
 0x1bb   : > { %v2860_v10 = vmax.f32 %v2732_v46, 0.0  ;;  %v2733_v38 = vadd.f32 %v4833_v63, %v5873_v61 }
 0x1bc   : > { %v4095_v29 = vpack.c.bf16 %v2862_v27, %v2862_v27  ;;  %v2863_v2 = vmax.f32 %v2735_v19, 0.0 }
 0x1bd   : > { %v4093_v8 = vpack.c.bf16 %v2860_v10, %v2860_v10  ;;  %v2861_v3 = vmax.f32 %v2733_v38, 0.0  ;;  %v4702_v9 = vpop.f32.mrb[40].mxu0  ;;  %v6409_v10 = vld [vmem:[#allocation12_spill] sm:$0xff] }
 0x1be   : > { %3503 = vst.msk [vmem:[%s5891_s17 + $0x98] sm:$0xf] %vm3464_vm1, %v4095_v29  ;;  %v4096_v11 = vpack.c.bf16 %v2863_v2, %v2863_v2  ;;  %v4834_v39 = vadd.f32 %v4702_v9, %v5773_v48  ;;  %v2210_v30 = vpop.f32.mrb[41].mxu0 }
 0x1bf   : > { %3501 = vst.msk [vmem:[%s5891_s17 + $0x90] sm:$0xf] %vm3464_vm1, %v4093_v8  ;;  %v4094_v45 = vpack.c.bf16 %v2861_v3, %v2861_v3  ;;  %v4835_v12 = vadd.f32 %v2210_v30, %v6404_v22  ;;  %v4703_v40 = vpop.f32.mrb[42].mxu0  ;;  %v6410_v22 = vld [vmem:[#allocation13_spill] sm:$0xff] }
 0x1c0   : > { %3504 = vst.msk [vmem:[%s5891_s17 + $0x9c] sm:$0xf] %vm3464_vm1, %v4096_v11  ;;  %v2738_v0 = vadd.f32 %v4834_v39, %v5873_v61  ;;  %v4836_v5 = vadd.f32 %v4703_v40, %v6405_v13  ;;  %v2213_v4 = vpop.f32.mrb[43].mxu0  ;;  %v6411_v13 = vld [vmem:[#allocation14_spill] sm:$0xff] }
 0x1c1   : > { %3502 = vst.msk [vmem:[%s5891_s17 + $0x94] sm:$0xf] %vm3464_vm1, %v4094_v45  ;;  %v2736_v48 = vadd.f32 %v4835_v12, %v5873_v61  ;;  %v4837_v24 = vadd.f32 %v2213_v4, %v5779_v44 }
 0x1c2   : > { %v2866_v7 = vmax.f32 %v2738_v0, 0.0  ;;  %v2739_v31 = vadd.f32 %v4836_v5, %v5873_v61 }
 0x1c3   : > { %v2864_v53 = vmax.f32 %v2736_v48, 0.0  ;;  %v2737_v20 = vadd.f32 %v4837_v24, %v5873_v61  ;;  %v6412_v24 = vld [vmem:[#allocation15_spill] sm:$0xff] }
 0x1c4   : > { %v4099_v42 = vpack.c.bf16 %v2866_v7, %v2866_v7  ;;  %v2867_v1 = vmax.f32 %v2739_v31, 0.0 }
 0x1c5   : > { %v4097_v32 = vpack.c.bf16 %v2864_v53, %v2864_v53  ;;  %v2865_v21 = vmax.f32 %v2737_v20, 0.0  ;;  %v4706_v55 = vpop.f32.mrb[44].mxu0  ;;  %v6413_v20 = vld [vmem:[#allocation16_spill] sm:$0xff] }
 0x1c6   : > { %3507 = vst.msk [vmem:[%s5891_s17 + $0xa8] sm:$0xf] %vm3464_vm1, %v4099_v42  ;;  %v4100_v23 = vpack.c.bf16 %v2867_v1, %v2867_v1  ;;  %v4838_v57 = vadd.f32 %v4706_v55, %v5789_v50  ;;  %v2226_v33 = vpop.f32.mrb[45].mxu0 }
 0x1c7   : > { %3505 = vst.msk [vmem:[%s5891_s17 + $0xa0] sm:$0xf] %vm3464_vm1, %v4097_v32  ;;  %v4098_v44 = vpack.c.bf16 %v2865_v21, %v2865_v21  ;;  %v4839_v25 = vadd.f32 %v2226_v33, %v6406_v43  ;;  %v4707_v6 = vpop.f32.mrb[46].mxu0 }
 0x1c8   : > { %3508 = vst.msk [vmem:[%s5891_s17 + $0xac] sm:$0xf] %vm3464_vm1, %v4100_v23  ;;  %v2742_v16 = vadd.f32 %v4838_v57, %v5873_v61  ;;  %v4840_v34 = vadd.f32 %v4707_v6, %v6407_v58  ;;  %v2229_v59 = vpop.f32.mrb[47].mxu0  ;;  %v6414_v6 = vld [vmem:[#allocation17_spill] sm:$0xff] }
 0x1c9   : > { %3506 = vst.msk [vmem:[%s5891_s17 + $0xa4] sm:$0xf] %vm3464_vm1, %v4098_v44  ;;  %v2740_v50 = vadd.f32 %v4839_v25, %v5873_v61  ;;  %v4841_v56 = vadd.f32 %v2229_v59, %v5795_v47  ;;  %v6415_v59 = vld [vmem:[#allocation18_spill] sm:$0xff] }
 0x1ca   : > { %v2870_v28 = vmax.f32 %v2742_v16, 0.0  ;;  %v2743_v49 = vadd.f32 %v4840_v34, %v5873_v61 }
 0x1cb   : > { %v2868_v60 = vmax.f32 %v2740_v50, 0.0  ;;  %v2741_v35 = vadd.f32 %v4841_v56, %v5873_v61 }
 0x1cc   : > { %v4103_v18 = vpack.c.bf16 %v2870_v28, %v2870_v28  ;;  %v2871_v54 = vmax.f32 %v2743_v49, 0.0  ;;  %v6416_v49 = vld [vmem:[#allocation19_spill] sm:$0xff] }
 0x1cd   : > { %v4101_v41 = vpack.c.bf16 %v2868_v60, %v2868_v60  ;;  %v2869_v14 = vmax.f32 %v2741_v35, 0.0  ;;  %v4710_v36 = vpop.f32.mrb[48].mxu0 }
 0x1ce   : > { %3511 = vst.msk [vmem:[%s5891_s17 + $0xb8] sm:$0xf] %vm3464_vm1, %v4103_v18  ;;  %v4104_v62 = vpack.c.bf16 %v2871_v54, %v2871_v54  ;;  %v4842_v15 = vadd.f32 %v4710_v36, %v5805_v52  ;;  %v2242_v17 = vpop.f32.mrb[49].mxu0  ;;  %v6417_v54 = vld [vmem:[#allocation20_spill] sm:$0xff] }
 0x1cf   : > { %3509 = vst.msk [vmem:[%s5891_s17 + $0xb0] sm:$0xf] %vm3464_vm1, %v4101_v41  ;;  %v4102_v47 = vpack.c.bf16 %v2869_v14, %v2869_v14  ;;  %v4843_v37 = vadd.f32 %v2242_v17, %v6408_v26  ;;  %v4711_v46 = vpop.f32.mrb[50].mxu0 }
 0x1d0   : > { %3512 = vst.msk [vmem:[%s5891_s17 + $0xbc] sm:$0xf] %vm3464_vm1, %v4104_v62  ;;  %v2746_v63 = vadd.f32 %v4842_v15, %v5873_v61  ;;  %v4844_v27 = vadd.f32 %v4711_v46, %v5809_v51  ;;  %v2245_v19 = vpop.f32.mrb[51].mxu0 }
 0x1d1   : > { %3510 = vst.msk [vmem:[%s5891_s17 + $0xb4] sm:$0xf] %vm3464_vm1, %v4102_v47  ;;  %v2744_v52 = vadd.f32 %v4843_v37, %v5873_v61  ;;  %v4845_v38 = vadd.f32 %v2245_v19, %v6409_v10 }
 0x1d2   : > { %v2874_v29 = vmax.f32 %v2746_v63, 0.0  ;;  %v2747_v2 = vadd.f32 %v4844_v27, %v5873_v61  ;;  %v6418_v27 = vld [vmem:[#allocation21_spill] sm:$0xff] }
 0x1d3   : > { %v2872_v8 = vmax.f32 %v2744_v52, 0.0  ;;  %v2745_v3 = vadd.f32 %v4845_v38, %v5873_v61  ;;  %v6419_v38 = vld [vmem:[#allocation22_spill] sm:$0xff] }
 0x1d4   : > { %v4107_v9 = vpack.c.bf16 %v2874_v29, %v2874_v29  ;;  %v2875_v11 = vmax.f32 %v2747_v2, 0.0 }
 0x1d5   : > { %v4105_v39 = vpack.c.bf16 %v2872_v8, %v2872_v8  ;;  %v2873_v51 = vmax.f32 %v2745_v3, 0.0  ;;  %v4714_v30 = vpop.f32.mrb[52].mxu0  ;;  %v6420_v3 = vld [vmem:[#allocation23_spill] sm:$0xff] }
 0x1d6   : > { %3515 = vst.msk [vmem:[%s5891_s17 + $0xc8] sm:$0xf] %vm3464_vm1, %v4107_v9  ;;  %v4108_v45 = vpack.c.bf16 %v2875_v11, %v2875_v11  ;;  %v4846_v12 = vadd.f32 %v4714_v30, %v6410_v22  ;;  %v2258_v40 = vpop.f32.mrb[53].mxu0 }
 0x1d7   : > { %3513 = vst.msk [vmem:[%s5891_s17 + $0xc0] sm:$0xf] %vm3464_vm1, %v4105_v39  ;;  %v4106_v0 = vpack.c.bf16 %v2873_v51, %v2873_v51  ;;  %v4847_v5 = vadd.f32 %v2258_v40, %v6411_v13  ;;  %v4715_v4 = vpop.f32.mrb[54].mxu0  ;;  %v6421_v51 = vld [vmem:[#allocation24_spill] sm:$0xff] }
 0x1d8   : > { %3516 = vst.msk [vmem:[%s5891_s17 + $0xcc] sm:$0xf] %vm3464_vm1, %v4108_v45  ;;  %v2750_v48 = vadd.f32 %v4846_v12, %v5873_v61  ;;  %v4848_v7 = vadd.f32 %v4715_v4, %v6412_v24  ;;  %v2261_v31 = vpop.f32.mrb[55].mxu0 }
 0x1d9   : > { %3514 = vst.msk [vmem:[%s5891_s17 + $0xc4] sm:$0xf] %vm3464_vm1, %v4106_v0  ;;  %v2748_v53 = vadd.f32 %v4847_v5, %v5873_v61  ;;  %v4849_v42 = vadd.f32 %v2261_v31, %v6413_v20 }
 0x1da   : > { %v2878_v1 = vmax.f32 %v2750_v48, 0.0  ;;  %v2751_v32 = vadd.f32 %v4848_v7, %v5873_v61 }
 0x1db   : > { %v2876_v21 = vmax.f32 %v2748_v53, 0.0  ;;  %v2749_v55 = vadd.f32 %v4849_v42, %v5873_v61 }
 0x1dc   : > { %v4111_v23 = vpack.c.bf16 %v2878_v1, %v2878_v1  ;;  %v2879_v57 = vmax.f32 %v2751_v32, 0.0 }
 0x1dd   : > { %v4109_v33 = vpack.c.bf16 %v2876_v21, %v2876_v21  ;;  %v2877_v44 = vmax.f32 %v2749_v55, 0.0  ;;  %v4718_v43 = vpop.f32.mrb[56].mxu0 }
 0x1de   : > { %3519 = vst.msk [vmem:[%s5891_s17 + $0xd8] sm:$0xf] %vm3464_vm1, %v4111_v23  ;;  %v4112_v25 = vpack.c.bf16 %v2879_v57, %v2879_v57  ;;  %v4850_v16 = vadd.f32 %v4718_v43, %v6414_v6  ;;  %v2274_v58 = vpop.f32.mrb[57].mxu0 }
 0x1df   : > { %3517 = vst.msk [vmem:[%s5891_s17 + $0xd0] sm:$0xf] %vm3464_vm1, %v4109_v33  ;;  %v4110_v34 = vpack.c.bf16 %v2877_v44, %v2877_v44  ;;  %v4851_v50 = vadd.f32 %v2274_v58, %v6415_v59  ;;  %v4719_v56 = vpop.f32.mrb[58].mxu0 }
 0x1e0   : > { %3520 = vst.msk [vmem:[%s5891_s17 + $0xdc] sm:$0xf] %vm3464_vm1, %v4112_v25  ;;  %v2754_v28 = vadd.f32 %v4850_v16, %v5873_v61  ;;  %v4852_v60 = vadd.f32 %v4719_v56, %v6416_v49  ;;  %v2277_v35 = vpop.f32.mrb[59].mxu0 }
 0x1e1   : > { %3518 = vst.msk [vmem:[%s5891_s17 + $0xd4] sm:$0xf] %vm3464_vm1, %v4110_v34  ;;  %v2752_v18 = vadd.f32 %v4851_v50, %v5873_v61  ;;  %v4853_v41 = vadd.f32 %v2277_v35, %v6417_v54 }
 0x1e2   : > { %v2882_v14 = vmax.f32 %v2754_v28, 0.0  ;;  %v2755_v36 = vadd.f32 %v4852_v60, %v5873_v61 }
 0x1e3   : > { %v2880_v62 = vmax.f32 %v2752_v18, 0.0  ;;  %v2753_v15 = vadd.f32 %v4853_v41, %v5873_v61 }
 0x1e4   : > { %v4115_v17 = vpack.c.bf16 %v2882_v14, %v2882_v14  ;;  %v2883_v47 = vmax.f32 %v2755_v36, 0.0 }
 0x1e5   : > { %v4113_v26 = vpack.c.bf16 %v2880_v62, %v2880_v62  ;;  %v2881_v37 = vmax.f32 %v2753_v15, 0.0  ;;  %v4722_v46 = vpop.f32.mrb[60].mxu0 }
 0x1e6   : > { %3523 = vst.msk [vmem:[%s5891_s17 + $0xe8] sm:$0xf] %vm3464_vm1, %v4115_v17  ;;  %v4116_v63 = vpack.c.bf16 %v2883_v47, %v2883_v47  ;;  %v4854_v19 = vadd.f32 %v4722_v46, %v6418_v27  ;;  %v2290_v52 = vpop.f32.mrb[61].mxu0 }
 0x1e7   : > { %3521 = vst.msk [vmem:[%s5891_s17 + $0xe0] sm:$0xf] %vm3464_vm1, %v4113_v26  ;;  %v4114_v10 = vpack.c.bf16 %v2881_v37, %v2881_v37  ;;  %v4855_v29 = vadd.f32 %v2290_v52, %v6419_v38  ;;  %v4723_v2 = vpop.f32.mrb[62].mxu0 }
 0x1e8   : > { %3524 = vst.msk [vmem:[%s5891_s17 + $0xec] sm:$0xf] %vm3464_vm1, %v4116_v63  ;;  %v2758_v8 = vadd.f32 %v4854_v19, %v5873_v61  ;;  %v4856_v9 = vadd.f32 %v4723_v2, %v6420_v3  ;;  %v2293_v11 = vpop.f32.mrb[63].mxu0 }
 0x1e9   : > { %3522 = vst.msk [vmem:[%s5891_s17 + $0xe4] sm:$0xf] %vm3464_vm1, %v4114_v10  ;;  %v2756_v39 = vadd.f32 %v4855_v29, %v5873_v61  ;;  %v4857_v30 = vadd.f32 %v2293_v11, %v6421_v51 }
 0x1ea   : > { %v2886_v45 = vmax.f32 %v2758_v8, 0.0  ;;  %v2759_v22 = vadd.f32 %v4856_v9, %v5873_v61 }
 0x1eb   : > { %v2884_v12 = vmax.f32 %v2756_v39, 0.0  ;;  %v2757_v40 = vadd.f32 %v4857_v30, %v5873_v61 }
 0x1ec   : > { %v4119_v0 = vpack.c.bf16 %v2886_v45, %v2886_v45  ;;  %v2887_v13 = vmax.f32 %v2759_v22, 0.0 }
 0x1ed   : > { %v4592_v5 = vpop.f32.mrb[64].mxu1  ;;  %v4117_v4 = vpack.c.bf16 %v2884_v12, %v2884_v12  ;;  %v2885_v48 = vmax.f32 %v2757_v40, 0.0  ;;  %v4726_v24 = vpop.f32.mrb[64].mxu0 }
 0x1ee   : > { %v1727_v7 = vpop.f32.mrb[65].mxu1  ;;  %3527 = vst.msk [vmem:[%s5891_s17 + $0xf8] sm:$0xf] %vm3464_vm1, %v4119_v0  ;;  %v4120_v31 = vpack.c.bf16 %v2887_v13, %v2887_v13  ;;  %v4858_v53 = vadd.f32 %v4726_v24, %v4592_v5  ;;  %v2306_v20 = vpop.f32.mrb[65].mxu0 }
 0x1ef   : > { %v4593_v42 = vpop.f32.mrb[66].mxu1  ;;  %3525 = vst.msk [vmem:[%s5891_s17 + $0xf0] sm:$0xf] %vm3464_vm1, %v4117_v4  ;;  %v4118_v1 = vpack.c.bf16 %v2885_v48, %v2885_v48  ;;  %v4859_v32 = vadd.f32 %v2306_v20, %v1727_v7  ;;  %v4727_v21 = vpop.f32.mrb[66].mxu0 }
 0x1f0   : > { %v1730_v55 = vpop.f32.mrb[67].mxu1  ;;  %3528 = vst.msk [vmem:[%s5891_s17 + $0xfc] sm:$0xf] %vm3464_vm1, %v4120_v31  ;;  %v2762_v23 = vadd.f32 %v4858_v53, %v5873_v61  ;;  %v4860_v57 = vadd.f32 %v4727_v21, %v4593_v42  ;;  %v2309_v33 = vpop.f32.mrb[67].mxu0 }
 0x1f1   : > { %3526 = vst.msk [vmem:[%s5891_s17 + $0xf4] sm:$0xf] %vm3464_vm1, %v4118_v1  ;;  %v2760_v44 = vadd.f32 %v4859_v32, %v5873_v61  ;;  %v4861_v43 = vadd.f32 %v2309_v33, %v1730_v55 }
 0x1f2   : > { %v2890_v25 = vmax.f32 %v2762_v23, 0.0  ;;  %v2763_v6 = vadd.f32 %v4860_v57, %v5873_v61 }
 0x1f3   : > { %v2888_v16 = vmax.f32 %v2760_v44, 0.0  ;;  %v2761_v58 = vadd.f32 %v4861_v43, %v5873_v61 }
 0x1f4   : > { %v4123_v34 = vpack.c.bf16 %v2890_v25, %v2890_v25  ;;  %v2891_v59 = vmax.f32 %v2763_v6, 0.0 }
 0x1f5   : > { %v4596_v50 = vpop.f32.mrb[68].mxu1  ;;  %v4121_v56 = vpack.c.bf16 %v2888_v16, %v2888_v16  ;;  %v2889_v28 = vmax.f32 %v2761_v58, 0.0  ;;  %v4730_v49 = vpop.f32.mrb[68].mxu0 }
 0x1f6   : > { %v1743_v60 = vpop.f32.mrb[69].mxu1  ;;  %3531 = vst.msk [vmem:[%s5891_s17 + $0x108] sm:$0xf] %vm3464_vm1, %v4123_v34  ;;  %v4124_v35 = vpack.c.bf16 %v2891_v59, %v2891_v59  ;;  %v4862_v18 = vadd.f32 %v4730_v49, %v4596_v50  ;;  %v2322_v54 = vpop.f32.mrb[69].mxu0 }
 0x1f7   : > { %v4597_v41 = vpop.f32.mrb[70].mxu1  ;;  %3529 = vst.msk [vmem:[%s5891_s17 + $0x100] sm:$0xf] %vm3464_vm1, %v4121_v56  ;;  %v4122_v14 = vpack.c.bf16 %v2889_v28, %v2889_v28  ;;  %v4863_v36 = vadd.f32 %v2322_v54, %v1743_v60  ;;  %v4731_v62 = vpop.f32.mrb[70].mxu0 }
 0x1f8   : > { %v1746_v15 = vpop.f32.mrb[71].mxu1  ;;  %3532 = vst.msk [vmem:[%s5891_s17 + $0x10c] sm:$0xf] %vm3464_vm1, %v4124_v35  ;;  %v2766_v17 = vadd.f32 %v4862_v18, %v5873_v61  ;;  %v4864_v47 = vadd.f32 %v4731_v62, %v4597_v41  ;;  %v2325_v26 = vpop.f32.mrb[71].mxu0 }
 0x1f9   : > { %3530 = vst.msk [vmem:[%s5891_s17 + $0x104] sm:$0xf] %vm3464_vm1, %v4122_v14  ;;  %v2764_v37 = vadd.f32 %v4863_v36, %v5873_v61  ;;  %v4865_v46 = vadd.f32 %v2325_v26, %v1746_v15 }
 0x1fa   : > { %v2894_v63 = vmax.f32 %v2766_v17, 0.0  ;;  %v2767_v27 = vadd.f32 %v4864_v47, %v5873_v61 }
 0x1fb   : > { %v2892_v19 = vmax.f32 %v2764_v37, 0.0  ;;  %v2765_v52 = vadd.f32 %v4865_v46, %v5873_v61 }
 0x1fc   : > { %v4127_v10 = vpack.c.bf16 %v2894_v63, %v2894_v63  ;;  %v2895_v38 = vmax.f32 %v2767_v27, 0.0 }
 0x1fd   : > { %v4600_v29 = vpop.f32.mrb[72].mxu1  ;;  %v4125_v2 = vpack.c.bf16 %v2892_v19, %v2892_v19  ;;  %v2893_v8 = vmax.f32 %v2765_v52, 0.0  ;;  %v4734_v3 = vpop.f32.mrb[72].mxu0  ;;  %v6221_v52 = vld [vmem:[%s6374_s2] ss:$0 sm:$0xff] }
 0x1fe   : > { %v1759_v9 = vpop.f32.mrb[73].mxu1  ;;  %3535 = vst.msk [vmem:[%s5891_s17 + $0x118] sm:$0xf] %vm3464_vm1, %v4127_v10  ;;  %v4128_v11 = vpack.c.bf16 %v2895_v38, %v2895_v38  ;;  %v4866_v39 = vadd.f32 %v4734_v3, %v4600_v29  ;;  %v2338_v51 = vpop.f32.mrb[73].mxu0 }
 0x1ff   : > { %v4601_v30 = vpop.f32.mrb[74].mxu1  ;;  %3533 = vst.msk [vmem:[%s5891_s17 + $0x110] sm:$0xf] %vm3464_vm1, %v4125_v2  ;;  %v4126_v45 = vpack.c.bf16 %v2893_v8, %v2893_v8  ;;  %v4867_v22 = vadd.f32 %v2338_v51, %v1759_v9  ;;  %v4735_v12 = vpop.f32.mrb[74].mxu0 }
 0x200   : > { %v1762_v40 = vpop.f32.mrb[75].mxu1  ;;  %3536 = vst.msk [vmem:[%s5891_s17 + $0x11c] sm:$0xf] %vm3464_vm1, %v4128_v11  ;;  %v2770_v0 = vadd.f32 %v4866_v39, %v5873_v61  ;;  %v4868_v13 = vadd.f32 %v4735_v12, %v4601_v30  ;;  %v2341_v5 = vpop.f32.mrb[75].mxu0 }
 0x201   : > { %3534 = vst.msk [vmem:[%s5891_s17 + $0x114] sm:$0xf] %vm3464_vm1, %v4126_v45  ;;  %v2768_v4 = vadd.f32 %v4867_v22, %v5873_v61  ;;  %v4869_v48 = vadd.f32 %v2341_v5, %v1762_v40 }
 0x202   : > { %v2898_v24 = vmax.f32 %v2770_v0, 0.0  ;;  %v2771_v7 = vadd.f32 %v4868_v13, %v5873_v61 }
 0x203   : > { %v2896_v31 = vmax.f32 %v2768_v4, 0.0  ;;  %v2769_v53 = vadd.f32 %v4869_v48, %v5873_v61 }
 0x204   : > { %v4131_v20 = vpack.c.bf16 %v2898_v24, %v2898_v24  ;;  %v2899_v42 = vmax.f32 %v2771_v7, 0.0 }
 0x205   : > { %v4604_v1 = vpop.f32.mrb[76].mxu1  ;;  %v4129_v32 = vpack.c.bf16 %v2896_v31, %v2896_v31  ;;  %v2897_v21 = vmax.f32 %v2769_v53, 0.0  ;;  %v4738_v55 = vpop.f32.mrb[76].mxu0 }
 0x206   : > { %v1775_v23 = vpop.f32.mrb[77].mxu1  ;;  %3539 = vst.msk [vmem:[%s5891_s17 + $0x128] sm:$0xf] %vm3464_vm1, %v4131_v20  ;;  %v4132_v57 = vpack.c.bf16 %v2899_v42, %v2899_v42  ;;  %v4870_v33 = vadd.f32 %v4738_v55, %v4604_v1  ;;  %v2354_v44 = vpop.f32.mrb[77].mxu0 }
 0x207   : > { %v4605_v43 = vpop.f32.mrb[78].mxu1  ;;  %3537 = vst.msk [vmem:[%s5891_s17 + $0x120] sm:$0xf] %vm3464_vm1, %v4129_v32  ;;  %v4130_v25 = vpack.c.bf16 %v2897_v21, %v2897_v21  ;;  %v4871_v6 = vadd.f32 %v2354_v44, %v1775_v23  ;;  %v4739_v16 = vpop.f32.mrb[78].mxu0 }
 0x208   : > { %v1778_v58 = vpop.f32.mrb[79].mxu1  ;;  %3540 = vst.msk [vmem:[%s5891_s17 + $0x12c] sm:$0xf] %vm3464_vm1, %v4132_v57  ;;  %v2774_v34 = vadd.f32 %v4870_v33, %v5873_v61  ;;  %v4872_v59 = vadd.f32 %v4739_v16, %v4605_v43  ;;  %v2357_v50 = vpop.f32.mrb[79].mxu0 }
 0x209   : > { %3538 = vst.msk [vmem:[%s5891_s17 + $0x124] sm:$0xf] %vm3464_vm1, %v4130_v25  ;;  %v2772_v56 = vadd.f32 %v4871_v6, %v5873_v61  ;;  %v4873_v28 = vadd.f32 %v2357_v50, %v1778_v58 }
 0x20a   : > { %v2902_v49 = vmax.f32 %v2774_v34, 0.0  ;;  %v2775_v60 = vadd.f32 %v4872_v59, %v5873_v61 }
 0x20b   : > { %v2900_v35 = vmax.f32 %v2772_v56, 0.0  ;;  %v2773_v18 = vadd.f32 %v4873_v28, %v5873_v61 }
 0x20c   : > { %v4135_v54 = vpack.c.bf16 %v2902_v49, %v2902_v49  ;;  %v2903_v41 = vmax.f32 %v2775_v60, 0.0 }
 0x20d   : > { %v4608_v14 = vpop.f32.mrb[80].mxu1  ;;  %v4133_v36 = vpack.c.bf16 %v2900_v35, %v2900_v35  ;;  %v2901_v62 = vmax.f32 %v2773_v18, 0.0  ;;  %v4742_v15 = vpop.f32.mrb[80].mxu0 }
 0x20e   : > { %v1791_v17 = vpop.f32.mrb[81].mxu1  ;;  %3543 = vst.msk [vmem:[%s5891_s17 + $0x138] sm:$0xf] %vm3464_vm1, %v4135_v54  ;;  %v4136_v47 = vpack.c.bf16 %v2903_v41, %v2903_v41  ;;  %v4874_v26 = vadd.f32 %v4742_v15, %v4608_v14  ;;  %v2370_v37 = vpop.f32.mrb[81].mxu0 }
 0x20f   : > { %v4609_v46 = vpop.f32.mrb[82].mxu1  ;;  %3541 = vst.msk [vmem:[%s5891_s17 + $0x130] sm:$0xf] %vm3464_vm1, %v4133_v36  ;;  %v4134_v63 = vpack.c.bf16 %v2901_v62, %v2901_v62  ;;  %v4875_v27 = vadd.f32 %v2370_v37, %v1791_v17  ;;  %v4743_v61 = vpop.f32.mrb[82].mxu0 }
 0x210   : > { %v1794_v19 = vpop.f32.mrb[83].mxu1  ;;  %3544 = vst.msk [vmem:[%s5891_s17 + $0x13c] sm:$0xf] %vm3464_vm1, %v4136_v47  ;;  %v2778_v10 = vadd.f32 %v6221_v52, %v4874_v26  ;;  %v4876_v38 = vadd.f32 %v4743_v61, %v4609_v46  ;;  %v2373_v29 = vpop.f32.mrb[83].mxu0 }
 0x211   : > { %3542 = vst.msk [vmem:[%s5891_s17 + $0x134] sm:$0xf] %vm3464_vm1, %v4134_v63  ;;  %v2776_v2 = vadd.f32 %v6221_v52, %v4875_v27  ;;  %v4877_v8 = vadd.f32 %v2373_v29, %v1794_v19 }
 0x212   : > { %v2906_v3 = vmax.f32 %v2778_v10, 0.0  ;;  %v2779_v9 = vadd.f32 %v6221_v52, %v4876_v38 }
 0x213   : > { %v2904_v11 = vmax.f32 %v2776_v2, 0.0  ;;  %v2777_v39 = vadd.f32 %v6221_v52, %v4877_v8 }
 0x214   : > { %v4139_v51 = vpack.c.bf16 %v2906_v3, %v2906_v3  ;;  %v2907_v30 = vmax.f32 %v2779_v9, 0.0 }
 0x215   : > { %v4612_v45 = vpop.f32.mrb[84].mxu1  ;;  %v4137_v22 = vpack.c.bf16 %v2904_v11, %v2904_v11  ;;  %v2905_v12 = vmax.f32 %v2777_v39, 0.0  ;;  %v4746_v40 = vpop.f32.mrb[84].mxu0 }
 0x216   : > { %v1807_v0 = vpop.f32.mrb[85].mxu1  ;;  %3547 = vst.msk [vmem:[%s5891_s17 + $0x148] sm:$0xf] %vm3464_vm1, %v4139_v51  ;;  %v4140_v13 = vpack.c.bf16 %v2907_v30, %v2907_v30  ;;  %v4878_v5 = vadd.f32 %v4746_v40, %v4612_v45  ;;  %v2386_v4 = vpop.f32.mrb[85].mxu0 }
 0x217   : > { %v4613_v48 = vpop.f32.mrb[86].mxu1  ;;  %3545 = vst.msk [vmem:[%s5891_s17 + $0x140] sm:$0xf] %vm3464_vm1, %v4137_v22  ;;  %v4138_v24 = vpack.c.bf16 %v2905_v12, %v2905_v12  ;;  %v4879_v7 = vadd.f32 %v2386_v4, %v1807_v0  ;;  %v4747_v31 = vpop.f32.mrb[86].mxu0 }
 0x218   : > { %v1810_v53 = vpop.f32.mrb[87].mxu1  ;;  %3548 = vst.msk [vmem:[%s5891_s17 + $0x14c] sm:$0xf] %vm3464_vm1, %v4140_v13  ;;  %v2782_v20 = vadd.f32 %v6221_v52, %v4878_v5  ;;  %v4880_v42 = vadd.f32 %v4747_v31, %v4613_v48  ;;  %v2389_v1 = vpop.f32.mrb[87].mxu0 }
 0x219   : > { %3546 = vst.msk [vmem:[%s5891_s17 + $0x144] sm:$0xf] %vm3464_vm1, %v4138_v24  ;;  %v2780_v32 = vadd.f32 %v6221_v52, %v4879_v7  ;;  %v4881_v21 = vadd.f32 %v2389_v1, %v1810_v53 }
 0x21a   : > { %v2910_v55 = vmax.f32 %v2782_v20, 0.0  ;;  %v2783_v23 = vadd.f32 %v6221_v52, %v4880_v42 }
 0x21b   : > { %v2908_v57 = vmax.f32 %v2780_v32, 0.0  ;;  %v2781_v33 = vadd.f32 %v6221_v52, %v4881_v21 }
 0x21c   : > { %v4143_v44 = vpack.c.bf16 %v2910_v55, %v2910_v55  ;;  %v2911_v43 = vmax.f32 %v2783_v23, 0.0 }
 0x21d   : > { %v4616_v25 = vpop.f32.mrb[88].mxu1  ;;  %v4141_v6 = vpack.c.bf16 %v2908_v57, %v2908_v57  ;;  %v2909_v16 = vmax.f32 %v2781_v33, 0.0  ;;  %v4750_v58 = vpop.f32.mrb[88].mxu0 }
 0x21e   : > { %v1823_v34 = vpop.f32.mrb[89].mxu1  ;;  %3551 = vst.msk [vmem:[%s5891_s17 + $0x158] sm:$0xf] %vm3464_vm1, %v4143_v44  ;;  %v4144_v59 = vpack.c.bf16 %v2911_v43, %v2911_v43  ;;  %v4882_v50 = vadd.f32 %v4750_v58, %v4616_v25  ;;  %v2402_v56 = vpop.f32.mrb[89].mxu0 }
 0x21f   : > { %v4617_v28 = vpop.f32.mrb[90].mxu1  ;;  %3549 = vst.msk [vmem:[%s5891_s17 + $0x150] sm:$0xf] %vm3464_vm1, %v4141_v6  ;;  %v4142_v49 = vpack.c.bf16 %v2909_v16, %v2909_v16  ;;  %v4883_v60 = vadd.f32 %v2402_v56, %v1823_v34  ;;  %v4751_v35 = vpop.f32.mrb[90].mxu0 }
 0x220   : > { %v1826_v18 = vpop.f32.mrb[91].mxu1  ;;  %3552 = vst.msk [vmem:[%s5891_s17 + $0x15c] sm:$0xf] %vm3464_vm1, %v4144_v59  ;;  %v2786_v54 = vadd.f32 %v6221_v52, %v4882_v50  ;;  %v4884_v41 = vadd.f32 %v4751_v35, %v4617_v28  ;;  %v2405_v14 = vpop.f32.mrb[91].mxu0 }
 0x221   : > { %3550 = vst.msk [vmem:[%s5891_s17 + $0x154] sm:$0xf] %vm3464_vm1, %v4142_v49  ;;  %v2784_v36 = vadd.f32 %v6221_v52, %v4883_v60  ;;  %v4885_v62 = vadd.f32 %v2405_v14, %v1826_v18 }
 0x222   : > { %v2914_v15 = vmax.f32 %v2786_v54, 0.0  ;;  %v2787_v17 = vadd.f32 %v6221_v52, %v4884_v41 }
 0x223   : > { %v2912_v47 = vmax.f32 %v2784_v36, 0.0  ;;  %v2785_v26 = vadd.f32 %v6221_v52, %v4885_v62 }
 0x224   : > { %v4147_v37 = vpack.c.bf16 %v2914_v15, %v2914_v15  ;;  %v2915_v46 = vmax.f32 %v2787_v17, 0.0 }
 0x225   : > { %v4620_v63 = vpop.f32.mrb[92].mxu1  ;;  %v4145_v27 = vpack.c.bf16 %v2912_v47, %v2912_v47  ;;  %v2913_v61 = vmax.f32 %v2785_v26, 0.0  ;;  %v4754_v19 = vpop.f32.mrb[92].mxu0 }
 0x226   : > { %v1839_v10 = vpop.f32.mrb[93].mxu1  ;;  %3555 = vst.msk [vmem:[%s5891_s17 + $0x168] sm:$0xf] %vm3464_vm1, %v4147_v37  ;;  %v4148_v38 = vpack.c.bf16 %v2915_v46, %v2915_v46  ;;  %v4886_v29 = vadd.f32 %v4754_v19, %v4620_v63  ;;  %v2418_v2 = vpop.f32.mrb[93].mxu0 }
 0x227   : > { %v4621_v8 = vpop.f32.mrb[94].mxu1  ;;  %3553 = vst.msk [vmem:[%s5891_s17 + $0x160] sm:$0xf] %vm3464_vm1, %v4145_v27  ;;  %v4146_v3 = vpack.c.bf16 %v2913_v61, %v2913_v61  ;;  %v4887_v9 = vadd.f32 %v2418_v2, %v1839_v10  ;;  %v4755_v11 = vpop.f32.mrb[94].mxu0 }
 0x228   : > { %v1842_v39 = vpop.f32.mrb[95].mxu1  ;;  %3556 = vst.msk [vmem:[%s5891_s17 + $0x16c] sm:$0xf] %vm3464_vm1, %v4148_v38  ;;  %v2790_v51 = vadd.f32 %v6221_v52, %v4886_v29  ;;  %v4888_v30 = vadd.f32 %v4755_v11, %v4621_v8  ;;  %v2421_v45 = vpop.f32.mrb[95].mxu0 }
 0x229   : > { %3554 = vst.msk [vmem:[%s5891_s17 + $0x164] sm:$0xf] %vm3464_vm1, %v4146_v3  ;;  %v2788_v22 = vadd.f32 %v6221_v52, %v4887_v9  ;;  %v4889_v12 = vadd.f32 %v2421_v45, %v1842_v39 }
 0x22a   : > { %v2918_v40 = vmax.f32 %v2790_v51, 0.0  ;;  %v2791_v0 = vadd.f32 %v6221_v52, %v4888_v30 }
 0x22b   : > { %v2916_v13 = vmax.f32 %v2788_v22, 0.0  ;;  %v2789_v5 = vadd.f32 %v6221_v52, %v4889_v12 }
 0x22c   : > { %v4151_v4 = vpack.c.bf16 %v2918_v40, %v2918_v40  ;;  %v2919_v48 = vmax.f32 %v2791_v0, 0.0 }
 0x22d   : > { %v4624_v24 = vpop.f32.mrb[96].mxu1  ;;  %v4149_v7 = vpack.c.bf16 %v2916_v13, %v2916_v13  ;;  %v2917_v31 = vmax.f32 %v2789_v5, 0.0  ;;  %v4758_v53 = vpop.f32.mrb[96].mxu0 }
 0x22e   : > { %v1855_v20 = vpop.f32.mrb[97].mxu1  ;;  %3559 = vst.msk [vmem:[%s5891_s17 + $0x178] sm:$0xf] %vm3464_vm1, %v4151_v4  ;;  %v4152_v42 = vpack.c.bf16 %v2919_v48, %v2919_v48  ;;  %v4890_v1 = vadd.f32 %v4758_v53, %v4624_v24  ;;  %v2434_v32 = vpop.f32.mrb[97].mxu0 }
 0x22f   : > { %v4625_v21 = vpop.f32.mrb[98].mxu1  ;;  %3557 = vst.msk [vmem:[%s5891_s17 + $0x170] sm:$0xf] %vm3464_vm1, %v4149_v7  ;;  %v4150_v55 = vpack.c.bf16 %v2917_v31, %v2917_v31  ;;  %v4891_v23 = vadd.f32 %v2434_v32, %v1855_v20  ;;  %v4759_v57 = vpop.f32.mrb[98].mxu0 }
 0x230   : > { %v1858_v33 = vpop.f32.mrb[99].mxu1  ;;  %3560 = vst.msk [vmem:[%s5891_s17 + $0x17c] sm:$0xf] %vm3464_vm1, %v4152_v42  ;;  %v2794_v44 = vadd.f32 %v6221_v52, %v4890_v1  ;;  %v4892_v43 = vadd.f32 %v4759_v57, %v4625_v21  ;;  %v2437_v25 = vpop.f32.mrb[99].mxu0 }
 0x231   : > { %3558 = vst.msk [vmem:[%s5891_s17 + $0x174] sm:$0xf] %vm3464_vm1, %v4150_v55  ;;  %v2792_v6 = vadd.f32 %v6221_v52, %v4891_v23  ;;  %v4893_v16 = vadd.f32 %v2437_v25, %v1858_v33 }
 0x232   : > { %v2922_v58 = vmax.f32 %v2794_v44, 0.0  ;;  %v2795_v34 = vadd.f32 %v6221_v52, %v4892_v43 }
 0x233   : > { %v2920_v59 = vmax.f32 %v2792_v6, 0.0  ;;  %v2793_v50 = vadd.f32 %v6221_v52, %v4893_v16 }
 0x234   : > { %v4155_v56 = vpack.c.bf16 %v2922_v58, %v2922_v58  ;;  %v2923_v28 = vmax.f32 %v2795_v34, 0.0 }
 0x235   : > { %v4628_v49 = vpop.f32.mrb[100].mxu1  ;;  %v4153_v60 = vpack.c.bf16 %v2920_v59, %v2920_v59  ;;  %v2921_v35 = vmax.f32 %v2793_v50, 0.0  ;;  %v4762_v18 = vpop.f32.mrb[100].mxu0 }
 0x236   : > { %v1871_v54 = vpop.f32.mrb[101].mxu1  ;;  %3563 = vst.msk [vmem:[%s5891_s17 + $0x188] sm:$0xf] %vm3464_vm1, %v4155_v56  ;;  %v4156_v41 = vpack.c.bf16 %v2923_v28, %v2923_v28  ;;  %v4894_v14 = vadd.f32 %v4762_v18, %v4628_v49  ;;  %v2450_v36 = vpop.f32.mrb[101].mxu0 }
 0x237   : > { %v4629_v62 = vpop.f32.mrb[102].mxu1  ;;  %3561 = vst.msk [vmem:[%s5891_s17 + $0x180] sm:$0xf] %vm3464_vm1, %v4153_v60  ;;  %v4154_v15 = vpack.c.bf16 %v2921_v35, %v2921_v35  ;;  %v4895_v17 = vadd.f32 %v2450_v36, %v1871_v54  ;;  %v4763_v47 = vpop.f32.mrb[102].mxu0 }
 0x238   : > { %v1874_v26 = vpop.f32.mrb[103].mxu1  ;;  %3564 = vst.msk [vmem:[%s5891_s17 + $0x18c] sm:$0xf] %vm3464_vm1, %v4156_v41  ;;  %v2798_v37 = vadd.f32 %v6221_v52, %v4894_v14  ;;  %v4896_v46 = vadd.f32 %v4763_v47, %v4629_v62  ;;  %v2453_v63 = vpop.f32.mrb[103].mxu0 }
 0x239   : > { %3562 = vst.msk [vmem:[%s5891_s17 + $0x184] sm:$0xf] %vm3464_vm1, %v4154_v15  ;;  %v2796_v27 = vadd.f32 %v6221_v52, %v4895_v17  ;;  %v4897_v61 = vadd.f32 %v2453_v63, %v1874_v26 }
 0x23a   : > { %v2926_v19 = vmax.f32 %v2798_v37, 0.0  ;;  %v2799_v10 = vadd.f32 %v6221_v52, %v4896_v46 }
 0x23b   : > { %v2924_v38 = vmax.f32 %v2796_v27, 0.0  ;;  %v2797_v29 = vadd.f32 %v6221_v52, %v4897_v61 }
 0x23c   : > { %v4159_v2 = vpack.c.bf16 %v2926_v19, %v2926_v19  ;;  %v2927_v8 = vmax.f32 %v2799_v10, 0.0 }
 0x23d   : > { %v4632_v3 = vpop.f32.mrb[104].mxu1  ;;  %v4157_v9 = vpack.c.bf16 %v2924_v38, %v2924_v38  ;;  %v2925_v11 = vmax.f32 %v2797_v29, 0.0  ;;  %v4766_v39 = vpop.f32.mrb[104].mxu0 }
 0x23e   : > { %v1887_v51 = vpop.f32.mrb[105].mxu1  ;;  %3567 = vst.msk [vmem:[%s5891_s17 + $0x198] sm:$0xf] %vm3464_vm1, %v4159_v2  ;;  %v4160_v30 = vpack.c.bf16 %v2927_v8, %v2927_v8  ;;  %v4898_v45 = vadd.f32 %v4766_v39, %v4632_v3  ;;  %v2466_v22 = vpop.f32.mrb[105].mxu0 }
 0x23f   : > { %v4633_v12 = vpop.f32.mrb[106].mxu1  ;;  %3565 = vst.msk [vmem:[%s5891_s17 + $0x190] sm:$0xf] %vm3464_vm1, %v4157_v9  ;;  %v4158_v40 = vpack.c.bf16 %v2925_v11, %v2925_v11  ;;  %v4899_v0 = vadd.f32 %v2466_v22, %v1887_v51  ;;  %v4767_v13 = vpop.f32.mrb[106].mxu0 }
 0x240   : > { %v1890_v5 = vpop.f32.mrb[107].mxu1  ;;  %3568 = vst.msk [vmem:[%s5891_s17 + $0x19c] sm:$0xf] %vm3464_vm1, %v4160_v30  ;;  %v2802_v4 = vadd.f32 %v6221_v52, %v4898_v45  ;;  %v4900_v48 = vadd.f32 %v4767_v13, %v4633_v12  ;;  %v2469_v24 = vpop.f32.mrb[107].mxu0 }
 0x241   : > { %3566 = vst.msk [vmem:[%s5891_s17 + $0x194] sm:$0xf] %vm3464_vm1, %v4158_v40  ;;  %v2800_v7 = vadd.f32 %v6221_v52, %v4899_v0  ;;  %v4901_v31 = vadd.f32 %v2469_v24, %v1890_v5 }
 0x242   : > { %v2930_v53 = vmax.f32 %v2802_v4, 0.0  ;;  %v2803_v20 = vadd.f32 %v6221_v52, %v4900_v48 }
 0x243   : > { %v2928_v42 = vmax.f32 %v2800_v7, 0.0  ;;  %v2801_v1 = vadd.f32 %v6221_v52, %v4901_v31 }
 0x244   : > { %v4163_v32 = vpack.c.bf16 %v2930_v53, %v2930_v53  ;;  %v2931_v21 = vmax.f32 %v2803_v20, 0.0 }
 0x245   : > { %v4636_v55 = vpop.f32.mrb[108].mxu1  ;;  %v4161_v23 = vpack.c.bf16 %v2928_v42, %v2928_v42  ;;  %v2929_v57 = vmax.f32 %v2801_v1, 0.0  ;;  %v4770_v33 = vpop.f32.mrb[108].mxu0 }
 0x246   : > { %v1903_v44 = vpop.f32.mrb[109].mxu1  ;;  %3571 = vst.msk [vmem:[%s5891_s17 + $0x1a8] sm:$0xf] %vm3464_vm1, %v4163_v32  ;;  %v4164_v43 = vpack.c.bf16 %v2931_v21, %v2931_v21  ;;  %v4902_v25 = vadd.f32 %v4770_v33, %v4636_v55  ;;  %v2482_v6 = vpop.f32.mrb[109].mxu0 }
 0x247   : > { %v4637_v16 = vpop.f32.mrb[110].mxu1  ;;  %3569 = vst.msk [vmem:[%s5891_s17 + $0x1a0] sm:$0xf] %vm3464_vm1, %v4161_v23  ;;  %v4162_v58 = vpack.c.bf16 %v2929_v57, %v2929_v57  ;;  %v4903_v34 = vadd.f32 %v2482_v6, %v1903_v44  ;;  %v4771_v59 = vpop.f32.mrb[110].mxu0 }
 0x248   : > { %v1906_v50 = vpop.f32.mrb[111].mxu1  ;;  %3572 = vst.msk [vmem:[%s5891_s17 + $0x1ac] sm:$0xf] %vm3464_vm1, %v4164_v43  ;;  %v2806_v56 = vadd.f32 %v6221_v52, %v4902_v25  ;;  %v4904_v28 = vadd.f32 %v4771_v59, %v4637_v16  ;;  %v2485_v49 = vpop.f32.mrb[111].mxu0 }
 0x249   : > { %3570 = vst.msk [vmem:[%s5891_s17 + $0x1a4] sm:$0xf] %vm3464_vm1, %v4162_v58  ;;  %v2804_v60 = vadd.f32 %v6221_v52, %v4903_v34  ;;  %v4905_v35 = vadd.f32 %v2485_v49, %v1906_v50 }
 0x24a   : > { %v2934_v18 = vmax.f32 %v2806_v56, 0.0  ;;  %v2807_v54 = vadd.f32 %v6221_v52, %v4904_v28 }
 0x24b   : > { %v2932_v41 = vmax.f32 %v2804_v60, 0.0  ;;  %v2805_v14 = vadd.f32 %v6221_v52, %v4905_v35 }
 0x24c   : > { %v4167_v36 = vpack.c.bf16 %v2934_v18, %v2934_v18  ;;  %v2935_v62 = vmax.f32 %v2807_v54, 0.0 }
 0x24d   : > { %v4640_v15 = vpop.f32.mrb[112].mxu1  ;;  %v4165_v17 = vpack.c.bf16 %v2932_v41, %v2932_v41  ;;  %v2933_v47 = vmax.f32 %v2805_v14, 0.0  ;;  %v4774_v26 = vpop.f32.mrb[112].mxu0 }
 0x24e   : > { %v1919_v37 = vpop.f32.mrb[113].mxu1  ;;  %3575 = vst.msk [vmem:[%s5891_s17 + $0x1b8] sm:$0xf] %vm3464_vm1, %v4167_v36  ;;  %v4168_v46 = vpack.c.bf16 %v2935_v62, %v2935_v62  ;;  %v4906_v63 = vadd.f32 %v4774_v26, %v4640_v15  ;;  %v2498_v27 = vpop.f32.mrb[113].mxu0 }
 0x24f   : > { %v4641_v61 = vpop.f32.mrb[114].mxu1  ;;  %3573 = vst.msk [vmem:[%s5891_s17 + $0x1b0] sm:$0xf] %vm3464_vm1, %v4165_v17  ;;  %v4166_v19 = vpack.c.bf16 %v2933_v47, %v2933_v47  ;;  %v4907_v10 = vadd.f32 %v2498_v27, %v1919_v37  ;;  %v4775_v38 = vpop.f32.mrb[114].mxu0 }
 0x250   : > { %v1922_v29 = vpop.f32.mrb[115].mxu1  ;;  %3576 = vst.msk [vmem:[%s5891_s17 + $0x1bc] sm:$0xf] %vm3464_vm1, %v4168_v46  ;;  %v2810_v2 = vadd.f32 %v6221_v52, %v4906_v63  ;;  %v4908_v8 = vadd.f32 %v4775_v38, %v4641_v61  ;;  %v2501_v3 = vpop.f32.mrb[115].mxu0 }
 0x251   : > { %3574 = vst.msk [vmem:[%s5891_s17 + $0x1b4] sm:$0xf] %vm3464_vm1, %v4166_v19  ;;  %v2808_v9 = vadd.f32 %v6221_v52, %v4907_v10  ;;  %v4909_v11 = vadd.f32 %v2501_v3, %v1922_v29 }
 0x252   : > { %v2938_v39 = vmax.f32 %v2810_v2, 0.0  ;;  %v2811_v51 = vadd.f32 %v6221_v52, %v4908_v8 }
 0x253   : > { %v2936_v30 = vmax.f32 %v2808_v9, 0.0  ;;  %v2809_v45 = vadd.f32 %v6221_v52, %v4909_v11 }
 0x254   : > { %v4171_v22 = vpack.c.bf16 %v2938_v39, %v2938_v39  ;;  %v2939_v12 = vmax.f32 %v2811_v51, 0.0 }
 0x255   : > { %v4644_v40 = vpop.f32.mrb[116].mxu1  ;;  %v4169_v0 = vpack.c.bf16 %v2936_v30, %v2936_v30  ;;  %v2937_v13 = vmax.f32 %v2809_v45, 0.0  ;;  %v4778_v5 = vpop.f32.mrb[116].mxu0 }
 0x256   : > { %v1935_v4 = vpop.f32.mrb[117].mxu1  ;;  %3579 = vst.msk [vmem:[%s5891_s17 + $0x1c8] sm:$0xf] %vm3464_vm1, %v4171_v22  ;;  %v4172_v48 = vpack.c.bf16 %v2939_v12, %v2939_v12  ;;  %v4910_v24 = vadd.f32 %v4778_v5, %v4644_v40  ;;  %v2514_v7 = vpop.f32.mrb[117].mxu0 }
 0x257   : > { %v4645_v31 = vpop.f32.mrb[118].mxu1  ;;  %3577 = vst.msk [vmem:[%s5891_s17 + $0x1c0] sm:$0xf] %vm3464_vm1, %v4169_v0  ;;  %v4170_v53 = vpack.c.bf16 %v2937_v13, %v2937_v13  ;;  %v4911_v20 = vadd.f32 %v2514_v7, %v1935_v4  ;;  %v4779_v42 = vpop.f32.mrb[118].mxu0 }
 0x258   : > { %v1938_v1 = vpop.f32.mrb[119].mxu1  ;;  %3580 = vst.msk [vmem:[%s5891_s17 + $0x1cc] sm:$0xf] %vm3464_vm1, %v4172_v48  ;;  %v2814_v32 = vadd.f32 %v6221_v52, %v4910_v24  ;;  %v4912_v21 = vadd.f32 %v4779_v42, %v4645_v31  ;;  %v2517_v55 = vpop.f32.mrb[119].mxu0 }
 0x259   : > { %3578 = vst.msk [vmem:[%s5891_s17 + $0x1c4] sm:$0xf] %vm3464_vm1, %v4170_v53  ;;  %v2812_v23 = vadd.f32 %v6221_v52, %v4911_v20  ;;  %v4913_v57 = vadd.f32 %v2517_v55, %v1938_v1 }
 0x25a   : > { %v2942_v33 = vmax.f32 %v2814_v32, 0.0  ;;  %v2815_v44 = vadd.f32 %v6221_v52, %v4912_v21 }
 0x25b   : > { %v2940_v43 = vmax.f32 %v2812_v23, 0.0  ;;  %v2813_v25 = vadd.f32 %v6221_v52, %v4913_v57 }
 0x25c   : > { %v4175_v6 = vpack.c.bf16 %v2942_v33, %v2942_v33  ;;  %v2943_v16 = vmax.f32 %v2815_v44, 0.0 }
 0x25d   : > { %v4648_v58 = vpop.f32.mrb[120].mxu1  ;;  %v4173_v34 = vpack.c.bf16 %v2940_v43, %v2940_v43  ;;  %v2941_v59 = vmax.f32 %v2813_v25, 0.0  ;;  %v4782_v50 = vpop.f32.mrb[120].mxu0 }
 0x25e   : > { %v1951_v56 = vpop.f32.mrb[121].mxu1  ;;  %3583 = vst.msk [vmem:[%s5891_s17 + $0x1d8] sm:$0xf] %vm3464_vm1, %v4175_v6  ;;  %v4176_v28 = vpack.c.bf16 %v2943_v16, %v2943_v16  ;;  %v4914_v49 = vadd.f32 %v4782_v50, %v4648_v58  ;;  %v2530_v60 = vpop.f32.mrb[121].mxu0 }
 0x25f   : > { %v4649_v35 = vpop.f32.mrb[122].mxu1  ;;  %3581 = vst.msk [vmem:[%s5891_s17 + $0x1d0] sm:$0xf] %vm3464_vm1, %v4173_v34  ;;  %v4174_v18 = vpack.c.bf16 %v2941_v59, %v2941_v59  ;;  %v4915_v54 = vadd.f32 %v2530_v60, %v1951_v56  ;;  %v4783_v41 = vpop.f32.mrb[122].mxu0 }
 0x260   : > { %v1954_v14 = vpop.f32.mrb[123].mxu1  ;;  %3584 = vst.msk [vmem:[%s5891_s17 + $0x1dc] sm:$0xf] %vm3464_vm1, %v4176_v28  ;;  %v2818_v36 = vadd.f32 %v6221_v52, %v4914_v49  ;;  %v4916_v62 = vadd.f32 %v4783_v41, %v4649_v35  ;;  %v2533_v15 = vpop.f32.mrb[123].mxu0 }
 0x261   : > { %3582 = vst.msk [vmem:[%s5891_s17 + $0x1d4] sm:$0xf] %vm3464_vm1, %v4174_v18  ;;  %v2816_v17 = vadd.f32 %v6221_v52, %v4915_v54  ;;  %v4917_v47 = vadd.f32 %v2533_v15, %v1954_v14 }
 0x262   : > { %v2946_v26 = vmax.f32 %v2818_v36, 0.0  ;;  %v2819_v37 = vadd.f32 %v6221_v52, %v4916_v62 }
 0x263   : > { %v2944_v46 = vmax.f32 %v2816_v17, 0.0  ;;  %v2817_v63 = vadd.f32 %v6221_v52, %v4917_v47 }
 0x264   : > { %v4179_v27 = vpack.c.bf16 %v2946_v26, %v2946_v26  ;;  %v2947_v61 = vmax.f32 %v2819_v37, 0.0 }
 0x265   : > { %v4652_v19 = vpop.f32.mrb[124].mxu1  ;;  %v4177_v10 = vpack.c.bf16 %v2944_v46, %v2944_v46  ;;  %v2945_v38 = vmax.f32 %v2817_v63, 0.0  ;;  %v4786_v29 = vpop.f32.mrb[124].mxu0 }
 0x266   : > { %v1967_v2 = vpop.f32.mrb[125].mxu1  ;;  %3587 = vst.msk [vmem:[%s5891_s17 + $0x1e8] sm:$0xf] %vm3464_vm1, %v4179_v27  ;;  %v4180_v8 = vpack.c.bf16 %v2947_v61, %v2947_v61  ;;  %v4918_v3 = vadd.f32 %v4786_v29, %v4652_v19  ;;  %v2546_v9 = vpop.f32.mrb[125].mxu0 }
 0x267   : > { %v4653_v11 = vpop.f32.mrb[126].mxu1  ;;  %3585 = vst.msk [vmem:[%s5891_s17 + $0x1e0] sm:$0xf] %vm3464_vm1, %v4177_v10  ;;  %v4178_v39 = vpack.c.bf16 %v2945_v38, %v2945_v38  ;;  %v4919_v51 = vadd.f32 %v2546_v9, %v1967_v2  ;;  %v4787_v30 = vpop.f32.mrb[126].mxu0 }
 0x268   : > { %v1970_v45 = vpop.f32.mrb[127].mxu1  ;;  %3588 = vst.msk [vmem:[%s5891_s17 + $0x1ec] sm:$0xf] %vm3464_vm1, %v4180_v8  ;;  %v2822_v22 = vadd.f32 %v6221_v52, %v4918_v3  ;;  %v4920_v12 = vadd.f32 %v4787_v30, %v4653_v11  ;;  %v2549_v40 = vpop.f32.mrb[127].mxu0 }
 0x269   : > { %3586 = vst.msk [vmem:[%s5891_s17 + $0x1e4] sm:$0xf] %vm3464_vm1, %v4178_v39  ;;  %v2820_v0 = vadd.f32 %v6221_v52, %v4919_v51  ;;  %v4921_v13 = vadd.f32 %v2549_v40, %v1970_v45 }
 0x26a   : > { %v2950_v5 = vmax.f32 %v2822_v22, 0.0  ;;  %v2823_v4 = vadd.f32 %v6221_v52, %v4920_v12 }
 0x26b   : > { %v2948_v48 = vmax.f32 %v2820_v0, 0.0  ;;  %v2821_v24 = vadd.f32 %v6221_v52, %v4921_v13 }
 0x26c   : > { %v4183_v7 = vpack.c.bf16 %v2950_v5, %v2950_v5  ;;  %v2951_v31 = vmax.f32 %v2823_v4, 0.0 }
 0x26d   : > { %v4181_v53 = vpack.c.bf16 %v2948_v48, %v2948_v48  ;;  %v2949_v20 = vmax.f32 %v2821_v24, 0.0 }
 0x26e   : > { %3591 = vst.msk [vmem:[%s5891_s17 + $0x1f8] sm:$0xf] %vm3464_vm1, %v4183_v7  ;;  %v4184_v42 = vpack.c.bf16 %v2951_v31, %v2951_v31 }
 0x26f   : > { %3589 = vst.msk [vmem:[%s5891_s17 + $0x1f0] sm:$0xf] %vm3464_vm1, %v4181_v53  ;;  %v4182_v1 = vpack.c.bf16 %v2949_v20, %v2949_v20 }
 0x270   : > { %3592 = vst.msk [vmem:[%s5891_s17 + $0x1fc] sm:$0xf] %vm3464_vm1, %v4184_v42 }
 0x271   : > { %3590 = vst.msk [vmem:[%s5891_s17 + $0x1f4] sm:$0xf] %vm3464_vm1, %v4182_v1 }
 0x272 PF: > { %s13_s12 = sadd.s32 1, %s5143_s12  }
 0x273   : > { %p10_p5 = scmp.ge.s32.totalorder %s13_s12, 4  }
 0x275   :  { %12 = sbr.rel (!%p10_p5) target bundleno = 1 (0x1), region = 62 }

// kernel: _lambda_.10
= control target key start
LH: loop header
LB: loop body
LE: loop exit
PB: predicated region body
PF: predicated region fallthrough
CT: control target
= control target key end

     0   :  { %s2016_s24 = smov 0   ;;  %s2364_s0 = inlined_call_operand.vmem [shape: bf16[512,144], index: 0, kind: input, shape index: {}]   ;;  %s2365_s1 = inlined_call_operand.vmem [shape: bf16[512,16], index: 1, kind: input, shape index: {}]   ;;  %s2366_s2 = inlined_call_operand.vmem [shape: bf16[144,32], index: 2, kind: input, shape index: {}]   ;;  %s2367_s3 = inlined_call_operand.vmem [shape: f32[1,32], index: 3, kind: input, shape index: {}, may-alias: {3,5}]   ;;  %s2368_s4 = inlined_call_operand.vmem [shape: bf16[16,32], index: 4, kind: input, shape index: {}]   ;;  %s2369_s5 = inlined_call_operand.vmem [shape: f32[1,32], index: 5, kind: input, shape index: {}, may-alias: {3,5}]   ;;  %s2370_s6 = inlined_call_operand.vmem [shape: bf16[512,32], index: 6, kind: output, shape index: {0}]   ;;  %s2371_s7 = inlined_call_operand.vmem [shape: bf16[512,32], index: 7, kind: output, shape index: {1}]  }
   0x1 LB: > { %s1578_s25 = sadd.s32 4294967295, %s1973_s24   ;;  %p1582_p0 = scmp.ge.s32.totalorder %s1973_s24, 1  ;;  %s1973_s24 = sphi %s2016_s24, %s18_s24  }
   0x2   : > { %p253_p1 = scmp.lt.s32.totalorder %s1973_s24, 3 }
   0x4   : > { %p254_p2 = pnand %p1582_p0, %p253_p1 }
   0x5   : > { %v1893_v0 = vld [vmem:[%s2366_s2] sm:$0xff] (!%p254_p2)   ;;  %v1975_v1 = vmov (!%p254_p2), 0   ;;  %s1583_s28 = sshll.u32 (!%p254_p2), %s1578_s25, 5  ;;  %v1894_v2 = vld [vmem:[%s2366_s2 + $0x8] sm:$0xff] (!%p254_p2)   ;;  %v1895_v3 = vld [vmem:[%s2366_s2 + $0x10] sm:$0xff] (!%p254_p2)   ;;  %vm577_vm0 = vcmask (!%p254_p2), 130048  }
   0x6   : > { %257 = sbr.rel (%p254_p2) target bundleno = 351 (0x15f), region = 44  ;;  %626 = vmatprep.subr.bf16.mxu0 (!%p254_p2), %v1975_v1  ;;  %1866 = vmatprep.subr.bf16.mxu1 (!%p254_p2), %v1975_v1  ;;  %p297_p3 = scmp.lt.s32.totalorder (!%p254_p2), %s1583_s28, 63  ;;  %v1896_v4 = vld [vmem:[%s2366_s2 + $0x18] sm:$0xff] (!%p254_p2)   ;;  %v1897_v7 = vld [vmem:[%s2366_s2 + $0x20] sm:$0xff] (!%p254_p2)   ;;  %v1898_v8 = vld [vmem:[%s2366_s2 + $0x28] sm:$0xff] (!%p254_p2)   ;;  %vm947_vm1 = vcmask (!%p254_p2), 257024  }
   0x7   : > { %627 = vmatpush1.bf16.msra.mxu0 (!%p254_p2), %v1893_v0  ;;  %1875 = vmatpush1.bf16.msra.mxu1 (!%p254_p2), %v1893_v0  ;;  %v1899_v9 = vld [vmem:[%s2366_s2 + $0x30] sm:$0xff] (!%p254_p2)   ;;  %v1900_v10 = vld [vmem:[%s2366_s2 + $0x38] sm:$0xff] (!%p254_p2)   ;;  %v1901_v11 = vld [vmem:[%s2366_s2 + $0x40] sm:$0xff] (!%p254_p2)  }
   0x8   : > { %628 = vmatprep.subr.bf16.mxu0 (!%p254_p2), %v1975_v1  ;;  %1867 = vmatprep.subr.bf16.mxu1 (!%p254_p2), %v1975_v1  ;;  %v1908_v12 = vld [vmem:[%s2368_s4] sm:$0xff] (!%p254_p2)  }
   0x9   : > { %v2150_v59 = vld [vmem:[%s2367_s3] ss:$0 sm:$0xff] (!%p254_p2) }
   0xb   : > { %629 = vmatpush1.bf16.msra.mxu0 (!%p254_p2), %v1894_v2  ;;  %1876 = vmatpush1.bf16.msra.mxu1 (!%p254_p2), %v1894_v2 }
   0xc   : > { %630 = vmatprep.subr.bf16.mxu0 (!%p254_p2), %v1975_v1  ;;  %1868 = vmatprep.subr.bf16.mxu1 (!%p254_p2), %v1975_v1 }
   0xd   : > { %s2373_s28 = smov (!%p297_p3, %s1583_s28), 63 }
   0xe   : > { %s1750_s10 = sshll.u32 %s2373_s28, 3  ;;  %s2048_s18 = sshll.u32 %s2373_s28, 2 }
   0xf   : > { %s2036_s13 = scalar_lea.vmem %s2364_s0, %s1750_s10  ;;  %631 = vmatpush1.bf16.msra.mxu0 %v1895_v3  ;;  %1877 = vmatpush1.bf16.msra.mxu1 %v1895_v3  ;;  %s2057_s23 = scalar_lea.vmem %s2365_s1, %s2048_s18 }
  0x10   : > { %v1904_v5 = vld [vmem:[%s2036_s13 + $0x4] ss:$8 sps:$4 sm:$0xff]   ;;  %632 = vmatprep.subr.bf16.mxu0 %v1975_v1  ;;  %1869 = vmatprep.subr.bf16.mxu1 %v1975_v1  ;;  %v1902_v13 = vld [vmem:[%s2036_s13] ss:$8 sps:$4 sm:$0xff]   ;;  %v1909_v15 = vld [vmem:[%s2036_s13 + $0x14] ss:$8 sps:$4 sm:$0xff]   ;;  %s2160_s14 = scalar_lea.vmem %s2370_s6, %s2048_s18  ;;  %s2217_s20 = scalar_lea.vmem %s2371_s7, %s2048_s18 }
  0x11   : > { %v1907_v6 = vld [vmem:[%s2036_s13 + $0xc4] ss:$8 sps:$4 sm:$0xff]   ;;  %1634 = vmatprep.mubr.msk.bf16.mxu0 %vm577_vm0, %v1904_v5  ;;  %v1905_v14 = vld [vmem:[%s2036_s13 + $0xc0] ss:$8 sps:$4 sm:$0xff]   ;;  %v1911_v16 = vld [vmem:[%s2036_s13 + $0xd4] ss:$8 sps:$4 sm:$0xff]  }
  0x12   : > { %1646 = vmatprep.mubr.msk.bf16.mxu1 %vm577_vm0, %v1907_v6  ;;  %v1913_v17 = vld [vmem:[%s2036_s13 + $0x10] ss:$8 sps:$4 sm:$0xff]   ;;  %v1915_v19 = vld [vmem:[%s2036_s13 + $0x24] ss:$8 sps:$4 sm:$0xff]   ;;  %v1919_v21 = vld [vmem:[%s2036_s13 + $0x20] ss:$8 sps:$4 sm:$0xff]  }
  0x13   : > { %633 = vmatpush1.bf16.msra.mxu0 %v1896_v4  ;;  %1878 = vmatpush1.bf16.msra.mxu1 %v1896_v4  ;;  %v1914_v18 = vld [vmem:[%s2036_s13 + $0xd0] ss:$8 sps:$4 sm:$0xff]   ;;  %v1917_v20 = vld [vmem:[%s2036_s13 + $0xe4] ss:$8 sps:$4 sm:$0xff]   ;;  %v1920_v22 = vld [vmem:[%s2036_s13 + $0xe0] ss:$8 sps:$4 sm:$0xff]  }
  0x14   : > { %634 = vmatprep.subr.bf16.mxu0 %v1975_v1  ;;  %1870 = vmatprep.subr.bf16.mxu1 %v1975_v1  ;;  %v1921_v23 = vld [vmem:[%s2036_s13 + $0x34] ss:$8 sps:$4 sm:$0xff]   ;;  %v1925_v25 = vld [vmem:[%s2036_s13 + $0x30] ss:$8 sps:$4 sm:$0xff]   ;;  %v1927_v27 = vld [vmem:[%s2036_s13 + $0x44] ss:$8 sps:$4 sm:$0xff]  }
  0x15   : > { %v1923_v24 = vld [vmem:[%s2036_s13 + $0xf4] ss:$8 sps:$4 sm:$0xff]   ;;  %v1926_v26 = vld [vmem:[%s2036_s13 + $0xf0] ss:$8 sps:$4 sm:$0xff]   ;;  %v1929_v28 = vld [vmem:[%s2057_s23] sm:$0xff]  }
  0x16   : > { %v1930_v29 = vld [vmem:[%s2036_s13 + $0x40] ss:$8 sps:$4 sm:$0xff]   ;;  %v1932_v31 = vld [vmem:[%s2036_s13 + $0x54] ss:$8 sps:$4 sm:$0xff]   ;;  %v1935_v33 = vld [vmem:[%s2036_s13 + $0x50] ss:$8 sps:$4 sm:$0xff]  }
  0x17   : > { %635 = vmatpush1.bf16.msra.mxu0 %v1897_v7  ;;  %1879 = vmatpush1.bf16.msra.mxu1 %v1897_v7  ;;  %v1931_v30 = vld [vmem:[%s2057_s23 + $0x8] sm:$0xff]   ;;  %v1934_v32 = vld [vmem:[%s2057_s23 + $0x10] sm:$0xff]   ;;  %v1936_v34 = vld [vmem:[%s2057_s23 + $0x18] sm:$0xff]  }
  0x18   : > { %636 = vmatprep.subr.bf16.mxu0 %v1975_v1  ;;  %1871 = vmatprep.subr.bf16.mxu1 %v1975_v1  ;;  %v1937_v35 = vld [vmem:[%s2036_s13 + $0x64] ss:$8 sps:$4 sm:$0xff]   ;;  %v1940_v37 = vld [vmem:[%s2036_s13 + $0x60] ss:$8 sps:$4 sm:$0xff]   ;;  %v1942_v39 = vld [vmem:[%s2036_s13 + $0x74] ss:$8 sps:$4 sm:$0xff]  }
  0x19   : > { %v1939_v36 = vld [vmem:[%s2057_s23 + $0x20] sm:$0xff]   ;;  %v1941_v38 = vld [vmem:[%s2057_s23 + $0x28] sm:$0xff]   ;;  %v1944_v40 = vld [vmem:[%s2057_s23 + $0x30] sm:$0xff]  }
  0x1a   : > { %v1945_v41 = vld [vmem:[%s2036_s13 + $0x70] ss:$8 sps:$4 sm:$0xff]   ;;  %v1947_v43 = vld [vmem:[%s2036_s13 + $0x84] ss:$8 sps:$4 sm:$0xff]   ;;  %v1950_v45 = vld [vmem:[%s2036_s13 + $0x80] ss:$8 sps:$4 sm:$0xff]  }
  0x1b   : > { %637 = vmatpush1.bf16.msra.mxu0 %v1898_v8  ;;  %1880 = vmatpush1.bf16.msra.mxu1 %v1898_v8  ;;  %v1946_v42 = vld [vmem:[%s2057_s23 + $0x38] sm:$0xff]   ;;  %v1949_v44 = vld [vmem:[%s2057_s23 + $0x40] sm:$0xff]   ;;  %v1951_v46 = vld [vmem:[%s2057_s23 + $0x48] sm:$0xff]  }
  0x1c   : > { %638 = vmatprep.subr.bf16.mxu0 %v1975_v1  ;;  %1872 = vmatprep.subr.bf16.mxu1 %v1975_v1  ;;  %v1952_v47 = vld [vmem:[%s2036_s13 + $0x94] ss:$8 sps:$4 sm:$0xff]   ;;  %v1955_v49 = vld [vmem:[%s2036_s13 + $0x90] ss:$8 sps:$4 sm:$0xff]   ;;  %v1957_v51 = vld [vmem:[%s2036_s13 + $0xa4] ss:$8 sps:$4 sm:$0xff]  }
  0x1d   : > { %v1954_v48 = vld [vmem:[%s2057_s23 + $0x50] sm:$0xff]   ;;  %v1956_v50 = vld [vmem:[%s2057_s23 + $0x58] sm:$0xff]   ;;  %v1959_v52 = vld [vmem:[%s2057_s23 + $0x60] sm:$0xff]  }
  0x1e   : > { %v1960_v53 = vld [vmem:[%s2036_s13 + $0xa0] ss:$8 sps:$4 sm:$0xff]   ;;  %v1962_v55 = vld [vmem:[%s2036_s13 + $0xb4] ss:$8 sps:$4 sm:$0xff]   ;;  %v1965_v57 = vld [vmem:[%s2036_s13 + $0xb0] ss:$8 sps:$4 sm:$0xff]  }
  0x1f   : > { %639 = vmatpush1.bf16.msra.mxu0 %v1899_v9  ;;  %1881 = vmatpush1.bf16.msra.mxu1 %v1899_v9  ;;  %v1961_v54 = vld [vmem:[%s2057_s23 + $0x68] sm:$0xff]   ;;  %v1964_v56 = vld [vmem:[%s2057_s23 + $0x70] sm:$0xff]   ;;  %v1966_v58 = vld [vmem:[%s2057_s23 + $0x78] sm:$0xff]  }
  0x20   : > { %640 = vmatprep.subr.bf16.mxu0 %v1975_v1  ;;  %1873 = vmatprep.subr.bf16.mxu1 %v1975_v1 }
  0x23   : > { %641 = vmatpush1.bf16.msra.mxu0 %v1900_v10  ;;  %1882 = vmatpush1.bf16.msra.mxu1 %v1900_v10 }
  0x24   : > { %642 = vmatprep.subr.bf16.mxu0 %v1975_v1  ;;  %1874 = vmatprep.subr.bf16.mxu1 %v1975_v1 }
  0x27   : > { %643 = vmatpush1.bf16.msra.mxu0 %v1901_v11  ;;  %1883 = vmatpush1.bf16.msra.mxu1 %v1901_v11 }
  0x28   : > { %1832 = vmatprep.subr.bf16.mxu1 %v1908_v12 }
  0x2a   : > { %659 = vmatmul.mubr.bf16.vlgmr.msra.gmra.mrb[0].mxu0 %v1902_v13  ;;  %755 = vmatmul.mubr.bf16.vlgmr.msra.gmra.mrb[0].mxu1 %v1905_v14 }
  0x2b   : > { %1833 = vmatpush3.bf16.msra.mxu1 %v1908_v12  ;;  %1635 = vmatprep.mubr.msk.bf16.mxu0 %vm577_vm0, %v1909_v15 }
  0x2c   : > { %1647 = vmatprep.mubr.msk.bf16.mxu1 %vm577_vm0, %v1911_v16 }
  0x32   : > { %667 = vmatmul.mubr.bf16.gmra.mrb[4].mxu0 %v1913_v17  ;;  %763 = vmatmul.mubr.bf16.gmra.mrb[4].mxu1 %v1914_v18 }
  0x33   : > { %1636 = vmatprep.mubr.msk.bf16.mxu0 %vm577_vm0, %v1915_v19  ;;  %1648 = vmatprep.mubr.msk.bf16.mxu1 %vm577_vm0, %v1917_v20 }
  0x3a   : > { %675 = vmatmul.mubr.bf16.gmra.mrb[8].mxu0 %v1919_v21  ;;  %771 = vmatmul.mubr.bf16.gmra.mrb[8].mxu1 %v1920_v22 }
  0x3b   : > { %1637 = vmatprep.mubr.msk.bf16.mxu0 %vm577_vm0, %v1921_v23  ;;  %1649 = vmatprep.mubr.msk.bf16.mxu1 %vm577_vm0, %v1923_v24 }
  0x42   : > { %683 = vmatmul.mubr.bf16.gmra.mrb[12].mxu0 %v1925_v25  ;;  %779 = vmatmul.mubr.bf16.gmra.mrb[12].mxu1 %v1926_v26 }
  0x43   : > { %1638 = vmatprep.mubr.msk.bf16.mxu0 %vm577_vm0, %v1927_v27  ;;  %1834 = vmatprep.mubr.msk.bf16.mxu1 %vm577_vm0, %v1929_v28 }
  0x4a   : > { %691 = vmatmul.mubr.bf16.gmra.mrb[16].mxu0 %v1930_v29  ;;  %1835 = vmatmul.mubr.msk.bf16.vlgmr.msra.gmra.mrb[16].mxu1 %vm577_vm0, %v1931_v30 }
  0x4b   : > { %1639 = vmatprep.mubr.msk.bf16.mxu0 %vm577_vm0, %v1932_v31  ;;  %1838 = vmatprep.mubr.msk.bf16.mxu1 %vm577_vm0, %v1934_v32 }
  0x52   : > { %699 = vmatmul.mubr.bf16.gmra.mrb[20].mxu0 %v1935_v33  ;;  %1839 = vmatmul.mubr.msk.bf16.gmra.mrb[20].mxu1 %vm577_vm0, %v1936_v34 }
  0x53   : > { %1640 = vmatprep.mubr.msk.bf16.mxu0 %vm577_vm0, %v1937_v35  ;;  %1842 = vmatprep.mubr.msk.bf16.mxu1 %vm577_vm0, %v1939_v36 }
  0x5a   : > { %707 = vmatmul.mubr.bf16.gmra.mrb[24].mxu0 %v1940_v37  ;;  %1843 = vmatmul.mubr.msk.bf16.gmra.mrb[24].mxu1 %vm577_vm0, %v1941_v38 }
  0x5b   : > { %1641 = vmatprep.mubr.msk.bf16.mxu0 %vm577_vm0, %v1942_v39  ;;  %1846 = vmatprep.mubr.msk.bf16.mxu1 %vm577_vm0, %v1944_v40 }
  0x62   : > { %715 = vmatmul.mubr.bf16.gmra.mrb[28].mxu0 %v1945_v41  ;;  %1847 = vmatmul.mubr.msk.bf16.gmra.mrb[28].mxu1 %vm577_vm0, %v1946_v42 }
  0x63   : > { %1642 = vmatprep.mubr.msk.bf16.mxu0 %vm577_vm0, %v1947_v43  ;;  %1850 = vmatprep.mubr.msk.bf16.mxu1 %vm577_vm0, %v1949_v44 }
  0x6a   : > { %723 = vmatmul.mubr.bf16.gmra.mrb[32].mxu0 %v1950_v45  ;;  %1851 = vmatmul.mubr.msk.bf16.gmra.mrb[32].mxu1 %vm577_vm0, %v1951_v46 }
  0x6b   : > { %1643 = vmatprep.mubr.msk.bf16.mxu0 %vm577_vm0, %v1952_v47  ;;  %1854 = vmatprep.mubr.msk.bf16.mxu1 %vm577_vm0, %v1954_v48 }
  0x72   : > { %731 = vmatmul.mubr.bf16.gmra.mrb[36].mxu0 %v1955_v49  ;;  %1855 = vmatmul.mubr.msk.bf16.gmra.mrb[36].mxu1 %vm577_vm0, %v1956_v50 }
  0x73   : > { %1644 = vmatprep.mubr.msk.bf16.mxu0 %vm577_vm0, %v1957_v51  ;;  %1858 = vmatprep.mubr.msk.bf16.mxu1 %vm577_vm0, %v1959_v52 }
  0x7a   : > { %739 = vmatmul.mubr.bf16.gmra.mrb[40].mxu0 %v1960_v53  ;;  %1859 = vmatmul.mubr.msk.bf16.gmra.mrb[40].mxu1 %vm577_vm0, %v1961_v54 }
  0x7b   : > { %1645 = vmatprep.mubr.msk.bf16.mxu0 %vm577_vm0, %v1962_v55  ;;  %1862 = vmatprep.mubr.msk.bf16.mxu1 %vm577_vm0, %v1964_v56 }
  0x82   : > { %747 = vmatmul.mubr.bf16.gmra.mrb[44].mxu0 %v1965_v57  ;;  %1863 = vmatmul.mubr.msk.bf16.gmra.mrb[44].mxu1 %vm577_vm0, %v1966_v58 }
  0xfd   : > { %v660_v60 = vpop.f32.mrb[0].mxu0  ;;  %v756_v61 = vpop.f32.mrb[0].mxu1 }
  0xfe   : > { %v661_v62 = vadd.f32 %v2150_v59, %v660_v60  ;;  %v757_v63 = vadd.f32 %v2150_v59, %v756_v61  ;;  %v662_v0 = vpop.f32.mrb[1].mxu0  ;;  %v758_v1 = vpop.f32.mrb[1].mxu1 }
  0xff   : > { %v663_v2 = vpop.f32.mrb[2].mxu0  ;;  %v759_v3 = vpop.f32.mrb[2].mxu1 }
 0x100   : > { %v787_v4 = vmax.f32 %v661_v62, 0.0  ;;  %v811_v5 = vmax.f32 %v757_v63, 0.0  ;;  %v664_v6 = vadd.f32 %v2150_v59, %v663_v2  ;;  %v760_v7 = vadd.f32 %v2150_v59, %v759_v3  ;;  %v665_v8 = vpop.f32.mrb[3].mxu0  ;;  %v761_v9 = vpop.f32.mrb[3].mxu1 }
 0x102   : > { %v1751_v10 = vpack.c.bf16 %v787_v4, %v787_v4  ;;  %v1775_v11 = vpack.c.bf16 %v811_v5, %v811_v5  ;;  %v788_v12 = vmax.f32 %v664_v6, 0.0  ;;  %v812_v13 = vmax.f32 %v760_v7, 0.0 }
 0x104   : > { %948 = vst.msk [vmem:[%s2160_s14] sm:$0xf] %vm947_vm1, %v1751_v10  ;;  %972 = vst.msk [vmem:[%s2160_s14 + $0x60] sm:$0xf] %vm947_vm1, %v1775_v11  ;;  %v1752_v14 = vpack.c.bf16 %v788_v12, %v788_v12  ;;  %v1776_v15 = vpack.c.bf16 %v812_v13, %v812_v13  ;;  %v2201_v11 = vld [vmem:[%s2369_s5] ss:$0 sm:$0xff] }
 0x105   : > { %v668_v16 = vpop.f32.mrb[4].mxu0  ;;  %v764_v17 = vpop.f32.mrb[4].mxu1 }
 0x106   : > { %949 = vst.msk [vmem:[%s2160_s14 + $0x4] sm:$0xf] %vm947_vm1, %v1752_v14  ;;  %973 = vst.msk [vmem:[%s2160_s14 + $0x64] sm:$0xf] %vm947_vm1, %v1776_v15  ;;  %v669_v18 = vadd.f32 %v2150_v59, %v668_v16  ;;  %v765_v19 = vadd.f32 %v2150_v59, %v764_v17  ;;  %v670_v20 = vpop.f32.mrb[5].mxu0  ;;  %v766_v21 = vpop.f32.mrb[5].mxu1 }
 0x107   : > { %v671_v22 = vpop.f32.mrb[6].mxu0  ;;  %v767_v23 = vpop.f32.mrb[6].mxu1 }
 0x108   : > { %v789_v24 = vmax.f32 %v669_v18, 0.0  ;;  %v813_v25 = vmax.f32 %v765_v19, 0.0  ;;  %v672_v26 = vadd.f32 %v2150_v59, %v671_v22  ;;  %v768_v27 = vadd.f32 %v2150_v59, %v767_v23  ;;  %v673_v28 = vpop.f32.mrb[7].mxu0  ;;  %v769_v29 = vpop.f32.mrb[7].mxu1 }
 0x10a   : > { %v1753_v30 = vpack.c.bf16 %v789_v24, %v789_v24  ;;  %v1777_v31 = vpack.c.bf16 %v813_v25, %v813_v25  ;;  %v790_v32 = vmax.f32 %v672_v26, 0.0  ;;  %v814_v33 = vmax.f32 %v768_v27, 0.0 }
 0x10c   : > { %950 = vst.msk [vmem:[%s2160_s14 + $0x8] sm:$0xf] %vm947_vm1, %v1753_v30  ;;  %974 = vst.msk [vmem:[%s2160_s14 + $0x68] sm:$0xf] %vm947_vm1, %v1777_v31  ;;  %v1754_v34 = vpack.c.bf16 %v790_v32, %v790_v32  ;;  %v1778_v35 = vpack.c.bf16 %v814_v33, %v814_v33 }
 0x10d   : > { %v676_v36 = vpop.f32.mrb[8].mxu0  ;;  %v772_v37 = vpop.f32.mrb[8].mxu1 }
 0x10e   : > { %951 = vst.msk [vmem:[%s2160_s14 + $0xc] sm:$0xf] %vm947_vm1, %v1754_v34  ;;  %975 = vst.msk [vmem:[%s2160_s14 + $0x6c] sm:$0xf] %vm947_vm1, %v1778_v35  ;;  %v677_v38 = vadd.f32 %v2150_v59, %v676_v36  ;;  %v773_v39 = vadd.f32 %v2150_v59, %v772_v37  ;;  %v678_v40 = vpop.f32.mrb[9].mxu0  ;;  %v774_v41 = vpop.f32.mrb[9].mxu1 }
 0x10f   : > { %v679_v42 = vpop.f32.mrb[10].mxu0  ;;  %v775_v43 = vpop.f32.mrb[10].mxu1 }
 0x110   : > { %v791_v44 = vmax.f32 %v677_v38, 0.0  ;;  %v815_v45 = vmax.f32 %v773_v39, 0.0  ;;  %v680_v46 = vadd.f32 %v2150_v59, %v679_v42  ;;  %v776_v47 = vadd.f32 %v2150_v59, %v775_v43  ;;  %v681_v48 = vpop.f32.mrb[11].mxu0  ;;  %v777_v49 = vpop.f32.mrb[11].mxu1 }
 0x112   : > { %v1755_v50 = vpack.c.bf16 %v791_v44, %v791_v44  ;;  %v1779_v51 = vpack.c.bf16 %v815_v45, %v815_v45  ;;  %v792_v52 = vmax.f32 %v680_v46, 0.0  ;;  %v816_v53 = vmax.f32 %v776_v47, 0.0 }
 0x114   : > { %952 = vst.msk [vmem:[%s2160_s14 + $0x10] sm:$0xf] %vm947_vm1, %v1755_v50  ;;  %976 = vst.msk [vmem:[%s2160_s14 + $0x70] sm:$0xf] %vm947_vm1, %v1779_v51  ;;  %v1756_v54 = vpack.c.bf16 %v792_v52, %v792_v52  ;;  %v1780_v55 = vpack.c.bf16 %v816_v53, %v816_v53 }
 0x115   : > { %v684_v56 = vpop.f32.mrb[12].mxu0  ;;  %v780_v57 = vpop.f32.mrb[12].mxu1 }
 0x116   : > { %953 = vst.msk [vmem:[%s2160_s14 + $0x14] sm:$0xf] %vm947_vm1, %v1756_v54  ;;  %977 = vst.msk [vmem:[%s2160_s14 + $0x74] sm:$0xf] %vm947_vm1, %v1780_v55  ;;  %v685_v58 = vadd.f32 %v2150_v59, %v684_v56  ;;  %v781_v60 = vadd.f32 %v2150_v59, %v780_v57  ;;  %v686_v61 = vpop.f32.mrb[13].mxu0  ;;  %v782_v62 = vpop.f32.mrb[13].mxu1 }
 0x117   : > { %v687_v63 = vpop.f32.mrb[14].mxu0  ;;  %v783_v0 = vpop.f32.mrb[14].mxu1 }
 0x118   : > { %v793_v1 = vmax.f32 %v685_v58, 0.0  ;;  %v817_v2 = vmax.f32 %v781_v60, 0.0  ;;  %v688_v3 = vadd.f32 %v2150_v59, %v687_v63  ;;  %v784_v4 = vadd.f32 %v2150_v59, %v783_v0  ;;  %v689_v5 = vpop.f32.mrb[15].mxu0  ;;  %v785_v6 = vpop.f32.mrb[15].mxu1 }
 0x11a   : > { %v1757_v7 = vpack.c.bf16 %v793_v1, %v793_v1  ;;  %v1781_v8 = vpack.c.bf16 %v817_v2, %v817_v2  ;;  %v794_v9 = vmax.f32 %v688_v3, 0.0  ;;  %v818_v10 = vmax.f32 %v784_v4, 0.0 }
 0x11c   : > { %954 = vst.msk [vmem:[%s2160_s14 + $0x18] sm:$0xf] %vm947_vm1, %v1757_v7  ;;  %978 = vst.msk [vmem:[%s2160_s14 + $0x78] sm:$0xf] %vm947_vm1, %v1781_v8  ;;  %v1758_v12 = vpack.c.bf16 %v794_v9, %v794_v9  ;;  %v1782_v13 = vpack.c.bf16 %v818_v10, %v818_v10 }
 0x11d   : > { %v692_v14 = vpop.f32.mrb[16].mxu0  ;;  %v1836_v15 = vpop.f32.mrb[16].mxu1 }
 0x11e   : > { %955 = vst.msk [vmem:[%s2160_s14 + $0x1c] sm:$0xf] %vm947_vm1, %v1758_v12  ;;  %979 = vst.msk [vmem:[%s2160_s14 + $0x7c] sm:$0xf] %vm947_vm1, %v1782_v13  ;;  %v693_v16 = vadd.f32 %v2150_v59, %v692_v14  ;;  %v1198_v17 = vadd.f32 %v1836_v15, %v2201_v11  ;;  %v694_v18 = vpop.f32.mrb[17].mxu0  ;;  %v1189_v19 = vpop.f32.mrb[17].mxu1 }
 0x11f   : > { %v1190_v20 = vadd.f32 %v2201_v11, %v1189_v19  ;;  %v695_v21 = vpop.f32.mrb[18].mxu0  ;;  %v1837_v22 = vpop.f32.mrb[18].mxu1 }
 0x120   : > { %v795_v23 = vmax.f32 %v693_v16, 0.0  ;;  %v1785_v24 = vpack.c.bf16 %v1198_v17, %v1198_v17  ;;  %v696_v25 = vadd.f32 %v2150_v59, %v695_v21  ;;  %v1201_v26 = vadd.f32 %v1837_v22, %v2201_v11  ;;  %v697_v27 = vpop.f32.mrb[19].mxu0  ;;  %v1192_v28 = vpop.f32.mrb[19].mxu1 }
 0x121   : > { %v1783_v29 = vpack.c.bf16 %v1190_v20, %v1190_v20  ;;  %v1193_v30 = vadd.f32 %v2201_v11, %v1192_v28 }
 0x122   : > { %v1759_v31 = vpack.c.bf16 %v795_v23, %v795_v23  ;;  %1446 = vst.msk [vmem:[%s2217_s20 + $0x8] sm:$0xf] %vm947_vm1, %v1785_v24  ;;  %v796_v32 = vmax.f32 %v696_v25, 0.0  ;;  %v1786_v33 = vpack.c.bf16 %v1201_v26, %v1201_v26 }
 0x123   : > { %1444 = vst.msk [vmem:[%s2217_s20] sm:$0xf] %vm947_vm1, %v1783_v29  ;;  %v1784_v34 = vpack.c.bf16 %v1193_v30, %v1193_v30 }
 0x124   : > { %956 = vst.msk [vmem:[%s2160_s14 + $0x20] sm:$0xf] %vm947_vm1, %v1759_v31  ;;  %v1760_v35 = vpack.c.bf16 %v796_v32, %v796_v32  ;;  %1447 = vst.msk [vmem:[%s2217_s20 + $0xc] sm:$0xf] %vm947_vm1, %v1786_v33 }
 0x125   : > { %1445 = vst.msk [vmem:[%s2217_s20 + $0x4] sm:$0xf] %vm947_vm1, %v1784_v34  ;;  %v700_v36 = vpop.f32.mrb[20].mxu0  ;;  %v1840_v37 = vpop.f32.mrb[20].mxu1 }
 0x126   : > { %957 = vst.msk [vmem:[%s2160_s14 + $0x24] sm:$0xf] %vm947_vm1, %v1760_v35  ;;  %v701_v38 = vadd.f32 %v2150_v59, %v700_v36  ;;  %v1214_v39 = vadd.f32 %v1840_v37, %v2201_v11  ;;  %v702_v40 = vpop.f32.mrb[21].mxu0  ;;  %v1205_v41 = vpop.f32.mrb[21].mxu1 }
 0x127   : > { %v1206_v42 = vadd.f32 %v2201_v11, %v1205_v41  ;;  %v703_v43 = vpop.f32.mrb[22].mxu0  ;;  %v1841_v44 = vpop.f32.mrb[22].mxu1 }
 0x128   : > { %v797_v45 = vmax.f32 %v701_v38, 0.0  ;;  %v1789_v46 = vpack.c.bf16 %v1214_v39, %v1214_v39  ;;  %v704_v47 = vadd.f32 %v2150_v59, %v703_v43  ;;  %v1217_v48 = vadd.f32 %v1841_v44, %v2201_v11  ;;  %v705_v49 = vpop.f32.mrb[23].mxu0  ;;  %v1208_v50 = vpop.f32.mrb[23].mxu1 }
 0x129   : > { %v1787_v51 = vpack.c.bf16 %v1206_v42, %v1206_v42  ;;  %v1209_v52 = vadd.f32 %v2201_v11, %v1208_v50 }
 0x12a   : > { %v1761_v53 = vpack.c.bf16 %v797_v45, %v797_v45  ;;  %1450 = vst.msk [vmem:[%s2217_s20 + $0x18] sm:$0xf] %vm947_vm1, %v1789_v46  ;;  %v798_v54 = vmax.f32 %v704_v47, 0.0  ;;  %v1790_v55 = vpack.c.bf16 %v1217_v48, %v1217_v48 }
 0x12b   : > { %1448 = vst.msk [vmem:[%s2217_s20 + $0x10] sm:$0xf] %vm947_vm1, %v1787_v51  ;;  %v1788_v56 = vpack.c.bf16 %v1209_v52, %v1209_v52 }
 0x12c   : > { %958 = vst.msk [vmem:[%s2160_s14 + $0x28] sm:$0xf] %vm947_vm1, %v1761_v53  ;;  %v1762_v57 = vpack.c.bf16 %v798_v54, %v798_v54  ;;  %1451 = vst.msk [vmem:[%s2217_s20 + $0x1c] sm:$0xf] %vm947_vm1, %v1790_v55 }
 0x12d   : > { %1449 = vst.msk [vmem:[%s2217_s20 + $0x14] sm:$0xf] %vm947_vm1, %v1788_v56  ;;  %v708_v58 = vpop.f32.mrb[24].mxu0  ;;  %v1844_v60 = vpop.f32.mrb[24].mxu1 }
 0x12e   : > { %959 = vst.msk [vmem:[%s2160_s14 + $0x2c] sm:$0xf] %vm947_vm1, %v1762_v57  ;;  %v709_v61 = vadd.f32 %v2150_v59, %v708_v58  ;;  %v1230_v62 = vadd.f32 %v1844_v60, %v2201_v11  ;;  %v710_v63 = vpop.f32.mrb[25].mxu0  ;;  %v1221_v0 = vpop.f32.mrb[25].mxu1 }
 0x12f   : > { %v1222_v1 = vadd.f32 %v2201_v11, %v1221_v0  ;;  %v711_v2 = vpop.f32.mrb[26].mxu0  ;;  %v1845_v3 = vpop.f32.mrb[26].mxu1 }
 0x130   : > { %v799_v4 = vmax.f32 %v709_v61, 0.0  ;;  %v1793_v5 = vpack.c.bf16 %v1230_v62, %v1230_v62  ;;  %v712_v6 = vadd.f32 %v2150_v59, %v711_v2  ;;  %v1233_v7 = vadd.f32 %v1845_v3, %v2201_v11  ;;  %v713_v8 = vpop.f32.mrb[27].mxu0  ;;  %v1224_v9 = vpop.f32.mrb[27].mxu1 }
 0x131   : > { %v1791_v10 = vpack.c.bf16 %v1222_v1, %v1222_v1  ;;  %v1225_v12 = vadd.f32 %v2201_v11, %v1224_v9 }
 0x132   : > { %v1763_v13 = vpack.c.bf16 %v799_v4, %v799_v4  ;;  %1454 = vst.msk [vmem:[%s2217_s20 + $0x28] sm:$0xf] %vm947_vm1, %v1793_v5  ;;  %v800_v14 = vmax.f32 %v712_v6, 0.0  ;;  %v1794_v15 = vpack.c.bf16 %v1233_v7, %v1233_v7 }
 0x133   : > { %1452 = vst.msk [vmem:[%s2217_s20 + $0x20] sm:$0xf] %vm947_vm1, %v1791_v10  ;;  %v1792_v16 = vpack.c.bf16 %v1225_v12, %v1225_v12 }
 0x134   : > { %960 = vst.msk [vmem:[%s2160_s14 + $0x30] sm:$0xf] %vm947_vm1, %v1763_v13  ;;  %v1764_v17 = vpack.c.bf16 %v800_v14, %v800_v14  ;;  %1455 = vst.msk [vmem:[%s2217_s20 + $0x2c] sm:$0xf] %vm947_vm1, %v1794_v15 }
 0x135   : > { %1453 = vst.msk [vmem:[%s2217_s20 + $0x24] sm:$0xf] %vm947_vm1, %v1792_v16  ;;  %v716_v18 = vpop.f32.mrb[28].mxu0  ;;  %v1848_v19 = vpop.f32.mrb[28].mxu1 }
 0x136   : > { %961 = vst.msk [vmem:[%s2160_s14 + $0x34] sm:$0xf] %vm947_vm1, %v1764_v17  ;;  %v717_v20 = vadd.f32 %v2150_v59, %v716_v18  ;;  %v1246_v21 = vadd.f32 %v1848_v19, %v2201_v11  ;;  %v718_v22 = vpop.f32.mrb[29].mxu0  ;;  %v1237_v23 = vpop.f32.mrb[29].mxu1 }
 0x137   : > { %v1238_v24 = vadd.f32 %v2201_v11, %v1237_v23  ;;  %v719_v25 = vpop.f32.mrb[30].mxu0  ;;  %v1849_v26 = vpop.f32.mrb[30].mxu1 }
 0x138   : > { %v801_v27 = vmax.f32 %v717_v20, 0.0  ;;  %v1797_v28 = vpack.c.bf16 %v1246_v21, %v1246_v21  ;;  %v720_v29 = vadd.f32 %v2150_v59, %v719_v25  ;;  %v1249_v30 = vadd.f32 %v1849_v26, %v2201_v11  ;;  %v721_v31 = vpop.f32.mrb[31].mxu0  ;;  %v1240_v32 = vpop.f32.mrb[31].mxu1 }
 0x139   : > { %v1795_v33 = vpack.c.bf16 %v1238_v24, %v1238_v24  ;;  %v1241_v34 = vadd.f32 %v2201_v11, %v1240_v32 }
 0x13a   : > { %v1765_v35 = vpack.c.bf16 %v801_v27, %v801_v27  ;;  %1458 = vst.msk [vmem:[%s2217_s20 + $0x38] sm:$0xf] %vm947_vm1, %v1797_v28  ;;  %v802_v36 = vmax.f32 %v720_v29, 0.0  ;;  %v1798_v37 = vpack.c.bf16 %v1249_v30, %v1249_v30 }
 0x13b   : > { %1456 = vst.msk [vmem:[%s2217_s20 + $0x30] sm:$0xf] %vm947_vm1, %v1795_v33  ;;  %v1796_v38 = vpack.c.bf16 %v1241_v34, %v1241_v34 }
 0x13c   : > { %962 = vst.msk [vmem:[%s2160_s14 + $0x38] sm:$0xf] %vm947_vm1, %v1765_v35  ;;  %v1766_v39 = vpack.c.bf16 %v802_v36, %v802_v36  ;;  %1459 = vst.msk [vmem:[%s2217_s20 + $0x3c] sm:$0xf] %vm947_vm1, %v1798_v37 }
 0x13d   : > { %1457 = vst.msk [vmem:[%s2217_s20 + $0x34] sm:$0xf] %vm947_vm1, %v1796_v38  ;;  %v724_v40 = vpop.f32.mrb[32].mxu0  ;;  %v1852_v41 = vpop.f32.mrb[32].mxu1 }
 0x13e   : > { %963 = vst.msk [vmem:[%s2160_s14 + $0x3c] sm:$0xf] %vm947_vm1, %v1766_v39  ;;  %v725_v42 = vadd.f32 %v2150_v59, %v724_v40  ;;  %v1262_v43 = vadd.f32 %v1852_v41, %v2201_v11  ;;  %v726_v44 = vpop.f32.mrb[33].mxu0  ;;  %v1253_v45 = vpop.f32.mrb[33].mxu1 }
 0x13f   : > { %v1254_v46 = vadd.f32 %v2201_v11, %v1253_v45  ;;  %v727_v47 = vpop.f32.mrb[34].mxu0  ;;  %v1853_v48 = vpop.f32.mrb[34].mxu1 }
 0x140   : > { %v803_v49 = vmax.f32 %v725_v42, 0.0  ;;  %v1801_v50 = vpack.c.bf16 %v1262_v43, %v1262_v43  ;;  %v728_v51 = vadd.f32 %v2150_v59, %v727_v47  ;;  %v1265_v52 = vadd.f32 %v1853_v48, %v2201_v11  ;;  %v729_v53 = vpop.f32.mrb[35].mxu0  ;;  %v1256_v54 = vpop.f32.mrb[35].mxu1 }
 0x141   : > { %v1799_v55 = vpack.c.bf16 %v1254_v46, %v1254_v46  ;;  %v1257_v56 = vadd.f32 %v2201_v11, %v1256_v54 }
 0x142   : > { %v1767_v57 = vpack.c.bf16 %v803_v49, %v803_v49  ;;  %1462 = vst.msk [vmem:[%s2217_s20 + $0x48] sm:$0xf] %vm947_vm1, %v1801_v50  ;;  %v804_v58 = vmax.f32 %v728_v51, 0.0  ;;  %v1802_v60 = vpack.c.bf16 %v1265_v52, %v1265_v52 }
 0x143   : > { %1460 = vst.msk [vmem:[%s2217_s20 + $0x40] sm:$0xf] %vm947_vm1, %v1799_v55  ;;  %v1800_v61 = vpack.c.bf16 %v1257_v56, %v1257_v56 }
 0x144   : > { %964 = vst.msk [vmem:[%s2160_s14 + $0x40] sm:$0xf] %vm947_vm1, %v1767_v57  ;;  %v1768_v62 = vpack.c.bf16 %v804_v58, %v804_v58  ;;  %1463 = vst.msk [vmem:[%s2217_s20 + $0x4c] sm:$0xf] %vm947_vm1, %v1802_v60 }
 0x145   : > { %1461 = vst.msk [vmem:[%s2217_s20 + $0x44] sm:$0xf] %vm947_vm1, %v1800_v61  ;;  %v732_v63 = vpop.f32.mrb[36].mxu0  ;;  %v1856_v0 = vpop.f32.mrb[36].mxu1 }
 0x146   : > { %965 = vst.msk [vmem:[%s2160_s14 + $0x44] sm:$0xf] %vm947_vm1, %v1768_v62  ;;  %v733_v1 = vadd.f32 %v2150_v59, %v732_v63  ;;  %v1278_v2 = vadd.f32 %v1856_v0, %v2201_v11  ;;  %v734_v3 = vpop.f32.mrb[37].mxu0  ;;  %v1269_v4 = vpop.f32.mrb[37].mxu1 }
 0x147   : > { %v1270_v5 = vadd.f32 %v2201_v11, %v1269_v4  ;;  %v735_v6 = vpop.f32.mrb[38].mxu0  ;;  %v1857_v7 = vpop.f32.mrb[38].mxu1 }
 0x148   : > { %v805_v8 = vmax.f32 %v733_v1, 0.0  ;;  %v1805_v9 = vpack.c.bf16 %v1278_v2, %v1278_v2  ;;  %v736_v10 = vadd.f32 %v2150_v59, %v735_v6  ;;  %v1281_v12 = vadd.f32 %v1857_v7, %v2201_v11  ;;  %v737_v13 = vpop.f32.mrb[39].mxu0  ;;  %v1272_v14 = vpop.f32.mrb[39].mxu1 }
 0x149   : > { %v1803_v15 = vpack.c.bf16 %v1270_v5, %v1270_v5  ;;  %v1273_v16 = vadd.f32 %v2201_v11, %v1272_v14 }
 0x14a   : > { %v1769_v17 = vpack.c.bf16 %v805_v8, %v805_v8  ;;  %1466 = vst.msk [vmem:[%s2217_s20 + $0x58] sm:$0xf] %vm947_vm1, %v1805_v9  ;;  %v806_v18 = vmax.f32 %v736_v10, 0.0  ;;  %v1806_v19 = vpack.c.bf16 %v1281_v12, %v1281_v12 }
 0x14b   : > { %1464 = vst.msk [vmem:[%s2217_s20 + $0x50] sm:$0xf] %vm947_vm1, %v1803_v15  ;;  %v1804_v20 = vpack.c.bf16 %v1273_v16, %v1273_v16 }
 0x14c   : > { %966 = vst.msk [vmem:[%s2160_s14 + $0x48] sm:$0xf] %vm947_vm1, %v1769_v17  ;;  %v1770_v21 = vpack.c.bf16 %v806_v18, %v806_v18  ;;  %1467 = vst.msk [vmem:[%s2217_s20 + $0x5c] sm:$0xf] %vm947_vm1, %v1806_v19 }
 0x14d   : > { %1465 = vst.msk [vmem:[%s2217_s20 + $0x54] sm:$0xf] %vm947_vm1, %v1804_v20  ;;  %v740_v22 = vpop.f32.mrb[40].mxu0  ;;  %v1860_v23 = vpop.f32.mrb[40].mxu1 }
 0x14e   : > { %967 = vst.msk [vmem:[%s2160_s14 + $0x4c] sm:$0xf] %vm947_vm1, %v1770_v21  ;;  %v741_v24 = vadd.f32 %v2150_v59, %v740_v22  ;;  %v1294_v25 = vadd.f32 %v1860_v23, %v2201_v11  ;;  %v742_v26 = vpop.f32.mrb[41].mxu0  ;;  %v1285_v27 = vpop.f32.mrb[41].mxu1 }
 0x14f   : > { %v1286_v28 = vadd.f32 %v2201_v11, %v1285_v27  ;;  %v743_v29 = vpop.f32.mrb[42].mxu0  ;;  %v1861_v30 = vpop.f32.mrb[42].mxu1 }
 0x150   : > { %v807_v31 = vmax.f32 %v741_v24, 0.0  ;;  %v1809_v32 = vpack.c.bf16 %v1294_v25, %v1294_v25  ;;  %v744_v33 = vadd.f32 %v2150_v59, %v743_v29  ;;  %v1297_v34 = vadd.f32 %v1861_v30, %v2201_v11  ;;  %v745_v35 = vpop.f32.mrb[43].mxu0  ;;  %v1288_v36 = vpop.f32.mrb[43].mxu1 }
 0x151   : > { %v1807_v37 = vpack.c.bf16 %v1286_v28, %v1286_v28  ;;  %v1289_v38 = vadd.f32 %v2201_v11, %v1288_v36 }
 0x152   : > { %v1771_v39 = vpack.c.bf16 %v807_v31, %v807_v31  ;;  %1470 = vst.msk [vmem:[%s2217_s20 + $0x68] sm:$0xf] %vm947_vm1, %v1809_v32  ;;  %v808_v40 = vmax.f32 %v744_v33, 0.0  ;;  %v1810_v41 = vpack.c.bf16 %v1297_v34, %v1297_v34 }
 0x153   : > { %1468 = vst.msk [vmem:[%s2217_s20 + $0x60] sm:$0xf] %vm947_vm1, %v1807_v37  ;;  %v1808_v42 = vpack.c.bf16 %v1289_v38, %v1289_v38 }
 0x154   : > { %968 = vst.msk [vmem:[%s2160_s14 + $0x50] sm:$0xf] %vm947_vm1, %v1771_v39  ;;  %v1772_v43 = vpack.c.bf16 %v808_v40, %v808_v40  ;;  %1471 = vst.msk [vmem:[%s2217_s20 + $0x6c] sm:$0xf] %vm947_vm1, %v1810_v41 }
 0x155   : > { %1469 = vst.msk [vmem:[%s2217_s20 + $0x64] sm:$0xf] %vm947_vm1, %v1808_v42  ;;  %v748_v44 = vpop.f32.mrb[44].mxu0  ;;  %v1864_v45 = vpop.f32.mrb[44].mxu1 }
 0x156   : > { %969 = vst.msk [vmem:[%s2160_s14 + $0x54] sm:$0xf] %vm947_vm1, %v1772_v43  ;;  %v749_v46 = vadd.f32 %v2150_v59, %v748_v44  ;;  %v1310_v47 = vadd.f32 %v1864_v45, %v2201_v11  ;;  %v750_v48 = vpop.f32.mrb[45].mxu0  ;;  %v1301_v49 = vpop.f32.mrb[45].mxu1 }
 0x157   : > { %v1302_v50 = vadd.f32 %v2201_v11, %v1301_v49  ;;  %v751_v51 = vpop.f32.mrb[46].mxu0  ;;  %v1865_v52 = vpop.f32.mrb[46].mxu1 }
 0x158   : > { %v809_v53 = vmax.f32 %v749_v46, 0.0  ;;  %v1813_v54 = vpack.c.bf16 %v1310_v47, %v1310_v47  ;;  %v752_v55 = vadd.f32 %v2150_v59, %v751_v51  ;;  %v1313_v56 = vadd.f32 %v1865_v52, %v2201_v11  ;;  %v753_v57 = vpop.f32.mrb[47].mxu0  ;;  %v1304_v58 = vpop.f32.mrb[47].mxu1 }
 0x159   : > { %v1811_v60 = vpack.c.bf16 %v1302_v50, %v1302_v50  ;;  %v1305_v61 = vadd.f32 %v2201_v11, %v1304_v58 }
 0x15a   : > { %v1773_v62 = vpack.c.bf16 %v809_v53, %v809_v53  ;;  %1474 = vst.msk [vmem:[%s2217_s20 + $0x78] sm:$0xf] %vm947_vm1, %v1813_v54  ;;  %v810_v63 = vmax.f32 %v752_v55, 0.0  ;;  %v1814_v0 = vpack.c.bf16 %v1313_v56, %v1313_v56 }
 0x15b   : > { %1472 = vst.msk [vmem:[%s2217_s20 + $0x70] sm:$0xf] %vm947_vm1, %v1811_v60  ;;  %v1812_v1 = vpack.c.bf16 %v1305_v61, %v1305_v61 }
 0x15c   : > { %970 = vst.msk [vmem:[%s2160_s14 + $0x58] sm:$0xf] %vm947_vm1, %v1773_v62  ;;  %v1774_v2 = vpack.c.bf16 %v810_v63, %v810_v63  ;;  %1475 = vst.msk [vmem:[%s2217_s20 + $0x7c] sm:$0xf] %vm947_vm1, %v1814_v0 }
 0x15d   : > { %1473 = vst.msk [vmem:[%s2217_s20 + $0x74] sm:$0xf] %vm947_vm1, %v1812_v1 }
 0x15e   : > { %971 = vst.msk [vmem:[%s2160_s14 + $0x5c] sm:$0xf] %vm947_vm1, %v1774_v2 }
 0x15f PF: > { %s18_s24 = sadd.s32 1, %s1973_s24  }
 0x160   : > { %p15_p4 = scmp.ge.s32.totalorder %s18_s24, 4  }
 0x162   :  { %17 = sbr.rel (!%p15_p4) target bundleno = 1 (0x1), region = 89 }

// kernel: _lambda_.9
= control target key start
LH: loop header
LB: loop body
LE: loop exit
PB: predicated region body
PF: predicated region fallthrough
CT: control target
= control target key end

     0   :  { %s5937_s15 = smov 0   ;;  %s7225_s0 = inlined_call_operand.vmem [shape: bf16[2,34,32,48], index: 0, kind: input, shape index: {}]   ;;  %s7226_s1 = inlined_call_operand.vmem [shape: bf16[3,48,16], index: 1, kind: input, shape index: {}]   ;;  %s7227_s2 = inlined_call_operand.vmem [shape: f32[1,16], index: 2, kind: input, shape index: {}]   ;;  %s7228_s3 = inlined_call_operand.vmem [shape: bf16[2048,16], index: 3, kind: input, shape index: {}]   ;;  %s7229_s4 = inlined_call_operand.vmem [shape: bf16[2048,16], index: 4, kind: output, shape index: {}]  }
   0x1 LB: > { %s5943_s16 = sadd.s32 4294967295, %s5910_s15   ;;  %p4098_p0 = scmp.ge.s32.totalorder %s5910_s15, 1  ;;  %s5910_s15 = sphi %s5937_s15, %s14_s15  }
   0x2   : > { %p173_p1 = scmp.lt.s32.totalorder %s5910_s15, 3 }
   0x4   : > { %p174_p2 = pnand %p4098_p0, %p173_p1 }
   0x6   : > { %177 = sbr.rel (%p174_p2) target bundleno = 628 (0x274), region = 36 }
   0xd   : > { %v5825_v0 = vld [vmem:[%s7226_s1 + $0x18] sm:$0xff]   ;;  %p204_p3 = scmp.lt.s32.totalorder %s5943_s16, 1  ;;  %v5826_v1 = vld [vmem:[%s7226_s1] sm:$0xff]   ;;  %v5828_v3 = vld [vmem:[%s7226_s1 + $0x8] sm:$0xff]   ;;  %vm714_vm0 = vcmask 392192   ;;  %s4100_s14 = sshll.u32 %s5943_s16, 7 }
   0xe   : > { %5152 = vmatprep.subr.bf16.mxu1 %v5825_v0  ;;  %v5827_v2 = vld [vmem:[%s7226_s1 + $0x20] sm:$0xff]   ;;  %5286 = vmatprep.subr.bf16.mxu0 %v5826_v1  ;;  %v5829_v4 = vld [vmem:[%s7226_s1 + $0x28] sm:$0xff]   ;;  %v5830_v5 = vld [vmem:[%s7226_s1 + $0x10] sm:$0xff]   ;;  %p210_p4 = scmp.lt.s32.totalorder %s4100_s14, 255  ;;  %vm3897_vm1 = vcmask 125952  }
   0xf   : > { %s205_s23 = scalar_select %p204_p3, %s5943_s16, 1  ;;  %5153 = vmatpush3.bf16.msra.mxu1 %v5825_v0  ;;  %5287 = vmatpush3.bf16.msra.mxu0 %v5826_v1  ;;  %v5835_v8 = vld [vmem:[%s7226_s1 + $0x30] sm:$0xff]   ;;  %v5846_v14 = vld [vmem:[%s7226_s1 + $0x38] sm:$0xff]   ;;  %v5857_v17 = vld [vmem:[%s7226_s1 + $0x40] sm:$0xff]  }
  0x10   : > { %5154 = vmatprep.subr.bf16.mxu1 %v5827_v2  ;;  %5288 = vmatprep.subr.bf16.mxu0 %v5828_v3  ;;  %s7285_s14 = smov (!%p210_p4, %s4100_s14), 255 }
  0x11   : > { %s5816_s28 = smul.u32 544, %s205_s23  ;;  %s4101_s16 = sshll.u32 %s7285_s14, 2 }
  0x12   : > { %s6642_s19 = scalar_lea.vmem %s7228_s3, %s4101_s16  ;;  %s6682_s24 = scalar_lea.vmem %s7229_s4, %s4101_s16 }
  0x13   : > { %s5970_s7 = scalar_lea.vmem %s7225_s0, %s5816_s28  ;;  %5155 = vmatpush3.bf16.msra.mxu1 %v5827_v2  ;;  %5289 = vmatpush3.bf16.msra.mxu0 %v5828_v3 }
  0x14   : > { %v5831_v6 = vld [vmem:[%s5970_s7 + $0x10] sm:$0xff]   ;;  %5156 = vmatprep.subr.bf16.mxu1 %v5829_v4  ;;  %v5832_v7 = vld [vmem:[%s5970_s7] sm:$0xff]   ;;  %5290 = vmatprep.subr.bf16.mxu0 %v5830_v5  ;;  %v5833_v9 = vld [vmem:[%s5970_s7 + $0x18] sm:$0xff]  }
  0x15   : > { %5158 = vmatprep.mubr.msk.bf16.mxu1 %vm714_vm0, %v5831_v6  ;;  %5292 = vmatprep.mubr.msk.bf16.mxu0 %vm714_vm0, %v5832_v7  ;;  %v5834_v10 = vld [vmem:[%s5970_s7 + $0x8] sm:$0xff]   ;;  %v5982_v11 = vld [vmem:[%s5970_s7 + $0x20] sm:$0xff]   ;;  %v5993_v13 = vld [vmem:[%s5970_s7 + $0x30] sm:$0xff]  }
  0x16   : > { %v5990_v12 = vld [vmem:[%s5970_s7 + $0x28] sm:$0xff]   ;;  %v6006_v15 = vld [vmem:[%s5970_s7 + $0x38] sm:$0xff]   ;;  %v6009_v16 = vld [vmem:[%s5970_s7 + $0x40] sm:$0xff]  }
  0x17   : > { %5157 = vmatpush3.bf16.msra.mxu1 %v5829_v4  ;;  %5291 = vmatpush3.bf16.msra.mxu0 %v5830_v5  ;;  %v6023_v18 = vld [vmem:[%s5970_s7 + $0x48] sm:$0xff]   ;;  %v6026_v19 = vld [vmem:[%s5970_s7 + $0x50] sm:$0xff]   ;;  %v6037_v20 = vld [vmem:[%s5970_s7 + $0x58] sm:$0xff]  }
  0x18   : > { %5554 = vmatprep.subr.bf16.mxu1 %v5826_v1  ;;  %5420 = vmatprep.subr.bf16.mxu0 %v5835_v8  ;;  %v6040_v21 = vld [vmem:[%s5970_s7 + $0x60] sm:$0xff]   ;;  %v6051_v22 = vld [vmem:[%s5970_s7 + $0x68] sm:$0xff]   ;;  %v6054_v23 = vld [vmem:[%s5970_s7 + $0x70] sm:$0xff]  }
  0x19   : > { %v6065_v24 = vld [vmem:[%s5970_s7 + $0x78] sm:$0xff]   ;;  %v6068_v25 = vld [vmem:[%s5970_s7 + $0x80] sm:$0xff]   ;;  %v6079_v26 = vld [vmem:[%s5970_s7 + $0x88] sm:$0xff]  }
  0x1a   : > { %5159 = vmatmul.mubr.msk.bf16.vlgmr.msra.gmra.mrb[0].mxu1 %vm714_vm0, %v5833_v9  ;;  %5293 = vmatmul.mubr.msk.bf16.vlgmr.msra.gmra.mrb[0].mxu0 %vm714_vm0, %v5834_v10  ;;  %v6082_v27 = vld [vmem:[%s5970_s7 + $0x90] sm:$0xff]   ;;  %v6093_v28 = vld [vmem:[%s5970_s7 + $0x98] sm:$0xff]   ;;  %v6096_v29 = vld [vmem:[%s5970_s7 + $0xa0] sm:$0xff]  }
  0x1b   : > { %5557 = vmatpush3.bf16.msra.mxu1 %v5826_v1  ;;  %5421 = vmatpush3.bf16.msra.mxu0 %v5835_v8  ;;  %v6107_v30 = vld [vmem:[%s5970_s7 + $0xa8] sm:$0xff]   ;;  %v6110_v31 = vld [vmem:[%s5970_s7 + $0xb0] sm:$0xff]   ;;  %v6121_v32 = vld [vmem:[%s5970_s7 + $0xb8] sm:$0xff]  }
  0x1c   : > { %5162 = vmatprep.mubr.msk.bf16.mxu1 %vm714_vm0, %v5982_v11  ;;  %5296 = vmatprep.mubr.msk.bf16.mxu0 %vm714_vm0, %v5831_v6  ;;  %v6124_v33 = vld [vmem:[%s5970_s7 + $0xc0] sm:$0xff]   ;;  %v6135_v34 = vld [vmem:[%s5970_s7 + $0xc8] sm:$0xff]   ;;  %v6138_v35 = vld [vmem:[%s5970_s7 + $0xd0] sm:$0xff]  }
  0x1d   : > { %5555 = vmatprep.subr.bf16.mxu1 %v5828_v3  ;;  %5422 = vmatprep.subr.bf16.mxu0 %v5846_v14  ;;  %v6149_v36 = vld [vmem:[%s5970_s7 + $0xd8] sm:$0xff]   ;;  %v6152_v37 = vld [vmem:[%s5970_s7 + $0xe0] sm:$0xff]   ;;  %v6163_v38 = vld [vmem:[%s5970_s7 + $0xe8] sm:$0xff]  }
  0x1e   : > { %v6166_v39 = vld [vmem:[%s5970_s7 + $0xf0] sm:$0xff]   ;;  %v6177_v40 = vld [vmem:[%s5970_s7 + $0xf8] sm:$0xff]   ;;  %v6180_v41 = vld [vmem:[%s5970_s7 + $0x100] sm:$0xff]  }
  0x1f   : > { %5558 = vmatpush3.bf16.msra.mxu1 %v5828_v3  ;;  %5423 = vmatpush3.bf16.msra.mxu0 %v5846_v14  ;;  %v6191_v42 = vld [vmem:[%s5970_s7 + $0x108] sm:$0xff]   ;;  %v6194_v43 = vld [vmem:[%s5970_s7 + $0x110] sm:$0xff]   ;;  %v6205_v44 = vld [vmem:[%s5970_s7 + $0x118] sm:$0xff]  }
  0x20   : > { %5556 = vmatprep.subr.bf16.mxu1 %v5830_v5  ;;  %5424 = vmatprep.subr.bf16.mxu0 %v5857_v17  ;;  %v6208_v45 = vld [vmem:[%s5970_s7 + $0x120] sm:$0xff]   ;;  %v6219_v46 = vld [vmem:[%s5970_s7 + $0x128] sm:$0xff]   ;;  %v6222_v47 = vld [vmem:[%s5970_s7 + $0x130] sm:$0xff]  }
  0x21   : > { %v6233_v48 = vld [vmem:[%s5970_s7 + $0x138] sm:$0xff]   ;;  %v6236_v49 = vld [vmem:[%s5970_s7 + $0x140] sm:$0xff]   ;;  %v6247_v50 = vld [vmem:[%s5970_s7 + $0x148] sm:$0xff]  }
  0x22   : > { %5163 = vmatmul.mubr.msk.bf16.gmra.mrb[4].mxu1 %vm714_vm0, %v5990_v12  ;;  %5297 = vmatmul.mubr.msk.bf16.gmra.mrb[4].mxu0 %vm714_vm0, %v5833_v9  ;;  %v6250_v51 = vld [vmem:[%s5970_s7 + $0x150] sm:$0xff]   ;;  %v6261_v52 = vld [vmem:[%s5970_s7 + $0x158] sm:$0xff]   ;;  %v6264_v53 = vld [vmem:[%s5970_s7 + $0x160] sm:$0xff]  }
  0x23   : > { %5166 = vmatprep.mubr.msk.bf16.mxu1 %vm714_vm0, %v5993_v13  ;;  %5300 = vmatprep.mubr.msk.bf16.mxu0 %vm714_vm0, %v5982_v11  ;;  %v6275_v54 = vld [vmem:[%s5970_s7 + $0x168] sm:$0xff]   ;;  %v6278_v55 = vld [vmem:[%s5970_s7 + $0x170] sm:$0xff]   ;;  %v6289_v56 = vld [vmem:[%s5970_s7 + $0x178] sm:$0xff]  }
  0x24   : > { %5559 = vmatpush3.bf16.msra.mxu1 %v5830_v5  ;;  %5425 = vmatpush3.bf16.msra.mxu0 %v5857_v17  ;;  %v6292_v57 = vld [vmem:[%s5970_s7 + $0x180] sm:$0xff]   ;;  %v6303_v58 = vld [vmem:[%s5970_s7 + $0x188] sm:$0xff]   ;;  %v6306_v59 = vld [vmem:[%s5970_s7 + $0x190] sm:$0xff]  }
  0x25   : > { %v6317_v60 = vld [vmem:[%s5970_s7 + $0x198] sm:$0xff]   ;;  %v6320_v61 = vld [vmem:[%s5970_s7 + $0x1a0] sm:$0xff]   ;;  %v6331_v62 = vld [vmem:[%s5970_s7 + $0x1a8] sm:$0xff]  }
  0x26   : > { %v6334_v63 = vld [vmem:[%s5970_s7 + $0x1b0] sm:$0xff]   ;;  %v6345_v0 = vld [vmem:[%s5970_s7 + $0x1b8] sm:$0xff]   ;;  %v6348_v1 = vld [vmem:[%s5970_s7 + $0x1c0] sm:$0xff]  }
  0x27   : > { %v6363_v4 = vld [vmem:[%s5970_s7 + $0x1c8] sm:$0xff]   ;;  %v6368_v6 = vld [vmem:[%s5970_s7 + $0x1d0] sm:$0xff]   ;;  %v6385_v10 = vld [vmem:[%s5970_s7 + $0x1d8] sm:$0xff]  }
  0x2a   : > { %5167 = vmatmul.mubr.msk.bf16.gmra.mrb[8].mxu1 %vm714_vm0, %v6006_v15  ;;  %5301 = vmatmul.mubr.msk.bf16.gmra.mrb[8].mxu0 %vm714_vm0, %v5990_v12 }
  0x2b   : > { %5170 = vmatprep.mubr.msk.bf16.mxu1 %vm714_vm0, %v6009_v16  ;;  %5304 = vmatprep.mubr.msk.bf16.mxu0 %vm714_vm0, %v5993_v13 }
  0x32   : > { %5171 = vmatmul.mubr.msk.bf16.gmra.mrb[12].mxu1 %vm714_vm0, %v6023_v18  ;;  %5305 = vmatmul.mubr.msk.bf16.gmra.mrb[12].mxu0 %vm714_vm0, %v6006_v15 }
  0x33   : > { %5174 = vmatprep.mubr.msk.bf16.mxu1 %vm714_vm0, %v6026_v19  ;;  %5308 = vmatprep.mubr.msk.bf16.mxu0 %vm714_vm0, %v6009_v16 }
  0x3a   : > { %5175 = vmatmul.mubr.msk.bf16.gmra.mrb[16].mxu1 %vm714_vm0, %v6037_v20  ;;  %5309 = vmatmul.mubr.msk.bf16.gmra.mrb[16].mxu0 %vm714_vm0, %v6023_v18 }
  0x3b   : > { %5178 = vmatprep.mubr.msk.bf16.mxu1 %vm714_vm0, %v6040_v21  ;;  %5312 = vmatprep.mubr.msk.bf16.mxu0 %vm714_vm0, %v6026_v19 }
  0x42   : > { %5179 = vmatmul.mubr.msk.bf16.gmra.mrb[20].mxu1 %vm714_vm0, %v6051_v22  ;;  %5313 = vmatmul.mubr.msk.bf16.gmra.mrb[20].mxu0 %vm714_vm0, %v6037_v20 }
  0x43   : > { %5182 = vmatprep.mubr.msk.bf16.mxu1 %vm714_vm0, %v6054_v23  ;;  %5316 = vmatprep.mubr.msk.bf16.mxu0 %vm714_vm0, %v6040_v21 }
  0x4a   : > { %5183 = vmatmul.mubr.msk.bf16.gmra.mrb[24].mxu1 %vm714_vm0, %v6065_v24  ;;  %5317 = vmatmul.mubr.msk.bf16.gmra.mrb[24].mxu0 %vm714_vm0, %v6051_v22 }
  0x4b   : > { %5186 = vmatprep.mubr.msk.bf16.mxu1 %vm714_vm0, %v6068_v25  ;;  %5320 = vmatprep.mubr.msk.bf16.mxu0 %vm714_vm0, %v6054_v23 }
  0x52   : > { %5187 = vmatmul.mubr.msk.bf16.gmra.mrb[28].mxu1 %vm714_vm0, %v6079_v26  ;;  %5321 = vmatmul.mubr.msk.bf16.gmra.mrb[28].mxu0 %vm714_vm0, %v6065_v24 }
  0x53   : > { %5190 = vmatprep.mubr.msk.bf16.mxu1 %vm714_vm0, %v6082_v27  ;;  %5324 = vmatprep.mubr.msk.bf16.mxu0 %vm714_vm0, %v6068_v25 }
  0x5a   : > { %5191 = vmatmul.mubr.msk.bf16.gmra.mrb[32].mxu1 %vm714_vm0, %v6093_v28  ;;  %5325 = vmatmul.mubr.msk.bf16.gmra.mrb[32].mxu0 %vm714_vm0, %v6079_v26 }
  0x5b   : > { %5194 = vmatprep.mubr.msk.bf16.mxu1 %vm714_vm0, %v6096_v29  ;;  %5328 = vmatprep.mubr.msk.bf16.mxu0 %vm714_vm0, %v6082_v27 }
  0x62   : > { %5195 = vmatmul.mubr.msk.bf16.gmra.mrb[36].mxu1 %vm714_vm0, %v6107_v30  ;;  %5329 = vmatmul.mubr.msk.bf16.gmra.mrb[36].mxu0 %vm714_vm0, %v6093_v28 }
  0x63   : > { %5198 = vmatprep.mubr.msk.bf16.mxu1 %vm714_vm0, %v6110_v31  ;;  %5332 = vmatprep.mubr.msk.bf16.mxu0 %vm714_vm0, %v6096_v29 }
  0x6a   : > { %5199 = vmatmul.mubr.msk.bf16.gmra.mrb[40].mxu1 %vm714_vm0, %v6121_v32  ;;  %5333 = vmatmul.mubr.msk.bf16.gmra.mrb[40].mxu0 %vm714_vm0, %v6107_v30 }
  0x6b   : > { %5202 = vmatprep.mubr.msk.bf16.mxu1 %vm714_vm0, %v6124_v33  ;;  %5336 = vmatprep.mubr.msk.bf16.mxu0 %vm714_vm0, %v6110_v31 }
  0x72   : > { %5203 = vmatmul.mubr.msk.bf16.gmra.mrb[44].mxu1 %vm714_vm0, %v6135_v34  ;;  %5337 = vmatmul.mubr.msk.bf16.gmra.mrb[44].mxu0 %vm714_vm0, %v6121_v32 }
  0x73   : > { %5206 = vmatprep.mubr.msk.bf16.mxu1 %vm714_vm0, %v6138_v35  ;;  %5340 = vmatprep.mubr.msk.bf16.mxu0 %vm714_vm0, %v6124_v33 }
  0x7a   : > { %5207 = vmatmul.mubr.msk.bf16.gmra.mrb[48].mxu1 %vm714_vm0, %v6149_v36  ;;  %5341 = vmatmul.mubr.msk.bf16.gmra.mrb[48].mxu0 %vm714_vm0, %v6135_v34 }
  0x7b   : > { %5210 = vmatprep.mubr.msk.bf16.mxu1 %vm714_vm0, %v6152_v37  ;;  %5344 = vmatprep.mubr.msk.bf16.mxu0 %vm714_vm0, %v6138_v35 }
  0x82   : > { %5211 = vmatmul.mubr.msk.bf16.gmra.mrb[52].mxu1 %vm714_vm0, %v6163_v38  ;;  %5345 = vmatmul.mubr.msk.bf16.gmra.mrb[52].mxu0 %vm714_vm0, %v6149_v36 }
  0x83   : > { %5214 = vmatprep.mubr.msk.bf16.mxu1 %vm714_vm0, %v6166_v39  ;;  %5348 = vmatprep.mubr.msk.bf16.mxu0 %vm714_vm0, %v6152_v37 }
  0x8a   : > { %5215 = vmatmul.mubr.msk.bf16.gmra.mrb[56].mxu1 %vm714_vm0, %v6177_v40  ;;  %5349 = vmatmul.mubr.msk.bf16.gmra.mrb[56].mxu0 %vm714_vm0, %v6163_v38 }
  0x8b   : > { %5218 = vmatprep.mubr.msk.bf16.mxu1 %vm714_vm0, %v6180_v41  ;;  %5352 = vmatprep.mubr.msk.bf16.mxu0 %vm714_vm0, %v6166_v39 }
  0x92   : > { %5219 = vmatmul.mubr.msk.bf16.gmra.mrb[60].mxu1 %vm714_vm0, %v6191_v42  ;;  %5353 = vmatmul.mubr.msk.bf16.gmra.mrb[60].mxu0 %vm714_vm0, %v6177_v40 }
  0x93   : > { %5222 = vmatprep.mubr.msk.bf16.mxu1 %vm714_vm0, %v6194_v43  ;;  %5426 = vmatprep.mubr.msk.bf16.mxu0 %vm714_vm0, %v5982_v11 }
  0x9a   : > { %5223 = vmatmul.mubr.msk.bf16.gmra.mrb[64].mxu1 %vm714_vm0, %v6205_v44  ;;  %5427 = vmatmul.mubr.msk.bf16.vlgmr.msra.gmra.mrb[0].mxu0 %vm714_vm0, %v5990_v12  ;;  %v6390_v12 = vld [vmem:[%s5970_s7 + $0x1e0] sm:$0xff]  }
  0x9b   : > { %5226 = vmatprep.mubr.msk.bf16.mxu1 %vm714_vm0, %v6208_v45  ;;  %5430 = vmatprep.mubr.msk.bf16.mxu0 %vm714_vm0, %v5993_v13 }
  0xa2   : > { %5227 = vmatmul.mubr.msk.bf16.gmra.mrb[68].mxu1 %vm714_vm0, %v6219_v46  ;;  %5431 = vmatmul.mubr.msk.bf16.gmra.mrb[4].mxu0 %vm714_vm0, %v6006_v15 }
  0xa3   : > { %5230 = vmatprep.mubr.msk.bf16.mxu1 %vm714_vm0, %v6222_v47  ;;  %5434 = vmatprep.mubr.msk.bf16.mxu0 %vm714_vm0, %v6009_v16  ;;  %v6407_v16 = vld [vmem:[%s5970_s7 + $0x1e8] sm:$0xff]  }
  0xaa   : > { %5231 = vmatmul.mubr.msk.bf16.gmra.mrb[72].mxu1 %vm714_vm0, %v6233_v48  ;;  %5435 = vmatmul.mubr.msk.bf16.gmra.mrb[8].mxu0 %vm714_vm0, %v6023_v18  ;;  %v6412_v18 = vld [vmem:[%s5970_s7 + $0x1f0] sm:$0xff]  }
  0xab   : > { %5234 = vmatprep.mubr.msk.bf16.mxu1 %vm714_vm0, %v6236_v49  ;;  %5438 = vmatprep.mubr.msk.bf16.mxu0 %vm714_vm0, %v6026_v19 }
  0xb2   : > { %5235 = vmatmul.mubr.msk.bf16.gmra.mrb[76].mxu1 %vm714_vm0, %v6247_v50  ;;  %5439 = vmatmul.mubr.msk.bf16.gmra.mrb[12].mxu0 %vm714_vm0, %v6037_v20 }
  0xb3   : > { %5238 = vmatprep.mubr.msk.bf16.mxu1 %vm714_vm0, %v6250_v51  ;;  %5442 = vmatprep.mubr.msk.bf16.mxu0 %vm714_vm0, %v6040_v21 }
  0xba   : > { %5239 = vmatmul.mubr.msk.bf16.gmra.mrb[80].mxu1 %vm714_vm0, %v6261_v52  ;;  %5443 = vmatmul.mubr.msk.bf16.gmra.mrb[16].mxu0 %vm714_vm0, %v6051_v22  ;;  %v6429_v22 = vld [vmem:[%s5970_s7 + $0x1f8] sm:$0xff]  }
  0xbb   : > { %5242 = vmatprep.mubr.msk.bf16.mxu1 %vm714_vm0, %v6264_v53  ;;  %5446 = vmatprep.mubr.msk.bf16.mxu0 %vm714_vm0, %v6054_v23 }
  0xc2   : > { %5243 = vmatmul.mubr.msk.bf16.gmra.mrb[84].mxu1 %vm714_vm0, %v6275_v54  ;;  %5447 = vmatmul.mubr.msk.bf16.gmra.mrb[20].mxu0 %vm714_vm0, %v6065_v24  ;;  %v6434_v24 = vld [vmem:[%s5970_s7 + $0x200] sm:$0xff]  }
  0xc3   : > { %5246 = vmatprep.mubr.msk.bf16.mxu1 %vm714_vm0, %v6278_v55  ;;  %5450 = vmatprep.mubr.msk.bf16.mxu0 %vm714_vm0, %v6068_v25 }
  0xca   : > { %5247 = vmatmul.mubr.msk.bf16.gmra.mrb[88].mxu1 %vm714_vm0, %v6289_v56  ;;  %5451 = vmatmul.mubr.msk.bf16.gmra.mrb[24].mxu0 %vm714_vm0, %v6079_v26 }
  0xcb   : > { %5250 = vmatprep.mubr.msk.bf16.mxu1 %vm714_vm0, %v6292_v57  ;;  %5454 = vmatprep.mubr.msk.bf16.mxu0 %vm714_vm0, %v6082_v27 }
  0xd2   : > { %5251 = vmatmul.mubr.msk.bf16.gmra.mrb[92].mxu1 %vm714_vm0, %v6303_v58  ;;  %5455 = vmatmul.mubr.msk.bf16.gmra.mrb[28].mxu0 %vm714_vm0, %v6093_v28  ;;  %v6451_v28 = vld [vmem:[%s5970_s7 + $0x208] sm:$0xff]  }
  0xd3   : > { %5254 = vmatprep.mubr.msk.bf16.mxu1 %vm714_vm0, %v6306_v59  ;;  %5458 = vmatprep.mubr.msk.bf16.mxu0 %vm714_vm0, %v6096_v29 }
  0xda   : > { %5255 = vmatmul.mubr.msk.bf16.gmra.mrb[96].mxu1 %vm714_vm0, %v6317_v60  ;;  %5459 = vmatmul.mubr.msk.bf16.gmra.mrb[32].mxu0 %vm714_vm0, %v6107_v30 }
  0xdb   : > { %5258 = vmatprep.mubr.msk.bf16.mxu1 %vm714_vm0, %v6320_v61  ;;  %5462 = vmatprep.mubr.msk.bf16.mxu0 %vm714_vm0, %v6110_v31 }
  0xe2   : > { %5259 = vmatmul.mubr.msk.bf16.gmra.mrb[100].mxu1 %vm714_vm0, %v6331_v62  ;;  %5463 = vmatmul.mubr.msk.bf16.gmra.mrb[36].mxu0 %vm714_vm0, %v6121_v32 }
  0xe3   : > { %5262 = vmatprep.mubr.msk.bf16.mxu1 %vm714_vm0, %v6334_v63  ;;  %5466 = vmatprep.mubr.msk.bf16.mxu0 %vm714_vm0, %v6124_v33 }
  0xea   : > { %5263 = vmatmul.mubr.msk.bf16.gmra.mrb[104].mxu1 %vm714_vm0, %v6345_v0  ;;  %5467 = vmatmul.mubr.msk.bf16.gmra.mrb[40].mxu0 %vm714_vm0, %v6135_v34 }
  0xeb   : > { %5266 = vmatprep.mubr.msk.bf16.mxu1 %vm714_vm0, %v6348_v1  ;;  %5470 = vmatprep.mubr.msk.bf16.mxu0 %vm714_vm0, %v6138_v35 }
  0xed   : > { %v6358_v2 = vpop.f32.mrb[0].mxu1 }
  0xee   : > { %v6360_v3 = vpop.f32.mrb[1].mxu1 }
  0xef   : > { %v6365_v5 = vpop.f32.mrb[2].mxu1 }
  0xf0   : > { %v6370_v7 = vpop.f32.mrb[3].mxu1 }
  0xf2   : > { %5267 = vmatmul.mubr.msk.bf16.gmra.mrb[108].mxu1 %vm714_vm0, %v6363_v4  ;;  %5471 = vmatmul.mubr.msk.bf16.gmra.mrb[44].mxu0 %vm714_vm0, %v6149_v36 }
  0xf3   : > { %5270 = vmatprep.mubr.msk.bf16.mxu1 %vm714_vm0, %v6368_v6  ;;  %5474 = vmatprep.mubr.msk.bf16.mxu0 %vm714_vm0, %v6152_v37 }
  0xf5   : > { %v6380_v8 = vpop.f32.mrb[4].mxu1 }
  0xf6   : > { %v6382_v9 = vpop.f32.mrb[5].mxu1 }
  0xf7   : > { %v6387_v11 = vpop.f32.mrb[6].mxu1 }
  0xf8   : > { %v6392_v13 = vpop.f32.mrb[7].mxu1 }
  0xfa   : > { %5271 = vmatmul.mubr.msk.bf16.gmra.mrb[112].mxu1 %vm714_vm0, %v6385_v10  ;;  %5475 = vmatmul.mubr.msk.bf16.gmra.mrb[48].mxu0 %vm714_vm0, %v6163_v38 }
  0xfb   : > { %5274 = vmatprep.mubr.msk.bf16.mxu1 %vm714_vm0, %v6390_v12  ;;  %5478 = vmatprep.mubr.msk.bf16.mxu0 %vm714_vm0, %v6166_v39 }
  0xfd   : > { %v6402_v14 = vpop.f32.mrb[8].mxu1 }
  0xfe   : > { %v6404_v15 = vpop.f32.mrb[9].mxu1 }
  0xff   : > { %v6409_v17 = vpop.f32.mrb[10].mxu1 }
 0x100   : > { %v6414_v19 = vpop.f32.mrb[11].mxu1 }
 0x102   : > { %5275 = vmatmul.mubr.msk.bf16.gmra.mrb[116].mxu1 %vm714_vm0, %v6407_v16  ;;  %5479 = vmatmul.mubr.msk.bf16.gmra.mrb[52].mxu0 %vm714_vm0, %v6177_v40 }
 0x103   : > { %5278 = vmatprep.mubr.msk.bf16.mxu1 %vm714_vm0, %v6412_v18  ;;  %5482 = vmatprep.mubr.msk.bf16.mxu0 %vm714_vm0, %v6180_v41 }
 0x105   : > { %v6424_v20 = vpop.f32.mrb[12].mxu1 }
 0x106   : > { %v6426_v21 = vpop.f32.mrb[13].mxu1 }
 0x107   : > { %v6431_v23 = vpop.f32.mrb[14].mxu1 }
 0x108   : > { %v6436_v25 = vpop.f32.mrb[15].mxu1 }
 0x10a   : > { %5279 = vmatmul.mubr.msk.bf16.gmra.mrb[120].mxu1 %vm714_vm0, %v6429_v22  ;;  %5483 = vmatmul.mubr.msk.bf16.gmra.mrb[56].mxu0 %vm714_vm0, %v6191_v42 }
 0x10b   : > { %5282 = vmatprep.mubr.msk.bf16.mxu1 %vm714_vm0, %v6434_v24  ;;  %5486 = vmatprep.mubr.msk.bf16.mxu0 %vm714_vm0, %v6194_v43 }
 0x10d   : > { %v6446_v26 = vpop.f32.mrb[16].mxu1 }
 0x10e   : > { %v6448_v27 = vpop.f32.mrb[17].mxu1 }
 0x10f   : > { %v6453_v29 = vpop.f32.mrb[18].mxu1 }
 0x110   : > { %v6455_v30 = vpop.f32.mrb[19].mxu1 }
 0x112   : > { %5283 = vmatmul.mubr.msk.bf16.gmra.mrb[124].mxu1 %vm714_vm0, %v6451_v28  ;;  %5487 = vmatmul.mubr.msk.bf16.gmra.mrb[60].mxu0 %vm714_vm0, %v6205_v44 }
 0x113   : > { %5356 = vmatprep.mubr.msk.bf16.mxu1 %vm714_vm0, %v6180_v41  ;;  %5490 = vmatprep.mubr.msk.bf16.mxu0 %vm714_vm0, %v6208_v45 }
 0x115   : > { %v6465_v31 = vpop.f32.mrb[20].mxu1 }
 0x116   : > { %v6467_v32 = vpop.f32.mrb[21].mxu1 }
 0x117   : > { %v6469_v33 = vpop.f32.mrb[22].mxu1 }
 0x118   : > { %v6471_v34 = vpop.f32.mrb[23].mxu1 }
 0x11a   : > { %5357 = vmatmul.mubr.msk.bf16.vlgmr.msra.gmra.mrb[64].mxu1 %vm714_vm0, %v6191_v42  ;;  %5491 = vmatmul.mubr.msk.bf16.gmra.mrb[64].mxu0 %vm714_vm0, %v6219_v46 }
 0x11b   : > { %5360 = vmatprep.mubr.msk.bf16.mxu1 %vm714_vm0, %v6194_v43  ;;  %5494 = vmatprep.mubr.msk.bf16.mxu0 %vm714_vm0, %v6222_v47 }
 0x11d   : > { %v6481_v35 = vpop.f32.mrb[24].mxu1 }
 0x11e   : > { %v6483_v36 = vpop.f32.mrb[25].mxu1 }
 0x11f   : > { %v6485_v37 = vpop.f32.mrb[26].mxu1 }
 0x120   : > { %v6487_v38 = vpop.f32.mrb[27].mxu1 }
 0x122   : > { %5361 = vmatmul.mubr.msk.bf16.gmra.mrb[68].mxu1 %vm714_vm0, %v6205_v44  ;;  %5495 = vmatmul.mubr.msk.bf16.gmra.mrb[68].mxu0 %vm714_vm0, %v6233_v48 }
 0x123   : > { %5364 = vmatprep.mubr.msk.bf16.mxu1 %vm714_vm0, %v6208_v45  ;;  %5498 = vmatprep.mubr.msk.bf16.mxu0 %vm714_vm0, %v6236_v49 }
 0x125   : > { %v6497_v39 = vpop.f32.mrb[28].mxu1 }
 0x126   : > { %v6499_v40 = vpop.f32.mrb[29].mxu1 }
 0x127   : > { %v6501_v41 = vpop.f32.mrb[30].mxu1 }
 0x128   : > { %7230 = vst [vmem:[#allocation2_spill] sm:$0xff] %v6501_v41  ;;  %v6503_v42 = vpop.f32.mrb[31].mxu1 }
 0x12a   : > { %5365 = vmatmul.mubr.msk.bf16.gmra.mrb[72].mxu1 %vm714_vm0, %v6219_v46  ;;  %5499 = vmatmul.mubr.msk.bf16.gmra.mrb[72].mxu0 %vm714_vm0, %v6247_v50 }
 0x12b   : > { %5368 = vmatprep.mubr.msk.bf16.mxu1 %vm714_vm0, %v6222_v47  ;;  %5502 = vmatprep.mubr.msk.bf16.mxu0 %vm714_vm0, %v6250_v51 }
 0x12d   : > { %v6513_v43 = vpop.f32.mrb[32].mxu1 }
 0x12e   : > { %v6515_v44 = vpop.f32.mrb[33].mxu1 }
 0x12f   : > { %7231 = vst [vmem:[#allocation3_spill] sm:$0xff] %v6515_v44  ;;  %v6517_v45 = vpop.f32.mrb[34].mxu1 }
 0x130   : > { %7232 = vst [vmem:[#allocation4_spill] sm:$0xff] %v6517_v45  ;;  %v6519_v41 = vpop.f32.mrb[35].mxu1 }
 0x132   : > { %5369 = vmatmul.mubr.msk.bf16.gmra.mrb[76].mxu1 %vm714_vm0, %v6233_v48  ;;  %5503 = vmatmul.mubr.msk.bf16.gmra.mrb[76].mxu0 %vm714_vm0, %v6261_v52 }
 0x133   : > { %5372 = vmatprep.mubr.msk.bf16.mxu1 %vm714_vm0, %v6236_v49  ;;  %5506 = vmatprep.mubr.msk.bf16.mxu0 %vm714_vm0, %v6264_v53 }
 0x135   : > { %v6529_v46 = vpop.f32.mrb[36].mxu1 }
 0x136   : > { %v6531_v47 = vpop.f32.mrb[37].mxu1 }
 0x137   : > { %7233 = vst [vmem:[#allocation5_spill] sm:$0xff] %v6531_v47  ;;  %v6533_v44 = vpop.f32.mrb[38].mxu1 }
 0x138   : > { %7234 = vst [vmem:[#allocation6_spill] sm:$0xff] %v6533_v44  ;;  %v6535_v45 = vpop.f32.mrb[39].mxu1 }
 0x13a   : > { %5373 = vmatmul.mubr.msk.bf16.gmra.mrb[80].mxu1 %vm714_vm0, %v6247_v50  ;;  %5507 = vmatmul.mubr.msk.bf16.gmra.mrb[80].mxu0 %vm714_vm0, %v6275_v54 }
 0x13b   : > { %5376 = vmatprep.mubr.msk.bf16.mxu1 %vm714_vm0, %v6250_v51  ;;  %5510 = vmatprep.mubr.msk.bf16.mxu0 %vm714_vm0, %v6278_v55 }
 0x13d   : > { %v6545_v48 = vpop.f32.mrb[40].mxu1 }
 0x13e   : > { %v6547_v49 = vpop.f32.mrb[41].mxu1 }
 0x13f   : > { %7235 = vst [vmem:[#allocation7_spill] sm:$0xff] %v6547_v49  ;;  %v6549_v47 = vpop.f32.mrb[42].mxu1 }
 0x140   : > { %7236 = vst [vmem:[#allocation8_spill] sm:$0xff] %v6549_v47  ;;  %v6551_v44 = vpop.f32.mrb[43].mxu1 }
 0x142   : > { %5377 = vmatmul.mubr.msk.bf16.gmra.mrb[84].mxu1 %vm714_vm0, %v6261_v52  ;;  %5511 = vmatmul.mubr.msk.bf16.gmra.mrb[84].mxu0 %vm714_vm0, %v6289_v56 }
 0x143   : > { %5380 = vmatprep.mubr.msk.bf16.mxu1 %vm714_vm0, %v6264_v53  ;;  %5514 = vmatprep.mubr.msk.bf16.mxu0 %vm714_vm0, %v6292_v57 }
 0x145   : > { %v6561_v50 = vpop.f32.mrb[44].mxu1 }
 0x146   : > { %7237 = vst [vmem:[#allocation9_spill] sm:$0xff] %v6561_v50  ;;  %v6563_v51 = vpop.f32.mrb[45].mxu1 }
 0x147   : > { %7238 = vst [vmem:[#allocation10_spill] sm:$0xff] %v6563_v51  ;;  %v6565_v49 = vpop.f32.mrb[46].mxu1 }
 0x148   : > { %7239 = vst [vmem:[#allocation11_spill] sm:$0xff] %v6565_v49  ;;  %v6567_v47 = vpop.f32.mrb[47].mxu1 }
 0x149   : > { %7240 = vst [vmem:[#allocation12_spill] sm:$0xff] %v6567_v47 }
 0x14a   : > { %5381 = vmatmul.mubr.msk.bf16.gmra.mrb[88].mxu1 %vm714_vm0, %v6275_v54  ;;  %5515 = vmatmul.mubr.msk.bf16.gmra.mrb[88].mxu0 %vm714_vm0, %v6303_v58 }
 0x14b   : > { %5384 = vmatprep.mubr.msk.bf16.mxu1 %vm714_vm0, %v6278_v55  ;;  %5518 = vmatprep.mubr.msk.bf16.mxu0 %vm714_vm0, %v6306_v59 }
 0x14d   : > { %v6577_v52 = vpop.f32.mrb[48].mxu1 }
 0x14e   : > { %7241 = vst [vmem:[#allocation13_spill] sm:$0xff] %v6577_v52  ;;  %v6579_v53 = vpop.f32.mrb[49].mxu1 }
 0x14f   : > { %7242 = vst [vmem:[#allocation14_spill] sm:$0xff] %v6579_v53  ;;  %v6581_v49 = vpop.f32.mrb[50].mxu1 }
 0x150   : > { %7243 = vst [vmem:[#allocation15_spill] sm:$0xff] %v6581_v49  ;;  %v6583_v47 = vpop.f32.mrb[51].mxu1 }
 0x151   : > { %7244 = vst [vmem:[#allocation16_spill] sm:$0xff] %v6583_v47 }
 0x152   : > { %5385 = vmatmul.mubr.msk.bf16.gmra.mrb[92].mxu1 %vm714_vm0, %v6289_v56  ;;  %5519 = vmatmul.mubr.msk.bf16.gmra.mrb[92].mxu0 %vm714_vm0, %v6317_v60 }
 0x153   : > { %5388 = vmatprep.mubr.msk.bf16.mxu1 %vm714_vm0, %v6292_v57  ;;  %5522 = vmatprep.mubr.msk.bf16.mxu0 %vm714_vm0, %v6320_v61 }
 0x155   : > { %v6593_v54 = vpop.f32.mrb[52].mxu1 }
 0x156   : > { %7245 = vst [vmem:[#allocation17_spill] sm:$0xff] %v6593_v54  ;;  %v6595_v55 = vpop.f32.mrb[53].mxu1 }
 0x157   : > { %7246 = vst [vmem:[#allocation18_spill] sm:$0xff] %v6595_v55  ;;  %v6597_v53 = vpop.f32.mrb[54].mxu1 }
 0x158   : > { %7247 = vst [vmem:[#allocation19_spill] sm:$0xff] %v6597_v53  ;;  %v6599_v49 = vpop.f32.mrb[55].mxu1 }
 0x159   : > { %7248 = vst [vmem:[#allocation20_spill] sm:$0xff] %v6599_v49 }
 0x15a   : > { %5389 = vmatmul.mubr.msk.bf16.gmra.mrb[96].mxu1 %vm714_vm0, %v6303_v58  ;;  %5523 = vmatmul.mubr.msk.bf16.gmra.mrb[96].mxu0 %vm714_vm0, %v6331_v62 }
 0x15b   : > { %5392 = vmatprep.mubr.msk.bf16.mxu1 %vm714_vm0, %v6306_v59  ;;  %5526 = vmatprep.mubr.msk.bf16.mxu0 %vm714_vm0, %v6334_v63 }
 0x15d   : > { %v6610_v56 = vpop.f32.mrb[56].mxu1 }
 0x15e   : > { %7249 = vst [vmem:[#allocation21_spill] sm:$0xff] %v6610_v56  ;;  %v6612_v57 = vpop.f32.mrb[57].mxu1 }
 0x15f   : > { %7250 = vst [vmem:[#allocation22_spill] sm:$0xff] %v6612_v57  ;;  %v6614_v53 = vpop.f32.mrb[58].mxu1 }
 0x160   : > { %7251 = vst [vmem:[#allocation23_spill] sm:$0xff] %v6614_v53  ;;  %v6616_v49 = vpop.f32.mrb[59].mxu1 }
 0x161   : > { %7252 = vst [vmem:[#allocation24_spill] sm:$0xff] %v6616_v49 }
 0x162   : > { %5393 = vmatmul.mubr.msk.bf16.gmra.mrb[100].mxu1 %vm714_vm0, %v6317_v60  ;;  %5527 = vmatmul.mubr.msk.bf16.gmra.mrb[100].mxu0 %vm714_vm0, %v6345_v0 }
 0x163   : > { %5396 = vmatprep.mubr.msk.bf16.mxu1 %vm714_vm0, %v6320_v61  ;;  %5530 = vmatprep.mubr.msk.bf16.mxu0 %vm714_vm0, %v6348_v1  ;;  %v4888_v61 = vld [vmem:[%s6642_s19 + $0x8] sm:$0xff]  }
 0x164   : > { %v4639_v47 = vunpack.c.h.bf16 %v4888_v61 }
 0x165   : > { %v6628_v58 = vpop.f32.mrb[60].mxu1 }
 0x166   : > { %7253 = vst [vmem:[#allocation25_spill] sm:$0xff] %v6628_v58  ;;  %v6630_v59 = vpop.f32.mrb[61].mxu1 }
 0x167   : > { %7254 = vst [vmem:[#allocation26_spill] sm:$0xff] %v6630_v59  ;;  %v6633_v49 = vpop.f32.mrb[62].mxu1  ;;  %v6657_v59 = vld [vmem:[%s7227_s2] ss:$0 sm:$0xff] }
 0x168   : > { %7255 = vst [vmem:[#allocation27_spill] sm:$0xff] %v6633_v49  ;;  %v6635_v60 = vpop.f32.mrb[63].mxu1 }
 0x169   : > { %7256 = vst [vmem:[#allocation28_spill] sm:$0xff] %v6635_v60  ;;  %v4633_v60 = vld [vmem:[%s6642_s19] sm:$0xff]  }
 0x16a   : > { %5397 = vmatmul.mubr.msk.bf16.gmra.mrb[104].mxu1 %vm714_vm0, %v6331_v62  ;;  %5531 = vmatmul.mubr.msk.bf16.gmra.mrb[104].mxu0 %vm714_vm0, %v6363_v4  ;;  %v4638_v62 = vunpack.c.l.bf16 %v4888_v61  ;;  %v4634_v56 = vunpack.c.l.bf16 %v4633_v60 }
 0x16b   : > { %5400 = vmatprep.mubr.msk.bf16.mxu1 %vm714_vm0, %v6334_v63  ;;  %5534 = vmatprep.mubr.msk.bf16.mxu0 %vm714_vm0, %v6368_v6 }
 0x16d   : > { %v5428_v49 = vpop.f32.mrb[0].mxu0 }
 0x16e   : > { %v5560_v58 = vadd.f32 %v5428_v49, %v6358_v2  ;;  %v2099_v53 = vpop.f32.mrb[1].mxu0  ;;  %v4635_v2 = vunpack.c.h.bf16 %v4633_v60 }
 0x16f   : > { %v5561_v57 = vadd.f32 %v2099_v53, %v6360_v3  ;;  %v5429_v63 = vpop.f32.mrb[2].mxu0 }
 0x170   : > { %v2747_v55 = vadd.f32 %v5560_v58, %v6657_v59  ;;  %v5562_v54 = vadd.f32 %v5429_v63, %v6365_v5  ;;  %v2102_v52 = vpop.f32.mrb[3].mxu0  ;;  %v4890_v58 = vld [vmem:[%s6642_s19 + $0x18] sm:$0xff]  }
 0x171   : > { %v2745_v51 = vadd.f32 %v5561_v57, %v6657_v59  ;;  %v5563_v50 = vadd.f32 %v2102_v52, %v6370_v7  ;;  %v4889_v57 = vld [vmem:[%s6642_s19 + $0x10] sm:$0xff]  }
 0x172   : > { %5401 = vmatmul.mubr.msk.bf16.gmra.mrb[108].mxu1 %vm714_vm0, %v6345_v0  ;;  %v3131_v3 = vadd.f32 %v4638_v62, %v2747_v55  ;;  %v2748_v49 = vadd.f32 %v5562_v54, %v6657_v59  ;;  %5535 = vmatmul.mubr.msk.bf16.gmra.mrb[108].mxu0 %vm714_vm0, %v6385_v10  ;;  %v4642_v63 = vunpack.c.l.bf16 %v4889_v57 }
 0x173   : > { %5404 = vmatprep.mubr.msk.bf16.mxu1 %vm714_vm0, %v6348_v1  ;;  %v3129_v5 = vadd.f32 %v4634_v56, %v2745_v51  ;;  %v2746_v53 = vadd.f32 %v5563_v50, %v6657_v59  ;;  %5538 = vmatprep.mubr.msk.bf16.mxu0 %vm714_vm0, %v6390_v12  ;;  %v4646_v56 = vunpack.c.l.bf16 %v4890_v58 }
 0x174   : > { %v3259_v7 = vmax.f32 %v3131_v3, 0.0  ;;  %v3132_v52 = vadd.f32 %v4639_v47, %v2748_v49 }
 0x175   : > { %v3257_v0 = vmax.f32 %v3129_v5, 0.0  ;;  %v3130_v1 = vadd.f32 %v4635_v2, %v2746_v53  ;;  %v5432_v51 = vpop.f32.mrb[4].mxu0  ;;  %v4647_v53 = vunpack.c.h.bf16 %v4890_v58 }
 0x176   : > { %v4506_v54 = vpack.c.bf16 %v3259_v7, %v3259_v7  ;;  %v3260_v50 = vmax.f32 %v3132_v52, 0.0  ;;  %v5564_v55 = vadd.f32 %v5432_v51, %v6380_v8  ;;  %v2115_v60 = vpop.f32.mrb[5].mxu0 }
 0x177   : > { %v4504_v47 = vpack.c.bf16 %v3257_v0, %v3257_v0  ;;  %v3258_v61 = vmax.f32 %v3130_v1, 0.0  ;;  %v5565_v62 = vadd.f32 %v2115_v60, %v6382_v9  ;;  %v5433_v3 = vpop.f32.mrb[6].mxu0  ;;  %v4643_v0 = vunpack.c.h.bf16 %v4889_v57  ;;  %v4892_v57 = vld [vmem:[%s6642_s19 + $0x28] sm:$0xff]  }
 0x178   : > { %3900 = vst.msk [vmem:[%s6682_s24 + $0x8] sm:$0xf] %vm3897_vm1, %v4506_v54  ;;  %v4507_v49 = vpack.c.bf16 %v3260_v50, %v3260_v50  ;;  %v2751_v2 = vadd.f32 %v5564_v55, %v6657_v59  ;;  %v5566_v5 = vadd.f32 %v5433_v3, %v6387_v11  ;;  %v2118_v8 = vpop.f32.mrb[7].mxu0  ;;  %v4891_v54 = vld [vmem:[%s6642_s19 + $0x20] sm:$0xff]  }
 0x179   : > { %3898 = vst.msk [vmem:[%s6682_s24] sm:$0xf] %vm3897_vm1, %v4504_v47  ;;  %v4505_v7 = vpack.c.bf16 %v3258_v61, %v3258_v61  ;;  %v2749_v52 = vadd.f32 %v5565_v62, %v6657_v59  ;;  %v5567_v9 = vadd.f32 %v2118_v8, %v6392_v13  ;;  %v4654_v61 = vunpack.c.l.bf16 %v4892_v57 }
 0x17a   : > { %5405 = vmatmul.mubr.msk.bf16.gmra.mrb[112].mxu1 %vm714_vm0, %v6363_v4  ;;  %3901 = vst.msk [vmem:[%s6682_s24 + $0xc] sm:$0xf] %vm3897_vm1, %v4507_v49  ;;  %v3135_v1 = vadd.f32 %v4646_v56, %v2751_v2  ;;  %v2752_v11 = vadd.f32 %v5566_v5, %v6657_v59  ;;  %5539 = vmatmul.mubr.msk.bf16.gmra.mrb[112].mxu0 %vm714_vm0, %v6407_v16  ;;  %v4650_v2 = vunpack.c.l.bf16 %v4891_v54 }
 0x17b   : > { %5408 = vmatprep.mubr.msk.bf16.mxu1 %vm714_vm0, %v6368_v6  ;;  %3899 = vst.msk [vmem:[%s6682_s24 + $0x4] sm:$0xf] %vm3897_vm1, %v4505_v7  ;;  %v3133_v58 = vadd.f32 %v4642_v63, %v2749_v52  ;;  %v2750_v13 = vadd.f32 %v5567_v9, %v6657_v59  ;;  %5542 = vmatprep.mubr.msk.bf16.mxu0 %vm714_vm0, %v6412_v18  ;;  %v4655_v52 = vunpack.c.h.bf16 %v4892_v57 }
 0x17c   : > { %v3263_v4 = vmax.f32 %v3135_v1, 0.0  ;;  %v3136_v51 = vadd.f32 %v4647_v53, %v2752_v11  ;;  %v4651_v1 = vunpack.c.h.bf16 %v4891_v54 }
 0x17d   : > { %v3261_v50 = vmax.f32 %v3133_v58, 0.0  ;;  %v3134_v55 = vadd.f32 %v4643_v0, %v2750_v13  ;;  %v5436_v56 = vpop.f32.mrb[8].mxu0  ;;  %v4894_v13 = vld [vmem:[%s6642_s19 + $0x38] sm:$0xff]  }
 0x17e   : > { %v4510_v60 = vpack.c.bf16 %v3263_v4, %v3263_v4  ;;  %v3264_v47 = vmax.f32 %v3136_v51, 0.0  ;;  %v5568_v6 = vadd.f32 %v5436_v56, %v6402_v14  ;;  %v2131_v62 = vpop.f32.mrb[9].mxu0  ;;  %v4893_v4 = vld [vmem:[%s6642_s19 + $0x30] sm:$0xff]  }
 0x17f   : > { %v4508_v63 = vpack.c.bf16 %v3261_v50, %v3261_v50  ;;  %v3262_v3 = vmax.f32 %v3134_v55, 0.0  ;;  %v5569_v49 = vadd.f32 %v2131_v62, %v6404_v15  ;;  %v5437_v5 = vpop.f32.mrb[10].mxu0 }
 0x180   : > { %3904 = vst.msk [vmem:[%s6682_s24 + $0x18] sm:$0xf] %vm3897_vm1, %v4510_v60  ;;  %v4511_v53 = vpack.c.bf16 %v3264_v47, %v3264_v47  ;;  %v2755_v8 = vadd.f32 %v5568_v6, %v6657_v59  ;;  %v5570_v7 = vadd.f32 %v5437_v5, %v6409_v17  ;;  %v2134_v14 = vpop.f32.mrb[11].mxu0  ;;  %v4662_v60 = vunpack.c.l.bf16 %v4894_v13 }
 0x181   : > { %3902 = vst.msk [vmem:[%s6682_s24 + $0x10] sm:$0xf] %vm3897_vm1, %v4508_v63  ;;  %v4509_v9 = vpack.c.bf16 %v3262_v3, %v3262_v3  ;;  %v2753_v0 = vadd.f32 %v5569_v49, %v6657_v59  ;;  %v5571_v15 = vadd.f32 %v2134_v14, %v6414_v19  ;;  %v5900_v3 = vld [vmem:[%s5970_s7 + $0x210] sm:$0xff]  }
 0x182   : > { %5409 = vmatmul.mubr.msk.bf16.gmra.mrb[116].mxu1 %vm714_vm0, %v6385_v10  ;;  %3905 = vst.msk [vmem:[%s6682_s24 + $0x1c] sm:$0xf] %vm3897_vm1, %v4511_v53  ;;  %v3139_v11 = vadd.f32 %v4654_v61, %v2755_v8  ;;  %v2756_v17 = vadd.f32 %v5570_v7, %v6657_v59  ;;  %5543 = vmatmul.mubr.msk.bf16.gmra.mrb[116].mxu0 %vm714_vm0, %v6429_v22  ;;  %v4663_v53 = vunpack.c.h.bf16 %v4894_v13 }
 0x183   : > { %5412 = vmatprep.mubr.msk.bf16.mxu1 %vm714_vm0, %v6390_v12  ;;  %3903 = vst.msk [vmem:[%s6682_s24 + $0x14] sm:$0xf] %vm3897_vm1, %v4509_v9  ;;  %v3137_v58 = vadd.f32 %v4650_v2, %v2753_v0  ;;  %v2754_v19 = vadd.f32 %v5571_v15, %v6657_v59  ;;  %5546 = vmatprep.mubr.msk.bf16.mxu0 %vm714_vm0, %v6434_v24  ;;  %v4658_v24 = vunpack.c.l.bf16 %v4893_v4  ;;  %v4896_v0 = vld [vmem:[%s6642_s19 + $0x48] sm:$0xff]  }
 0x184   : > { %v3267_v10 = vmax.f32 %v3139_v11, 0.0  ;;  %v3140_v57 = vadd.f32 %v4655_v52, %v2756_v17  ;;  %v4659_v52 = vunpack.c.h.bf16 %v4893_v4  ;;  %v4670_v13 = vunpack.c.l.bf16 %v4896_v0 }
 0x185   : > { %v3265_v51 = vmax.f32 %v3137_v58, 0.0  ;;  %v3138_v54 = vadd.f32 %v4651_v1, %v2754_v19  ;;  %v5440_v50 = vpop.f32.mrb[12].mxu0  ;;  %v4895_v1 = vld [vmem:[%s6642_s19 + $0x40] sm:$0xff]  }
 0x186   : > { %v4514_v55 = vpack.c.bf16 %v3267_v10, %v3267_v10  ;;  %v3268_v56 = vmax.f32 %v3140_v57, 0.0  ;;  %v5572_v12 = vadd.f32 %v5440_v50, %v6424_v20  ;;  %v2147_v47 = vpop.f32.mrb[13].mxu0  ;;  %v5901_v57 = vld [vmem:[%s5970_s7 + $0x218] sm:$0xff]   ;;  %v4666_v50 = vunpack.c.l.bf16 %v4895_v1 }
 0x187   : > { %v4512_v6 = vpack.c.bf16 %v3265_v51, %v3265_v51  ;;  %v3266_v61 = vmax.f32 %v3138_v54, 0.0  ;;  %v5573_v62 = vadd.f32 %v2147_v47, %v6426_v21  ;;  %v5441_v63 = vpop.f32.mrb[14].mxu0 }
 0x188   : > { %3908 = vst.msk [vmem:[%s6682_s24 + $0x28] sm:$0xf] %vm3897_vm1, %v4514_v55  ;;  %v4515_v49 = vpack.c.bf16 %v3268_v56, %v3268_v56  ;;  %v2759_v2 = vadd.f32 %v5572_v12, %v6657_v59  ;;  %v5574_v5 = vadd.f32 %v5441_v63, %v6431_v23  ;;  %v2150_v20 = vpop.f32.mrb[15].mxu0 }
 0x189   : > { %3906 = vst.msk [vmem:[%s6682_s24 + $0x20] sm:$0xf] %vm3897_vm1, %v4512_v6  ;;  %v4513_v8 = vpack.c.bf16 %v3266_v61, %v3266_v61  ;;  %v2757_v21 = vadd.f32 %v5573_v62, %v6657_v59  ;;  %v5575_v7 = vadd.f32 %v2150_v20, %v6436_v25  ;;  %v4667_v62 = vunpack.c.h.bf16 %v4895_v1 }
 0x18a   : > { %5413 = vmatmul.mubr.msk.bf16.gmra.mrb[120].mxu1 %vm714_vm0, %v6407_v16  ;;  %3909 = vst.msk [vmem:[%s6682_s24 + $0x2c] sm:$0xf] %vm3897_vm1, %v4515_v49  ;;  %v3143_v14 = vadd.f32 %v4662_v60, %v2759_v2  ;;  %v2760_v23 = vadd.f32 %v5574_v5, %v6657_v59  ;;  %5547 = vmatmul.mubr.msk.bf16.gmra.mrb[120].mxu0 %vm714_vm0, %v6451_v28  ;;  %v4898_v49 = vld [vmem:[%s6642_s19 + $0x58] sm:$0xff]   ;;  %v4897_v5 = vld [vmem:[%s6642_s19 + $0x50] sm:$0xff]  }
 0x18b   : > { %5416 = vmatprep.mubr.msk.bf16.mxu1 %vm714_vm0, %v6412_v18  ;;  %3907 = vst.msk [vmem:[%s6682_s24 + $0x24] sm:$0xf] %vm3897_vm1, %v4513_v8  ;;  %v3141_v9 = vadd.f32 %v4658_v24, %v2757_v21  ;;  %v2758_v25 = vadd.f32 %v5575_v7, %v6657_v59  ;;  %5550 = vmatprep.mubr.msk.bf16.mxu0 %vm714_vm0, %v5900_v3 }
 0x18c   : > { %v3271_v16 = vmax.f32 %v3143_v14, 0.0  ;;  %v3144_v15 = vadd.f32 %v4663_v53, %v2760_v23 }
 0x18d   : > { %v3269_v11 = vmax.f32 %v3141_v9, 0.0  ;;  %v3142_v17 = vadd.f32 %v4659_v52, %v2758_v25  ;;  %v5444_v58 = vpop.f32.mrb[16].mxu0  ;;  %v4678_v52 = vunpack.c.l.bf16 %v4898_v49 }
 0x18e   : > { %v4518_v28 = vpack.c.bf16 %v3271_v16, %v3271_v16  ;;  %v3272_v19 = vmax.f32 %v3144_v15, 0.0  ;;  %v5576_v18 = vadd.f32 %v5444_v58, %v6446_v26  ;;  %v2163_v10 = vpop.f32.mrb[17].mxu0  ;;  %v4671_v26 = vunpack.c.h.bf16 %v4896_v0 }
 0x18f   : > { %v4516_v4 = vpack.c.bf16 %v3269_v11, %v3269_v11  ;;  %v3270_v51 = vmax.f32 %v3142_v17, 0.0  ;;  %v5577_v54 = vadd.f32 %v2163_v10, %v6448_v27  ;;  %v5445_v55 = vpop.f32.mrb[18].mxu0  ;;  %v4674_v0 = vunpack.c.l.bf16 %v4897_v5 }
 0x190   : > { %3912 = vst.msk [vmem:[%s6682_s24 + $0x38] sm:$0xf] %vm3897_vm1, %v4518_v28  ;;  %v4519_v56 = vpack.c.bf16 %v3272_v19, %v3272_v19  ;;  %v2763_v12 = vadd.f32 %v5576_v18, %v6657_v59  ;;  %v5578_v60 = vadd.f32 %v5445_v55, %v6453_v29  ;;  %v2166_v47 = vpop.f32.mrb[19].mxu0  ;;  %v4679_v17 = vunpack.c.h.bf16 %v4898_v49 }
 0x191   : > { %3910 = vst.msk [vmem:[%s6682_s24 + $0x30] sm:$0xf] %vm3897_vm1, %v4516_v4  ;;  %v4517_v6 = vpack.c.bf16 %v3270_v51, %v3270_v51  ;;  %v2761_v61 = vadd.f32 %v5577_v54, %v6657_v59  ;;  %v5579_v27 = vadd.f32 %v2166_v47, %v6455_v30  ;;  %v4675_v19 = vunpack.c.h.bf16 %v4897_v5  ;;  %v4899_v54 = vld [vmem:[%s6642_s19 + $0x60] sm:$0xff]  }
 0x192   : > { %5417 = vmatmul.mubr.msk.bf16.gmra.mrb[124].mxu1 %vm714_vm0, %v6429_v22  ;;  %3913 = vst.msk [vmem:[%s6682_s24 + $0x3c] sm:$0xf] %vm3897_vm1, %v4519_v56  ;;  %v3147_v24 = vadd.f32 %v4670_v13, %v2763_v12  ;;  %v2764_v29 = vadd.f32 %v5578_v60, %v6657_v59  ;;  %5551 = vmatmul.mubr.msk.bf16.gmra.mrb[124].mxu0 %vm714_vm0, %v5901_v57  ;;  %v4900_v57 = vld [vmem:[%s6642_s19 + $0x68] sm:$0xff]   ;;  %v4683_v5 = vunpack.c.h.bf16 %v4899_v54 }
 0x193   : > { %3911 = vst.msk [vmem:[%s6682_s24 + $0x34] sm:$0xf] %vm3897_vm1, %v4517_v6  ;;  %v3145_v63 = vadd.f32 %v4666_v50, %v2761_v61  ;;  %v2762_v3 = vadd.f32 %v5579_v27, %v6657_v59  ;;  %v4687_v49 = vunpack.c.h.bf16 %v4900_v57 }
 0x194   : > { %v3275_v2 = vmax.f32 %v3147_v24, 0.0  ;;  %v3148_v30 = vadd.f32 %v4671_v26, %v2764_v29  ;;  %v4686_v26 = vunpack.c.l.bf16 %v4900_v57 }
 0x195   : > { %v3273_v53 = vmax.f32 %v3145_v63, 0.0  ;;  %v3146_v20 = vadd.f32 %v4667_v62, %v2762_v3  ;;  %v5448_v22 = vpop.f32.mrb[20].mxu0  ;;  %v4682_v62 = vunpack.c.l.bf16 %v4899_v54 }
 0x196   : > { %v4522_v8 = vpack.c.bf16 %v3275_v2, %v3275_v2  ;;  %v3276_v21 = vmax.f32 %v3148_v30, 0.0  ;;  %v5580_v7 = vadd.f32 %v5448_v22, %v6465_v31  ;;  %v2179_v14 = vpop.f32.mrb[21].mxu0 }
 0x197   : > { %v4520_v23 = vpack.c.bf16 %v3273_v53, %v3273_v53  ;;  %v3274_v9 = vmax.f32 %v3146_v20, 0.0  ;;  %v5581_v25 = vadd.f32 %v2179_v14, %v6467_v32  ;;  %v5449_v16 = vpop.f32.mrb[22].mxu0 }
 0x198   : > { %3916 = vst.msk [vmem:[%s6682_s24 + $0x48] sm:$0xf] %vm3897_vm1, %v4522_v8  ;;  %v4523_v15 = vpack.c.bf16 %v3276_v21, %v3276_v21  ;;  %v2767_v1 = vadd.f32 %v5580_v7, %v6657_v59  ;;  %v5582_v11 = vadd.f32 %v5449_v16, %v6469_v33  ;;  %v2182_v31 = vpop.f32.mrb[23].mxu0  ;;  %v4902_v8 = vld [vmem:[%s6642_s19 + $0x78] sm:$0xff]  }
 0x199   : > { %3914 = vst.msk [vmem:[%s6682_s24 + $0x40] sm:$0xf] %vm3897_vm1, %v4520_v23  ;;  %v4521_v58 = vpack.c.bf16 %v3274_v9, %v3274_v9  ;;  %v2765_v28 = vadd.f32 %v5581_v25, %v6657_v59  ;;  %v5583_v32 = vadd.f32 %v2182_v31, %v6471_v34  ;;  %v4694_v16 = vunpack.c.l.bf16 %v4902_v8 }
 0x19a   : > { %3917 = vst.msk [vmem:[%s6682_s24 + $0x4c] sm:$0xf] %vm3897_vm1, %v4523_v15  ;;  %v3151_v18 = vadd.f32 %v4678_v52, %v2767_v1  ;;  %v2768_v13 = vadd.f32 %v5582_v11, %v6657_v59  ;;  %v4901_v52 = vld [vmem:[%s6642_s19 + $0x70] sm:$0xff]  }
 0x19b   : > { %3915 = vst.msk [vmem:[%s6682_s24 + $0x44] sm:$0xf] %vm3897_vm1, %v4521_v58  ;;  %v3149_v10 = vadd.f32 %v4674_v0, %v2765_v28  ;;  %v2766_v33 = vadd.f32 %v5583_v32, %v6657_v59  ;;  %v4690_v31 = vunpack.c.l.bf16 %v4901_v52  ;;  %v4691_v57 = vunpack.c.h.bf16 %v4901_v52 }
 0x19c   : > { %v3279_v4 = vmax.f32 %v3151_v18, 0.0  ;;  %v3152_v51 = vadd.f32 %v4679_v17, %v2768_v13  ;;  %v4695_v13 = vunpack.c.h.bf16 %v4902_v8 }
 0x19d   : > { %v3277_v50 = vmax.f32 %v3149_v10, 0.0  ;;  %v3150_v55 = vadd.f32 %v4675_v19, %v2766_v33  ;;  %v5452_v56 = vpop.f32.mrb[24].mxu0  ;;  %v7257_v19 = vld [vmem:[#allocation2_spill] sm:$0xff] }
 0x19e   : > { %v4526_v34 = vpack.c.bf16 %v3279_v4, %v3279_v4  ;;  %v3280_v12 = vmax.f32 %v3152_v51, 0.0  ;;  %v5584_v60 = vadd.f32 %v5452_v56, %v6481_v35  ;;  %v2195_v47 = vpop.f32.mrb[25].mxu0 }
 0x19f   : > { %v4524_v6 = vpack.c.bf16 %v3277_v50, %v3277_v50  ;;  %v3278_v61 = vmax.f32 %v3150_v55, 0.0  ;;  %v5585_v27 = vadd.f32 %v2195_v47, %v6483_v36  ;;  %v5453_v24 = vpop.f32.mrb[26].mxu0  ;;  %v4904_v55 = vld [vmem:[%s6642_s19 + $0x88] sm:$0xff]  }
 0x1a0   : > { %3920 = vst.msk [vmem:[%s6682_s24 + $0x58] sm:$0xf] %vm3897_vm1, %v4526_v34  ;;  %v4527_v29 = vpack.c.bf16 %v3280_v12, %v3280_v12  ;;  %v2771_v63 = vadd.f32 %v5584_v60, %v6657_v59  ;;  %v5586_v3 = vadd.f32 %v5453_v24, %v6485_v37  ;;  %v2198_v35 = vpop.f32.mrb[27].mxu0  ;;  %v4903_v12 = vld [vmem:[%s6642_s19 + $0x80] sm:$0xff]  }
 0x1a1   : > { %3918 = vst.msk [vmem:[%s6682_s24 + $0x50] sm:$0xf] %vm3897_vm1, %v4524_v6  ;;  %v4525_v2 = vpack.c.bf16 %v3278_v61, %v3278_v61  ;;  %v2769_v30 = vadd.f32 %v5585_v27, %v6657_v59  ;;  %v5587_v36 = vadd.f32 %v2198_v35, %v6487_v38  ;;  %v4702_v27 = vunpack.c.l.bf16 %v4904_v55 }
 0x1a2   : > { %3921 = vst.msk [vmem:[%s6682_s24 + $0x5c] sm:$0xf] %vm3897_vm1, %v4527_v29  ;;  %v3155_v53 = vadd.f32 %v4686_v26, %v2771_v63  ;;  %v2772_v20 = vadd.f32 %v5586_v3, %v6657_v59  ;;  %v7258_v63 = vld [vmem:[#allocation3_spill] sm:$0xff]  ;;  %v4699_v8 = vunpack.c.h.bf16 %v4903_v12 }
 0x1a3   : > { %3919 = vst.msk [vmem:[%s6682_s24 + $0x54] sm:$0xf] %vm3897_vm1, %v4525_v2  ;;  %v3153_v22 = vadd.f32 %v4682_v62, %v2769_v30  ;;  %v2770_v37 = vadd.f32 %v5587_v36, %v6657_v59  ;;  %v7259_v36 = vld [vmem:[#allocation4_spill] sm:$0xff] }
 0x1a4   : > { %v3283_v21 = vmax.f32 %v3155_v53, 0.0  ;;  %v3156_v7 = vadd.f32 %v4687_v49, %v2772_v20  ;;  %v4698_v49 = vunpack.c.l.bf16 %v4903_v12  ;;  %v4703_v53 = vunpack.c.h.bf16 %v4904_v55 }
 0x1a5   : > { %v3281_v14 = vmax.f32 %v3153_v22, 0.0  ;;  %v3154_v23 = vadd.f32 %v4683_v5, %v2770_v37  ;;  %v5456_v9 = vpop.f32.mrb[28].mxu0 }
 0x1a6   : > { %v4530_v38 = vpack.c.bf16 %v3283_v21, %v3283_v21  ;;  %v3284_v25 = vmax.f32 %v3156_v7, 0.0  ;;  %v5588_v0 = vadd.f32 %v5456_v9, %v6497_v39  ;;  %v2211_v15 = vpop.f32.mrb[29].mxu0 }
 0x1a7   : > { %v4528_v1 = vpack.c.bf16 %v3281_v14, %v3281_v14  ;;  %v3282_v11 = vmax.f32 %v3154_v23, 0.0  ;;  %v5589_v17 = vadd.f32 %v2211_v15, %v6499_v40  ;;  %v5457_v58 = vpop.f32.mrb[30].mxu0  ;;  %v4906_v23 = vld [vmem:[%s6642_s19 + $0x98] sm:$0xff]  }
 0x1a8   : > { %3924 = vst.msk [vmem:[%s6682_s24 + $0x68] sm:$0xf] %vm3897_vm1, %v4530_v38  ;;  %v4531_v28 = vpack.c.bf16 %v3284_v25, %v3284_v25  ;;  %v2775_v32 = vadd.f32 %v5588_v0, %v6657_v59  ;;  %v5590_v18 = vadd.f32 %v5457_v58, %v7257_v19  ;;  %v2214_v39 = vpop.f32.mrb[31].mxu0  ;;  %v4905_v25 = vld [vmem:[%s6642_s19 + $0x90] sm:$0xff]  }
 0x1a9   : > { %3922 = vst.msk [vmem:[%s6682_s24 + $0x60] sm:$0xf] %vm3897_vm1, %v4528_v1  ;;  %v4529_v10 = vpack.c.bf16 %v3282_v11, %v3282_v11  ;;  %v2773_v33 = vadd.f32 %v5589_v17, %v6657_v59  ;;  %v5591_v40 = vadd.f32 %v2214_v39, %v6503_v42  ;;  %v4710_v17 = vunpack.c.l.bf16 %v4906_v23 }
 0x1aa   : > { %3925 = vst.msk [vmem:[%s6682_s24 + $0x6c] sm:$0xf] %vm3897_vm1, %v4531_v28  ;;  %v3159_v4 = vadd.f32 %v4694_v16, %v2775_v32  ;;  %v2776_v51 = vadd.f32 %v5590_v18, %v6657_v59  ;;  %v7260_v32 = vld [vmem:[#allocation5_spill] sm:$0xff]  ;;  %v4706_v18 = vunpack.c.l.bf16 %v4905_v25 }
 0x1ab   : > { %3923 = vst.msk [vmem:[%s6682_s24 + $0x64] sm:$0xf] %vm3897_vm1, %v4529_v10  ;;  %v3157_v54 = vadd.f32 %v4690_v31, %v2773_v33  ;;  %v2774_v50 = vadd.f32 %v5591_v40, %v6657_v59  ;;  %v7261_v33 = vld [vmem:[#allocation6_spill] sm:$0xff] }
 0x1ac   : > { %v3287_v56 = vmax.f32 %v3159_v4, 0.0  ;;  %v3160_v34 = vadd.f32 %v4695_v13, %v2776_v51 }
 0x1ad   : > { %v3285_v60 = vmax.f32 %v3157_v54, 0.0  ;;  %v3158_v26 = vadd.f32 %v4691_v57, %v2774_v50  ;;  %v5460_v47 = vpop.f32.mrb[32].mxu0  ;;  %v4711_v57 = vunpack.c.h.bf16 %v4906_v23  ;;  %v4707_v50 = vunpack.c.h.bf16 %v4905_v25 }
 0x1ae   : > { %v4534_v42 = vpack.c.bf16 %v3287_v56, %v3287_v56  ;;  %v3288_v6 = vmax.f32 %v3160_v34, 0.0  ;;  %v5592_v61 = vadd.f32 %v5460_v47, %v6513_v43  ;;  %v2227_v62 = vpop.f32.mrb[33].mxu0 }
 0x1af   : > { %v4532_v24 = vpack.c.bf16 %v3285_v60, %v3285_v60  ;;  %v3286_v29 = vmax.f32 %v3158_v26, 0.0  ;;  %v5593_v3 = vadd.f32 %v2227_v62, %v7258_v63  ;;  %v5461_v35 = vpop.f32.mrb[34].mxu0  ;;  %v4908_v60 = vld [vmem:[%s6642_s19 + $0xa8] sm:$0xff]  }
 0x1b0   : > { %3928 = vst.msk [vmem:[%s6682_s24 + $0x78] sm:$0xf] %vm3897_vm1, %v4534_v42  ;;  %v4535_v2 = vpack.c.bf16 %v3288_v6, %v3288_v6  ;;  %v2779_v30 = vadd.f32 %v5592_v61, %v6657_v59  ;;  %v5594_v5 = vadd.f32 %v5461_v35, %v7259_v36  ;;  %v2230_v43 = vpop.f32.mrb[35].mxu0  ;;  %v4907_v42 = vld [vmem:[%s6642_s19 + $0xa0] sm:$0xff]   ;;  %v7262_v35 = vld [vmem:[#allocation7_spill] sm:$0xff] }
 0x1b1   : > { %3926 = vst.msk [vmem:[%s6682_s24 + $0x70] sm:$0xf] %vm3897_vm1, %v4532_v24  ;;  %v4533_v20 = vpack.c.bf16 %v3286_v29, %v3286_v29  ;;  %v2777_v22 = vadd.f32 %v5593_v3, %v6657_v59  ;;  %v5595_v37 = vadd.f32 %v2230_v43, %v6519_v41  ;;  %v4718_v29 = vunpack.c.l.bf16 %v4908_v60  ;;  %v7263_v43 = vld [vmem:[#allocation8_spill] sm:$0xff] }
 0x1b2   : > { %3929 = vst.msk [vmem:[%s6682_s24 + $0x7c] sm:$0xf] %vm3897_vm1, %v4535_v2  ;;  %v3163_v21 = vadd.f32 %v4702_v27, %v2779_v30  ;;  %v2780_v7 = vadd.f32 %v5594_v5, %v6657_v59  ;;  %v4714_v30 = vunpack.c.l.bf16 %v4907_v42 }
 0x1b3   : > { %3927 = vst.msk [vmem:[%s6682_s24 + $0x74] sm:$0xf] %vm3897_vm1, %v4533_v20  ;;  %v3161_v52 = vadd.f32 %v4698_v49, %v2777_v22  ;;  %v2778_v14 = vadd.f32 %v5595_v37, %v6657_v59  ;;  %v4719_v22 = vunpack.c.h.bf16 %v4908_v60 }
 0x1b4   : > { %v3291_v9 = vmax.f32 %v3163_v21, 0.0  ;;  %v3164_v38 = vadd.f32 %v4703_v53, %v2780_v7  ;;  %v4715_v7 = vunpack.c.h.bf16 %v4907_v42  ;;  %v4912_v42 = vld [vmem:[%s6642_s19 + $0xc8] sm:$0xff]  }
 0x1b5   : > { %v3289_v0 = vmax.f32 %v3161_v52, 0.0  ;;  %v3162_v16 = vadd.f32 %v4699_v8, %v2778_v14  ;;  %v5464_v15 = vpop.f32.mrb[36].mxu0 }
 0x1b6   : > { %v4538_v41 = vpack.c.bf16 %v3291_v9, %v3291_v9  ;;  %v3292_v1 = vmax.f32 %v3164_v38, 0.0  ;;  %v5596_v11 = vadd.f32 %v5464_v15, %v6529_v46  ;;  %v2243_v31 = vpop.f32.mrb[37].mxu0  ;;  %v4910_v38 = vld [vmem:[%s6642_s19 + $0xb8] sm:$0xff]  }
 0x1b7   : > { %v4536_v58 = vpack.c.bf16 %v3289_v0, %v3289_v0  ;;  %v3290_v28 = vmax.f32 %v3162_v16, 0.0  ;;  %v5597_v19 = vadd.f32 %v2243_v31, %v7260_v32  ;;  %v5465_v13 = vpop.f32.mrb[38].mxu0  ;;  %v4909_v16 = vld [vmem:[%s6642_s19 + $0xb0] sm:$0xff]  }
 0x1b8   : > { %3932 = vst.msk [vmem:[%s6682_s24 + $0x88] sm:$0xf] %vm3897_vm1, %v4538_v41  ;;  %v4539_v39 = vpack.c.bf16 %v3292_v1, %v3292_v1  ;;  %v2783_v10 = vadd.f32 %v5596_v11, %v6657_v59  ;;  %v5598_v40 = vadd.f32 %v5465_v13, %v7261_v33  ;;  %v2246_v46 = vpop.f32.mrb[39].mxu0 }
 0x1b9   : > { %3930 = vst.msk [vmem:[%s6682_s24 + $0x80] sm:$0xf] %vm3897_vm1, %v4536_v58  ;;  %v4537_v4 = vpack.c.bf16 %v3290_v28, %v3290_v28  ;;  %v2781_v51 = vadd.f32 %v5597_v19, %v6657_v59  ;;  %v5599_v54 = vadd.f32 %v2246_v46, %v6535_v45  ;;  %v4726_v58 = vunpack.c.l.bf16 %v4910_v38 }
 0x1ba   : > { %3933 = vst.msk [vmem:[%s6682_s24 + $0x8c] sm:$0xf] %vm3897_vm1, %v4539_v39  ;;  %v3167_v55 = vadd.f32 %v4710_v17, %v2783_v10  ;;  %v2784_v56 = vadd.f32 %v5598_v40, %v6657_v59  ;;  %v7264_v17 = vld [vmem:[#allocation9_spill] sm:$0xff]  ;;  %v4722_v39 = vunpack.c.l.bf16 %v4909_v16 }
 0x1bb   : > { %3931 = vst.msk [vmem:[%s6682_s24 + $0x84] sm:$0xf] %vm3897_vm1, %v4537_v4  ;;  %v3165_v34 = vadd.f32 %v4706_v18, %v2781_v51  ;;  %v2782_v12 = vadd.f32 %v5599_v54, %v6657_v59  ;;  %v7265_v18 = vld [vmem:[#allocation10_spill] sm:$0xff]  ;;  %v4727_v4 = vunpack.c.h.bf16 %v4910_v38 }
 0x1bc   : > { %v3295_v26 = vmax.f32 %v3167_v55, 0.0  ;;  %v3168_v47 = vadd.f32 %v4711_v57, %v2784_v56  ;;  %v7266_v57 = vld [vmem:[#allocation11_spill] sm:$0xff]  ;;  %v7267_v55 = vld [vmem:[#allocation12_spill] sm:$0xff] }
 0x1bd   : > { %v3293_v6 = vmax.f32 %v3165_v34, 0.0  ;;  %v3166_v61 = vadd.f32 %v4707_v50, %v2782_v12  ;;  %v5468_v27 = vpop.f32.mrb[40].mxu0  ;;  %v4723_v34 = vunpack.c.h.bf16 %v4909_v16 }
 0x1be   : > { %v4542_v45 = vpack.c.bf16 %v3295_v26, %v3295_v26  ;;  %v3296_v62 = vmax.f32 %v3168_v47, 0.0  ;;  %v5600_v24 = vadd.f32 %v5468_v27, %v6545_v48  ;;  %v2259_v63 = vpop.f32.mrb[41].mxu0  ;;  %v4911_v27 = vld [vmem:[%s6642_s19 + $0xc0] sm:$0xff]  }
 0x1bf   : > { %v4540_v3 = vpack.c.bf16 %v3293_v6, %v3293_v6  ;;  %v3294_v49 = vmax.f32 %v3166_v61, 0.0  ;;  %v5601_v2 = vadd.f32 %v2259_v63, %v7262_v35  ;;  %v5469_v36 = vpop.f32.mrb[42].mxu0  ;;  %v4734_v35 = vunpack.c.l.bf16 %v4912_v42 }
 0x1c0   : > { %3936 = vst.msk [vmem:[%s6682_s24 + $0x98] sm:$0xf] %vm3897_vm1, %v4542_v45  ;;  %v4543_v5 = vpack.c.bf16 %v3296_v62, %v3296_v62  ;;  %v2787_v53 = vadd.f32 %v5600_v24, %v6657_v59  ;;  %v5602_v20 = vadd.f32 %v5469_v36, %v7263_v43  ;;  %v2262_v48 = vpop.f32.mrb[43].mxu0  ;;  %v4730_v43 = vunpack.c.l.bf16 %v4911_v27 }
 0x1c1   : > { %3934 = vst.msk [vmem:[%s6682_s24 + $0x90] sm:$0xf] %vm3897_vm1, %v4540_v3  ;;  %v4541_v37 = vpack.c.bf16 %v3294_v49, %v3294_v49  ;;  %v2785_v8 = vadd.f32 %v5601_v2, %v6657_v59  ;;  %v5603_v21 = vadd.f32 %v2262_v48, %v6551_v44  ;;  %v7268_v3 = vld [vmem:[#allocation13_spill] sm:$0xff]  ;;  %v4731_v38 = vunpack.c.h.bf16 %v4911_v27 }
 0x1c2   : > { %3937 = vst.msk [vmem:[%s6682_s24 + $0x9c] sm:$0xf] %vm3897_vm1, %v4543_v5  ;;  %v3171_v52 = vadd.f32 %v4718_v29, %v2787_v53  ;;  %v2788_v14 = vadd.f32 %v5602_v20, %v6657_v59  ;;  %v7269_v5 = vld [vmem:[#allocation14_spill] sm:$0xff] }
 0x1c3   : > { %3935 = vst.msk [vmem:[%s6682_s24 + $0x94] sm:$0xf] %vm3897_vm1, %v4541_v37  ;;  %v3169_v23 = vadd.f32 %v4714_v30, %v2785_v8  ;;  %v2786_v9 = vadd.f32 %v5603_v21, %v6657_v59  ;;  %v7270_v37 = vld [vmem:[#allocation15_spill] sm:$0xff]  ;;  %v4735_v21 = vunpack.c.h.bf16 %v4912_v42 }
 0x1c4   : > { %v3299_v25 = vmax.f32 %v3171_v52, 0.0  ;;  %v3172_v0 = vadd.f32 %v4719_v22, %v2788_v14 }
 0x1c5   : > { %v3297_v15 = vmax.f32 %v3169_v23, 0.0  ;;  %v3170_v41 = vadd.f32 %v4715_v7, %v2786_v9  ;;  %v5472_v1 = vpop.f32.mrb[44].mxu0  ;;  %v7271_v23 = vld [vmem:[#allocation16_spill] sm:$0xff] }
 0x1c6   : > { %v4546_v44 = vpack.c.bf16 %v3299_v25, %v3299_v25  ;;  %v3300_v11 = vmax.f32 %v3172_v0, 0.0  ;;  %v5604_v31 = vadd.f32 %v5472_v1, %v7264_v17  ;;  %v2275_v28 = vpop.f32.mrb[45].mxu0 }
 0x1c7   : > { %v4544_v32 = vpack.c.bf16 %v3297_v15, %v3297_v15  ;;  %v3298_v19 = vmax.f32 %v3170_v41, 0.0  ;;  %v5605_v13 = vadd.f32 %v2275_v28, %v7265_v18  ;;  %v5473_v10 = vpop.f32.mrb[46].mxu0  ;;  %v4914_v41 = vld [vmem:[%s6642_s19 + $0xd8] sm:$0xff]  }
 0x1c8   : > { %3940 = vst.msk [vmem:[%s6682_s24 + $0xa8] sm:$0xf] %vm3897_vm1, %v4546_v44  ;;  %v4547_v33 = vpack.c.bf16 %v3300_v11, %v3300_v11  ;;  %v2791_v40 = vadd.f32 %v5604_v31, %v6657_v59  ;;  %v5606_v46 = vadd.f32 %v5473_v10, %v7266_v57  ;;  %v2278_v51 = vpop.f32.mrb[47].mxu0  ;;  %v4913_v11 = vld [vmem:[%s6642_s19 + $0xd0] sm:$0xff]  }
 0x1c9   : > { %3938 = vst.msk [vmem:[%s6682_s24 + $0xa0] sm:$0xf] %vm3897_vm1, %v4544_v32  ;;  %v4545_v54 = vpack.c.bf16 %v3298_v19, %v3298_v19  ;;  %v2789_v50 = vadd.f32 %v5605_v13, %v6657_v59  ;;  %v5607_v56 = vadd.f32 %v2278_v51, %v7267_v55  ;;  %v7272_v19 = vld [vmem:[#allocation17_spill] sm:$0xff]  ;;  %v4742_v13 = vunpack.c.l.bf16 %v4914_v41 }
 0x1ca   : > { %3941 = vst.msk [vmem:[%s6682_s24 + $0xac] sm:$0xf] %vm3897_vm1, %v4547_v33  ;;  %v3175_v12 = vadd.f32 %v4726_v58, %v2791_v40  ;;  %v2792_v60 = vadd.f32 %v5606_v46, %v6657_v59  ;;  %v7273_v40 = vld [vmem:[#allocation18_spill] sm:$0xff]  ;;  %v4738_v46 = vunpack.c.l.bf16 %v4913_v11  ;;  %v4739_v42 = vunpack.c.h.bf16 %v4913_v11 }
 0x1cb   : > { %3939 = vst.msk [vmem:[%s6682_s24 + $0xa4] sm:$0xf] %vm3897_vm1, %v4545_v54  ;;  %v3173_v26 = vadd.f32 %v4722_v39, %v2789_v50  ;;  %v2790_v47 = vadd.f32 %v5607_v56, %v6657_v59  ;;  %v7274_v50 = vld [vmem:[#allocation19_spill] sm:$0xff]  ;;  %v4743_v56 = vunpack.c.h.bf16 %v4914_v41 }
 0x1cc   : > { %v3303_v6 = vmax.f32 %v3175_v12, 0.0  ;;  %v3176_v61 = vadd.f32 %v4727_v4, %v2792_v60 }
 0x1cd   : > { %v3301_v45 = vmax.f32 %v3173_v26, 0.0  ;;  %v3174_v62 = vadd.f32 %v4723_v34, %v2790_v47  ;;  %v5476_v24 = vpop.f32.mrb[48].mxu0  ;;  %v7275_v26 = vld [vmem:[#allocation20_spill] sm:$0xff] }
 0x1ce   : > { %v4550_v29 = vpack.c.bf16 %v3303_v6, %v3303_v6  ;;  %v3304_v63 = vmax.f32 %v3176_v61, 0.0  ;;  %v5608_v49 = vadd.f32 %v5476_v24, %v7268_v3  ;;  %v2291_v2 = vpop.f32.mrb[49].mxu0 }
 0x1cf   : > { %v4548_v30 = vpack.c.bf16 %v3301_v45, %v3301_v45  ;;  %v3302_v36 = vmax.f32 %v3174_v62, 0.0  ;;  %v5609_v53 = vadd.f32 %v2291_v2, %v7269_v5  ;;  %v5477_v20 = vpop.f32.mrb[50].mxu0  ;;  %v4916_v62 = vld [vmem:[%s6642_s19 + $0xe8] sm:$0xff]  }
 0x1d0   : > { %3944 = vst.msk [vmem:[%s6682_s24 + $0xb8] sm:$0xf] %vm3897_vm1, %v4550_v29  ;;  %v4551_v22 = vpack.c.bf16 %v3304_v63, %v3304_v63  ;;  %v2795_v48 = vadd.f32 %v5608_v49, %v6657_v59  ;;  %v5610_v8 = vadd.f32 %v5477_v20, %v7270_v37  ;;  %v2294_v7 = vpop.f32.mrb[51].mxu0  ;;  %v4915_v63 = vld [vmem:[%s6642_s19 + $0xe0] sm:$0xff]  }
 0x1d1   : > { %3942 = vst.msk [vmem:[%s6682_s24 + $0xb0] sm:$0xf] %vm3897_vm1, %v4548_v30  ;;  %v4549_v52 = vpack.c.bf16 %v3302_v36, %v3302_v36  ;;  %v2793_v14 = vadd.f32 %v5609_v53, %v6657_v59  ;;  %v5611_v9 = vadd.f32 %v2294_v7, %v7271_v23  ;;  %v7276_v36 = vld [vmem:[#allocation21_spill] sm:$0xff]  ;;  %v4750_v53 = vunpack.c.l.bf16 %v4916_v62 }
 0x1d2   : > { %3945 = vst.msk [vmem:[%s6682_s24 + $0xbc] sm:$0xf] %vm3897_vm1, %v4551_v22  ;;  %v3179_v25 = vadd.f32 %v4734_v35, %v2795_v48  ;;  %v2796_v0 = vadd.f32 %v5610_v8, %v6657_v59  ;;  %v7277_v48 = vld [vmem:[#allocation22_spill] sm:$0xff]  ;;  %v4746_v8 = vunpack.c.l.bf16 %v4915_v63  ;;  %v4747_v41 = vunpack.c.h.bf16 %v4915_v63 }
 0x1d3   : > { %3943 = vst.msk [vmem:[%s6682_s24 + $0xb4] sm:$0xf] %vm3897_vm1, %v4549_v52  ;;  %v3177_v16 = vadd.f32 %v4730_v43, %v2793_v14  ;;  %v2794_v15 = vadd.f32 %v5611_v9, %v6657_v59  ;;  %v7278_v14 = vld [vmem:[#allocation23_spill] sm:$0xff]  ;;  %v4751_v9 = vunpack.c.h.bf16 %v4916_v62 }
 0x1d4   : > { %v3307_v1 = vmax.f32 %v3179_v25, 0.0  ;;  %v3180_v44 = vadd.f32 %v4735_v21, %v2796_v0 }
 0x1d5   : > { %v3305_v17 = vmax.f32 %v3177_v16, 0.0  ;;  %v3178_v31 = vadd.f32 %v4731_v38, %v2794_v15  ;;  %v5480_v58 = vpop.f32.mrb[52].mxu0  ;;  %v7279_v16 = vld [vmem:[#allocation24_spill] sm:$0xff] }
 0x1d6   : > { %v4554_v28 = vpack.c.bf16 %v3307_v1, %v3307_v1  ;;  %v3308_v32 = vmax.f32 %v3180_v44, 0.0  ;;  %v5612_v18 = vadd.f32 %v5480_v58, %v7272_v19  ;;  %v2307_v39 = vpop.f32.mrb[53].mxu0  ;;  %v6961_v44 = vld [vmem:[%s7227_s2] ss:$0 sm:$0xff]  ;;  %v4918_v58 = vld [vmem:[%s6642_s19 + $0xf8] sm:$0xff]  }
 0x1d7   : > { %v4552_v10 = vpack.c.bf16 %v3305_v17, %v3305_v17  ;;  %v3306_v33 = vmax.f32 %v3178_v31, 0.0  ;;  %v5613_v57 = vadd.f32 %v2307_v39, %v7273_v40  ;;  %v5481_v4 = vpop.f32.mrb[54].mxu0 }
 0x1d8   : > { %3948 = vst.msk [vmem:[%s6682_s24 + $0xc8] sm:$0xf] %vm3897_vm1, %v4554_v28  ;;  %v4555_v51 = vpack.c.bf16 %v3308_v32, %v3308_v32  ;;  %v2799_v54 = vadd.f32 %v5612_v18, %v6657_v59  ;;  %v5614_v55 = vadd.f32 %v5481_v4, %v7274_v50  ;;  %v2310_v34 = vpop.f32.mrb[55].mxu0  ;;  %v4917_v32 = vld [vmem:[%s6642_s19 + $0xf0] sm:$0xff]  }
 0x1d9   : > { %3946 = vst.msk [vmem:[%s6682_s24 + $0xc0] sm:$0xf] %vm3897_vm1, %v4552_v10  ;;  %v4553_v12 = vpack.c.bf16 %v3306_v33, %v3306_v33  ;;  %v2797_v60 = vadd.f32 %v5613_v57, %v6657_v59  ;;  %v5615_v47 = vadd.f32 %v2310_v34, %v7275_v26  ;;  %v7280_v33 = vld [vmem:[#allocation25_spill] sm:$0xff]  ;;  %v4758_v57 = vunpack.c.l.bf16 %v4918_v58 }
 0x1da   : > { %3949 = vst.msk [vmem:[%s6682_s24 + $0xcc] sm:$0xf] %vm3897_vm1, %v4555_v51  ;;  %v3183_v6 = vadd.f32 %v4742_v13, %v2799_v54  ;;  %v2800_v61 = vadd.f32 %v5614_v55, %v6657_v59  ;;  %v7281_v54 = vld [vmem:[#allocation26_spill] sm:$0xff]  ;;  %v4754_v55 = vunpack.c.l.bf16 %v4917_v32  ;;  %v4755_v62 = vunpack.c.h.bf16 %v4917_v32 }
 0x1db   : > { %3947 = vst.msk [vmem:[%s6682_s24 + $0xc4] sm:$0xf] %vm3897_vm1, %v4553_v12  ;;  %v3181_v27 = vadd.f32 %v4738_v46, %v2797_v60  ;;  %v2798_v45 = vadd.f32 %v5615_v47, %v6657_v59  ;;  %v7282_v60 = vld [vmem:[#allocation27_spill] sm:$0xff]  ;;  %v4759_v47 = vunpack.c.h.bf16 %v4918_v58 }
 0x1dc   : > { %v3311_v24 = vmax.f32 %v3183_v6, 0.0  ;;  %v3184_v29 = vadd.f32 %v4743_v56, %v2800_v61 }
 0x1dd   : > { %v3309_v3 = vmax.f32 %v3181_v27, 0.0  ;;  %v3182_v49 = vadd.f32 %v4739_v42, %v2798_v45  ;;  %v5484_v35 = vpop.f32.mrb[56].mxu0  ;;  %v7283_v27 = vld [vmem:[#allocation28_spill] sm:$0xff] }
 0x1de   : > { %v4558_v2 = vpack.c.bf16 %v3311_v24, %v3311_v24  ;;  %v3312_v30 = vmax.f32 %v3184_v29, 0.0  ;;  %v5616_v5 = vadd.f32 %v5484_v35, %v7276_v36  ;;  %v2323_v43 = vpop.f32.mrb[57].mxu0  ;;  %v4919_v36 = vld [vmem:[%s6642_s19 + $0x100] sm:$0xff]  }
 0x1df   : > { %v4556_v20 = vpack.c.bf16 %v3309_v3, %v3309_v3  ;;  %v3310_v22 = vmax.f32 %v3182_v49, 0.0  ;;  %v5617_v37 = vadd.f32 %v2323_v43, %v7277_v48  ;;  %v5485_v21 = vpop.f32.mrb[58].mxu0  ;;  %v4920_v49 = vld [vmem:[%s6642_s19 + $0x108] sm:$0xff]   ;;  %v4763_v58 = vunpack.c.h.bf16 %v4919_v36 }
 0x1e0   : > { %3952 = vst.msk [vmem:[%s6682_s24 + $0xd8] sm:$0xf] %vm3897_vm1, %v4558_v2  ;;  %v4559_v7 = vpack.c.bf16 %v3312_v30, %v3312_v30  ;;  %v2803_v52 = vadd.f32 %v5616_v5, %v6657_v59  ;;  %v5618_v23 = vadd.f32 %v5485_v21, %v7278_v14  ;;  %v2326_v38 = vpop.f32.mrb[59].mxu0 }
 0x1e1   : > { %3950 = vst.msk [vmem:[%s6682_s24 + $0xd0] sm:$0xf] %vm3897_vm1, %v4556_v20  ;;  %v4557_v25 = vpack.c.bf16 %v3310_v22, %v3310_v22  ;;  %v2801_v0 = vadd.f32 %v5617_v37, %v6657_v59  ;;  %v5619_v15 = vadd.f32 %v2326_v38, %v7279_v16 }
 0x1e2   : > { %3953 = vst.msk [vmem:[%s6682_s24 + $0xdc] sm:$0xf] %vm3897_vm1, %v4559_v7  ;;  %v3187_v1 = vadd.f32 %v4750_v53, %v2803_v52  ;;  %v2804_v11 = vadd.f32 %v6961_v44, %v5618_v23 }
 0x1e3   : > { %3951 = vst.msk [vmem:[%s6682_s24 + $0xd4] sm:$0xf] %vm3897_vm1, %v4557_v25  ;;  %v3185_v17 = vadd.f32 %v4746_v8, %v2801_v0  ;;  %v2802_v31 = vadd.f32 %v6961_v44, %v5619_v15  ;;  %v4766_v8 = vunpack.c.l.bf16 %v4920_v49 }
 0x1e4   : > { %v3315_v59 = vmax.f32 %v3187_v1, 0.0  ;;  %v3188_v28 = vadd.f32 %v4751_v9, %v2804_v11  ;;  %v4762_v9 = vunpack.c.l.bf16 %v4919_v36 }
 0x1e5   : > { %v3313_v19 = vmax.f32 %v3185_v17, 0.0  ;;  %v3186_v18 = vadd.f32 %v4747_v41, %v2802_v31  ;;  %v5488_v13 = vpop.f32.mrb[60].mxu0  ;;  %v4767_v41 = vunpack.c.h.bf16 %v4920_v49 }
 0x1e6   : > { %v4562_v39 = vpack.c.bf16 %v3315_v59, %v3315_v59  ;;  %v3316_v10 = vmax.f32 %v3188_v28, 0.0  ;;  %v5620_v40 = vadd.f32 %v5488_v13, %v7280_v33  ;;  %v2339_v46 = vpop.f32.mrb[61].mxu0  ;;  %v4921_v33 = vld [vmem:[%s6642_s19 + $0x110] sm:$0xff]  }
 0x1e7   : > { %v4560_v4 = vpack.c.bf16 %v3313_v19, %v3313_v19  ;;  %v3314_v51 = vmax.f32 %v3186_v18, 0.0  ;;  %v5621_v50 = vadd.f32 %v2339_v46, %v7281_v54  ;;  %v5489_v56 = vpop.f32.mrb[62].mxu0  ;;  %v4922_v18 = vld [vmem:[%s6642_s19 + $0x118] sm:$0xff]   ;;  %v4771_v49 = vunpack.c.h.bf16 %v4921_v33 }
 0x1e8   : > { %3956 = vst.msk [vmem:[%s6682_s24 + $0xe8] sm:$0xf] %vm3897_vm1, %v4562_v39  ;;  %v4563_v34 = vpack.c.bf16 %v3316_v10, %v3316_v10  ;;  %v2807_v12 = vadd.f32 %v6961_v44, %v5620_v40  ;;  %v5622_v26 = vadd.f32 %v5489_v56, %v7282_v60  ;;  %v2342_v42 = vpop.f32.mrb[63].mxu0 }
 0x1e9   : > { %3954 = vst.msk [vmem:[%s6682_s24 + $0xe0] sm:$0xf] %vm3897_vm1, %v4560_v4  ;;  %v4561_v6 = vpack.c.bf16 %v3314_v51, %v3314_v51  ;;  %v2805_v61 = vadd.f32 %v6961_v44, %v5621_v50  ;;  %v5623_v45 = vadd.f32 %v2342_v42, %v7283_v27 }
 0x1ea   : > { %3957 = vst.msk [vmem:[%s6682_s24 + $0xec] sm:$0xf] %vm3897_vm1, %v4563_v34  ;;  %v3191_v24 = vadd.f32 %v4758_v57, %v2807_v12  ;;  %v2808_v29 = vadd.f32 %v6961_v44, %v5622_v26 }
 0x1eb   : > { %3955 = vst.msk [vmem:[%s6682_s24 + $0xe4] sm:$0xf] %vm3897_vm1, %v4561_v6  ;;  %v3189_v63 = vadd.f32 %v4754_v55, %v2805_v61  ;;  %v2806_v3 = vadd.f32 %v6961_v44, %v5623_v45  ;;  %v4774_v55 = vunpack.c.l.bf16 %v4922_v18 }
 0x1ec   : > { %v3319_v35 = vmax.f32 %v3191_v24, 0.0  ;;  %v3192_v2 = vadd.f32 %v4759_v47, %v2808_v29  ;;  %v4770_v47 = vunpack.c.l.bf16 %v4921_v33 }
 0x1ed   : > { %v5358_v30 = vpop.f32.mrb[64].mxu1  ;;  %v3317_v5 = vmax.f32 %v3189_v63, 0.0  ;;  %v3190_v53 = vadd.f32 %v4755_v62, %v2806_v3  ;;  %v5492_v43 = vpop.f32.mrb[64].mxu0  ;;  %v4775_v62 = vunpack.c.h.bf16 %v4922_v18 }
 0x1ee   : > { %v1776_v20 = vpop.f32.mrb[65].mxu1  ;;  %v4566_v22 = vpack.c.bf16 %v3319_v35, %v3319_v35  ;;  %v3320_v48 = vmax.f32 %v3192_v2, 0.0  ;;  %v5624_v37 = vadd.f32 %v5492_v43, %v5358_v30  ;;  %v2355_v21 = vpop.f32.mrb[65].mxu0 }
 0x1ef   : > { %v5359_v7 = vpop.f32.mrb[66].mxu1  ;;  %v4564_v52 = vpack.c.bf16 %v3317_v5, %v3317_v5  ;;  %v3318_v14 = vmax.f32 %v3190_v53, 0.0  ;;  %v5625_v23 = vadd.f32 %v2355_v21, %v1776_v20  ;;  %v5493_v38 = vpop.f32.mrb[66].mxu0  ;;  %v4924_v5 = vld [vmem:[%s6642_s19 + $0x128] sm:$0xff]  }
 0x1f0   : > { %v1779_v25 = vpop.f32.mrb[67].mxu1  ;;  %3960 = vst.msk [vmem:[%s6682_s24 + $0xf8] sm:$0xf] %vm3897_vm1, %v4566_v22  ;;  %v4567_v0 = vpack.c.bf16 %v3320_v48, %v3320_v48  ;;  %v2811_v16 = vadd.f32 %v6961_v44, %v5624_v37  ;;  %v5626_v15 = vadd.f32 %v5493_v38, %v5359_v7  ;;  %v2358_v1 = vpop.f32.mrb[67].mxu0  ;;  %v4923_v22 = vld [vmem:[%s6642_s19 + $0x120] sm:$0xff]  }
 0x1f1   : > { %3958 = vst.msk [vmem:[%s6682_s24 + $0xf0] sm:$0xf] %vm3897_vm1, %v4564_v52  ;;  %v4565_v11 = vpack.c.bf16 %v3318_v14, %v3318_v14  ;;  %v2809_v17 = vadd.f32 %v6961_v44, %v5625_v23  ;;  %v5627_v31 = vadd.f32 %v2358_v1, %v1779_v25  ;;  %v4782_v23 = vunpack.c.l.bf16 %v4924_v5 }
 0x1f2   : > { %3961 = vst.msk [vmem:[%s6682_s24 + $0xfc] sm:$0xf] %vm3897_vm1, %v4567_v0  ;;  %v3195_v59 = vadd.f32 %v4766_v8, %v2811_v16  ;;  %v2812_v28 = vadd.f32 %v6961_v44, %v5626_v15  ;;  %v4778_v15 = vunpack.c.l.bf16 %v4923_v22  ;;  %v4779_v18 = vunpack.c.h.bf16 %v4923_v22 }
 0x1f3   : > { %3959 = vst.msk [vmem:[%s6682_s24 + $0xf4] sm:$0xf] %vm3897_vm1, %v4565_v11  ;;  %v3193_v32 = vadd.f32 %v4762_v9, %v2809_v17  ;;  %v2810_v19 = vadd.f32 %v6961_v44, %v5627_v31 }
 0x1f4   : > { %v3323_v13 = vmax.f32 %v3195_v59, 0.0  ;;  %v3196_v39 = vadd.f32 %v4767_v41, %v2812_v28 }
 0x1f5   : > { %v5362_v10 = vpop.f32.mrb[68].mxu1  ;;  %v3321_v40 = vmax.f32 %v3193_v32, 0.0  ;;  %v3194_v57 = vadd.f32 %v4763_v58, %v2810_v19  ;;  %v5496_v46 = vpop.f32.mrb[68].mxu0  ;;  %v4783_v58 = vunpack.c.h.bf16 %v4924_v5 }
 0x1f6   : > { %v1792_v4 = vpop.f32.mrb[69].mxu1  ;;  %v4570_v51 = vpack.c.bf16 %v3323_v13, %v3323_v13  ;;  %v3324_v54 = vmax.f32 %v3196_v39, 0.0  ;;  %v5628_v50 = vadd.f32 %v5496_v46, %v5362_v10  ;;  %v2371_v56 = vpop.f32.mrb[69].mxu0 }
 0x1f7   : > { %v5363_v34 = vpop.f32.mrb[70].mxu1  ;;  %v4568_v12 = vpack.c.bf16 %v3321_v40, %v3321_v40  ;;  %v3322_v60 = vmax.f32 %v3194_v57, 0.0  ;;  %v5629_v26 = vadd.f32 %v2371_v56, %v1792_v4  ;;  %v5497_v42 = vpop.f32.mrb[70].mxu0  ;;  %v4926_v40 = vld [vmem:[%s6642_s19 + $0x138] sm:$0xff]  }
 0x1f8   : > { %v1795_v6 = vpop.f32.mrb[71].mxu1  ;;  %3964 = vst.msk [vmem:[%s6682_s24 + $0x108] sm:$0xf] %vm3897_vm1, %v4570_v51  ;;  %v4571_v61 = vpack.c.bf16 %v3324_v54, %v3324_v54  ;;  %v2815_v27 = vadd.f32 %v6961_v44, %v5628_v50  ;;  %v5630_v45 = vadd.f32 %v5497_v42, %v5363_v34  ;;  %v2374_v24 = vpop.f32.mrb[71].mxu0  ;;  %v4925_v51 = vld [vmem:[%s6642_s19 + $0x130] sm:$0xff]  }
 0x1f9   : > { %3962 = vst.msk [vmem:[%s6682_s24 + $0x100] sm:$0xf] %vm3897_vm1, %v4568_v12  ;;  %v4569_v29 = vpack.c.bf16 %v3322_v60, %v3322_v60  ;;  %v2813_v63 = vadd.f32 %v6961_v44, %v5629_v26  ;;  %v5631_v3 = vadd.f32 %v2374_v24, %v1795_v6  ;;  %v4790_v26 = vunpack.c.l.bf16 %v4926_v40 }
 0x1fa   : > { %3965 = vst.msk [vmem:[%s6682_s24 + $0x10c] sm:$0xf] %vm3897_vm1, %v4571_v61  ;;  %v3199_v35 = vadd.f32 %v4774_v55, %v2815_v27  ;;  %v2816_v2 = vadd.f32 %v6961_v44, %v5630_v45  ;;  %v4786_v45 = vunpack.c.l.bf16 %v4925_v51  ;;  %v4787_v5 = vunpack.c.h.bf16 %v4925_v51 }
 0x1fb   : > { %3963 = vst.msk [vmem:[%s6682_s24 + $0x104] sm:$0xf] %vm3897_vm1, %v4569_v29  ;;  %v3197_v30 = vadd.f32 %v4770_v47, %v2813_v63  ;;  %v2814_v36 = vadd.f32 %v6961_v44, %v5631_v3 }
 0x1fc   : > { %v3327_v53 = vmax.f32 %v3199_v35, 0.0  ;;  %v3200_v43 = vadd.f32 %v4775_v62, %v2816_v2 }
 0x1fd   : > { %v5366_v20 = vpop.f32.mrb[72].mxu1  ;;  %v3325_v48 = vmax.f32 %v3197_v30, 0.0  ;;  %v3198_v37 = vadd.f32 %v4771_v49, %v2814_v36  ;;  %v5500_v8 = vpop.f32.mrb[72].mxu0  ;;  %v4791_v49 = vunpack.c.h.bf16 %v4926_v40 }
 0x1fe   : > { %v1808_v21 = vpop.f32.mrb[73].mxu1  ;;  %v4574_v7 = vpack.c.bf16 %v3327_v53, %v3327_v53  ;;  %v3328_v52 = vmax.f32 %v3200_v43, 0.0  ;;  %v5632_v14 = vadd.f32 %v5500_v8, %v5366_v20  ;;  %v2387_v9 = vpop.f32.mrb[73].mxu0 }
 0x1ff   : > { %v5367_v38 = vpop.f32.mrb[74].mxu1  ;;  %v4572_v25 = vpack.c.bf16 %v3325_v48, %v3325_v48  ;;  %v3326_v0 = vmax.f32 %v3198_v37, 0.0  ;;  %v5633_v16 = vadd.f32 %v2387_v9, %v1808_v21  ;;  %v5501_v41 = vpop.f32.mrb[74].mxu0  ;;  %v4928_v48 = vld [vmem:[%s6642_s19 + $0x148] sm:$0xff]  }
 0x200   : > { %v1811_v1 = vpop.f32.mrb[75].mxu1  ;;  %3968 = vst.msk [vmem:[%s6682_s24 + $0x118] sm:$0xf] %vm3897_vm1, %v4574_v7  ;;  %v4575_v11 = vpack.c.bf16 %v3328_v52, %v3328_v52  ;;  %v2819_v17 = vadd.f32 %v6961_v44, %v5632_v14  ;;  %v5634_v31 = vadd.f32 %v5501_v41, %v5367_v38  ;;  %v2390_v59 = vpop.f32.mrb[75].mxu0  ;;  %v4927_v7 = vld [vmem:[%s6642_s19 + $0x140] sm:$0xff]  }
 0x201   : > { %3966 = vst.msk [vmem:[%s6682_s24 + $0x110] sm:$0xf] %vm3897_vm1, %v4572_v25  ;;  %v4573_v28 = vpack.c.bf16 %v3326_v0, %v3326_v0  ;;  %v2817_v32 = vadd.f32 %v6961_v44, %v5633_v16  ;;  %v5635_v19 = vadd.f32 %v2390_v59, %v1811_v1  ;;  %v4798_v16 = vunpack.c.l.bf16 %v4928_v48 }
 0x202   : > { %3969 = vst.msk [vmem:[%s6682_s24 + $0x11c] sm:$0xf] %vm3897_vm1, %v4575_v11  ;;  %v3203_v13 = vadd.f32 %v4782_v23, %v2819_v17  ;;  %v2820_v39 = vadd.f32 %v6961_v44, %v5634_v31  ;;  %v4794_v31 = vunpack.c.l.bf16 %v4927_v7  ;;  %v4795_v40 = vunpack.c.h.bf16 %v4927_v7 }
 0x203   : > { %3967 = vst.msk [vmem:[%s6682_s24 + $0x114] sm:$0xf] %vm3897_vm1, %v4573_v28  ;;  %v3201_v10 = vadd.f32 %v4778_v15, %v2817_v32  ;;  %v2818_v33 = vadd.f32 %v6961_v44, %v5635_v19 }
 0x204   : > { %v3331_v57 = vmax.f32 %v3203_v13, 0.0  ;;  %v3204_v46 = vadd.f32 %v4783_v58, %v2820_v39 }
 0x205   : > { %v5370_v4 = vpop.f32.mrb[76].mxu1  ;;  %v3329_v54 = vmax.f32 %v3201_v10, 0.0  ;;  %v3202_v50 = vadd.f32 %v4779_v18, %v2818_v33  ;;  %v5504_v55 = vpop.f32.mrb[76].mxu0  ;;  %v4799_v18 = vunpack.c.h.bf16 %v4928_v48 }
 0x206   : > { %v1824_v56 = vpop.f32.mrb[77].mxu1  ;;  %v4578_v34 = vpack.c.bf16 %v3331_v57, %v3331_v57  ;;  %v3332_v12 = vmax.f32 %v3204_v46, 0.0  ;;  %v5636_v60 = vadd.f32 %v5504_v55, %v5370_v4  ;;  %v2403_v47 = vpop.f32.mrb[77].mxu0 }
 0x207   : > { %v5371_v42 = vpop.f32.mrb[78].mxu1  ;;  %v4576_v6 = vpack.c.bf16 %v3329_v54, %v3329_v54  ;;  %v3330_v61 = vmax.f32 %v3202_v50, 0.0  ;;  %v5637_v27 = vadd.f32 %v2403_v47, %v1824_v56  ;;  %v5505_v62 = vpop.f32.mrb[78].mxu0  ;;  %v4930_v54 = vld [vmem:[%s6642_s19 + $0x158] sm:$0xff]  }
 0x208   : > { %v1827_v24 = vpop.f32.mrb[79].mxu1  ;;  %3972 = vst.msk [vmem:[%s6682_s24 + $0x128] sm:$0xf] %vm3897_vm1, %v4578_v34  ;;  %v4579_v29 = vpack.c.bf16 %v3332_v12, %v3332_v12  ;;  %v2823_v63 = vadd.f32 %v6961_v44, %v5636_v60  ;;  %v5638_v3 = vadd.f32 %v5505_v62, %v5371_v42  ;;  %v2406_v35 = vpop.f32.mrb[79].mxu0  ;;  %v4929_v34 = vld [vmem:[%s6642_s19 + $0x150] sm:$0xff]  }
 0x209   : > { %3970 = vst.msk [vmem:[%s6682_s24 + $0x120] sm:$0xf] %vm3897_vm1, %v4576_v6  ;;  %v4577_v2 = vpack.c.bf16 %v3330_v61, %v3330_v61  ;;  %v2821_v30 = vadd.f32 %v6961_v44, %v5637_v27  ;;  %v5639_v36 = vadd.f32 %v2406_v35, %v1827_v24  ;;  %v4806_v27 = vunpack.c.l.bf16 %v4930_v54 }
 0x20a   : > { %3973 = vst.msk [vmem:[%s6682_s24 + $0x12c] sm:$0xf] %vm3897_vm1, %v4579_v29  ;;  %v3207_v53 = vadd.f32 %v4790_v26, %v2823_v63  ;;  %v2824_v43 = vadd.f32 %v6961_v44, %v5638_v3  ;;  %v4802_v3 = vunpack.c.l.bf16 %v4929_v34  ;;  %v4803_v48 = vunpack.c.h.bf16 %v4929_v34 }
 0x20b   : > { %3971 = vst.msk [vmem:[%s6682_s24 + $0x124] sm:$0xf] %vm3897_vm1, %v4577_v2  ;;  %v3205_v20 = vadd.f32 %v4786_v45, %v2821_v30  ;;  %v2822_v22 = vadd.f32 %v6961_v44, %v5639_v36 }
 0x20c   : > { %v3335_v37 = vmax.f32 %v3207_v53, 0.0  ;;  %v3208_v8 = vadd.f32 %v4791_v49, %v2824_v43 }
 0x20d   : > { %v5374_v21 = vpop.f32.mrb[80].mxu1  ;;  %v3333_v52 = vmax.f32 %v3205_v20, 0.0  ;;  %v3206_v14 = vadd.f32 %v4787_v5, %v2822_v22  ;;  %v5508_v23 = vpop.f32.mrb[80].mxu0  ;;  %v4807_v5 = vunpack.c.h.bf16 %v4930_v54 }
 0x20e   : > { %v1840_v9 = vpop.f32.mrb[81].mxu1  ;;  %v4582_v38 = vpack.c.bf16 %v3335_v37, %v3335_v37  ;;  %v3336_v25 = vmax.f32 %v3208_v8, 0.0  ;;  %v5640_v0 = vadd.f32 %v5508_v23, %v5374_v21  ;;  %v2419_v15 = vpop.f32.mrb[81].mxu0 }
 0x20f   : > { %v5375_v41 = vpop.f32.mrb[82].mxu1  ;;  %v4580_v1 = vpack.c.bf16 %v3333_v52, %v3333_v52  ;;  %v3334_v11 = vmax.f32 %v3206_v14, 0.0  ;;  %v5641_v17 = vadd.f32 %v2419_v15, %v1840_v9  ;;  %v5509_v58 = vpop.f32.mrb[82].mxu0  ;;  %v4932_v52 = vld [vmem:[%s6642_s19 + $0x168] sm:$0xff]  }
 0x210   : > { %v1843_v59 = vpop.f32.mrb[83].mxu1  ;;  %3976 = vst.msk [vmem:[%s6682_s24 + $0x138] sm:$0xf] %vm3897_vm1, %v4582_v38  ;;  %v4583_v28 = vpack.c.bf16 %v3336_v25, %v3336_v25  ;;  %v2827_v32 = vadd.f32 %v6961_v44, %v5640_v0  ;;  %v5642_v19 = vadd.f32 %v5509_v58, %v5375_v41  ;;  %v2422_v13 = vpop.f32.mrb[83].mxu0  ;;  %v4931_v38 = vld [vmem:[%s6642_s19 + $0x160] sm:$0xff]  }
 0x211   : > { %3974 = vst.msk [vmem:[%s6682_s24 + $0x130] sm:$0xf] %vm3897_vm1, %v4580_v1  ;;  %v4581_v39 = vpack.c.bf16 %v3334_v11, %v3334_v11  ;;  %v2825_v10 = vadd.f32 %v6961_v44, %v5641_v17  ;;  %v5643_v33 = vadd.f32 %v2422_v13, %v1843_v59  ;;  %v4814_v17 = vunpack.c.l.bf16 %v4932_v52 }
 0x212   : > { %3977 = vst.msk [vmem:[%s6682_s24 + $0x13c] sm:$0xf] %vm3897_vm1, %v4583_v28  ;;  %v3211_v57 = vadd.f32 %v4798_v16, %v2827_v32  ;;  %v2828_v46 = vadd.f32 %v6961_v44, %v5642_v19  ;;  %v4810_v19 = vunpack.c.l.bf16 %v4931_v38  ;;  %v4811_v54 = vunpack.c.h.bf16 %v4931_v38 }
 0x213   : > { %3975 = vst.msk [vmem:[%s6682_s24 + $0x134] sm:$0xf] %vm3897_vm1, %v4581_v39  ;;  %v3209_v4 = vadd.f32 %v4794_v31, %v2825_v10  ;;  %v2826_v51 = vadd.f32 %v6961_v44, %v5643_v33 }
 0x214   : > { %v3339_v50 = vmax.f32 %v3211_v57, 0.0  ;;  %v3212_v55 = vadd.f32 %v4799_v18, %v2828_v46 }
 0x215   : > { %v5378_v56 = vpop.f32.mrb[84].mxu1  ;;  %v3337_v12 = vmax.f32 %v3209_v4, 0.0  ;;  %v3210_v60 = vadd.f32 %v4795_v40, %v2826_v51  ;;  %v5512_v26 = vpop.f32.mrb[84].mxu0  ;;  %v4815_v40 = vunpack.c.h.bf16 %v4932_v52 }
 0x216   : > { %v1856_v47 = vpop.f32.mrb[85].mxu1  ;;  %v4586_v42 = vpack.c.bf16 %v3339_v50, %v3339_v50  ;;  %v3340_v6 = vmax.f32 %v3212_v55, 0.0  ;;  %v5644_v61 = vadd.f32 %v5512_v26, %v5378_v56  ;;  %v2435_v45 = vpop.f32.mrb[85].mxu0 }
 0x217   : > { %v5379_v62 = vpop.f32.mrb[86].mxu1  ;;  %v4584_v24 = vpack.c.bf16 %v3337_v12, %v3337_v12  ;;  %v3338_v29 = vmax.f32 %v3210_v60, 0.0  ;;  %v5645_v63 = vadd.f32 %v2435_v45, %v1856_v47  ;;  %v5513_v49 = vpop.f32.mrb[86].mxu0  ;;  %v4934_v12 = vld [vmem:[%s6642_s19 + $0x178] sm:$0xff]  }
 0x218   : > { %v1859_v35 = vpop.f32.mrb[87].mxu1  ;;  %3980 = vst.msk [vmem:[%s6682_s24 + $0x148] sm:$0xf] %vm3897_vm1, %v4586_v42  ;;  %v4587_v2 = vpack.c.bf16 %v3340_v6, %v3340_v6  ;;  %v2831_v30 = vadd.f32 %v6961_v44, %v5644_v61  ;;  %v5646_v36 = vadd.f32 %v5513_v49, %v5379_v62  ;;  %v2438_v53 = vpop.f32.mrb[87].mxu0  ;;  %v4933_v42 = vld [vmem:[%s6642_s19 + $0x170] sm:$0xff]  }
 0x219   : > { %3978 = vst.msk [vmem:[%s6682_s24 + $0x140] sm:$0xf] %vm3897_vm1, %v4584_v24  ;;  %v4585_v43 = vpack.c.bf16 %v3338_v29, %v3338_v29  ;;  %v2829_v20 = vadd.f32 %v6961_v44, %v5645_v63  ;;  %v5647_v22 = vadd.f32 %v2438_v53, %v1859_v35  ;;  %v4822_v63 = vunpack.c.l.bf16 %v4934_v12 }
 0x21a   : > { %3981 = vst.msk [vmem:[%s6682_s24 + $0x14c] sm:$0xf] %vm3897_vm1, %v4587_v2  ;;  %v3215_v37 = vadd.f32 %v4806_v27, %v2831_v30  ;;  %v2832_v8 = vadd.f32 %v6961_v44, %v5646_v36  ;;  %v4818_v36 = vunpack.c.l.bf16 %v4933_v42  ;;  %v4819_v52 = vunpack.c.h.bf16 %v4933_v42 }
 0x21b   : > { %3979 = vst.msk [vmem:[%s6682_s24 + $0x144] sm:$0xf] %vm3897_vm1, %v4585_v43  ;;  %v3213_v21 = vadd.f32 %v4802_v3, %v2829_v20  ;;  %v2830_v7 = vadd.f32 %v6961_v44, %v5647_v22 }
 0x21c   : > { %v3343_v14 = vmax.f32 %v3215_v37, 0.0  ;;  %v3216_v23 = vadd.f32 %v4807_v5, %v2832_v8 }
 0x21d   : > { %v5382_v9 = vpop.f32.mrb[88].mxu1  ;;  %v3341_v25 = vmax.f32 %v3213_v21, 0.0  ;;  %v3214_v0 = vadd.f32 %v4803_v48, %v2830_v7  ;;  %v5516_v16 = vpop.f32.mrb[88].mxu0  ;;  %v4823_v48 = vunpack.c.h.bf16 %v4934_v12 }
 0x21e   : > { %v1872_v15 = vpop.f32.mrb[89].mxu1  ;;  %v4590_v41 = vpack.c.bf16 %v3343_v14, %v3343_v14  ;;  %v3344_v1 = vmax.f32 %v3216_v23, 0.0  ;;  %v5648_v11 = vadd.f32 %v5516_v16, %v5382_v9  ;;  %v2451_v31 = vpop.f32.mrb[89].mxu0 }
 0x21f   : > { %v5383_v58 = vpop.f32.mrb[90].mxu1  ;;  %v4588_v59 = vpack.c.bf16 %v3341_v25, %v3341_v25  ;;  %v3342_v28 = vmax.f32 %v3214_v0, 0.0  ;;  %v5649_v32 = vadd.f32 %v2451_v31, %v1872_v15  ;;  %v5517_v18 = vpop.f32.mrb[90].mxu0  ;;  %v4936_v25 = vld [vmem:[%s6642_s19 + $0x188] sm:$0xff]  }
 0x220   : > { %v1875_v13 = vpop.f32.mrb[91].mxu1  ;;  %3984 = vst.msk [vmem:[%s6682_s24 + $0x158] sm:$0xf] %vm3897_vm1, %v4590_v41  ;;  %v4591_v39 = vpack.c.bf16 %v3344_v1, %v3344_v1  ;;  %v2835_v10 = vadd.f32 %v6961_v44, %v5648_v11  ;;  %v5650_v33 = vadd.f32 %v5517_v18, %v5383_v58  ;;  %v2454_v57 = vpop.f32.mrb[91].mxu0  ;;  %v4935_v41 = vld [vmem:[%s6642_s19 + $0x180] sm:$0xff]  }
 0x221   : > { %3982 = vst.msk [vmem:[%s6682_s24 + $0x150] sm:$0xf] %vm3897_vm1, %v4588_v59  ;;  %v4589_v46 = vpack.c.bf16 %v3342_v28, %v3342_v28  ;;  %v2833_v4 = vadd.f32 %v6961_v44, %v5649_v32  ;;  %v5651_v51 = vadd.f32 %v2454_v57, %v1875_v13  ;;  %v4830_v32 = vunpack.c.l.bf16 %v4936_v25 }
 0x222   : > { %3985 = vst.msk [vmem:[%s6682_s24 + $0x15c] sm:$0xf] %vm3897_vm1, %v4591_v39  ;;  %v3219_v50 = vadd.f32 %v4814_v17, %v2835_v10  ;;  %v2836_v55 = vadd.f32 %v6961_v44, %v5650_v33  ;;  %v4826_v33 = vunpack.c.l.bf16 %v4935_v41  ;;  %v4827_v12 = vunpack.c.h.bf16 %v4935_v41 }
 0x223   : > { %3983 = vst.msk [vmem:[%s6682_s24 + $0x154] sm:$0xf] %vm3897_vm1, %v4589_v46  ;;  %v3217_v56 = vadd.f32 %v4810_v19, %v2833_v4  ;;  %v2834_v34 = vadd.f32 %v6961_v44, %v5651_v51 }
 0x224   : > { %v3347_v60 = vmax.f32 %v3219_v50, 0.0  ;;  %v3220_v26 = vadd.f32 %v4815_v40, %v2836_v55 }
 0x225   : > { %v5386_v47 = vpop.f32.mrb[92].mxu1  ;;  %v3345_v6 = vmax.f32 %v3217_v56, 0.0  ;;  %v3218_v61 = vadd.f32 %v4811_v54, %v2834_v34  ;;  %v5520_v27 = vpop.f32.mrb[92].mxu0  ;;  %v4831_v54 = vunpack.c.h.bf16 %v4936_v25 }
 0x226   : > { %v1888_v45 = vpop.f32.mrb[93].mxu1  ;;  %v4594_v62 = vpack.c.bf16 %v3347_v60, %v3347_v60  ;;  %v3348_v24 = vmax.f32 %v3220_v26, 0.0  ;;  %v5652_v29 = vadd.f32 %v5520_v27, %v5386_v47  ;;  %v2467_v3 = vpop.f32.mrb[93].mxu0 }
 0x227   : > { %v5387_v49 = vpop.f32.mrb[94].mxu1  ;;  %v4592_v35 = vpack.c.bf16 %v3345_v6, %v3345_v6  ;;  %v3346_v2 = vmax.f32 %v3218_v61, 0.0  ;;  %v5653_v30 = vadd.f32 %v2467_v3, %v1888_v45  ;;  %v5521_v5 = vpop.f32.mrb[94].mxu0  ;;  %v4938_v6 = vld [vmem:[%s6642_s19 + $0x198] sm:$0xff]  }
 0x228   : > { %v1891_v53 = vpop.f32.mrb[95].mxu1  ;;  %3988 = vst.msk [vmem:[%s6682_s24 + $0x168] sm:$0xf] %vm3897_vm1, %v4594_v62  ;;  %v4595_v43 = vpack.c.bf16 %v3348_v24, %v3348_v24  ;;  %v2839_v20 = vadd.f32 %v6961_v44, %v5652_v29  ;;  %v5654_v22 = vadd.f32 %v5521_v5, %v5387_v49  ;;  %v2470_v37 = vpop.f32.mrb[95].mxu0  ;;  %v4937_v62 = vld [vmem:[%s6642_s19 + $0x190] sm:$0xff]  }
 0x229   : > { %3986 = vst.msk [vmem:[%s6682_s24 + $0x160] sm:$0xf] %vm3897_vm1, %v4592_v35  ;;  %v4593_v8 = vpack.c.bf16 %v3346_v2, %v3346_v2  ;;  %v2837_v21 = vadd.f32 %v6961_v44, %v5653_v30  ;;  %v5655_v7 = vadd.f32 %v2470_v37, %v1891_v53  ;;  %v4838_v30 = vunpack.c.l.bf16 %v4938_v6 }
 0x22a   : > { %3989 = vst.msk [vmem:[%s6682_s24 + $0x16c] sm:$0xf] %vm3897_vm1, %v4595_v43  ;;  %v3223_v14 = vadd.f32 %v4822_v63, %v2839_v20  ;;  %v2840_v23 = vadd.f32 %v6961_v44, %v5654_v22  ;;  %v4834_v22 = vunpack.c.l.bf16 %v4937_v62  ;;  %v4835_v25 = vunpack.c.h.bf16 %v4937_v62 }
 0x22b   : > { %3987 = vst.msk [vmem:[%s6682_s24 + $0x164] sm:$0xf] %vm3897_vm1, %v4593_v8  ;;  %v3221_v9 = vadd.f32 %v4818_v36, %v2837_v21  ;;  %v2838_v38 = vadd.f32 %v6961_v44, %v5655_v7 }
 0x22c   : > { %v3351_v0 = vmax.f32 %v3223_v14, 0.0  ;;  %v3224_v16 = vadd.f32 %v4823_v48, %v2840_v23 }
 0x22d   : > { %v5390_v15 = vpop.f32.mrb[96].mxu1  ;;  %v3349_v1 = vmax.f32 %v3221_v9, 0.0  ;;  %v3222_v11 = vadd.f32 %v4819_v52, %v2838_v38  ;;  %v5524_v17 = vpop.f32.mrb[96].mxu0  ;;  %v4839_v52 = vunpack.c.h.bf16 %v4938_v6 }
 0x22e   : > { %v1904_v31 = vpop.f32.mrb[97].mxu1  ;;  %v4598_v58 = vpack.c.bf16 %v3351_v0, %v3351_v0  ;;  %v3352_v59 = vmax.f32 %v3224_v16, 0.0  ;;  %v5656_v28 = vadd.f32 %v5524_v17, %v5390_v15  ;;  %v2483_v19 = vpop.f32.mrb[97].mxu0 }
 0x22f   : > { %v5391_v18 = vpop.f32.mrb[98].mxu1  ;;  %v4596_v13 = vpack.c.bf16 %v3349_v1, %v3349_v1  ;;  %v3350_v39 = vmax.f32 %v3222_v11, 0.0  ;;  %v5657_v10 = vadd.f32 %v2483_v19, %v1904_v31  ;;  %v5525_v40 = vpop.f32.mrb[98].mxu0  ;;  %v4940_v1 = vld [vmem:[%s6642_s19 + $0x1a8] sm:$0xff]  }
 0x230   : > { %v1907_v57 = vpop.f32.mrb[99].mxu1  ;;  %3992 = vst.msk [vmem:[%s6682_s24 + $0x178] sm:$0xf] %vm3897_vm1, %v4598_v58  ;;  %v4599_v46 = vpack.c.bf16 %v3352_v59, %v3352_v59  ;;  %v2843_v4 = vadd.f32 %v6961_v44, %v5656_v28  ;;  %v5658_v51 = vadd.f32 %v5525_v40, %v5391_v18  ;;  %v2486_v50 = vpop.f32.mrb[99].mxu0  ;;  %v4939_v58 = vld [vmem:[%s6642_s19 + $0x1a0] sm:$0xff]  }
 0x231   : > { %3990 = vst.msk [vmem:[%s6682_s24 + $0x170] sm:$0xf] %vm3897_vm1, %v4596_v13  ;;  %v4597_v55 = vpack.c.bf16 %v3350_v39, %v3350_v39  ;;  %v2841_v56 = vadd.f32 %v6961_v44, %v5657_v10  ;;  %v5659_v34 = vadd.f32 %v2486_v50, %v1907_v57  ;;  %v4846_v10 = vunpack.c.l.bf16 %v4940_v1 }
 0x232   : > { %3993 = vst.msk [vmem:[%s6682_s24 + $0x17c] sm:$0xf] %vm3897_vm1, %v4599_v46  ;;  %v3227_v60 = vadd.f32 %v4830_v32, %v2843_v4  ;;  %v2844_v26 = vadd.f32 %v6961_v44, %v5658_v51  ;;  %v4842_v51 = vunpack.c.l.bf16 %v4939_v58  ;;  %v4843_v6 = vunpack.c.h.bf16 %v4939_v58 }
 0x233   : > { %3991 = vst.msk [vmem:[%s6682_s24 + $0x174] sm:$0xf] %vm3897_vm1, %v4597_v55  ;;  %v3225_v47 = vadd.f32 %v4826_v33, %v2841_v56  ;;  %v2842_v42 = vadd.f32 %v6961_v44, %v5659_v34 }
 0x234   : > { %v3355_v61 = vmax.f32 %v3227_v60, 0.0  ;;  %v3228_v27 = vadd.f32 %v4831_v54, %v2844_v26 }
 0x235   : > { %v5394_v45 = vpop.f32.mrb[100].mxu1  ;;  %v3353_v24 = vmax.f32 %v3225_v47, 0.0  ;;  %v3226_v29 = vadd.f32 %v4827_v12, %v2842_v42  ;;  %v5528_v63 = vpop.f32.mrb[100].mxu0  ;;  %v4847_v12 = vunpack.c.h.bf16 %v4940_v1 }
 0x236   : > { %v1920_v3 = vpop.f32.mrb[101].mxu1  ;;  %v4602_v49 = vpack.c.bf16 %v3355_v61, %v3355_v61  ;;  %v3356_v35 = vmax.f32 %v3228_v27, 0.0  ;;  %v5660_v2 = vadd.f32 %v5528_v63, %v5394_v45  ;;  %v2499_v36 = vpop.f32.mrb[101].mxu0 }
 0x237   : > { %v5395_v5 = vpop.f32.mrb[102].mxu1  ;;  %v4600_v53 = vpack.c.bf16 %v3353_v24, %v3353_v24  ;;  %v3354_v43 = vmax.f32 %v3226_v29, 0.0  ;;  %v5661_v20 = vadd.f32 %v2499_v36, %v1920_v3  ;;  %v5529_v48 = vpop.f32.mrb[102].mxu0  ;;  %v4942_v24 = vld [vmem:[%s6642_s19 + $0x1b8] sm:$0xff]  }
 0x238   : > { %v1923_v37 = vpop.f32.mrb[103].mxu1  ;;  %3996 = vst.msk [vmem:[%s6682_s24 + $0x188] sm:$0xf] %vm3897_vm1, %v4602_v49  ;;  %v4603_v8 = vpack.c.bf16 %v3356_v35, %v3356_v35  ;;  %v2847_v21 = vadd.f32 %v6961_v44, %v5660_v2  ;;  %v5662_v7 = vadd.f32 %v5529_v48, %v5395_v5  ;;  %v2502_v14 = vpop.f32.mrb[103].mxu0  ;;  %v4941_v49 = vld [vmem:[%s6642_s19 + $0x1b0] sm:$0xff]  }
 0x239   : > { %3994 = vst.msk [vmem:[%s6682_s24 + $0x180] sm:$0xf] %vm3897_vm1, %v4600_v53  ;;  %v4601_v23 = vpack.c.bf16 %v3354_v43, %v3354_v43  ;;  %v2845_v9 = vadd.f32 %v6961_v44, %v5661_v20  ;;  %v5663_v38 = vadd.f32 %v2502_v14, %v1923_v37  ;;  %v4854_v20 = vunpack.c.l.bf16 %v4942_v24 }
 0x23a   : > { %3997 = vst.msk [vmem:[%s6682_s24 + $0x18c] sm:$0xf] %vm3897_vm1, %v4603_v8  ;;  %v3231_v0 = vadd.f32 %v4838_v30, %v2847_v21  ;;  %v2848_v16 = vadd.f32 %v6961_v44, %v5662_v7  ;;  %v4850_v7 = vunpack.c.l.bf16 %v4941_v49  ;;  %v4851_v1 = vunpack.c.h.bf16 %v4941_v49 }
 0x23b   : > { %3995 = vst.msk [vmem:[%s6682_s24 + $0x184] sm:$0xf] %vm3897_vm1, %v4601_v23  ;;  %v3229_v15 = vadd.f32 %v4834_v22, %v2845_v9  ;;  %v2846_v41 = vadd.f32 %v6961_v44, %v5663_v38 }
 0x23c   : > { %v3359_v11 = vmax.f32 %v3231_v0, 0.0  ;;  %v3232_v17 = vadd.f32 %v4839_v52, %v2848_v16 }
 0x23d   : > { %v5398_v31 = vpop.f32.mrb[104].mxu1  ;;  %v3357_v59 = vmax.f32 %v3229_v15, 0.0  ;;  %v3230_v28 = vadd.f32 %v4835_v25, %v2846_v41  ;;  %v5532_v32 = vpop.f32.mrb[104].mxu0  ;;  %v4855_v25 = vunpack.c.h.bf16 %v4942_v24 }
 0x23e   : > { %v1936_v19 = vpop.f32.mrb[105].mxu1  ;;  %v4606_v18 = vpack.c.bf16 %v3359_v11, %v3359_v11  ;;  %v3360_v13 = vmax.f32 %v3232_v17, 0.0  ;;  %v5664_v39 = vadd.f32 %v5532_v32, %v5398_v31  ;;  %v2515_v33 = vpop.f32.mrb[105].mxu0 }
 0x23f   : > { %v5399_v40 = vpop.f32.mrb[106].mxu1  ;;  %v4604_v57 = vpack.c.bf16 %v3357_v59, %v3357_v59  ;;  %v3358_v46 = vmax.f32 %v3230_v28, 0.0  ;;  %v5665_v4 = vadd.f32 %v2515_v33, %v1936_v19  ;;  %v5533_v54 = vpop.f32.mrb[106].mxu0  ;;  %v4944_v59 = vld [vmem:[%s6642_s19 + $0x1c8] sm:$0xff]  }
 0x240   : > { %v1939_v50 = vpop.f32.mrb[107].mxu1  ;;  %4000 = vst.msk [vmem:[%s6682_s24 + $0x198] sm:$0xf] %vm3897_vm1, %v4606_v18  ;;  %v4607_v55 = vpack.c.bf16 %v3360_v13, %v3360_v13  ;;  %v2851_v56 = vadd.f32 %v6961_v44, %v5664_v39  ;;  %v5666_v34 = vadd.f32 %v5533_v54, %v5399_v40  ;;  %v2518_v60 = vpop.f32.mrb[107].mxu0  ;;  %v4943_v18 = vld [vmem:[%s6642_s19 + $0x1c0] sm:$0xff]  }
 0x241   : > { %3998 = vst.msk [vmem:[%s6682_s24 + $0x190] sm:$0xf] %vm3897_vm1, %v4604_v57  ;;  %v4605_v26 = vpack.c.bf16 %v3358_v46, %v3358_v46  ;;  %v2849_v47 = vadd.f32 %v6961_v44, %v5665_v4  ;;  %v5667_v42 = vadd.f32 %v2518_v60, %v1939_v50  ;;  %v4862_v4 = vunpack.c.l.bf16 %v4944_v59 }
 0x242   : > { %4001 = vst.msk [vmem:[%s6682_s24 + $0x19c] sm:$0xf] %vm3897_vm1, %v4607_v55  ;;  %v3235_v61 = vadd.f32 %v4846_v10, %v2851_v56  ;;  %v2852_v27 = vadd.f32 %v6961_v44, %v5666_v34  ;;  %v4858_v56 = vunpack.c.l.bf16 %v4943_v18  ;;  %v4859_v24 = vunpack.c.h.bf16 %v4943_v18 }
 0x243   : > { %3999 = vst.msk [vmem:[%s6682_s24 + $0x194] sm:$0xf] %vm3897_vm1, %v4605_v26  ;;  %v3233_v45 = vadd.f32 %v4842_v51, %v2849_v47  ;;  %v2850_v62 = vadd.f32 %v6961_v44, %v5667_v42  ;;  %v7160_v26 = vld [vmem:[%s7227_s2] ss:$0 sm:$0xff] }
 0x244   : > { %v3363_v29 = vmax.f32 %v3235_v61, 0.0  ;;  %v3236_v63 = vadd.f32 %v4847_v12, %v2852_v27 }
 0x245   : > { %v5402_v3 = vpop.f32.mrb[108].mxu1  ;;  %v3361_v35 = vmax.f32 %v3233_v45, 0.0  ;;  %v3234_v2 = vadd.f32 %v4843_v6, %v2850_v62  ;;  %v5536_v30 = vpop.f32.mrb[108].mxu0  ;;  %v4863_v6 = vunpack.c.h.bf16 %v4944_v59 }
 0x246   : > { %v1952_v36 = vpop.f32.mrb[109].mxu1  ;;  %v4610_v5 = vpack.c.bf16 %v3363_v29, %v3363_v29  ;;  %v3364_v53 = vmax.f32 %v3236_v63, 0.0  ;;  %v5668_v43 = vadd.f32 %v5536_v30, %v5402_v3  ;;  %v2531_v22 = vpop.f32.mrb[109].mxu0 }
 0x247   : > { %v5403_v48 = vpop.f32.mrb[110].mxu1  ;;  %v4608_v37 = vpack.c.bf16 %v3361_v35, %v3361_v35  ;;  %v3362_v8 = vmax.f32 %v3234_v2, 0.0  ;;  %v5669_v21 = vadd.f32 %v2531_v22, %v1952_v36  ;;  %v5537_v52 = vpop.f32.mrb[110].mxu0  ;;  %v4946_v35 = vld [vmem:[%s6642_s19 + $0x1d8] sm:$0xff]  }
 0x248   : > { %v1955_v14 = vpop.f32.mrb[111].mxu1  ;;  %4004 = vst.msk [vmem:[%s6682_s24 + $0x1a8] sm:$0xf] %vm3897_vm1, %v4610_v5  ;;  %v4611_v23 = vpack.c.bf16 %v3364_v53, %v3364_v53  ;;  %v2855_v9 = vadd.f32 %v6961_v44, %v5668_v43  ;;  %v5670_v38 = vadd.f32 %v5537_v52, %v5403_v48  ;;  %v2534_v0 = vpop.f32.mrb[111].mxu0  ;;  %v4945_v5 = vld [vmem:[%s6642_s19 + $0x1d0] sm:$0xff]  }
 0x249   : > { %4002 = vst.msk [vmem:[%s6682_s24 + $0x1a0] sm:$0xf] %vm3897_vm1, %v4608_v37  ;;  %v4609_v16 = vpack.c.bf16 %v3362_v8, %v3362_v8  ;;  %v2853_v15 = vadd.f32 %v6961_v44, %v5669_v21  ;;  %v5671_v41 = vadd.f32 %v2534_v0, %v1955_v14  ;;  %v4870_v21 = vunpack.c.l.bf16 %v4946_v35 }
 0x24a   : > { %4005 = vst.msk [vmem:[%s6682_s24 + $0x1ac] sm:$0xf] %vm3897_vm1, %v4611_v23  ;;  %v3239_v11 = vadd.f32 %v4854_v20, %v2855_v9  ;;  %v2856_v17 = vadd.f32 %v6961_v44, %v5670_v38  ;;  %v4866_v38 = vunpack.c.l.bf16 %v4945_v5  ;;  %v4867_v59 = vunpack.c.h.bf16 %v4945_v5 }
 0x24b   : > { %4003 = vst.msk [vmem:[%s6682_s24 + $0x1a4] sm:$0xf] %vm3897_vm1, %v4609_v16  ;;  %v3237_v31 = vadd.f32 %v4850_v7, %v2853_v15  ;;  %v2854_v58 = vadd.f32 %v6961_v44, %v5671_v41 }
 0x24c   : > { %v3367_v28 = vmax.f32 %v3239_v11, 0.0  ;;  %v3240_v32 = vadd.f32 %v4855_v25, %v2856_v17 }
 0x24d   : > { %v5406_v19 = vpop.f32.mrb[112].mxu1  ;;  %v3365_v13 = vmax.f32 %v3237_v31, 0.0  ;;  %v3238_v39 = vadd.f32 %v4851_v1, %v2854_v58  ;;  %v5540_v10 = vpop.f32.mrb[112].mxu0  ;;  %v4871_v1 = vunpack.c.h.bf16 %v4946_v35 }
 0x24e   : > { %v1968_v33 = vpop.f32.mrb[113].mxu1  ;;  %v4614_v40 = vpack.c.bf16 %v3367_v28, %v3367_v28  ;;  %v3368_v57 = vmax.f32 %v3240_v32, 0.0  ;;  %v5672_v46 = vadd.f32 %v5540_v10, %v5406_v19  ;;  %v2547_v51 = vpop.f32.mrb[113].mxu0 }
 0x24f   : > { %v5407_v54 = vpop.f32.mrb[114].mxu1  ;;  %v4612_v50 = vpack.c.bf16 %v3365_v13, %v3365_v13  ;;  %v3366_v55 = vmax.f32 %v3238_v39, 0.0  ;;  %v5673_v44 = vadd.f32 %v2547_v51, %v1968_v33  ;;  %v5541_v34 = vpop.f32.mrb[114].mxu0  ;;  %v4948_v13 = vld [vmem:[%s6642_s19 + $0x1e8] sm:$0xff]  }
 0x250   : > { %v1971_v12 = vpop.f32.mrb[115].mxu1  ;;  %4008 = vst.msk [vmem:[%s6682_s24 + $0x1b8] sm:$0xf] %vm3897_vm1, %v4614_v40  ;;  %v4615_v60 = vpack.c.bf16 %v3368_v57, %v3368_v57  ;;  %v2859_v47 = vadd.f32 %v7160_v26, %v5672_v46  ;;  %v5674_v42 = vadd.f32 %v5541_v34, %v5407_v54  ;;  %v2550_v61 = vpop.f32.mrb[115].mxu0  ;;  %v4947_v40 = vld [vmem:[%s6642_s19 + $0x1e0] sm:$0xff]  }
 0x251   : > { %4006 = vst.msk [vmem:[%s6682_s24 + $0x1b0] sm:$0xf] %vm3897_vm1, %v4612_v50  ;;  %v4613_v27 = vpack.c.bf16 %v3366_v55, %v3366_v55  ;;  %v2857_v45 = vadd.f32 %v7160_v26, %v5673_v44  ;;  %v5675_v62 = vadd.f32 %v2550_v61, %v1971_v12  ;;  %v4878_v44 = vunpack.c.l.bf16 %v4948_v13 }
 0x252   : > { %4009 = vst.msk [vmem:[%s6682_s24 + $0x1bc] sm:$0xf] %vm3897_vm1, %v4615_v60  ;;  %v3243_v29 = vadd.f32 %v4862_v4, %v2859_v47  ;;  %v2860_v63 = vadd.f32 %v7160_v26, %v5674_v42  ;;  %v4874_v42 = vunpack.c.l.bf16 %v4947_v40  ;;  %v4875_v35 = vunpack.c.h.bf16 %v4947_v40 }
 0x253   : > { %4007 = vst.msk [vmem:[%s6682_s24 + $0x1b4] sm:$0xf] %vm3897_vm1, %v4613_v27  ;;  %v3241_v3 = vadd.f32 %v4858_v56, %v2857_v45  ;;  %v2858_v49 = vadd.f32 %v7160_v26, %v5675_v62 }
 0x254   : > { %v3371_v2 = vmax.f32 %v3243_v29, 0.0  ;;  %v3244_v30 = vadd.f32 %v4863_v6, %v2860_v63 }
 0x255   : > { %v5410_v36 = vpop.f32.mrb[116].mxu1  ;;  %v3369_v53 = vmax.f32 %v3241_v3, 0.0  ;;  %v3242_v43 = vadd.f32 %v4859_v24, %v2858_v49  ;;  %v5544_v20 = vpop.f32.mrb[116].mxu0  ;;  %v4879_v24 = vunpack.c.h.bf16 %v4948_v13 }
 0x256   : > { %v1984_v22 = vpop.f32.mrb[117].mxu1  ;;  %v4618_v48 = vpack.c.bf16 %v3371_v2, %v3371_v2  ;;  %v3372_v37 = vmax.f32 %v3244_v30, 0.0  ;;  %v5676_v8 = vadd.f32 %v5544_v20, %v5410_v36  ;;  %v2563_v7 = vpop.f32.mrb[117].mxu0 }
 0x257   : > { %v5411_v52 = vpop.f32.mrb[118].mxu1  ;;  %v4616_v14 = vpack.c.bf16 %v3369_v53, %v3369_v53  ;;  %v3370_v23 = vmax.f32 %v3242_v43, 0.0  ;;  %v5677_v9 = vadd.f32 %v2563_v7, %v1984_v22  ;;  %v5545_v25 = vpop.f32.mrb[118].mxu0  ;;  %v4950_v53 = vld [vmem:[%s6642_s19 + $0x1f8] sm:$0xff]  }
 0x258   : > { %v1987_v0 = vpop.f32.mrb[119].mxu1  ;;  %4012 = vst.msk [vmem:[%s6682_s24 + $0x1c8] sm:$0xf] %vm3897_vm1, %v4618_v48  ;;  %v4619_v16 = vpack.c.bf16 %v3372_v37, %v3372_v37  ;;  %v2863_v15 = vadd.f32 %v7160_v26, %v5676_v8  ;;  %v5678_v41 = vadd.f32 %v5545_v25, %v5411_v52  ;;  %v2566_v11 = vpop.f32.mrb[119].mxu0  ;;  %v4949_v48 = vld [vmem:[%s6642_s19 + $0x1f0] sm:$0xff]  }
 0x259   : > { %4010 = vst.msk [vmem:[%s6682_s24 + $0x1c0] sm:$0xf] %vm3897_vm1, %v4616_v14  ;;  %v4617_v17 = vpack.c.bf16 %v3370_v23, %v3370_v23  ;;  %v2861_v31 = vadd.f32 %v7160_v26, %v5677_v9  ;;  %v5679_v58 = vadd.f32 %v2566_v11, %v1987_v0  ;;  %v4886_v9 = vunpack.c.l.bf16 %v4950_v53 }
 0x25a   : > { %4013 = vst.msk [vmem:[%s6682_s24 + $0x1cc] sm:$0xf] %vm3897_vm1, %v4619_v16  ;;  %v3247_v28 = vadd.f32 %v4870_v21, %v2863_v15  ;;  %v2864_v32 = vadd.f32 %v7160_v26, %v5678_v41  ;;  %v4882_v41 = vunpack.c.l.bf16 %v4949_v48  ;;  %v4883_v13 = vunpack.c.h.bf16 %v4949_v48 }
 0x25b   : > { %4011 = vst.msk [vmem:[%s6682_s24 + $0x1c4] sm:$0xf] %vm3897_vm1, %v4617_v17  ;;  %v3245_v19 = vadd.f32 %v4866_v38, %v2861_v31  ;;  %v2862_v18 = vadd.f32 %v7160_v26, %v5679_v58 }
 0x25c   : > { %v3375_v39 = vmax.f32 %v3247_v28, 0.0  ;;  %v3248_v10 = vadd.f32 %v4871_v1, %v2864_v32 }
 0x25d   : > { %v5414_v33 = vpop.f32.mrb[120].mxu1  ;;  %v3373_v57 = vmax.f32 %v3245_v19, 0.0  ;;  %v3246_v46 = vadd.f32 %v4867_v59, %v2862_v18  ;;  %v5548_v4 = vpop.f32.mrb[120].mxu0  ;;  %v4887_v59 = vunpack.c.h.bf16 %v4950_v53 }
 0x25e   : > { %v2000_v51 = vpop.f32.mrb[121].mxu1  ;;  %v4622_v54 = vpack.c.bf16 %v3375_v39, %v3375_v39  ;;  %v3376_v50 = vmax.f32 %v3248_v10, 0.0  ;;  %v5680_v55 = vadd.f32 %v5548_v4, %v5414_v33  ;;  %v2579_v56 = vpop.f32.mrb[121].mxu0 }
 0x25f   : > { %v5415_v34 = vpop.f32.mrb[122].mxu1  ;;  %v4620_v12 = vpack.c.bf16 %v3373_v57, %v3373_v57  ;;  %v3374_v60 = vmax.f32 %v3246_v46, 0.0  ;;  %v5681_v47 = vadd.f32 %v2579_v56, %v2000_v51  ;;  %v5549_v6 = vpop.f32.mrb[122].mxu0 }
 0x260   : > { %v2003_v61 = vpop.f32.mrb[123].mxu1  ;;  %4016 = vst.msk [vmem:[%s6682_s24 + $0x1d8] sm:$0xf] %vm3897_vm1, %v4622_v54  ;;  %v4623_v27 = vpack.c.bf16 %v3376_v50, %v3376_v50  ;;  %v2867_v45 = vadd.f32 %v7160_v26, %v5680_v55  ;;  %v5682_v62 = vadd.f32 %v5549_v6, %v5415_v34  ;;  %v2582_v29 = vpop.f32.mrb[123].mxu0 }
 0x261   : > { %4014 = vst.msk [vmem:[%s6682_s24 + $0x1d0] sm:$0xf] %vm3897_vm1, %v4620_v12  ;;  %v4621_v63 = vpack.c.bf16 %v3374_v60, %v3374_v60  ;;  %v2865_v3 = vadd.f32 %v7160_v26, %v5681_v47  ;;  %v5683_v49 = vadd.f32 %v2582_v29, %v2003_v61 }
 0x262   : > { %4017 = vst.msk [vmem:[%s6682_s24 + $0x1dc] sm:$0xf] %vm3897_vm1, %v4623_v27  ;;  %v3251_v2 = vadd.f32 %v4878_v44, %v2867_v45  ;;  %v2868_v30 = vadd.f32 %v7160_v26, %v5682_v62 }
 0x263   : > { %4015 = vst.msk [vmem:[%s6682_s24 + $0x1d4] sm:$0xf] %vm3897_vm1, %v4621_v63  ;;  %v3249_v36 = vadd.f32 %v4874_v42, %v2865_v3  ;;  %v2866_v5 = vadd.f32 %v7160_v26, %v5683_v49 }
 0x264   : > { %v3379_v43 = vmax.f32 %v3251_v2, 0.0  ;;  %v3252_v20 = vadd.f32 %v4879_v24, %v2868_v30 }
 0x265   : > { %v5418_v22 = vpop.f32.mrb[124].mxu1  ;;  %v3377_v37 = vmax.f32 %v3249_v36, 0.0  ;;  %v3250_v8 = vadd.f32 %v4875_v35, %v2866_v5  ;;  %v5552_v21 = vpop.f32.mrb[124].mxu0 }
 0x266   : > { %v2016_v7 = vpop.f32.mrb[125].mxu1  ;;  %v4626_v52 = vpack.c.bf16 %v3379_v43, %v3379_v43  ;;  %v3380_v14 = vmax.f32 %v3252_v20, 0.0  ;;  %v5684_v23 = vadd.f32 %v5552_v21, %v5418_v22  ;;  %v2595_v38 = vpop.f32.mrb[125].mxu0 }
 0x267   : > { %v5419_v25 = vpop.f32.mrb[126].mxu1  ;;  %v4624_v0 = vpack.c.bf16 %v3377_v37, %v3377_v37  ;;  %v3378_v16 = vmax.f32 %v3250_v8, 0.0  ;;  %v5685_v15 = vadd.f32 %v2595_v38, %v2016_v7  ;;  %v5553_v1 = vpop.f32.mrb[126].mxu0 }
 0x268   : > { %v2019_v11 = vpop.f32.mrb[127].mxu1  ;;  %4020 = vst.msk [vmem:[%s6682_s24 + $0x1e8] sm:$0xf] %vm3897_vm1, %v4626_v52  ;;  %v4627_v17 = vpack.c.bf16 %v3380_v14, %v3380_v14  ;;  %v2871_v31 = vadd.f32 %v7160_v26, %v5684_v23  ;;  %v5686_v58 = vadd.f32 %v5553_v1, %v5419_v25  ;;  %v2598_v28 = vpop.f32.mrb[127].mxu0 }
 0x269   : > { %4018 = vst.msk [vmem:[%s6682_s24 + $0x1e0] sm:$0xf] %vm3897_vm1, %v4624_v0  ;;  %v4625_v32 = vpack.c.bf16 %v3378_v16, %v3378_v16  ;;  %v2869_v19 = vadd.f32 %v7160_v26, %v5685_v15  ;;  %v5687_v18 = vadd.f32 %v2598_v28, %v2019_v11 }
 0x26a   : > { %4021 = vst.msk [vmem:[%s6682_s24 + $0x1ec] sm:$0xf] %vm3897_vm1, %v4627_v17  ;;  %v3255_v39 = vadd.f32 %v4886_v9, %v2871_v31  ;;  %v2872_v10 = vadd.f32 %v7160_v26, %v5686_v58 }
 0x26b   : > { %4019 = vst.msk [vmem:[%s6682_s24 + $0x1e4] sm:$0xf] %vm3897_vm1, %v4625_v32  ;;  %v3253_v33 = vadd.f32 %v4882_v41, %v2869_v19  ;;  %v2870_v40 = vadd.f32 %v7160_v26, %v5687_v18 }
 0x26c   : > { %v3383_v57 = vmax.f32 %v3255_v39, 0.0  ;;  %v3256_v46 = vadd.f32 %v4887_v59, %v2872_v10 }
 0x26d   : > { %v3381_v4 = vmax.f32 %v3253_v33, 0.0  ;;  %v3254_v51 = vadd.f32 %v4883_v13, %v2870_v40 }
 0x26e   : > { %v4630_v54 = vpack.c.bf16 %v3383_v57, %v3383_v57  ;;  %v3384_v50 = vmax.f32 %v3256_v46, 0.0 }
 0x26f   : > { %v4628_v55 = vpack.c.bf16 %v3381_v4, %v3381_v4  ;;  %v3382_v44 = vmax.f32 %v3254_v51, 0.0 }
 0x270   : > { %4024 = vst.msk [vmem:[%s6682_s24 + $0x1f8] sm:$0xf] %vm3897_vm1, %v4630_v54  ;;  %v4631_v56 = vpack.c.bf16 %v3384_v50, %v3384_v50 }
 0x271   : > { %4022 = vst.msk [vmem:[%s6682_s24 + $0x1f0] sm:$0xf] %vm3897_vm1, %v4628_v55  ;;  %v4629_v34 = vpack.c.bf16 %v3382_v44, %v3382_v44 }
 0x272   : > { %4025 = vst.msk [vmem:[%s6682_s24 + $0x1fc] sm:$0xf] %vm3897_vm1, %v4631_v56 }
 0x273   : > { %4023 = vst.msk [vmem:[%s6682_s24 + $0x1f4] sm:$0xf] %vm3897_vm1, %v4629_v34 }
 0x274 PF: > { %s14_s15 = sadd.s32 1, %s5910_s15  }
 0x275   : > { %p11_p5 = scmp.ge.s32.totalorder %s14_s15, 4  }
 0x277   :  { %13 = sbr.rel (!%p11_p5) target bundleno = 1 (0x1), region = 69 }

// kernel: _lambda_.11
= control target key start
LH: loop header
LB: loop body
LE: loop exit
PB: predicated region body
PF: predicated region fallthrough
CT: control target
= control target key end

     0   :  { %s2050_s15 = smov 0   ;;  %s2358_s0 = inlined_call_operand.vmem [shape: bf16[2,18,16,96], index: 0, kind: input, shape index: {}]   ;;  %s2359_s1 = inlined_call_operand.vmem [shape: bf16[3,96,32], index: 1, kind: input, shape index: {}]   ;;  %s2360_s2 = inlined_call_operand.vmem [shape: f32[1,32], index: 2, kind: input, shape index: {}]   ;;  %s2361_s3 = inlined_call_operand.vmem [shape: bf16[512,32], index: 3, kind: input, shape index: {}]   ;;  %s2362_s4 = inlined_call_operand.vmem [shape: bf16[512,32], index: 4, kind: output, shape index: {}]  }
   0x1 LB: > { %s2056_s16 = sadd.s32 4294967295, %s2023_s15   ;;  %p1462_p0 = scmp.ge.s32.totalorder %s2023_s15, 1  ;;  %s2023_s15 = sphi %s2050_s15, %s14_s15  }
   0x2   : > { %p173_p1 = scmp.lt.s32.totalorder %s2023_s15, 3 }
   0x4   : > { %p174_p2 = pnand %p1462_p0, %p173_p1 }
   0x5   : > { %v1981_v0 = vld [vmem:[%s2359_s1 + $0x30] sm:$0xff] (!%p174_p2)   ;;  %p204_p3 = scmp.lt.s32.totalorder (!%p174_p2), %s2056_s16, 1  ;;  %v1982_v1 = vld [vmem:[%s2359_s1] sm:$0xff] (!%p174_p2)   ;;  %v1983_v2 = vld [vmem:[%s2359_s1 + $0x38] sm:$0xff] (!%p174_p2)   ;;  %vm410_vm0 = vcmask (!%p174_p2), 785408   ;;  %s1464_s8 = sshll.u32 (!%p174_p2), %s2056_s16, 5 }
   0x6   : > { %177 = sbr.rel (%p174_p2) target bundleno = 345 (0x159), region = 36  ;;  %1764 = vmatprep.subr.bf16.mxu1 (!%p174_p2), %v1981_v0  ;;  %1808 = vmatprep.subr.bf16.mxu0 (!%p174_p2), %v1982_v1  ;;  %v1984_v3 = vld [vmem:[%s2359_s1 + $0x8] sm:$0xff] (!%p174_p2)   ;;  %v1985_v4 = vld [vmem:[%s2359_s1 + $0x40] sm:$0xff] (!%p174_p2)   ;;  %v1986_v5 = vld [vmem:[%s2359_s1 + $0x10] sm:$0xff] (!%p174_p2)   ;;  %p210_p4 = scmp.lt.s32.totalorder (!%p174_p2), %s1464_s8, 63  ;;  %vm1357_vm1 = vcmask (!%p174_p2), 257024  }
   0x7   : > { %1765 = vmatpush3.bf16.msra.mxu1 (!%p174_p2), %v1981_v0  ;;  %1809 = vmatpush3.bf16.msra.mxu0 (!%p174_p2), %v1982_v1  ;;  %v1987_v6 = vld [vmem:[%s2359_s1 + $0x48] sm:$0xff] (!%p174_p2)   ;;  %v1988_v7 = vld [vmem:[%s2359_s1 + $0x18] sm:$0xff] (!%p174_p2)   ;;  %v1989_v8 = vld [vmem:[%s2359_s1 + $0x50] sm:$0xff] (!%p174_p2)  }
   0x8   : > { %1766 = vmatprep.subr.bf16.mxu1 (!%p174_p2), %v1983_v2  ;;  %1810 = vmatprep.subr.bf16.mxu0 (!%p174_p2), %v1984_v3  ;;  %v2097_v9 = vld [vmem:[%s2359_s1 + $0x20] sm:$0xff] (!%p174_p2)   ;;  %v1991_v12 = vld [vmem:[%s2359_s1 + $0x58] sm:$0xff] (!%p174_p2)   ;;  %v1992_v13 = vld [vmem:[%s2359_s1 + $0x28] sm:$0xff] (!%p174_p2)  }
   0x9   : > { %v1996_v14 = vld [vmem:[%s2359_s1 + $0x60] sm:$0xff] (!%p174_p2)   ;;  %v1997_v17 = vld [vmem:[%s2359_s1 + $0x68] sm:$0xff] (!%p174_p2)   ;;  %v2000_v18 = vld [vmem:[%s2359_s1 + $0x70] sm:$0xff] (!%p174_p2)  }
   0xa   : > { %v2003_v21 = vld [vmem:[%s2359_s1 + $0x78] sm:$0xff] (!%p174_p2)   ;;  %v2004_v22 = vld [vmem:[%s2359_s1 + $0x80] sm:$0xff] (!%p174_p2)   ;;  %v2007_v25 = vld [vmem:[%s2359_s1 + $0x88] sm:$0xff] (!%p174_p2)  }
   0xb   : > { %1767 = vmatpush3.bf16.msra.mxu1 (!%p174_p2), %v1983_v2  ;;  %1811 = vmatpush3.bf16.msra.mxu0 (!%p174_p2), %v1984_v3  ;;  %v2227_v55 = vld [vmem:[%s2360_s2] ss:$0 sm:$0xff] (!%p174_p2) }
   0xc   : > { %1768 = vmatprep.subr.bf16.mxu1 (!%p174_p2), %v1985_v4  ;;  %1812 = vmatprep.subr.bf16.mxu0 (!%p174_p2), %v1986_v5 }
   0xd   : > { %s205_s23 = scalar_select %p204_p3, %s2056_s16, 1 }
   0xe   : > { %s2364_s8 = smov (!%p210_p4, %s1464_s8), 63 }
   0xf   : > { %s1972_s30 = smul.u32 144, %s205_s23  ;;  %1769 = vmatpush3.bf16.msra.mxu1 %v1985_v4  ;;  %1813 = vmatpush3.bf16.msra.mxu0 %v1986_v5  ;;  %s1465_s9 = sshll.u32 %s2364_s8, 2 }
  0x10   : > { %1770 = vmatprep.subr.bf16.mxu1 %v1987_v6  ;;  %1814 = vmatprep.subr.bf16.mxu0 %v1988_v7  ;;  %s2240_s18 = scalar_lea.vmem %s2362_s4, %s1465_s9 }
  0x11   : > { %s2089_s11 = scalar_lea.vmem %s2358_s0, %s1972_s30 }
  0x12   : > { %v1993_v10 = vld [vmem:[%s2089_s11 + $0x8] sm:$0xff]   ;;  %v1994_v11 = vld [vmem:[%s2089_s11] sm:$0xff]   ;;  %v1995_v15 = vld [vmem:[%s2089_s11 + $0x10] sm:$0xff]  }
  0x13   : > { %1776 = vmatprep.mubr.msk.bf16.mxu1 %vm410_vm0, %v1993_v10  ;;  %1771 = vmatpush3.bf16.msra.mxu1 %v1987_v6  ;;  %v1998_v16 = vld [vmem:[%s2089_s11 + $0x18] sm:$0xff]   ;;  %v1999_v19 = vld [vmem:[%s2089_s11 + $0x20] sm:$0xff]   ;;  %v2001_v20 = vld [vmem:[%s2089_s11 + $0x28] sm:$0xff]  }
  0x14   : > { %1820 = vmatprep.mubr.msk.bf16.mxu0 %vm410_vm0, %v1994_v11  ;;  %1815 = vmatpush3.bf16.msra.mxu0 %v1988_v7  ;;  %v2002_v23 = vld [vmem:[%s2089_s11 + $0x30] sm:$0xff]   ;;  %v2005_v24 = vld [vmem:[%s2089_s11 + $0x38] sm:$0xff]   ;;  %v2006_v26 = vld [vmem:[%s2089_s11 + $0x40] sm:$0xff]  }
  0x15   : > { %1772 = vmatprep.subr.bf16.mxu1 %v1989_v8  ;;  %1816 = vmatprep.subr.bf16.mxu0 %v2097_v9  ;;  %v2008_v27 = vld [vmem:[%s2089_s11 + $0x48] sm:$0xff]   ;;  %v2009_v28 = vld [vmem:[%s2089_s11 + $0x50] sm:$0xff]   ;;  %v2010_v29 = vld [vmem:[%s2089_s11 + $0x58] sm:$0xff]  }
  0x16   : > { %v2011_v30 = vld [vmem:[%s2089_s11 + $0x60] sm:$0xff]   ;;  %v2012_v31 = vld [vmem:[%s2089_s11 + $0x68] sm:$0xff]   ;;  %v2013_v32 = vld [vmem:[%s2089_s11 + $0x70] sm:$0xff]  }
  0x17   : > { %1773 = vmatpush3.bf16.msra.mxu1 %v1989_v8  ;;  %v2014_v33 = vld [vmem:[%s2089_s11 + $0x78] sm:$0xff]   ;;  %v2015_v34 = vld [vmem:[%s2089_s11 + $0x80] sm:$0xff]   ;;  %v2016_v35 = vld [vmem:[%s2089_s11 + $0x88] sm:$0xff]   ;;  %s2220_s11 = scalar_lea.vmem %s2361_s3, %s1465_s9 }
  0x18   : > { %1817 = vmatpush3.bf16.msra.mxu0 %v2097_v9  ;;  %1774 = vmatprep.subr.bf16.mxu1 %v1991_v12  ;;  %v1683_v52 = vld [vmem:[%s2220_s11 + $0x8] sm:$0xff]   ;;  %v1620_v53 = vld [vmem:[%s2220_s11] sm:$0xff]  }
  0x19   : > { %1818 = vmatprep.subr.bf16.mxu0 %v1992_v13  ;;  %v1625_v57 = vunpack.c.l.bf16 %v1683_v52  ;;  %v1621_v60 = vunpack.c.l.bf16 %v1620_v53  ;;  %v1626_v0 = vunpack.c.h.bf16 %v1683_v52  ;;  %v1622_v4 = vunpack.c.h.bf16 %v1620_v53 }
  0x1b   : > { %1775 = vmatpush3.bf16.msra.mxu1 %v1991_v12  ;;  %v1684_v12 = vld [vmem:[%s2220_s11 + $0x10] sm:$0xff]  }
  0x1c   : > { %1819 = vmatpush3.bf16.msra.mxu0 %v1992_v13  ;;  %1896 = vmatprep.subr.bf16.mxu1 %v1982_v1 }
  0x1d   : > { %1852 = vmatprep.subr.bf16.mxu0 %v1996_v14 }
  0x1e   : > { %1777 = vmatmul.mubr.msk.bf16.vlgmr.msra.gmra.mrb[0].mxu1 %vm410_vm0, %v1995_v15 }
  0x1f   : > { %1821 = vmatmul.mubr.msk.bf16.vlgmr.msra.gmra.mrb[0].mxu0 %vm410_vm0, %v1993_v10  ;;  %1902 = vmatpush3.bf16.msra.mxu1 %v1982_v1 }
  0x20   : > { %1853 = vmatpush3.bf16.msra.mxu0 %v1996_v14  ;;  %1780 = vmatprep.mubr.msk.bf16.mxu1 %vm410_vm0, %v1998_v16 }
  0x21   : > { %1854 = vmatprep.subr.bf16.mxu0 %v1997_v17  ;;  %1824 = vmatprep.mubr.msk.bf16.mxu0 %vm410_vm0, %v1995_v15 }
  0x22   : > { %1897 = vmatprep.subr.bf16.mxu1 %v1984_v3 }
  0x23   : > { %1903 = vmatpush3.bf16.msra.mxu1 %v1984_v3 }
  0x24   : > { %1855 = vmatpush3.bf16.msra.mxu0 %v1997_v17  ;;  %1898 = vmatprep.subr.bf16.mxu1 %v1986_v5 }
  0x25   : > { %1856 = vmatprep.subr.bf16.mxu0 %v2000_v18 }
  0x26   : > { %1781 = vmatmul.mubr.msk.bf16.gmra.mrb[4].mxu1 %vm410_vm0, %v1999_v19 }
  0x27   : > { %1825 = vmatmul.mubr.msk.bf16.gmra.mrb[4].mxu0 %vm410_vm0, %v1998_v16  ;;  %1784 = vmatprep.mubr.msk.bf16.mxu1 %vm410_vm0, %v2001_v20 }
  0x28   : > { %1857 = vmatpush3.bf16.msra.mxu0 %v2000_v18  ;;  %1828 = vmatprep.mubr.msk.bf16.mxu0 %vm410_vm0, %v1999_v19 }
  0x29   : > { %1858 = vmatprep.subr.bf16.mxu0 %v2003_v21  ;;  %1904 = vmatpush3.bf16.msra.mxu1 %v1986_v5 }
  0x2a   : > { %1899 = vmatprep.subr.bf16.mxu1 %v1988_v7 }
  0x2c   : > { %1859 = vmatpush3.bf16.msra.mxu0 %v2003_v21 }
  0x2d   : > { %1860 = vmatprep.subr.bf16.mxu0 %v2004_v22  ;;  %1905 = vmatpush3.bf16.msra.mxu1 %v1988_v7 }
  0x2e   : > { %1785 = vmatmul.mubr.msk.bf16.gmra.mrb[8].mxu1 %vm410_vm0, %v2002_v23  ;;  %1900 = vmatprep.subr.bf16.mxu1 %v2097_v9 }
  0x2f   : > { %1829 = vmatmul.mubr.msk.bf16.gmra.mrb[8].mxu0 %vm410_vm0, %v2001_v20  ;;  %1788 = vmatprep.mubr.msk.bf16.mxu1 %vm410_vm0, %v2005_v24 }
  0x30   : > { %1832 = vmatprep.mubr.msk.bf16.mxu0 %vm410_vm0, %v2002_v23  ;;  %1861 = vmatpush3.bf16.msra.mxu0 %v2004_v22 }
  0x31   : > { %1862 = vmatprep.subr.bf16.mxu0 %v2007_v25  ;;  %1906 = vmatpush3.bf16.msra.mxu1 %v2097_v9  ;;  %v1685_v9 = vld [vmem:[%s2220_s11 + $0x18] sm:$0xff]  }
  0x32   : > { %1901 = vmatprep.subr.bf16.mxu1 %v1992_v13 }
  0x34   : > { %1863 = vmatpush3.bf16.msra.mxu0 %v2007_v25 }
  0x35   : > { %1907 = vmatpush3.bf16.msra.mxu1 %v1992_v13 }
  0x36   : > { %1789 = vmatmul.mubr.msk.bf16.gmra.mrb[12].mxu1 %vm410_vm0, %v2006_v26 }
  0x37   : > { %1833 = vmatmul.mubr.msk.bf16.gmra.mrb[12].mxu0 %vm410_vm0, %v2005_v24  ;;  %1792 = vmatprep.mubr.msk.bf16.mxu1 %vm410_vm0, %v2008_v27 }
  0x38   : > { %1864 = vmatprep.mubr.msk.bf16.mxu0 %vm410_vm0, %v1995_v15 }
  0x3e   : > { %1793 = vmatmul.mubr.msk.bf16.gmra.mrb[16].mxu1 %vm410_vm0, %v2009_v28 }
  0x3f   : > { %1865 = vmatmul.mubr.msk.bf16.vlgmr.msra.gmra.mrb[0].mxu0 %vm410_vm0, %v1998_v16  ;;  %1796 = vmatprep.mubr.msk.bf16.mxu1 %vm410_vm0, %v2010_v29 }
  0x40   : > { %1868 = vmatprep.mubr.msk.bf16.mxu0 %vm410_vm0, %v1999_v19  ;;  %v1633_v19 = vunpack.c.l.bf16 %v1685_v9 }
  0x46   : > { %1797 = vmatmul.mubr.msk.bf16.gmra.mrb[20].mxu1 %vm410_vm0, %v2011_v30 }
  0x47   : > { %1869 = vmatmul.mubr.msk.bf16.gmra.mrb[4].mxu0 %vm410_vm0, %v2001_v20  ;;  %1800 = vmatprep.mubr.msk.bf16.mxu1 %vm410_vm0, %v2012_v31 }
  0x48   : > { %1872 = vmatprep.mubr.msk.bf16.mxu0 %vm410_vm0, %v2002_v23 }
  0x4e   : > { %1801 = vmatmul.mubr.msk.bf16.gmra.mrb[24].mxu1 %vm410_vm0, %v2013_v32 }
  0x4f   : > { %1873 = vmatmul.mubr.msk.bf16.gmra.mrb[8].mxu0 %vm410_vm0, %v2005_v24  ;;  %1804 = vmatprep.mubr.msk.bf16.mxu1 %vm410_vm0, %v2014_v33  ;;  %v1629_v24 = vunpack.c.l.bf16 %v1684_v12 }
  0x50   : > { %1876 = vmatprep.mubr.msk.bf16.mxu0 %vm410_vm0, %v2006_v26 }
  0x56   : > { %1805 = vmatmul.mubr.msk.bf16.gmra.mrb[28].mxu1 %vm410_vm0, %v2015_v34 }
  0x57   : > { %1877 = vmatmul.mubr.msk.bf16.gmra.mrb[12].mxu0 %vm410_vm0, %v2008_v27  ;;  %1836 = vmatprep.mubr.msk.bf16.mxu1 %vm410_vm0, %v2006_v26 }
  0x58   : > { %1880 = vmatprep.mubr.msk.bf16.mxu0 %vm410_vm0, %v2009_v28 }
  0x5e   : > { %1837 = vmatmul.mubr.msk.bf16.vlgmr.msra.gmra.mrb[16].mxu1 %vm410_vm0, %v2008_v27 }
  0x5f   : > { %1881 = vmatmul.mubr.msk.bf16.gmra.mrb[16].mxu0 %vm410_vm0, %v2010_v29  ;;  %1840 = vmatprep.mubr.msk.bf16.mxu1 %vm410_vm0, %v2009_v28 }
  0x60   : > { %1884 = vmatprep.mubr.msk.bf16.mxu0 %vm410_vm0, %v2011_v30 }
  0x66   : > { %1841 = vmatmul.mubr.msk.bf16.gmra.mrb[20].mxu1 %vm410_vm0, %v2010_v29  ;;  %v1634_v29 = vunpack.c.h.bf16 %v1685_v9 }
  0x67   : > { %1885 = vmatmul.mubr.msk.bf16.gmra.mrb[20].mxu0 %vm410_vm0, %v2012_v31  ;;  %1844 = vmatprep.mubr.msk.bf16.mxu1 %vm410_vm0, %v2011_v30 }
  0x68   : > { %1888 = vmatprep.mubr.msk.bf16.mxu0 %vm410_vm0, %v2013_v32 }
  0x6e   : > { %1845 = vmatmul.mubr.msk.bf16.gmra.mrb[24].mxu1 %vm410_vm0, %v2012_v31 }
  0x6f   : > { %1889 = vmatmul.mubr.msk.bf16.gmra.mrb[24].mxu0 %vm410_vm0, %v2014_v33  ;;  %1848 = vmatprep.mubr.msk.bf16.mxu1 %vm410_vm0, %v2013_v32 }
  0x70   : > { %1892 = vmatprep.mubr.msk.bf16.mxu0 %vm410_vm0, %v2015_v34  ;;  %v1630_v34 = vunpack.c.h.bf16 %v1684_v12 }
  0x76   : > { %1849 = vmatmul.mubr.msk.bf16.gmra.mrb[28].mxu1 %vm410_vm0, %v2014_v33 }
  0x77   : > { %1893 = vmatmul.mubr.msk.bf16.gmra.mrb[28].mxu0 %vm410_vm0, %v2016_v35 }
  0xf1   : > { %v1778_v36 = vpop.f32.mrb[0].mxu1 }
  0xf2   : > { %v493_v37 = vpop.f32.mrb[1].mxu1 }
  0xf3   : > { %v1779_v38 = vpop.f32.mrb[2].mxu1 }
  0xf4   : > { %v496_v39 = vpop.f32.mrb[3].mxu1 }
  0xf9   : > { %v1782_v40 = vpop.f32.mrb[4].mxu1 }
  0xfa   : > { %v509_v41 = vpop.f32.mrb[5].mxu1 }
  0xfb   : > { %v1783_v42 = vpop.f32.mrb[6].mxu1 }
  0xfc   : > { %v2193_v43 = vpop.f32.mrb[7].mxu1 }
 0x101   : > { %v2196_v44 = vpop.f32.mrb[8].mxu1 }
 0x102   : > { %v2198_v45 = vpop.f32.mrb[9].mxu1 }
 0x103   : > { %v2200_v46 = vpop.f32.mrb[10].mxu1 }
 0x104   : > { %v2202_v47 = vpop.f32.mrb[11].mxu1 }
 0x109   : > { %v2206_v48 = vpop.f32.mrb[12].mxu1 }
 0x10a   : > { %v2208_v49 = vpop.f32.mrb[13].mxu1 }
 0x10b   : > { %v2211_v50 = vpop.f32.mrb[14].mxu1 }
 0x10c   : > { %v2213_v51 = vpop.f32.mrb[15].mxu1 }
 0x112   : > { %v1866_v54 = vpop.f32.mrb[0].mxu0 }
 0x113   : > { %v1908_v56 = vadd.f32 %v1866_v54, %v1778_v36  ;;  %v903_v58 = vpop.f32.mrb[1].mxu0 }
 0x114   : > { %v1909_v59 = vadd.f32 %v903_v58, %v493_v37  ;;  %v1867_v61 = vpop.f32.mrb[2].mxu0 }
 0x115   : > { %v1071_v62 = vadd.f32 %v1908_v56, %v2227_v55  ;;  %v1910_v63 = vadd.f32 %v1867_v61, %v1779_v38  ;;  %v906_v1 = vpop.f32.mrb[3].mxu0 }
 0x116   : > { %v1069_v2 = vadd.f32 %v1909_v59, %v2227_v55  ;;  %v1911_v3 = vadd.f32 %v906_v1, %v496_v39  ;;  %v1687_v39 = vld [vmem:[%s2220_s11 + $0x28] sm:$0xff]  }
 0x117   : > { %v1167_v5 = vadd.f32 %v1625_v57, %v1071_v62  ;;  %v1072_v6 = vadd.f32 %v1910_v63, %v2227_v55  ;;  %v1641_v58 = vunpack.c.l.bf16 %v1687_v39 }
 0x118   : > { %v1165_v7 = vadd.f32 %v1621_v60, %v1069_v2  ;;  %v1070_v8 = vadd.f32 %v1911_v3, %v2227_v55 }
 0x119   : > { %v1199_v10 = vmax.f32 %v1167_v5, 0.0  ;;  %v1168_v11 = vadd.f32 %v1626_v0, %v1072_v6 }
 0x11a   : > { %v1197_v13 = vmax.f32 %v1165_v7, 0.0  ;;  %v1166_v14 = vadd.f32 %v1622_v4, %v1070_v8  ;;  %v1870_v15 = vpop.f32.mrb[4].mxu0  ;;  %v1642_v4 = vunpack.c.h.bf16 %v1687_v39 }
 0x11b   : > { %v1589_v16 = vpack.c.bf16 %v1199_v10, %v1199_v10  ;;  %v1200_v17 = vmax.f32 %v1168_v11, 0.0  ;;  %v1912_v18 = vadd.f32 %v1870_v15, %v1782_v40  ;;  %v919_v20 = vpop.f32.mrb[5].mxu0  ;;  %v1689_v11 = vld [vmem:[%s2220_s11 + $0x38] sm:$0xff]  }
 0x11c   : > { %v1587_v21 = vpack.c.bf16 %v1197_v13, %v1197_v13  ;;  %v1198_v22 = vmax.f32 %v1166_v14, 0.0  ;;  %v1913_v23 = vadd.f32 %v919_v20, %v509_v41  ;;  %v1871_v25 = vpop.f32.mrb[6].mxu0  ;;  %v1688_v14 = vld [vmem:[%s2220_s11 + $0x30] sm:$0xff]   ;;  %v1649_v20 = vunpack.c.l.bf16 %v1689_v11 }
 0x11d   : > { %1360 = vst.msk [vmem:[%s2240_s18 + $0x8] sm:$0xf] %vm1357_vm1, %v1589_v16  ;;  %v1590_v26 = vpack.c.bf16 %v1200_v17, %v1200_v17  ;;  %v1075_v27 = vadd.f32 %v1912_v18, %v2227_v55  ;;  %v1914_v28 = vadd.f32 %v1871_v25, %v1783_v42  ;;  %v922_v30 = vpop.f32.mrb[7].mxu0  ;;  %v1686_v42 = vld [vmem:[%s2220_s11 + $0x20] sm:$0xff]   ;;  %v1645_v25 = vunpack.c.l.bf16 %v1688_v14 }
 0x11e   : > { %1358 = vst.msk [vmem:[%s2240_s18] sm:$0xf] %vm1357_vm1, %v1587_v21  ;;  %v1588_v31 = vpack.c.bf16 %v1198_v22, %v1198_v22  ;;  %v1073_v32 = vadd.f32 %v1913_v23, %v2227_v55  ;;  %v1915_v33 = vadd.f32 %v922_v30, %v2193_v43  ;;  %v1637_v63 = vunpack.c.l.bf16 %v1686_v42 }
 0x11f   : > { %1361 = vst.msk [vmem:[%s2240_s18 + $0xc] sm:$0xf] %vm1357_vm1, %v1590_v26  ;;  %v1171_v35 = vadd.f32 %v1633_v19, %v1075_v27  ;;  %v1076_v36 = vadd.f32 %v1914_v28, %v2227_v55  ;;  %v1638_v7 = vunpack.c.h.bf16 %v1686_v42  ;;  %v1650_v30 = vunpack.c.h.bf16 %v1689_v11 }
 0x120   : > { %1359 = vst.msk [vmem:[%s2240_s18 + $0x4] sm:$0xf] %vm1357_vm1, %v1588_v31  ;;  %v1169_v37 = vadd.f32 %v1629_v24, %v1073_v32  ;;  %v1074_v38 = vadd.f32 %v1915_v33, %v2227_v55  ;;  %v1646_v33 = vunpack.c.h.bf16 %v1688_v14 }
 0x121   : > { %v1203_v40 = vmax.f32 %v1171_v35, 0.0  ;;  %v1172_v41 = vadd.f32 %v1634_v29, %v1076_v36 }
 0x122   : > { %v1201_v52 = vmax.f32 %v1169_v37, 0.0  ;;  %v1170_v53 = vadd.f32 %v1630_v34, %v1074_v38  ;;  %v1874_v54 = vpop.f32.mrb[8].mxu0  ;;  %v1691_v37 = vld [vmem:[%s2220_s11 + $0x48] sm:$0xff]  }
 0x123   : > { %v1593_v43 = vpack.c.bf16 %v1203_v40, %v1203_v40  ;;  %v1204_v56 = vmax.f32 %v1172_v41, 0.0  ;;  %v1916_v57 = vadd.f32 %v1874_v54, %v2196_v44  ;;  %v935_v59 = vpop.f32.mrb[9].mxu0  ;;  %v1690_v41 = vld [vmem:[%s2220_s11 + $0x40] sm:$0xff]  }
 0x124   : > { %v1591_v60 = vpack.c.bf16 %v1201_v52, %v1201_v52  ;;  %v1202_v61 = vmax.f32 %v1170_v53, 0.0  ;;  %v1917_v62 = vadd.f32 %v935_v59, %v2198_v45  ;;  %v1875_v0 = vpop.f32.mrb[10].mxu0 }
 0x125   : > { %1364 = vst.msk [vmem:[%s2240_s18 + $0x18] sm:$0xf] %vm1357_vm1, %v1593_v43  ;;  %v1594_v1 = vpack.c.bf16 %v1204_v56, %v1204_v56  ;;  %v1079_v2 = vadd.f32 %v1916_v57, %v2227_v55  ;;  %v1918_v3 = vadd.f32 %v1875_v0, %v2200_v46  ;;  %v938_v44 = vpop.f32.mrb[11].mxu0  ;;  %v1657_v57 = vunpack.c.l.bf16 %v1691_v37 }
 0x126   : > { %1362 = vst.msk [vmem:[%s2240_s18 + $0x10] sm:$0xf] %vm1357_vm1, %v1591_v60  ;;  %v1592_v5 = vpack.c.bf16 %v1202_v61, %v1202_v61  ;;  %v1077_v6 = vadd.f32 %v1917_v62, %v2227_v55  ;;  %v1919_v45 = vadd.f32 %v938_v44, %v2202_v47  ;;  %v1658_v44 = vunpack.c.h.bf16 %v1691_v37 }
 0x127   : > { %1365 = vst.msk [vmem:[%s2240_s18 + $0x1c] sm:$0xf] %vm1357_vm1, %v1594_v1  ;;  %v1175_v8 = vadd.f32 %v1641_v58, %v1079_v2  ;;  %v1080_v9 = vadd.f32 %v1918_v3, %v2227_v55 }
 0x128   : > { %1363 = vst.msk [vmem:[%s2240_s18 + $0x14] sm:$0xf] %vm1357_vm1, %v1592_v5  ;;  %v1173_v10 = vadd.f32 %v1637_v63, %v1077_v6  ;;  %v1078_v46 = vadd.f32 %v1919_v45, %v2227_v55  ;;  %v1653_v63 = vunpack.c.l.bf16 %v1690_v41 }
 0x129   : > { %v1207_v12 = vmax.f32 %v1175_v8, 0.0  ;;  %v1176_v13 = vadd.f32 %v1642_v4, %v1080_v9  ;;  %v1654_v8 = vunpack.c.h.bf16 %v1690_v41 }
 0x12a   : > { %v1205_v15 = vmax.f32 %v1173_v10, 0.0  ;;  %v1174_v16 = vadd.f32 %v1638_v7, %v1078_v46  ;;  %v1878_v17 = vpop.f32.mrb[12].mxu0 }
 0x12b   : > { %v1597_v47 = vpack.c.bf16 %v1207_v12, %v1207_v12  ;;  %v1208_v18 = vmax.f32 %v1176_v13, 0.0  ;;  %v1920_v19 = vadd.f32 %v1878_v17, %v2206_v48  ;;  %v951_v21 = vpop.f32.mrb[13].mxu0  ;;  %v1693_v12 = vld [vmem:[%s2220_s11 + $0x58] sm:$0xff]  }
 0x12c   : > { %v1595_v22 = vpack.c.bf16 %v1205_v15, %v1205_v15  ;;  %v1206_v23 = vmax.f32 %v1174_v16, 0.0  ;;  %v1921_v24 = vadd.f32 %v951_v21, %v2208_v49  ;;  %v1879_v26 = vpop.f32.mrb[14].mxu0  ;;  %v1692_v16 = vld [vmem:[%s2220_s11 + $0x50] sm:$0xff]  }
 0x12d   : > { %1368 = vst.msk [vmem:[%s2240_s18 + $0x28] sm:$0xf] %vm1357_vm1, %v1597_v47  ;;  %v1598_v27 = vpack.c.bf16 %v1208_v18, %v1208_v18  ;;  %v1083_v28 = vadd.f32 %v1920_v19, %v2227_v55  ;;  %v1922_v29 = vadd.f32 %v1879_v26, %v2211_v50  ;;  %v954_v48 = vpop.f32.mrb[15].mxu0  ;;  %v1662_v37 = vunpack.c.h.bf16 %v1692_v16 }
 0x12e   : > { %1366 = vst.msk [vmem:[%s2240_s18 + $0x20] sm:$0xf] %vm1357_vm1, %v1595_v22  ;;  %v1596_v31 = vpack.c.bf16 %v1206_v23, %v1206_v23  ;;  %v1081_v32 = vadd.f32 %v1921_v24, %v2227_v55  ;;  %v1923_v49 = vadd.f32 %v954_v48, %v2213_v51  ;;  %v1665_v23 = vunpack.c.l.bf16 %v1693_v12 }
 0x12f   : > { %1369 = vst.msk [vmem:[%s2240_s18 + $0x2c] sm:$0xf] %vm1357_vm1, %v1598_v27  ;;  %v1179_v34 = vadd.f32 %v1649_v20, %v1083_v28  ;;  %v1084_v35 = vadd.f32 %v1922_v29, %v2227_v55  ;;  %v1661_v29 = vunpack.c.l.bf16 %v1692_v16 }
 0x130   : > { %1367 = vst.msk [vmem:[%s2240_s18 + $0x24] sm:$0xf] %vm1357_vm1, %v1596_v31  ;;  %v1177_v36 = vadd.f32 %v1645_v25, %v1081_v32  ;;  %v1082_v50 = vadd.f32 %v1923_v49, %v2227_v55 }
 0x131   : > { %v1211_v38 = vmax.f32 %v1179_v34, 0.0  ;;  %v1180_v39 = vadd.f32 %v1650_v30, %v1084_v35  ;;  %v1838_v40 = vpop.f32.mrb[16].mxu1 }
 0x132   : > { %v1209_v42 = vmax.f32 %v1177_v36, 0.0  ;;  %v1178_v52 = vadd.f32 %v1646_v33, %v1082_v50  ;;  %v1882_v51 = vpop.f32.mrb[16].mxu0  ;;  %v762_v53 = vpop.f32.mrb[17].mxu1  ;;  %v1666_v33 = vunpack.c.h.bf16 %v1693_v12 }
 0x133   : > { %v1601_v54 = vpack.c.bf16 %v1211_v38, %v1211_v38  ;;  %v1212_v43 = vmax.f32 %v1180_v39, 0.0  ;;  %v1924_v56 = vadd.f32 %v1882_v51, %v1838_v40  ;;  %v967_v58 = vpop.f32.mrb[17].mxu0  ;;  %v1839_v59 = vpop.f32.mrb[18].mxu1 }
 0x134   : > { %v1599_v60 = vpack.c.bf16 %v1209_v42, %v1209_v42  ;;  %v1210_v61 = vmax.f32 %v1178_v52, 0.0  ;;  %v1925_v62 = vadd.f32 %v967_v58, %v762_v53  ;;  %v1883_v0 = vpop.f32.mrb[18].mxu0  ;;  %v765_v1 = vpop.f32.mrb[19].mxu1  ;;  %v1695_v42 = vld [vmem:[%s2220_s11 + $0x68] sm:$0xff]  }
 0x135   : > { %1372 = vst.msk [vmem:[%s2240_s18 + $0x38] sm:$0xf] %vm1357_vm1, %v1601_v54  ;;  %v1602_v2 = vpack.c.bf16 %v1212_v43, %v1212_v43  ;;  %v1087_v3 = vadd.f32 %v1924_v56, %v2227_v55  ;;  %v1926_v4 = vadd.f32 %v1883_v0, %v1839_v59  ;;  %v970_v5 = vpop.f32.mrb[19].mxu0  ;;  %v1694_v54 = vld [vmem:[%s2220_s11 + $0x60] sm:$0xff]  }
 0x136   : > { %1370 = vst.msk [vmem:[%s2240_s18 + $0x30] sm:$0xf] %vm1357_vm1, %v1599_v60  ;;  %v1600_v6 = vpack.c.bf16 %v1210_v61, %v1210_v61  ;;  %v1085_v45 = vadd.f32 %v1925_v62, %v2227_v55  ;;  %v1927_v7 = vadd.f32 %v970_v5, %v765_v1  ;;  %v1673_v62 = vunpack.c.l.bf16 %v1695_v42 }
 0x137   : > { %1373 = vst.msk [vmem:[%s2240_s18 + $0x3c] sm:$0xf] %vm1357_vm1, %v1602_v2  ;;  %v1183_v9 = vadd.f32 %v1657_v57, %v1087_v3  ;;  %v1088_v10 = vadd.f32 %v1926_v4, %v2227_v55  ;;  %v1669_v4 = vunpack.c.l.bf16 %v1694_v54  ;;  %v1670_v12 = vunpack.c.h.bf16 %v1694_v54 }
 0x138   : > { %1371 = vst.msk [vmem:[%s2240_s18 + $0x34] sm:$0xf] %vm1357_vm1, %v1600_v6  ;;  %v1181_v46 = vadd.f32 %v1653_v63, %v1085_v45  ;;  %v1086_v11 = vadd.f32 %v1927_v7, %v2227_v55 }
 0x139   : > { %v1215_v13 = vmax.f32 %v1183_v9, 0.0  ;;  %v1184_v14 = vadd.f32 %v1658_v44, %v1088_v10  ;;  %v1842_v15 = vpop.f32.mrb[20].mxu1 }
 0x13a   : > { %v1213_v17 = vmax.f32 %v1181_v46, 0.0  ;;  %v1182_v47 = vadd.f32 %v1654_v8, %v1086_v11  ;;  %v1886_v18 = vpop.f32.mrb[20].mxu0  ;;  %v778_v19 = vpop.f32.mrb[21].mxu1  ;;  %v1674_v8 = vunpack.c.h.bf16 %v1695_v42 }
 0x13b   : > { %v1605_v20 = vpack.c.bf16 %v1215_v13, %v1215_v13  ;;  %v1216_v21 = vmax.f32 %v1184_v14, 0.0  ;;  %v1928_v22 = vadd.f32 %v1886_v18, %v1842_v15  ;;  %v983_v24 = vpop.f32.mrb[21].mxu0  ;;  %v1843_v25 = vpop.f32.mrb[22].mxu1 }
 0x13c   : > { %v1603_v26 = vpack.c.bf16 %v1213_v17, %v1213_v17  ;;  %v1214_v27 = vmax.f32 %v1182_v47, 0.0  ;;  %v1929_v28 = vadd.f32 %v983_v24, %v778_v19  ;;  %v1887_v30 = vpop.f32.mrb[22].mxu0  ;;  %v781_v48 = vpop.f32.mrb[23].mxu1  ;;  %v1697_v17 = vld [vmem:[%s2220_s11 + $0x78] sm:$0xff]  }
 0x13d   : > { %1376 = vst.msk [vmem:[%s2240_s18 + $0x48] sm:$0xf] %vm1357_vm1, %v1605_v20  ;;  %v1606_v31 = vpack.c.bf16 %v1216_v21, %v1216_v21  ;;  %v1091_v32 = vadd.f32 %v1928_v22, %v2227_v55  ;;  %v1930_v49 = vadd.f32 %v1887_v30, %v1843_v25  ;;  %v986_v34 = vpop.f32.mrb[23].mxu0  ;;  %v1696_v20 = vld [vmem:[%s2220_s11 + $0x70] sm:$0xff]  }
 0x13e   : > { %1374 = vst.msk [vmem:[%s2240_s18 + $0x40] sm:$0xf] %vm1357_vm1, %v1603_v26  ;;  %v1604_v35 = vpack.c.bf16 %v1214_v27, %v1214_v27  ;;  %v1089_v36 = vadd.f32 %v1929_v28, %v2227_v55  ;;  %v1931_v50 = vadd.f32 %v986_v34, %v781_v48  ;;  %v1681_v28 = vunpack.c.l.bf16 %v1697_v17 }
 0x13f   : > { %1377 = vst.msk [vmem:[%s2240_s18 + $0x4c] sm:$0xf] %vm1357_vm1, %v1606_v31  ;;  %v1187_v38 = vadd.f32 %v1665_v23, %v1091_v32  ;;  %v1092_v39 = vadd.f32 %v1930_v49, %v2227_v55  ;;  %v1677_v49 = vunpack.c.l.bf16 %v1696_v20  ;;  %v1678_v42 = vunpack.c.h.bf16 %v1696_v20 }
 0x140   : > { %1375 = vst.msk [vmem:[%s2240_s18 + $0x44] sm:$0xf] %vm1357_vm1, %v1604_v35  ;;  %v1185_v40 = vadd.f32 %v1661_v29, %v1089_v36  ;;  %v1090_v41 = vadd.f32 %v1931_v50, %v2227_v55 }
 0x141   : > { %v1219_v52 = vmax.f32 %v1187_v38, 0.0  ;;  %v1188_v51 = vadd.f32 %v1666_v33, %v1092_v39  ;;  %v1846_v53 = vpop.f32.mrb[24].mxu1 }
 0x142   : > { %v1217_v43 = vmax.f32 %v1185_v40, 0.0  ;;  %v1186_v56 = vadd.f32 %v1662_v37, %v1090_v41  ;;  %v1890_v57 = vpop.f32.mrb[24].mxu0  ;;  %v794_v58 = vpop.f32.mrb[25].mxu1  ;;  %v1682_v37 = vunpack.c.h.bf16 %v1697_v17 }
 0x143   : > { %v1609_v59 = vpack.c.bf16 %v1219_v52, %v1219_v52  ;;  %v1220_v60 = vmax.f32 %v1188_v51, 0.0  ;;  %v1932_v61 = vadd.f32 %v1890_v57, %v1846_v53  ;;  %v999_v63 = vpop.f32.mrb[25].mxu0  ;;  %v1847_v0 = vpop.f32.mrb[26].mxu1 }
 0x144   : > { %v1607_v1 = vpack.c.bf16 %v1217_v43, %v1217_v43  ;;  %v1218_v2 = vmax.f32 %v1186_v56, 0.0  ;;  %v1933_v3 = vadd.f32 %v999_v63, %v794_v58  ;;  %v1891_v44 = vpop.f32.mrb[26].mxu0  ;;  %v797_v5 = vpop.f32.mrb[27].mxu1 }
 0x145   : > { %1380 = vst.msk [vmem:[%s2240_s18 + $0x58] sm:$0xf] %vm1357_vm1, %v1609_v59  ;;  %v1610_v6 = vpack.c.bf16 %v1220_v60, %v1220_v60  ;;  %v1095_v45 = vadd.f32 %v1932_v61, %v2227_v55  ;;  %v1934_v7 = vadd.f32 %v1891_v44, %v1847_v0  ;;  %v1002_v9 = vpop.f32.mrb[27].mxu0 }
 0x146   : > { %1378 = vst.msk [vmem:[%s2240_s18 + $0x50] sm:$0xf] %vm1357_vm1, %v1607_v1  ;;  %v1608_v10 = vpack.c.bf16 %v1218_v2, %v1218_v2  ;;  %v1093_v46 = vadd.f32 %v1933_v3, %v2227_v55  ;;  %v1935_v11 = vadd.f32 %v1002_v9, %v797_v5 }
 0x147   : > { %1381 = vst.msk [vmem:[%s2240_s18 + $0x5c] sm:$0xf] %vm1357_vm1, %v1610_v6  ;;  %v1191_v13 = vadd.f32 %v1673_v62, %v1095_v45  ;;  %v1096_v14 = vadd.f32 %v1934_v7, %v2227_v55 }
 0x148   : > { %1379 = vst.msk [vmem:[%s2240_s18 + $0x54] sm:$0xf] %vm1357_vm1, %v1608_v10  ;;  %v1189_v15 = vadd.f32 %v1669_v4, %v1093_v46  ;;  %v1094_v16 = vadd.f32 %v1935_v11, %v2227_v55 }
 0x149   : > { %v1223_v47 = vmax.f32 %v1191_v13, 0.0  ;;  %v1192_v18 = vadd.f32 %v1674_v8, %v1096_v14  ;;  %v1850_v19 = vpop.f32.mrb[28].mxu1 }
 0x14a   : > { %v1221_v21 = vmax.f32 %v1189_v15, 0.0  ;;  %v1190_v22 = vadd.f32 %v1670_v12, %v1094_v16  ;;  %v1894_v23 = vpop.f32.mrb[28].mxu0  ;;  %v810_v24 = vpop.f32.mrb[29].mxu1 }
 0x14b   : > { %v1613_v25 = vpack.c.bf16 %v1223_v47, %v1223_v47  ;;  %v1224_v26 = vmax.f32 %v1192_v18, 0.0  ;;  %v1936_v27 = vadd.f32 %v1894_v23, %v1850_v19  ;;  %v1015_v29 = vpop.f32.mrb[29].mxu0  ;;  %v1851_v30 = vpop.f32.mrb[30].mxu1 }
 0x14c   : > { %v1611_v48 = vpack.c.bf16 %v1221_v21, %v1221_v21  ;;  %v1222_v31 = vmax.f32 %v1190_v22, 0.0  ;;  %v1937_v32 = vadd.f32 %v1015_v29, %v810_v24  ;;  %v1895_v33 = vpop.f32.mrb[30].mxu0  ;;  %v813_v34 = vpop.f32.mrb[31].mxu1 }
 0x14d   : > { %1384 = vst.msk [vmem:[%s2240_s18 + $0x68] sm:$0xf] %vm1357_vm1, %v1613_v25  ;;  %v1614_v35 = vpack.c.bf16 %v1224_v26, %v1224_v26  ;;  %v1099_v36 = vadd.f32 %v1936_v27, %v2227_v55  ;;  %v1938_v50 = vadd.f32 %v1895_v33, %v1851_v30  ;;  %v1018_v38 = vpop.f32.mrb[31].mxu0 }
 0x14e   : > { %1382 = vst.msk [vmem:[%s2240_s18 + $0x60] sm:$0xf] %vm1357_vm1, %v1611_v48  ;;  %v1612_v39 = vpack.c.bf16 %v1222_v31, %v1222_v31  ;;  %v1097_v40 = vadd.f32 %v1937_v32, %v2227_v55  ;;  %v1939_v41 = vadd.f32 %v1018_v38, %v813_v34 }
 0x14f   : > { %1385 = vst.msk [vmem:[%s2240_s18 + $0x6c] sm:$0xf] %vm1357_vm1, %v1614_v35  ;;  %v1195_v52 = vadd.f32 %v1681_v28, %v1099_v36  ;;  %v1100_v51 = vadd.f32 %v1938_v50, %v2227_v55 }
 0x150   : > { %1383 = vst.msk [vmem:[%s2240_s18 + $0x64] sm:$0xf] %vm1357_vm1, %v1612_v39  ;;  %v1193_v53 = vadd.f32 %v1677_v49, %v1097_v40  ;;  %v1098_v54 = vadd.f32 %v1939_v41, %v2227_v55 }
 0x151   : > { %v1227_v43 = vmax.f32 %v1195_v52, 0.0  ;;  %v1196_v56 = vadd.f32 %v1682_v37, %v1100_v51 }
 0x152   : > { %v1225_v57 = vmax.f32 %v1193_v53, 0.0  ;;  %v1194_v58 = vadd.f32 %v1678_v42, %v1098_v54 }
 0x153   : > { %v1617_v59 = vpack.c.bf16 %v1227_v43, %v1227_v43  ;;  %v1228_v60 = vmax.f32 %v1196_v56, 0.0 }
 0x154   : > { %v1615_v61 = vpack.c.bf16 %v1225_v57, %v1225_v57  ;;  %v1226_v62 = vmax.f32 %v1194_v58, 0.0 }
 0x155   : > { %1388 = vst.msk [vmem:[%s2240_s18 + $0x78] sm:$0xf] %vm1357_vm1, %v1617_v59  ;;  %v1618_v63 = vpack.c.bf16 %v1228_v60, %v1228_v60 }
 0x156   : > { %1386 = vst.msk [vmem:[%s2240_s18 + $0x70] sm:$0xf] %vm1357_vm1, %v1615_v61  ;;  %v1616_v0 = vpack.c.bf16 %v1226_v62, %v1226_v62 }
 0x157   : > { %1389 = vst.msk [vmem:[%s2240_s18 + $0x7c] sm:$0xf] %vm1357_vm1, %v1618_v63 }
 0x158   : > { %1387 = vst.msk [vmem:[%s2240_s18 + $0x74] sm:$0xf] %vm1357_vm1, %v1616_v0 }
 0x159 PF: > { %s14_s15 = sadd.s32 1, %s2023_s15  }
 0x15a   : > { %p11_p5 = scmp.ge.s32.totalorder %s14_s15, 4  }
 0x15c   :  { %13 = sbr.rel (!%p11_p5) target bundleno = 1 (0x1), region = 69 }

// kernel: _lambda_.12
= control target key start
LH: loop header
LB: loop body
LE: loop exit
PB: predicated region body
PF: predicated region fallthrough
CT: control target
= control target key end

     0   :  { %s1277_s24 = smov 0   ;;  %s1455_s0 = inlined_call_operand.vmem [shape: bf16[128,288], index: 0, kind: input, shape index: {}]   ;;  %s1456_s1 = inlined_call_operand.vmem [shape: bf16[128,32], index: 1, kind: input, shape index: {}]   ;;  %s1457_s2 = inlined_call_operand.vmem [shape: bf16[288,64], index: 2, kind: input, shape index: {}]   ;;  %s1458_s3 = inlined_call_operand.vmem [shape: f32[1,64], index: 3, kind: input, shape index: {}, may-alias: {3,5}]   ;;  %s1459_s4 = inlined_call_operand.vmem [shape: bf16[32,64], index: 4, kind: input, shape index: {}]   ;;  %s1460_s5 = inlined_call_operand.vmem [shape: f32[1,64], index: 5, kind: input, shape index: {}, may-alias: {3,5}]   ;;  %s1461_s6 = inlined_call_operand.vmem [shape: bf16[128,64], index: 6, kind: output, shape index: {0}]   ;;  %s1462_s7 = inlined_call_operand.vmem [shape: bf16[128,64], index: 7, kind: output, shape index: {1}]  }
   0x1 LB: > { %s1011_s25 = sadd.s32 4294967295, %s1235_s24   ;;  %p1015_p0 = scmp.ge.s32.totalorder %s1235_s24, 1  ;;  %s1235_s24 = sphi %s1277_s24, %s18_s24  }
   0x2   : > { %p253_p1 = scmp.lt.s32.totalorder %s1235_s24, 3 }
   0x4   : > { %p254_p2 = pnand %p1015_p0, %p253_p1 }
   0x5   : > { %v1189_v0 = vld [vmem:[%s1457_s2 + $0x40] sm:$0xff] (!%p254_p2)   ;;  %s1016_s28 = sshll.u32 (!%p254_p2), %s1011_s25, 3  ;;  %v1191_v2 = vld [vmem:[%s1457_s2 + $0x48] sm:$0xff] (!%p254_p2)   ;;  %v1193_v4 = vld [vmem:[%s1457_s2 + $0x50] sm:$0xff] (!%p254_p2)   ;;  %vm549_vm0 = vcmask (!%p254_p2), 261120   ;;  %vm732_vm1 = vcmask (!%p254_p2), 519168  }
   0x6   : > { %257 = sbr.rel (%p254_p2) target bundleno = 288 (0x120), region = 44  ;;  %v1190_v1 = vld [vmem:[%s1457_s2] sm:$0xff] (!%p254_p2)   ;;  %1104 = vmatprep.subr.bf16.mxu0 (!%p254_p2), %v1189_v0  ;;  %v1192_v3 = vld [vmem:[%s1457_s2 + $0x8] sm:$0xff] (!%p254_p2)   ;;  %p297_p3 = scmp.lt.s32.totalorder (!%p254_p2), %s1016_s28, 15  ;;  %v1194_v5 = vld [vmem:[%s1457_s2 + $0x10] sm:$0xff] (!%p254_p2)  }
   0x7   : > { %1105 = vmatpush3.bf16.msra.mxu0 (!%p254_p2), %v1190_v1  ;;  %v1195_v6 = vld [vmem:[%s1457_s2 + $0x58] sm:$0xff] (!%p254_p2)   ;;  %v1197_v8 = vld [vmem:[%s1457_s2 + $0x60] sm:$0xff] (!%p254_p2)   ;;  %v1199_v11 = vld [vmem:[%s1457_s2 + $0x68] sm:$0xff] (!%p254_p2)  }
   0x8   : > { %1106 = vmatprep.subr.bf16.mxu0 (!%p254_p2), %v1191_v2  ;;  %v1196_v7 = vld [vmem:[%s1457_s2 + $0x18] sm:$0xff] (!%p254_p2)   ;;  %v1203_v9 = vld [vmem:[%s1457_s2 + $0x80] sm:$0xff] (!%p254_p2)   ;;  %v1200_v12 = vld [vmem:[%s1457_s2 + $0x28] sm:$0xff] (!%p254_p2)  }
   0x9   : > { %v1198_v10 = vld [vmem:[%s1457_s2 + $0x20] sm:$0xff] (!%p254_p2)   ;;  %1156 = vmatprep.subr.bf16.mxu1 (!%p254_p2), %v1203_v9  ;;  %v1201_v13 = vld [vmem:[%s1457_s2 + $0x70] sm:$0xff] (!%p254_p2)   ;;  %v1209_v15 = vld [vmem:[%s1457_s2 + $0x88] sm:$0xff] (!%p254_p2)  }
   0xa   : > { %1157 = vmatpush3.bf16.msra.mxu1 (!%p254_p2), %v1203_v9  ;;  %v1212_v18 = vld [vmem:[%s1459_s4] sm:$0xff] (!%p254_p2)   ;;  %v1202_v19 = vld [vmem:[%s1457_s2 + $0x30] sm:$0xff] (!%p254_p2)   ;;  %v1204_v20 = vld [vmem:[%s1457_s2 + $0x78] sm:$0xff] (!%p254_p2)  }
   0xb   : > { %1107 = vmatpush3.bf16.msra.mxu0 (!%p254_p2), %v1192_v3  ;;  %1158 = vmatprep.subr.bf16.mxu1 (!%p254_p2), %v1209_v15  ;;  %v1218_v22 = vld [vmem:[%s1459_s4 + $0x8] sm:$0xff] (!%p254_p2)   ;;  %v1205_v23 = vld [vmem:[%s1457_s2 + $0x38] sm:$0xff] (!%p254_p2)   ;;  %v1387_v44 = vld [vmem:[%s1458_s3] ss:$0 sm:$0xff] (!%p254_p2) }
   0xc   : > { %1108 = vmatprep.subr.bf16.mxu0 (!%p254_p2), %v1193_v4  ;;  %v1067_v52 = vld [vmem:[%s1460_s5] ss:$0 sm:$0xff] (!%p254_p2) }
   0xd   : > { %s1464_s28 = smov (!%p297_p3, %s1016_s28), 15 }
   0xe   : > { %s1180_s20 = smul.u32 12, %s1464_s28  ;;  %1159 = vmatpush3.bf16.msra.mxu1 %v1209_v15  ;;  %s1352_s23 = sshll.u32 %s1464_s28, 2 }
   0xf   : > { %1109 = vmatpush3.bf16.msra.mxu0 %v1194_v5  ;;  %1168 = vmatprep.subr.bf16.mxu1 %v1212_v18  ;;  %s307_s9 = scalar_lea.vmem %s1456_s1, %s1352_s23  ;;  %s1402_s15 = scalar_lea.vmem %s1461_s6, %s1352_s23 }
  0x10   : > { %1110 = vmatprep.subr.bf16.mxu0 %v1195_v6  ;;  %s1324_s8 = scalar_lea.vmem %s1455_s0, %s1180_s20  ;;  %v1222_v26 = vld [vmem:[%s307_s9] sm:$0xff]   ;;  %v1223_v28 = vld [vmem:[%s307_s9 + $0x8] sm:$0xff]   ;;  %v1227_v30 = vld [vmem:[%s307_s9 + $0x10] sm:$0xff]   ;;  %s1408_s18 = scalar_lea.vmem %s1462_s7, %s1352_s23 }
  0x11   : > { %v1208_v14 = vld [vmem:[%s1324_s8 + $0x4] ss:$12 sps:$4 sm:$0xff]   ;;  %v1210_v16 = vld [vmem:[%s1324_s8 + $0x8] ss:$12 sps:$4 sm:$0xff]   ;;  %v1211_v17 = vld [vmem:[%s1324_s8 + $0x20] ss:$12 sps:$4 sm:$0xff]  }
  0x12   : > { %594 = vmatprep.mubr.bf16.mxu0 %v1208_v14  ;;  %1160 = vmatprep.mubr.msk.bf16.mxu1 %vm549_vm0, %v1210_v16  ;;  %v1216_v21 = vld [vmem:[%s1324_s8 + $0x38] ss:$12 sps:$4 sm:$0xff]   ;;  %v1206_v24 = vld [vmem:[%s1324_s8] ss:$12 sps:$4 sm:$0xff]   ;;  %v1217_v25 = vld [vmem:[%s1324_s8 + $0x50] ss:$12 sps:$4 sm:$0xff]  }
  0x13   : > { %1111 = vmatpush3.bf16.msra.mxu0 %v1196_v7  ;;  %1161 = vmatmul.mubr.msk.bf16.vlgmr.msra.gmra.mrb[0].mxu1 %vm549_vm0, %v1211_v17  ;;  %v1213_v27 = vld [vmem:[%s1324_s8 + $0x1c] ss:$12 sps:$4 sm:$0xff]   ;;  %v1215_v29 = vld [vmem:[%s1324_s8 + $0x18] ss:$12 sps:$4 sm:$0xff]   ;;  %v1219_v31 = vld [vmem:[%s1324_s8 + $0x34] ss:$12 sps:$4 sm:$0xff]  }
  0x14   : > { %1112 = vmatprep.subr.bf16.mxu0 %v1197_v8  ;;  %1169 = vmatpush3.bf16.msra.mxu1 %v1212_v18  ;;  %v1228_v32 = vld [vmem:[%s307_s9 + $0x18] sm:$0xff]   ;;  %v1226_v35 = vld [vmem:[%s1324_s8 + $0x48] ss:$12 sps:$4 sm:$0xff]  }
  0x15   : > { %1164 = vmatprep.mubr.msk.bf16.mxu1 %vm549_vm0, %v1216_v21  ;;  %1170 = vmatprep.subr.bf16.mxu1 %v1218_v22  ;;  %v1221_v33 = vld [vmem:[%s1324_s8 + $0x30] ss:$12 sps:$4 sm:$0xff]   ;;  %v1224_v34 = vld [vmem:[%s1324_s8 + $0x4c] ss:$12 sps:$4 sm:$0xff]  }
  0x17   : > { %1113 = vmatpush3.bf16.msra.mxu0 %v1198_v10 }
  0x18   : > { %1114 = vmatprep.subr.bf16.mxu0 %v1199_v11  ;;  %1171 = vmatpush3.bf16.msra.mxu1 %v1218_v22 }
  0x1b   : > { %1115 = vmatpush3.bf16.msra.mxu0 %v1200_v12  ;;  %1165 = vmatmul.mubr.msk.bf16.gmra.mrb[4].mxu1 %vm549_vm0, %v1217_v25 }
  0x1c   : > { %1116 = vmatprep.subr.bf16.mxu0 %v1201_v13  ;;  %1172 = vmatprep.mubr.msk.bf16.mxu1 %vm549_vm0, %v1222_v26 }
  0x1f   : > { %1117 = vmatpush3.bf16.msra.mxu0 %v1202_v19 }
  0x20   : > { %1118 = vmatprep.subr.bf16.mxu0 %v1204_v20 }
  0x23   : > { %1119 = vmatpush3.bf16.msra.mxu0 %v1205_v23  ;;  %1173 = vmatmul.mubr.msk.bf16.vlgmr.msra.gmra.mrb[8].mxu1 %vm549_vm0, %v1223_v28 }
  0x24   : > { %1176 = vmatprep.mubr.msk.bf16.mxu1 %vm549_vm0, %v1227_v30 }
  0x26   : > { %595 = vmatmul.mubr.bf16.vlgmr.msra.gmra.mrb[0].mxu0 %v1206_v24 }
  0x27   : > { %602 = vmatprep.mubr.bf16.mxu0 %v1213_v27 }
  0x2b   : > { %1177 = vmatmul.mubr.msk.bf16.gmra.mrb[12].mxu1 %vm549_vm0, %v1228_v32 }
  0x2e   : > { %603 = vmatmul.mubr.bf16.gmra.mrb[4].mxu0 %v1215_v29 }
  0x2f   : > { %610 = vmatprep.mubr.bf16.mxu0 %v1219_v31 }
  0x36   : > { %611 = vmatmul.mubr.bf16.gmra.mrb[8].mxu0 %v1221_v33 }
  0x37   : > { %618 = vmatprep.mubr.bf16.mxu0 %v1224_v34 }
  0x3e   : > { %619 = vmatmul.mubr.bf16.gmra.mrb[12].mxu0 %v1226_v35 }
  0xe6   : > { %v1162_v36 = vpop.f32.mrb[0].mxu1 }
  0xe7   : > { %v661_v37 = vpop.f32.mrb[1].mxu1 }
  0xe8   : > { %v1163_v38 = vpop.f32.mrb[2].mxu1 }
  0xe9   : > { %v664_v39 = vpop.f32.mrb[3].mxu1 }
  0xee   : > { %v1380_v40 = vpop.f32.mrb[4].mxu1 }
  0xef   : > { %v1382_v42 = vpop.f32.mrb[5].mxu1 }
  0xf0   : > { %v1389_v45 = vpop.f32.mrb[6].mxu1 }
  0xf1   : > { %v1391_v48 = vpop.f32.mrb[7].mxu1 }
  0xf6   : > { %v1174_v55 = vpop.f32.mrb[8].mxu1 }
  0xf7   : > { %v847_v59 = vadd.f32 %v1174_v55, %v1067_v52  ;;  %v838_v60 = vpop.f32.mrb[9].mxu1 }
  0xf8   : > { %v839_v62 = vadd.f32 %v1067_v52, %v838_v60  ;;  %v1175_v63 = vpop.f32.mrb[10].mxu1 }
  0xf9   : > { %v1120_v41 = vpop.f32.mrb[0].mxu0  ;;  %v1098_v4 = vpack.c.bf16 %v847_v59, %v847_v59  ;;  %v841_v5 = vpop.f32.mrb[11].mxu1  ;;  %v850_v8 = vadd.f32 %v1175_v63, %v1067_v52 }
  0xfa   : > { %v1121_v43 = vpop.f32.mrb[1].mxu0  ;;  %v1096_v7 = vpack.c.bf16 %v839_v62, %v839_v62  ;;  %v842_v9 = vadd.f32 %v1067_v52, %v841_v5 }
  0xfb   : > { %v1122_v46 = vadd.f32 %v1121_v43, %v1120_v41  ;;  %v1123_v47 = vpop.f32.mrb[2].mxu0  ;;  %903 = vst.msk [vmem:[%s1408_s18 + $0x8] sm:$0xf] %vm732_vm1, %v1098_v4  ;;  %v1099_v13 = vpack.c.bf16 %v850_v8, %v850_v8 }
  0xfc   : > { %v1124_v49 = vpop.f32.mrb[3].mxu0  ;;  %901 = vst.msk [vmem:[%s1408_s18] sm:$0xf] %vm732_vm1, %v1096_v7  ;;  %v1097_v14 = vpack.c.bf16 %v842_v9, %v842_v9 }
  0xfd   : > { %v1125_v50 = vadd.f32 %v1124_v49, %v1123_v47  ;;  %v597_v51 = vadd.f32 %v1122_v46, %v1387_v44  ;;  %904 = vst.msk [vmem:[%s1408_s18 + $0xc] sm:$0xf] %vm732_vm1, %v1099_v13 }
  0xfe   : > { %902 = vst.msk [vmem:[%s1408_s18 + $0x4] sm:$0xf] %vm732_vm1, %v1097_v14  ;;  %v1178_v17 = vpop.f32.mrb[12].mxu1 }
  0xff   : > { %v662_v53 = vadd.f32 %v661_v37, %v597_v51  ;;  %v600_v54 = vadd.f32 %v1125_v50, %v1387_v44  ;;  %v863_v21 = vadd.f32 %v1178_v17, %v1067_v52  ;;  %v854_v22 = vpop.f32.mrb[13].mxu1 }
 0x100   : > { %v855_v24 = vadd.f32 %v1067_v52, %v854_v22  ;;  %v1179_v25 = vpop.f32.mrb[14].mxu1 }
 0x101   : > { %v692_v56 = vmax.f32 %v662_v53, 0.0  ;;  %v665_v57 = vadd.f32 %v664_v39, %v600_v54  ;;  %v1126_v58 = vpop.f32.mrb[4].mxu0  ;;  %v1102_v30 = vpack.c.bf16 %v863_v21, %v863_v21  ;;  %v857_v31 = vpop.f32.mrb[15].mxu1  ;;  %v866_v34 = vadd.f32 %v1179_v25, %v1067_v52 }
 0x102   : > { %v1127_v61 = vpop.f32.mrb[5].mxu0  ;;  %v1100_v33 = vpack.c.bf16 %v855_v24, %v855_v24  ;;  %v858_v35 = vadd.f32 %v1067_v52, %v857_v31 }
 0x103   : > { %v1088_v0 = vpack.c.bf16 %v692_v56, %v692_v56  ;;  %v693_v1 = vmax.f32 %v665_v57, 0.0  ;;  %v1128_v2 = vadd.f32 %v1127_v61, %v1126_v58  ;;  %v1129_v3 = vpop.f32.mrb[6].mxu0  ;;  %907 = vst.msk [vmem:[%s1408_s18 + $0x18] sm:$0xf] %vm732_vm1, %v1102_v30  ;;  %v1103_v39 = vpack.c.bf16 %v866_v34, %v866_v34 }
 0x104   : > { %v1130_v6 = vpop.f32.mrb[7].mxu0  ;;  %905 = vst.msk [vmem:[%s1408_s18 + $0x10] sm:$0xf] %vm732_vm1, %v1100_v33  ;;  %v1101_v41 = vpack.c.bf16 %v858_v35, %v858_v35 }
 0x105   : > { %733 = vst.msk [vmem:[%s1402_s15] sm:$0xf] %vm732_vm1, %v1088_v0  ;;  %v1089_v10 = vpack.c.bf16 %v693_v1, %v693_v1  ;;  %v605_v11 = vadd.f32 %v1128_v2, %v1387_v44  ;;  %v1131_v12 = vadd.f32 %v1130_v6, %v1129_v3  ;;  %908 = vst.msk [vmem:[%s1408_s18 + $0x1c] sm:$0xf] %vm732_vm1, %v1103_v39 }
 0x106   : > { %906 = vst.msk [vmem:[%s1408_s18 + $0x14] sm:$0xf] %vm732_vm1, %v1101_v41 }
 0x107   : > { %734 = vst.msk [vmem:[%s1402_s15 + $0x4] sm:$0xf] %vm732_vm1, %v1089_v10  ;;  %v670_v15 = vadd.f32 %v1162_v36, %v605_v11  ;;  %v608_v16 = vadd.f32 %v1131_v12, %v1387_v44 }
 0x109   : > { %v694_v18 = vmax.f32 %v670_v15, 0.0  ;;  %v673_v19 = vadd.f32 %v1163_v38, %v608_v16  ;;  %v1132_v20 = vpop.f32.mrb[8].mxu0 }
 0x10a   : > { %v1133_v23 = vpop.f32.mrb[9].mxu0 }
 0x10b   : > { %v1090_v26 = vpack.c.bf16 %v694_v18, %v694_v18  ;;  %v695_v27 = vmax.f32 %v673_v19, 0.0  ;;  %v1134_v28 = vadd.f32 %v1133_v23, %v1132_v20  ;;  %v1135_v29 = vpop.f32.mrb[10].mxu0 }
 0x10c   : > { %v1136_v32 = vpop.f32.mrb[11].mxu0 }
 0x10d   : > { %735 = vst.msk [vmem:[%s1402_s15 + $0x8] sm:$0xf] %vm732_vm1, %v1090_v26  ;;  %v1091_v36 = vpack.c.bf16 %v695_v27, %v695_v27  ;;  %v613_v37 = vadd.f32 %v1134_v28, %v1387_v44  ;;  %v1137_v38 = vadd.f32 %v1136_v32, %v1135_v29 }
 0x10f   : > { %736 = vst.msk [vmem:[%s1402_s15 + $0xc] sm:$0xf] %vm732_vm1, %v1091_v36  ;;  %v678_v43 = vadd.f32 %v1382_v42, %v613_v37  ;;  %v616_v46 = vadd.f32 %v1137_v38, %v1387_v44 }
 0x111   : > { %v696_v47 = vmax.f32 %v678_v43, 0.0  ;;  %v681_v49 = vadd.f32 %v1391_v48, %v616_v46  ;;  %v1138_v50 = vpop.f32.mrb[12].mxu0 }
 0x112   : > { %v1139_v51 = vpop.f32.mrb[13].mxu0 }
 0x113   : > { %v1092_v52 = vpack.c.bf16 %v696_v47, %v696_v47  ;;  %v697_v53 = vmax.f32 %v681_v49, 0.0  ;;  %v1140_v54 = vadd.f32 %v1139_v51, %v1138_v50  ;;  %v1141_v55 = vpop.f32.mrb[14].mxu0 }
 0x114   : > { %v1142_v56 = vpop.f32.mrb[15].mxu0 }
 0x115   : > { %737 = vst.msk [vmem:[%s1402_s15 + $0x10] sm:$0xf] %vm732_vm1, %v1092_v52  ;;  %v1093_v42 = vpack.c.bf16 %v697_v53, %v697_v53  ;;  %v621_v57 = vadd.f32 %v1140_v54, %v1387_v44  ;;  %v1143_v58 = vadd.f32 %v1142_v56, %v1141_v55 }
 0x117   : > { %738 = vst.msk [vmem:[%s1402_s15 + $0x14] sm:$0xf] %vm732_vm1, %v1093_v42  ;;  %v686_v59 = vadd.f32 %v1380_v40, %v621_v57  ;;  %v624_v48 = vadd.f32 %v1143_v58, %v1387_v44 }
 0x119   : > { %v698_v60 = vmax.f32 %v686_v59, 0.0  ;;  %v689_v61 = vadd.f32 %v1389_v45, %v624_v48 }
 0x11b   : > { %v1094_v62 = vpack.c.bf16 %v698_v60, %v698_v60  ;;  %v699_v63 = vmax.f32 %v689_v61, 0.0 }
 0x11d   : > { %739 = vst.msk [vmem:[%s1402_s15 + $0x18] sm:$0xf] %vm732_vm1, %v1094_v62  ;;  %v1095_v0 = vpack.c.bf16 %v699_v63, %v699_v63 }
 0x11f   : > { %740 = vst.msk [vmem:[%s1402_s15 + $0x1c] sm:$0xf] %vm732_vm1, %v1095_v0 }
 0x120 PF: > { %s18_s24 = sadd.s32 1, %s1235_s24  }
 0x121   : > { %p15_p4 = scmp.ge.s32.totalorder %s18_s24, 4  }
 0x123   :  { %17 = sbr.rel (!%p15_p4) target bundleno = 1 (0x1), region = 89 }

// kernel: _lambda_.13
= control target key start
LH: loop header
LB: loop body
LE: loop exit
PB: predicated region body
PF: predicated region fallthrough
CT: control target
= control target key end

     0   :  { %13 = vsyncpa [#allocation3], 0  ;;  %s1912_s0 = inlined_call_operand.vmem [shape: bf16[2,10,8,192], index: 0, kind: input, shape index: {}]   ;;  %s1913_s1 = inlined_call_operand.vmem [shape: bf16[3,192,64], index: 1, kind: input, shape index: {}]   ;;  %s1914_s2 = inlined_call_operand.vmem [shape: f32[1,64], index: 2, kind: input, shape index: {}, may-alias: {2,5}]   ;;  %s1915_s3 = inlined_call_operand.vmem [shape: bf16[128,64], index: 3, kind: input, shape index: {}]   ;;  %s1916_s4 = inlined_call_operand.vmem [shape: f32[1,64], index: 4, kind: input, shape index: {}]   ;;  %s1917_s5 = inlined_call_operand.vmem [shape: f32[1,64], index: 5, kind: input, shape index: {}, may-alias: {2,5}]   ;;  %s1918_s6 = inlined_call_operand.vmem [shape: f32[64,10], index: 6, kind: input, shape index: {}]   ;;  %s1919_s7 = inlined_call_operand.vmem [shape: f32[1,10], index: 7, kind: input, shape index: {}]   ;;  %s1920_s8 = inlined_call_operand.hbm [shape: f32[2,1,10], index: 8, kind: output, shape index: {}]  }
   0x1   :  { %15 = vsyncpa [#allocation3 + $0x1], 0  ;;  %s1559_s27 = smov 0   ;;  %s1561_s28 = smov 0  }
   0x2   :  { %s1563_s29 = smov 0   ;;  %s1565_s30 = smov 0  }
   0x3 LB: > { %s1580_s9 = sadd.s32 4294967295, %s1507_s30   ;;  %s1184_s10 = sadd.s32 4294967294, %s1507_s30   ;;  %s1507_s30 = sphi %s1565_s30, %s1926_s30   ;;  %s1503_s29 = sphi %s1563_s29, %s1925_s29   ;;  %s1499_s28 = sphi %s1561_s28, %s1924_s28   ;;  %s1495_s27 = sphi %s1559_s27, %s1923_s27  }
   0x4   : > { %s1584_s11 = sadd.s32 1, %s1507_s30   ;;  %s206_s12 = sadd.s32 1, %s1503_s29 }
   0x5   : > { %s203_s13 = ssub.s32 %s1507_s30, %s1584_s11  ;;  %p216_p0 = scmp.ne.s32.totalorder %s1503_s29, %s1499_s28 }
   0x6   : > { %p204_p1 = scmp.eq.s32.totalorder %s203_s13, 0  ;;  %p217_p2 = scmp.eq.s32.totalorder %s1580_s9, 1 }
   0x7   : > { %p222_p3 = scmp.ne.s32.totalorder %s1499_s28, %s1495_s27  ;;  %p223_p4 = scmp.eq.s32.totalorder %s1184_s10, 1 }
   0x8   : > { %s1595_s14 = scalar_select %p204_p1, %s1503_s29, %s206_s12  }
   0x9   : > { %p1597_p5 = por %p217_p2, %p216_p0  ;;  %p1601_p6 = por %p223_p4, %p222_p3 }
   0xa   : > { %p1187_p7 = scmp.ge.s32.totalorder %s1507_s30, 1  ;;  %p276_p8 = scmp.lt.s32.totalorder %s1507_s30, 3 }
   0xc   : > { %p277_p9 = pnand %p1187_p7, %p276_p8 }
   0xd   : > { %v1391_v0 = vld [vmem:[%s1913_s1 + $0x60] sm:$0xff] (!%p277_p9)   ;;  %v1509_v1 = vmov (!%p277_p9), 0   ;;  %v1393_v3 = vld [vmem:[%s1913_s1 + $0x68] sm:$0xff] (!%p277_p9)   ;;  %v1395_v5 = vld [vmem:[%s1913_s1 + $0x70] sm:$0xff] (!%p277_p9)   ;;  %p314_p10 = scmp.lt.s32.totalorder (!%p277_p9), %s1580_s9, 1  ;;  %vm516_vm0 = vcmask (!%p277_p9), 523264  }
   0xe   : > { %280 = sbr.rel (%p277_p9) target bundleno = 599 (0x257), region = 52  ;;  %529 = vmatprep.subr.bf16.mxu0 (!%p277_p9), %v1509_v1  ;;  %693 = vmatprep.subr.bf16.mxu1 (!%p277_p9), %v1509_v1  ;;  %v1392_v2 = vld [vmem:[%s1913_s1] sm:$0xff] (!%p277_p9)   ;;  %v1394_v4 = vld [vmem:[%s1913_s1 + $0x8] sm:$0xff] (!%p277_p9)   ;;  %v1396_v6 = vld [vmem:[%s1913_s1 + $0x10] sm:$0xff] (!%p277_p9)   ;;  %vm1511_vm1 = vmmov (!%p277_p9), 0   ;;  %s1189_s22 = sshll.u32 (!%p277_p9), %s1580_s9, 3 }
   0xf   : > { %530 = vmatpush1.bf16.msra.mxu0 (!%p277_p9), %v1391_v0  ;;  %694 = vmatpush1.bf16.msra.mxu1 (!%p277_p9), %v1392_v2  ;;  %v1397_v7 = vld [vmem:[%s1913_s1 + $0x78] sm:$0xff] (!%p277_p9)   ;;  %v1399_v9 = vld [vmem:[%s1913_s1 + $0x80] sm:$0xff] (!%p277_p9)   ;;  %v1401_v11 = vld [vmem:[%s1913_s1 + $0x88] sm:$0xff] (!%p277_p9)   ;;  %p320_p11 = scmp.lt.s32.totalorder (!%p277_p9), %s1189_s22, 15  ;;  %s312_s21 = sand.u32 (!%p277_p9), 1, %s1499_s28   ;;  %vm1102_vm2 = vcmask (!%p277_p9), 73728  }
  0x10   : > { %531 = vmatprep.subr.bf16.mxu0 (!%p277_p9), %v1509_v1  ;;  %695 = vmatprep.subr.bf16.mxu1 (!%p277_p9), %v1509_v1  ;;  %v1398_v8 = vld [vmem:[%s1913_s1 + $0x18] sm:$0xff] (!%p277_p9)   ;;  %v1400_v10 = vld [vmem:[%s1913_s1 + $0x20] sm:$0xff] (!%p277_p9)   ;;  %v1402_v12 = vld [vmem:[%s1913_s1 + $0x28] sm:$0xff] (!%p277_p9)   ;;  %s313_s24 = scalar_lea.vmem (!%p277_p9), [#allocation2], %s312_s21  ;;  %s1105_s13 = scalar_lea.sflag (!%p277_p9), [#allocation3], %s312_s21 }
  0x11   : > { %v1403_v13 = vld [vmem:[%s1913_s1 + $0x90] sm:$0xff] (!%p277_p9)   ;;  %v1405_v20 = vld [vmem:[%s1913_s1 + $0x98] sm:$0xff] (!%p277_p9)   ;;  %v1407_v22 = vld [vmem:[%s1913_s1 + $0xa0] sm:$0xff] (!%p277_p9)  }
  0x12   : > { %v1404_v14 = vld [vmem:[%s1913_s1 + $0x30] sm:$0xff] (!%p277_p9)   ;;  %v1406_v21 = vld [vmem:[%s1913_s1 + $0x38] sm:$0xff] (!%p277_p9)   ;;  %v1408_v23 = vld [vmem:[%s1913_s1 + $0x40] sm:$0xff] (!%p277_p9)  }
  0x13   : > { %532 = vmatpush1.bf16.msra.mxu0 (!%p277_p9), %v1393_v3  ;;  %696 = vmatpush1.bf16.msra.mxu1 (!%p277_p9), %v1394_v4  ;;  %v1409_v24 = vld [vmem:[%s1913_s1 + $0xa8] sm:$0xff] (!%p277_p9)   ;;  %v1411_v26 = vld [vmem:[%s1913_s1 + $0xb0] sm:$0xff] (!%p277_p9)   ;;  %v1413_v28 = vld [vmem:[%s1913_s1 + $0xb8] sm:$0xff] (!%p277_p9)   ;;  %v1510_v4 = vmov (!%p277_p9), 0.0|0.0  }
  0x14   : > { %533 = vmatprep.subr.bf16.mxu0 (!%p277_p9), %v1509_v1  ;;  %697 = vmatprep.subr.bf16.mxu1 (!%p277_p9), %v1509_v1  ;;  %v1410_v25 = vld [vmem:[%s1913_s1 + $0x48] sm:$0xff] (!%p277_p9)   ;;  %v1412_v27 = vld [vmem:[%s1913_s1 + $0x50] sm:$0xff] (!%p277_p9)   ;;  %v1414_v29 = vld [vmem:[%s1913_s1 + $0x58] sm:$0xff] (!%p277_p9)  }
  0x15   : > { %s315_s20 = scalar_select %p314_p10, %s1580_s9, 1  ;;  %v1419_v34 = vld [vmem:[%s1913_s1 + $0xc0] sm:$0xff]   ;;  %v1420_v37 = vld [vmem:[%s1913_s1 + $0xc8] sm:$0xff]   ;;  %v1421_v41 = vld [vmem:[%s1913_s1 + $0xd0] sm:$0xff]  }
  0x16   : > { %v1422_v45 = vld [vmem:[%s1913_s1 + $0xd8] sm:$0xff]   ;;  %v1423_v49 = vld [vmem:[%s1913_s1 + $0xe0] sm:$0xff]   ;;  %v1427_v53 = vld [vmem:[%s1913_s1 + $0xe8] sm:$0xff]   ;;  %s1928_s22 = smov (!%p320_p11, %s1189_s22), 15 }
  0x17   : > { %534 = vmatpush1.bf16.msra.mxu0 %v1395_v5  ;;  %698 = vmatpush1.bf16.msra.mxu1 %v1396_v6  ;;  %s1347_s25 = smul.u32 80, %s315_s20  ;;  %v1429_v55 = vld [vmem:[%s1913_s1 + $0xf0] sm:$0xff]   ;;  %v1433_v57 = vld [vmem:[%s1913_s1 + $0xf8] sm:$0xff]   ;;  %v1435_v58 = vld [vmem:[%s1913_s1 + $0x100] sm:$0xff]   ;;  %s1190_s23 = sshll.u32 %s1928_s22, 2 }
  0x18   : > { %535 = vmatprep.subr.bf16.mxu0 %v1509_v1  ;;  %699 = vmatprep.subr.bf16.mxu1 %v1509_v1  ;;  %v1439_v59 = vld [vmem:[%s1913_s1 + $0x108] sm:$0xff]   ;;  %v1441_v60 = vld [vmem:[%s1913_s1 + $0x110] sm:$0xff]   ;;  %v1442_v61 = vld [vmem:[%s1913_s1 + $0x118] sm:$0xff]   ;;  %s323_s26 = scalar_lea.vmem %s1915_s3, %s1190_s23  ;;  %s1261_s23 = sshll.u32 %s1580_s9, 4 }
  0x19   : > { %s1660_s19 = scalar_lea.vmem %s1912_s0, %s1347_s25  ;;  %v1021_v2 = vld [vmem:[%s1918_s6 + $0x8] sm:$0xff]  ;;  %v1022_v5 = vld [vmem:[%s1918_s6 + $0x10] sm:$0xff]  ;;  %v1023_v6 = vld [vmem:[%s1918_s6 + $0x18] sm:$0xff]  ;;  %s1117_s25 = sshll.u32 %s313_s24, 4  ;;  %s1872_s25 = int_to_ptr.vmem [resolvable:$true] %s1117_s25 }
  0x1a   : > { %v327_v15 = vld [vmem:[%s1660_s19 + $0x8] sm:$0xff]  ;;  %v328_v16 = vld [vmem:[%s1660_s19 + $0x10] sm:$0xff]  ;;  %v326_v17 = vld [vmem:[%s1660_s19] sm:$0xff]  ;;  %s1870_s12 = scalar_lea.hbm %s1920_s8, %s1261_s23  ;;  %s1445_s17 = scalar_lea.vmem %s1872_s25, 16 }
  0x1b   : > { %536 = vmatpush1.bf16.msra.mxu0 %v1397_v7  ;;  %700 = vmatpush1.bf16.msra.mxu1 %v1398_v8  ;;  %v1192_v18 = vcombine.high %v327_v15, %v328_v16  ;;  %v1216_v19 = vcombine.high %v326_v17, %v327_v15  ;;  %v1191_v30 = vcombine.low %v327_v15, %v328_v16  ;;  %v329_v31 = vld [vmem:[%s1660_s19 + $0x18] sm:$0xff]  ;;  %v330_v32 = vld [vmem:[%s1660_s19 + $0x20] sm:$0xff]  ;;  %v331_v39 = vld [vmem:[%s1660_s19 + $0x28] sm:$0xff]  ;;  %p1446_p12 = scmp.ne.s32.totalorder %s1872_s25, %s1445_s17  ;;  %s1513_s9 = smov [#allocation2]  }
  0x1c   : > { %537 = vmatprep.subr.bf16.mxu0 %v1509_v1  ;;  %701 = vmatprep.subr.bf16.mxu1 %v1509_v1  ;;  %v1215_v33 = vcombine.low %v326_v17, %v327_v15  ;;  %v1194_v35 = vcombine.high %v329_v31, %v330_v32  ;;  %v1722_v36 = vcombine.high %v328_v16, %v329_v31  ;;  %v332_v40 = vld [vmem:[%s1660_s19 + $0x30] sm:$0xff]  ;;  %v333_v47 = vld [vmem:[%s1660_s19 + $0x38] sm:$0xff]  ;;  %v1754_v48 = vld [vmem:[%s1660_s19 + $0x40] sm:$0xff]  ;;  %s1449_s18 = sshll.u32 %s1513_s9, 4  ;;  %s1450_s18 = int_to_ptr.vmem [resolvable:$false] %s1449_s18 }
  0x1d   : > { %1211 = vmatprep.mubr.msk.bf16.mxu0 %vm516_vm0, %v1192_v18  ;;  %1235 = vmatprep.mubr.msk.bf16.mxu1 %vm516_vm0, %v1216_v19  ;;  %v1193_v38 = vcombine.low %v329_v31, %v330_v32  ;;  %v1737_v42 = vcombine.low %v328_v16, %v329_v31  ;;  %v1196_v43 = vcombine.high %v331_v39, %v332_v40  ;;  %v335_v62 = vld [vmem:[%s1660_s19 + $0x48] sm:$0xff]  ;;  %v1024_v8 = vld [vmem:[%s1918_s6 + $0x20] sm:$0xff]  ;;  %p1447_p13 = pnand %p1446_p12, %p1597_p5  ;;  %s1451_s20 = scalar_lea.vmem %s1450_s18, 32 }
  0x1e   : > { %v1741_v44 = vcombine.high %v330_v32, %v331_v39  ;;  %v1195_v46 = vcombine.low %v331_v39, %v332_v40  ;;  %v1219_v50 = vcombine.low %v330_v32, %v331_v39  ;;  %v1198_v51 = vcombine.high %v333_v47, %v1754_v48  ;;  %p1452_p1 = scmp.lt.s32.totalorder %s1872_s25, %s1450_s18  ;;  %p1453_p2 = scmp.lt.s32.totalorder %s1451_s20, %s1445_s17 }
  0x1f   : > { %538 = vmatpush1.bf16.msra.mxu0 %v1399_v9  ;;  %702 = vmatpush1.bf16.msra.mxu1 %v1400_v10  ;;  %v1222_v52 = vcombine.high %v332_v40, %v333_v47  ;;  %v1197_v54 = vcombine.low %v333_v47, %v1754_v48  ;;  %v1221_v56 = vcombine.low %v332_v40, %v333_v47  ;;  %v1025_v9 = vld [vmem:[%s1918_s6 + $0x28] sm:$0xff]  ;;  %p1448_p0 = pneg %p1447_p13 }
  0x20   : > { %539 = vmatprep.subr.bf16.mxu0 %v1509_v1  ;;  %703 = vmatprep.subr.bf16.mxu1 %v1509_v1  ;;  %v1240_v63 = vcombine.high %v1754_v48, %v335_v62  ;;  %v1239_v0 = vcombine.low %v1754_v48, %v335_v62  ;;  %v1315_v7 = vpack.c.bf16 %v1023_v6, %v1022_v5  ;;  %p1454_p3 = por %p1453_p2, %p1452_p1 }
  0x21   : > { %v1318_v10 = vpack.c.bf16 %v1025_v9, %v1024_v8 }
  0x22   : > { %p1455_p4 = pnand %p1454_p3, %p1448_p0 }
  0x23   : > { %540 = vmatpush1.bf16.msra.mxu0 %v1401_v11  ;;  %704 = vmatpush1.bf16.msra.mxu1 %v1402_v12  ;;  %v1026_v11 = vld [vmem:[%s1918_s6 + $0x30] sm:$0xff]  ;;  %v1027_v12 = vld [vmem:[%s1918_s6 + $0x38] sm:$0xff] }
  0x24   : > { %541 = vmatprep.subr.bf16.mxu0 %v1509_v1  ;;  %705 = vmatprep.subr.bf16.mxu1 %v1509_v1 }
  0x27   : > { %542 = vmatpush1.bf16.msra.mxu0 %v1403_v13  ;;  %706 = vmatpush1.bf16.msra.mxu1 %v1404_v14  ;;  %v1321_v13 = vpack.c.bf16 %v1027_v12, %v1026_v11  ;;  %v1512_v14 = vmov 0.0  }
  0x28   : > { %543 = vmatprep.subr.bf16.mxu0 %v1509_v1  ;;  %707 = vmatprep.subr.bf16.mxu1 %v1509_v1 }
  0x2b   : > { %544 = vmatpush1.bf16.msra.mxu0 %v1405_v20  ;;  %708 = vmatpush1.bf16.msra.mxu1 %v1406_v21 }
  0x2c   : > { %545 = vmatprep.subr.bf16.mxu0 %v1509_v1  ;;  %709 = vmatprep.subr.bf16.mxu1 %v1509_v1 }
  0x2f   : > { %546 = vmatpush1.bf16.msra.mxu0 %v1407_v22  ;;  %710 = vmatpush1.bf16.msra.mxu1 %v1408_v23 }
  0x30   : > { %547 = vmatprep.subr.bf16.mxu0 %v1509_v1  ;;  %711 = vmatprep.subr.bf16.mxu1 %v1509_v1 }
  0x33   : > { %548 = vmatpush1.bf16.msra.mxu0 %v1409_v24  ;;  %712 = vmatpush1.bf16.msra.mxu1 %v1410_v25 }
  0x34   : > { %549 = vmatprep.subr.bf16.mxu0 %v1509_v1  ;;  %713 = vmatprep.subr.bf16.mxu1 %v1509_v1 }
  0x37   : > { %550 = vmatpush1.bf16.msra.mxu0 %v1411_v26  ;;  %714 = vmatpush1.bf16.msra.mxu1 %v1412_v27 }
  0x38   : > { %551 = vmatprep.subr.bf16.mxu0 %v1509_v1  ;;  %715 = vmatprep.subr.bf16.mxu1 %v1509_v1 }
  0x3b   : > { %552 = vmatpush1.bf16.msra.mxu0 %v1413_v28  ;;  %716 = vmatpush1.bf16.msra.mxu1 %v1414_v29 }
  0x3c   : > { %839 = vmatprep.subr.bf16.mxu0 %v1509_v1  ;;  %1323 = vmatprep.subr.bf16.mxu1 %v1509_v1 }
  0x3e   : > { %562 = vmatmul.mubr.bf16.vlgmr.msra.gmra.mrb[0].mxu0 %v1191_v30  ;;  %726 = vmatmul.mubr.bf16.vlgmr.msra.gmra.mrb[0].mxu1 %v1215_v33 }
  0x3f   : > { %840 = vmatpush1.bf16.msra.mxu0 %v1419_v34  ;;  %1335 = vmatpush1.bf16.msra.mxu1 %v1419_v34 }
  0x40   : > { %841 = vmatprep.subr.bf16.mxu0 %v1509_v1  ;;  %1324 = vmatprep.subr.bf16.mxu1 %v1509_v1 }
  0x41   : > { %1212 = vmatprep.mubr.msk.bf16.mxu0 %vm516_vm0, %v1194_v35  ;;  %1236 = vmatprep.mubr.msk.bf16.mxu1 %vm516_vm0, %v1722_v36 }
  0x43   : > { %842 = vmatpush1.bf16.msra.mxu0 %v1420_v37  ;;  %1336 = vmatpush1.bf16.msra.mxu1 %v1420_v37 }
  0x44   : > { %843 = vmatprep.subr.bf16.mxu0 %v1509_v1  ;;  %1325 = vmatprep.subr.bf16.mxu1 %v1509_v1 }
  0x46   : > { %570 = vmatmul.mubr.bf16.gmra.mrb[4].mxu0 %v1193_v38  ;;  %734 = vmatmul.mubr.bf16.gmra.mrb[4].mxu1 %v1737_v42 }
  0x47   : > { %844 = vmatpush1.bf16.msra.mxu0 %v1421_v41  ;;  %1337 = vmatpush1.bf16.msra.mxu1 %v1421_v41 }
  0x48   : > { %845 = vmatprep.subr.bf16.mxu0 %v1509_v1  ;;  %1326 = vmatprep.subr.bf16.mxu1 %v1509_v1 }
  0x49   : > { %1213 = vmatprep.mubr.msk.bf16.mxu0 %vm516_vm0, %v1196_v43  ;;  %1237 = vmatprep.mubr.msk.bf16.mxu1 %vm516_vm0, %v1741_v44 }
  0x4b   : > { %846 = vmatpush1.bf16.msra.mxu0 %v1422_v45  ;;  %1338 = vmatpush1.bf16.msra.mxu1 %v1422_v45 }
  0x4c   : > { %847 = vmatprep.subr.bf16.mxu0 %v1509_v1  ;;  %1327 = vmatprep.subr.bf16.mxu1 %v1509_v1 }
  0x4e   : > { %578 = vmatmul.mubr.bf16.gmra.mrb[8].mxu0 %v1195_v46  ;;  %742 = vmatmul.mubr.bf16.gmra.mrb[8].mxu1 %v1219_v50 }
  0x4f   : > { %848 = vmatpush1.bf16.msra.mxu0 %v1423_v49  ;;  %1339 = vmatpush1.bf16.msra.mxu1 %v1423_v49 }
  0x50   : > { %849 = vmatprep.subr.bf16.mxu0 %v1509_v1  ;;  %1328 = vmatprep.subr.bf16.mxu1 %v1509_v1 }
  0x51   : > { %1214 = vmatprep.mubr.msk.bf16.mxu0 %vm516_vm0, %v1198_v51  ;;  %1238 = vmatprep.mubr.msk.bf16.mxu1 %vm516_vm0, %v1222_v52 }
  0x53   : > { %850 = vmatpush1.bf16.msra.mxu0 %v1427_v53  ;;  %1340 = vmatpush1.bf16.msra.mxu1 %v1427_v53 }
  0x54   : > { %851 = vmatprep.subr.bf16.mxu0 %v1509_v1  ;;  %1329 = vmatprep.subr.bf16.mxu1 %v1509_v1 }
  0x56   : > { %586 = vmatmul.mubr.bf16.gmra.mrb[12].mxu0 %v1197_v54  ;;  %750 = vmatmul.mubr.bf16.gmra.mrb[12].mxu1 %v1221_v56 }
  0x57   : > { %852 = vmatpush1.bf16.msra.mxu0 %v1429_v55  ;;  %1341 = vmatpush1.bf16.msra.mxu1 %v1429_v55  ;;  %v1265_v55 = vld [vmem:[%s323_s26] sm:$0xff]  }
  0x58   : > { %853 = vmatprep.subr.bf16.mxu0 %v1509_v1  ;;  %1330 = vmatprep.subr.bf16.mxu1 %v1509_v1  ;;  %v1267_v5 = vunpack.c.h.bf16 %v1265_v55 }
  0x59   : > { %1253 = vmatprep.mubr.msk.bf16.mxu0 %vm516_vm0, %v1722_v36  ;;  %1255 = vmatprep.mubr.msk.bf16.mxu1 %vm516_vm0, %v1222_v52 }
  0x5b   : > { %854 = vmatpush1.bf16.msra.mxu0 %v1433_v57  ;;  %1342 = vmatpush1.bf16.msra.mxu1 %v1433_v57 }
  0x5c   : > { %855 = vmatprep.subr.bf16.mxu0 %v1509_v1  ;;  %1331 = vmatprep.subr.bf16.mxu1 %v1509_v1 }
  0x5f   : > { %856 = vmatpush1.bf16.msra.mxu0 %v1435_v58  ;;  %1343 = vmatpush1.bf16.msra.mxu1 %v1435_v58  ;;  %v1257_v58 = vld [vmem:[%s1914_s2] ss:$0 sm:$0xff] }
  0x60   : > { %857 = vmatprep.subr.bf16.mxu0 %v1509_v1  ;;  %1332 = vmatprep.subr.bf16.mxu1 %v1509_v1 }
  0x63   : > { %858 = vmatpush1.bf16.msra.mxu0 %v1439_v59  ;;  %1344 = vmatpush1.bf16.msra.mxu1 %v1439_v59 }
  0x64   : > { %859 = vmatprep.subr.bf16.mxu0 %v1509_v1  ;;  %1333 = vmatprep.subr.bf16.mxu1 %v1509_v1 }
  0x67   : > { %860 = vmatpush1.bf16.msra.mxu0 %v1441_v60  ;;  %1345 = vmatpush1.bf16.msra.mxu1 %v1441_v60  ;;  %v1266_v60 = vunpack.c.l.bf16 %v1265_v55 }
  0x68   : > { %861 = vmatprep.subr.bf16.mxu0 %v1509_v1  ;;  %1334 = vmatprep.subr.bf16.mxu1 %v1509_v1  ;;  %v1020_v1 = vld [vmem:[%s1918_s6] sm:$0xff] }
  0x69   : > { %v1312_v3 = vpack.c.bf16 %v1021_v2, %v1020_v1 }
  0x6b   : > { %862 = vmatpush1.bf16.msra.mxu0 %v1442_v61  ;;  %1346 = vmatpush1.bf16.msra.mxu1 %v1442_v61 }
  0x6c   : > { %1311 = vmatprep.subr.bf16.mxu1 %v1510_v4 }
  0x6e   : > { %872 = vmatmul.mubr.bf16.vlgmr.msra.gmra.mrb[16].mxu0 %v1737_v42  ;;  %888 = vmatmul.mubr.bf16.vlgmr.msra.gmra.mrb[16].mxu1 %v1221_v56  ;;  %v1281_v56 = vld [vmem:[%s323_s26 + $0x10] sm:$0xff]  }
  0x6f   : > { %1254 = vmatprep.mubr.msk.bf16.mxu0 %vm516_vm0, %v1741_v44  ;;  %1256 = vmatprep.mubr.msk.bf16.mxu1 %vm516_vm0, %v1240_v63 }
  0x70   : > { %1313 = vmatpush3.bf16.msra.mxu1 %v1312_v3 }
  0x71   : > { %1314 = vmatprep.subr.bf16.mxu1 %v1510_v4 }
  0x74   : > { %1316 = vmatpush3.bf16.msra.mxu1 %v1315_v7 }
  0x75   : > { %1317 = vmatprep.subr.bf16.mxu1 %v1510_v4 }
  0x76   : > { %880 = vmatmul.mubr.bf16.gmra.mrb[20].mxu0 %v1219_v50  ;;  %896 = vmatmul.mubr.bf16.gmra.mrb[20].mxu1 %v1239_v0  ;;  %v1274_v0 = vunpack.c.l.bf16 %v1281_v56 }
  0x77   : > { %1308 = vmatprep.mubr.msk.f32.mxu1 %vm1511_vm1, %v1512_v14  ;;  %v1258_v14 = vld [vmem:[%s1916_s4] ss:$0 sm:$0xff] }
  0x78   : > { %1319 = vmatpush3.bf16.msra.mxu1 %v1318_v10  ;;  %v1275_v10 = vunpack.c.h.bf16 %v1281_v56 }
  0x79   : > { %1320 = vmatprep.subr.bf16.mxu1 %v1510_v4 }
  0x7c   : > { %1322 = vmatpush3.bf16.msra.mxu1 %v1321_v13 }
 0x111   : > { %v563_v15 = vpop.f32.mrb[0].mxu0  ;;  %v727_v16 = vpop.f32.mrb[0].mxu1 }
 0x112   : > { %v565_v17 = vpop.f32.mrb[1].mxu0  ;;  %v728_v18 = vadd.f32 %v727_v16, %v563_v15  ;;  %v729_v19 = vpop.f32.mrb[1].mxu1 }
 0x113   : > { %v566_v20 = vpop.f32.mrb[2].mxu0  ;;  %v730_v21 = vpop.f32.mrb[2].mxu1  ;;  %v1280_v17 = vld [vmem:[%s323_s26 + $0x8] sm:$0xff]  }
 0x114   : > { %v568_v22 = vpop.f32.mrb[3].mxu0  ;;  %v731_v23 = vadd.f32 %v730_v21, %v566_v20  ;;  %v732_v24 = vpop.f32.mrb[3].mxu1  ;;  %v1282_v20 = vld [vmem:[%s323_s26 + $0x18] sm:$0xff]   ;;  %v1259_v21 = vld [vmem:[%s1917_s5] ss:$0 sm:$0xff] }
 0x119   : > { %v571_v25 = vpop.f32.mrb[4].mxu0  ;;  %v735_v27 = vpop.f32.mrb[4].mxu1 }
 0x11a   : > { %v573_v26 = vpop.f32.mrb[5].mxu0  ;;  %v1834_v28 = vadd.f32 %v735_v27, %v571_v25  ;;  %v737_v30 = vpop.f32.mrb[5].mxu1  ;;  %v1270_v27 = vunpack.c.l.bf16 %v1280_v17 }
 0x11b   : > { %v574_v29 = vpop.f32.mrb[6].mxu0  ;;  %v738_v32 = vpop.f32.mrb[6].mxu1 }
 0x11c   : > { %v576_v31 = vpop.f32.mrb[7].mxu0  ;;  %v1836_v33 = vadd.f32 %v738_v32, %v574_v29  ;;  %v740_v34 = vpop.f32.mrb[7].mxu1 }
 0x11d   : > { %v1278_v34 = vunpack.c.l.bf16 %v1282_v20 }
 0x121   : > { %v579_v35 = vpop.f32.mrb[8].mxu0  ;;  %v743_v37 = vpop.f32.mrb[8].mxu1 }
 0x122   : > { %v581_v36 = vpop.f32.mrb[9].mxu0  ;;  %v744_v38 = vadd.f32 %v743_v37, %v579_v35  ;;  %v745_v40 = vpop.f32.mrb[9].mxu1  ;;  %v1271_v37 = vunpack.c.h.bf16 %v1280_v17 }
 0x123   : > { %v582_v39 = vpop.f32.mrb[10].mxu0  ;;  %v746_v42 = vpop.f32.mrb[10].mxu1 }
 0x124   : > { %v584_v41 = vpop.f32.mrb[11].mxu0  ;;  %v747_v43 = vadd.f32 %v746_v42, %v582_v39  ;;  %v748_v44 = vpop.f32.mrb[11].mxu1 }
 0x129   : > { %v587_v45 = vpop.f32.mrb[12].mxu0  ;;  %v751_v47 = vpop.f32.mrb[12].mxu1 }
 0x12a   : > { %v589_v46 = vpop.f32.mrb[13].mxu0  ;;  %v752_v48 = vadd.f32 %v751_v47, %v587_v45  ;;  %v753_v50 = vpop.f32.mrb[13].mxu1 }
 0x12b   : > { %v590_v49 = vpop.f32.mrb[14].mxu0  ;;  %v754_v52 = vpop.f32.mrb[14].mxu1 }
 0x12c   : > { %v592_v51 = vpop.f32.mrb[15].mxu0  ;;  %v755_v53 = vadd.f32 %v754_v52, %v590_v49  ;;  %v756_v54 = vpop.f32.mrb[15].mxu1 }
 0x141   : > { %v873_v57 = vpop.f32.mrb[16].mxu0  ;;  %v889_v61 = vpop.f32.mrb[16].mxu1 }
 0x142   : > { %v904_v59 = vadd.f32 %v873_v57, %v728_v18  ;;  %v875_v62 = vpop.f32.mrb[17].mxu0  ;;  %v908_v63 = vadd.f32 %v889_v61, %v744_v38  ;;  %v891_v1 = vpop.f32.mrb[17].mxu1 }
 0x143   : > { %v876_v2 = vpop.f32.mrb[18].mxu0  ;;  %v892_v6 = vpop.f32.mrb[18].mxu1 }
 0x144   : > { %v919_v3 = vadd.f32 %v1257_v58, %v904_v59  ;;  %v905_v4 = vadd.f32 %v876_v2, %v731_v23  ;;  %v878_v7 = vpop.f32.mrb[19].mxu0  ;;  %v923_v8 = vadd.f32 %v1257_v58, %v908_v63  ;;  %v909_v9 = vadd.f32 %v892_v6, %v747_v43  ;;  %v894_v11 = vpop.f32.mrb[19].mxu1 }
 0x146   : > { %v943_v12 = vadd.f32 %v1266_v60, %v919_v3  ;;  %v920_v13 = vadd.f32 %v1257_v58, %v905_v4  ;;  %v947_v15 = vadd.f32 %v1274_v0, %v923_v8  ;;  %v924_v16 = vadd.f32 %v1257_v58, %v909_v9 }
 0x148   : > { %v951_v18 = vmax.f32 %v943_v12, 0.0  ;;  %v944_v19 = vadd.f32 %v1267_v5, %v920_v13  ;;  %v948_v22 = vadd.f32 %v1275_v10, %v924_v16  ;;  %v955_v31 = vmax.f32 %v947_v15, 0.0 }
 0x149   : > { %v881_v23 = vpop.f32.mrb[20].mxu0  ;;  %v897_v29 = vpop.f32.mrb[20].mxu1 }
 0x14a   : > { %v966_v24 = vmul.f32 %v1258_v14, %v951_v18  ;;  %v952_v25 = vmax.f32 %v944_v19, 0.0  ;;  %v906_v26 = vadd.f32 %v881_v23, %v1834_v28  ;;  %v883_v30 = vpop.f32.mrb[21].mxu0  ;;  %v910_v32 = vadd.f32 %v897_v29, %v752_v48  ;;  %v899_v35 = vpop.f32.mrb[21].mxu1 }
 0x14b   : > { %v884_v36 = vpop.f32.mrb[22].mxu0  ;;  %v900_v42 = vpop.f32.mrb[22].mxu1  ;;  %v956_v44 = vmax.f32 %v948_v22, 0.0  ;;  %v1279_v28 = vunpack.c.h.bf16 %v1282_v20  ;;  %v970_v55 = vmul.f32 %v1258_v14, %v955_v31 }
 0x14c   : > { %v981_v38 = vadd.f32 %v1259_v21, %v966_v24  ;;  %v967_v39 = vmul.f32 %v1258_v14, %v952_v25  ;;  %v921_v40 = vadd.f32 %v1257_v58, %v906_v26  ;;  %v907_v41 = vadd.f32 %v884_v36, %v1836_v33  ;;  %v886_v43 = vpop.f32.mrb[23].mxu0  ;;  %v902_v47 = vpop.f32.mrb[23].mxu1 }
 0x14d   : > { %v925_v45 = vadd.f32 %v1257_v58, %v910_v32  ;;  %v911_v46 = vadd.f32 %v900_v42, %v755_v53  ;;  %v971_v60 = vmul.f32 %v1258_v14, %v956_v44  ;;  %v985_v3 = vadd.f32 %v1259_v21, %v970_v55 }
 0x14e   : > { %v989_v49 = vmax.f32 %v981_v38, 0.0  ;;  %v982_v50 = vadd.f32 %v1259_v21, %v967_v39  ;;  %v945_v51 = vadd.f32 %v1270_v27, %v921_v40  ;;  %v922_v48 = vadd.f32 %v1257_v58, %v907_v41  ;;  %v1028_v38 = vld [vmem:[%s1919_s7] sm:$0x1] }
 0x14f   : > { %v949_v52 = vadd.f32 %v1278_v34, %v925_v45  ;;  %v926_v54 = vadd.f32 %v1257_v58, %v911_v46  ;;  %v986_v58 = vadd.f32 %v1259_v21, %v971_v60  ;;  %v993_v10 = vmax.f32 %v985_v3, 0.0 }
 0x150   : > { %v990_v56 = vmax.f32 %v982_v50, 0.0  ;;  %v953_v57 = vmax.f32 %v945_v51, 0.0  ;;  %v946_v59 = vadd.f32 %v1271_v37, %v922_v48  ;;  %v997_v62 = vsel %vm516_vm0, %v989_v49, 0.0 }
 0x151   : > { %v957_v61 = vmax.f32 %v949_v52, 0.0  ;;  %v950_v33 = vadd.f32 %v1279_v28, %v926_v54  ;;  %v994_v16 = vmax.f32 %v986_v58, 0.0  ;;  %v1004_v20 = vsel %vm516_vm0, %v993_v10, 0.0 }
 0x152   : > { %v998_v63 = vsel %vm516_vm0, %v990_v56, 0.0  ;;  %v968_v53 = vmul.f32 %v1258_v14, %v953_v57  ;;  %v954_v0 = vmax.f32 %v946_v59, 0.0 }
 0x153   : > { %v999_v1 = vadd.f32 %v998_v63, %v997_v62  ;;  %v958_v2 = vmax.f32 %v950_v33, 0.0  ;;  %v972_v5 = vmul.f32 %v1258_v14, %v957_v61  ;;  %v1006_v24 = vsel %vm516_vm0, %v994_v16, 0.0 }
 0x154   : > { %v983_v4 = vadd.f32 %v1259_v21, %v968_v53  ;;  %v969_v6 = vmul.f32 %v1258_v14, %v954_v0 }
 0x155   : > { %v973_v9 = vmul.f32 %v1258_v14, %v958_v2  ;;  %v987_v12 = vadd.f32 %v1259_v21, %v972_v5 }
 0x156   : > { %v991_v7 = vmax.f32 %v983_v4, 0.0  ;;  %v984_v8 = vadd.f32 %v1259_v21, %v969_v6 }
 0x157   : > { %v988_v18 = vadd.f32 %v1259_v21, %v973_v9  ;;  %v995_v22 = vmax.f32 %v987_v12, 0.0 }
 0x158   : > { %v1000_v11 = vsel %vm516_vm0, %v991_v7, 0.0  ;;  %v992_v13 = vmax.f32 %v984_v8, 0.0 }
 0x159   : > { %v1001_v15 = vadd.f32 %v1000_v11, %v999_v1  ;;  %v996_v25 = vmax.f32 %v988_v18, 0.0  ;;  %v1008_v26 = vsel %vm516_vm0, %v995_v22, 0.0 }
 0x15a   : > { %v1002_v17 = vsel %vm516_vm0, %v992_v13, 0.0 }
 0x15b   : > { %v1003_v19 = vadd.f32 %v1002_v17, %v1001_v15  ;;  %v1010_v29 = vsel %vm516_vm0, %v996_v25, 0.0 }
 0x15d   : > { %v1005_v23 = vadd.f32 %v1004_v20, %v1003_v19 }
 0x15f   : > { %v1007_v14 = vadd.f32 %v1006_v24, %v1005_v23 }
 0x161   : > { %v1009_v27 = vadd.f32 %v1008_v26, %v1007_v14 }
 0x163   : > { %v1011_v30 = vadd.f32 %v1010_v29, %v1009_v27 }
 0x165   : > { %v1012_v31 = vrot.slane %v1011_v30, 4 }
 0x167   : > { %v1013_v32 = vadd.f32 %v1012_v31, %v1011_v30 }
 0x169   : > { %v1014_v21 = vrot.slane %v1013_v32, 2 }
 0x16b   : > { %v1015_v34 = vadd.f32 %v1014_v21, %v1013_v32 }
 0x16d   : > { %v1016_v35 = vrot.slane %v1015_v34, 1 }
 0x16f   : > { %v1017_v36 = vadd.f32 %v1016_v35, %v1015_v34 }
 0x171   : > { %v1019_v37 = vmul.f32 0.015625, %v1017_v36 }
 0x173   : > { %1309 = vmatmul.mubr.msk.f32.vlgmr.msra.gmra.mrb[24].mxu1 %vm516_vm0, %v1019_v37 }
 0x246   : > { %v1098_v39 = vpop.f32.mrb[24].mxu1 }
 0x247   : > { %v1099_v40 = vadd.f32 %v1098_v39, %v1028_v38  ;;  %v1310_v41 = vpop.f32.mrb[25].mxu1 }
 0x249   : > { %1103 = vst.msk [vmem:[%s313_s24] sm:$0x1] %vm1102_vm2, %v1099_v40 }
 0x24a   : > { %1458 = shalt.err (!%p1455_p4)
}
 0x24b   : > { %s1459_s21 = scalar_lea.hbm %s1870_s12, 16  ;;  %s1463_s23 = scalar_lea.hbm %s1920_s8, 32 }
 0x24c   : > { %p1460_p7 = scmp.ne.s32.totalorder %s1870_s12, %s1459_s21  ;;  %p1464_p10 = scmp.lt.u32.totalorder %s1870_s12, %s1920_s8 }
 0x24d   : > { %p1465_p11 = scmp.lt.u32.totalorder %s1463_s23, %s1459_s21  ;;  %p1467_p13 = scmp.lt.u32.totalorder %s1459_s21, %s1870_s12 }
 0x24e   : > { %p1461_p8 = pnand %p1460_p7, %p1597_p5 }
 0x24f   : > { %p1466_p12 = por %p1465_p11, %p1464_p10 }
 0x250   : > { %p1462_p9 = pneg %p1461_p8 }
 0x251   : > { %p1468_p0 = por %p1467_p13, %p1466_p12 }
 0x253   : > { %p1469_p1 = pnand %p1468_p0, %p1462_p9 }
 0x255   : > { %1472 = shalt.err (!%p1469_p1)
}
 0x256   : > { %1348 = dma.vmem_to_hbm [thread:$0]  (%p1597_p5), %s1872_s25, 16, %s1870_s12, %s1105_s13  }
 0x257 PF: > { %p1354_p2 = scmp.ge.s32.totalorder %s1507_s30, 2  ;;  %s1129_s10 = sand.u32 1, %s1495_s27  }
 0x258   : > { %s1130_s17 = scalar_lea.sflag [#allocation3], %s1129_s10 }
 0x259   : > { %p1351_p3 = pnand %p1354_p2, %p1601_p6 }
 0x25b   : > { %1490 = dma.done.wait (!%p1351_p3), %s1130_s17, 16  }
 0x25c   : > { %1492 = vsyncadd (!%p1351_p3), %s1130_s17, 4294967280  ;;  %p18_p4 = scmp.ge.s32.totalorder %s1584_s11, 4   ;;  %s1923_s27 = smov %s1499_s28 }
 0x25d   : > { %s1924_s28 = smov %s1503_s29  ;;  %s1925_s29 = smov %s1595_s14 }
 0x25e   : > { %s1926_s30 = smov %s1584_s11  ;;  %20 = sbr.rel (!%p18_p4) target bundleno = 3 (0x3), region = 90 }
 0x265   :  { %1134 = vsyncpa [#allocation3], 1 }
 0x266   :  { %1136 = vsyncpa [#allocation3 + $0x1], 1 }

</bundles_post_ra>
